<compile_context>
chip_gen: v6e
topology: v6e:2x2x1
jax: 0.10.0
libtpu: 0.0.40
codegen_flags: <defaults>
</compile_context>

<pallas_src>
import functools

import jax
import jax.numpy as jnp
import numpy as np
from jax.experimental import pallas as pl
from jax.experimental.pallas import tpu as pltpu

_HALO = 8  # left halo width in the padded scratches (keeps all stores 8-aligned)


# ----------------------------------------------------------------------------
# In-kernel helpers
# ----------------------------------------------------------------------------
def _zero_halo(ref, h, w):
    """Zero ONLY the halo border of a (h+2, w+2*_HALO, c) padded scratch.

    The interior [1:h+1, _HALO:_HALO+w, :] is fully overwritten every grid
    step, so it never needs clearing (perf-review item #1).
    """
    c = ref.shape[-1]
    zrow = jnp.zeros((1, w + 2 * _HALO, c), ref.dtype)
    ref[0:1, :, :] = zrow                                   # top halo row
    ref[h + 1:h + 2, :, :] = zrow                           # bottom halo row
    zcol = jnp.zeros((h, _HALO, c), ref.dtype)
    ref[1:h + 1, 0:_HALO, :] = zcol                         # left halo (incl. col 7)
    ref[1:h + 1, w + _HALO:w + 2 * _HALO, :] = zcol         # right halo (incl. col w+8)


def _conv3x3(src_ref, w_ref, h, w, cin):
    """3x3 / stride 1 / pad 1 conv over the padded image in `src_ref`.

    Nine accumulated MXU matmuls (one per tap); each tap is a direct VMEM
    window read — no im2col patch matrix is materialized (review items #2/#3).

    src_ref : (h+2, w+2*_HALO, cin) bf16, image at [1:h+1, _HALO:_HALO+w, :]
    w_ref   : (3, 3, cin, cout) bf16, tap (dy, dx) weight = w_ref[dy, dx]
    returns : (h*w, cout) float32, WITHOUT bias.
    """
    acc = None
    for dy in range(3):
        for dx in range(3):
            x0 = _HALO - 1 + dx
            slab = src_ref[dy:dy + h, x0:x0 + w, :]          # (h, w, cin) bf16
            tap = jnp.dot(slab.reshape(h * w, cin), w_ref[dy, dx, :, :],
                          preferred_element_type=jnp.float32)
            acc = tap if acc is None else acc + tap
    return acc


def _pool_sum2x2(v, hs_ref, ho, wo, w):
    """Sum over 2x2 windows of the row-major (h*w, c) matrix `v` (no 1/4 scale).

    H-pool is a free leading-dim reshape (row pairs are w apart); W-pool uses
    stride-2 sublane reads from the small `hs_ref` scratch (verified pattern).
    """
    c = v.shape[-1]
    v4 = v.reshape(ho, 2, w, c)
    hs_ref[...] = (v4[:, 0, :, :] + v4[:, 1, :, :]).reshape(ho * w, c)
    return (hs_ref[pl.ds(0, ho * wo, stride=2), :] +
            hs_ref[pl.ds(1, ho * wo, stride=2), :])


# ----------------------------------------------------------------------------
# Fused kernel: relu -> conv0 -> relu -> conv1 -> (pool) -> + residual
# ----------------------------------------------------------------------------
def _block_kernel(*refs, downsample, has_conv_res):
    if has_conv_res:
        (x_ref, w0_ref, b0_ref, w1_ref, b1_ref, wres_ref, bres_ref,
         o_ref, *scratch) = refs
    else:
        x_ref, w0_ref, b0_ref, w1_ref, b1_ref, o_ref, *scratch = refs
        wres_ref = bres_ref = None
    if downsample:
        xp_ref, t0_ref, hsm_ref, hsr_ref = scratch
    else:
        xp_ref, t0_ref = scratch

    _, h, w, cin = x_ref.shape
    _, ho, wo, cout = o_ref.shape

    # ---- main path: relu -> conv0 (+b0) -> relu -> conv1 --------------------
    _zero_halo(xp_ref, h, w)
    xp_ref[1:h + 1, _HALO:_HALO + w, :] = (
        jnp.maximum(x_ref[0], 0.0).astype(xp_ref.dtype))           # bf16 operand
    y0 = _conv3x3(xp_ref, w0_ref, h, w, cin) + b0_ref[...]         # (h*w, cout) f32

    _zero_halo(t0_ref, h, w)
    t0_ref[1:h + 1, _HALO:_HALO + w, :] = (
        jnp.maximum(y0, 0.0).reshape(h, w, cout).astype(t0_ref.dtype))
    # w1 was pre-scaled by 1/4 at init when downsampling; bias b1 is added later.
    y1 = _conv3x3(t0_ref, w1_ref, h, w, cout)                      # (h*w, cout) f32

    if downsample:
        pooled = _pool_sum2x2(y1, hsm_ref, ho, wo, w)              # (ho*wo, cout)
        # ---- residual: pool x FIRST, then 1x1 conv (w_res pre-scaled by 1/4) -
        px = _pool_sum2x2(x_ref[0].reshape(h * w, cin), hsr_ref, ho, wo, w)
        res = jnp.dot(px.astype(wres_ref.dtype), wres_ref[...],
                      preferred_element_type=jnp.float32) + bres_ref[...]
        out = pooled + b1_ref[...] + res
    else:
        if has_conv_res:
            xm = x_ref[0].reshape(h * w, cin)
            res = jnp.dot(xm.astype(wres_ref.dtype), wres_ref[...],
                          preferred_element_type=jnp.float32) + bres_ref[...]
        else:
            res = x_ref[0].reshape(h * w, cin)                     # identity (cin == cout)
        out = y1 + b1_ref[...] + res

    o_ref[0] = out.reshape(ho, wo, cout).astype(o_ref.dtype)


# ----------------------------------------------------------------------------
# pallas_call wrapper (grid over batch; one image per grid step)
# ----------------------------------------------------------------------------
def _fused_block(x_nhwc, w0, b0, w1, b1, wres, bres, *, downsample, has_conv_res):
    n, h, w, cin = x_nhwc.shape
    cout = w0.shape[-1]
    assert w % 8 == 0, "kernel assumes W is a multiple of 8 (sublane tiling)"
    if downsample:
        assert h % 2 == 0 and w % 16 == 0, (
            "downsample path assumes even H and W a multiple of 16")
    ho, wo = (h // 2, w // 2) if downsample else (h, w)
    out_dtype = x_nhwc.dtype

    kernel = functools.partial(_block_kernel, downsample=downsample,
                               has_conv_res=has_conv_res)

    in_specs = [
        pl.BlockSpec((1, h, w, cin), lambda i: (i, 0, 0, 0)),       # x
        pl.BlockSpec((3, 3, cin, cout), lambda i: (0, 0, 0, 0)),    # w0 taps (bf16)
        pl.BlockSpec((1, cout), lambda i: (0, 0)),                  # b0
        pl.BlockSpec((3, 3, cout, cout), lambda i: (0, 0, 0, 0)),   # w1 taps (bf16)
        pl.BlockSpec((1, cout), lambda i: (0, 0)),                  # b1
    ]
    args = [x_nhwc, w0, b0, w1, b1]
    if has_conv_res:
        in_specs += [pl.BlockSpec((cin, cout), lambda i: (0, 0)),   # w_res (1x1, bf16)
                     pl.BlockSpec((1, cout), lambda i: (0, 0))]     # b_res
        args += [wres, bres]

    wp = w + 2 * _HALO
    scratch_shapes = [
        pltpu.VMEM((h + 2, wp, cin), jnp.bfloat16),    # padded relu(x)      (bf16)
        pltpu.VMEM((h + 2, wp, cout), jnp.bfloat16),   # padded relu(conv0)  (bf16)
    ]
    if downsample:
        scratch_shapes += [pltpu.VMEM((ho * w, cout), jnp.float32),  # H-pooled main
                           pltpu.VMEM((ho * w, cin), jnp.float32)]   # H-pooled x

    # ---- VMEM budget from the actual scratch + double-buffered block sizes --
    itemsize = x_nhwc.dtype.itemsize
    scratch_bytes = ((h + 2) * wp * (cin + cout) * 2
                     + (ho * w * (cin + cout) * 4 if downsample else 0))
    io_bytes = (h * w * cin + ho * wo * cout) * itemsize
    wgt_bytes = (9 * cin * cout + 9 * cout * cout + cin * cout) * 2 + 3 * cout * 4
    need = scratch_bytes + 2 * (io_bytes + wgt_bytes) + (8 << 20)   # + headroom
    try:
        cap = int(pltpu.get_tpu_info().vmem_capacity_bytes) * 7 // 8
    except Exception:  # pragma: no cover - conservative fallback (v7x: 64 MiB/TC)
        cap = 56 << 20
    vmem_limit = int(min(max(need, 32 << 20), cap))

    flops = 2 * n * (h * w * 9 * (cin + cout) * cout
                     + (ho * wo * cin * cout if has_conv_res else 0))
    bytes_accessed = (x_nhwc.size * itemsize + n * ho * wo * cout * itemsize
                      + wgt_bytes)
    cost = pl.CostEstimate(flops=int(flops), transcendentals=0,
                           bytes_accessed=int(bytes_accessed))

    return pl.pallas_call(
        kernel,
        out_shape=jax.ShapeDtypeStruct((n, ho, wo, cout), out_dtype),
        grid=(n,),
        in_specs=in_specs,
        out_specs=pl.BlockSpec((1, ho, wo, cout), lambda i: (i, 0, 0, 0)),
        scratch_shapes=scratch_shapes,
        compiler_params=pltpu.CompilerParams(
            dimension_semantics=("parallel",),
            vmem_limit_bytes=vmem_limit),
        cost_estimate=cost,
    )(*args)


# ----------------------------------------------------------------------------
# Module
# ----------------------------------------------------------------------------
def _init_conv(key, cout, cin, kh, kw):
    # Deterministic PyTorch-style uniform(-1/sqrt(fan_in), 1/sqrt(fan_in)).
    fan_in = cin * kh * kw
    bound = 1.0 / float(fan_in) ** 0.5
    k_w, k_b = jax.random.split(key)
    w = jax.random.uniform(k_w, (cout, cin, kh, kw), jnp.float32, -bound, bound)
    b = jax.random.uniform(k_b, (cout,), jnp.float32, -bound, bound)
    return w, b


class BasicBlockDiscriminatorPallas:
    """Pallas re-implementation of BasicBlockDiscriminator (ReLU activation)."""

    def __init__(self, in_channels, out_channels, kernel_size=3, stride=1,
                 padding=1, downsample=True, *, key):
        assert kernel_size == 3 and stride == 1 and padding == 1, (
            "only the module defaults (3x3 conv, stride 1, pad 1) are implemented")
        self.in_channels = in_channels
        self.out_channels = out_channels
        self.downsample = downsample
        self.has_conv_res = downsample or (in_channels != out_channels)

        k_res, k0, k1 = jax.random.split(key, 3)
        if self.has_conv_res:
            self.w_res, self.b_res = _init_conv(k_res, out_channels, in_channels, 1, 1)
        self.w0, self.b0 = _init_conv(k0, out_channels, in_channels, 3, 3)
        self.w1, self.b1 = _init_conv(k1, out_channels, out_channels, 3, 3)

        # Kernel-side layouts, hoisted out of the forward pass:
        #   OIHW -> (ky, kx, ci, co) per-tap weights, cast to bf16 (MXU operands).
        #   The 0.25 avg-pool scale is folded into w1 / w_res when downsampling
        #   (biases are added AFTER the pool in the kernel, so they stay as-is).
        pool_scale = 0.25 if downsample else 1.0
        self.w0_taps = jnp.transpose(self.w0, (2, 3, 1, 0)).astype(jnp.bfloat16)
        self.w1_taps = (jnp.transpose(self.w1, (2, 3, 1, 0)) * pool_scale
                        ).astype(jnp.bfloat16)
        self.b0_row = self.b0.reshape(1, -1)
        self.b1_row = self.b1.reshape(1, -1)
        if self.has_conv_res:
            self.wres_mat = (self.w_res.reshape(out_channels, in_channels).T
                             * pool_scale).astype(jnp.bfloat16)
            self.bres_row = self.b_res.reshape(1, -1)
        else:
            self.wres_mat = None
            self.bres_row = None

    def __call__(self, x_nchw):
        x = jnp.transpose(x_nchw, (0, 2, 3, 1))                      # NCHW -> NHWC
        y = _fused_block(x, self.w0_taps, self.b0_row, self.w1_taps, self.b1_row,
                         self.wres_mat, self.bres_row,
                         downsample=self.downsample,
                         has_conv_res=self.has_conv_res)
        return jnp.transpose(y, (0, 3, 1, 2))                        # NHWC -> NCHW

    # Pure-JAX reference of the exact PyTorch forward (f32, for correctness check).
    def reference(self, x_nchw):
        def conv(x, w, b, pad):
            y = jax.lax.conv_general_dilated(
                x, w, window_strides=(1, 1),
                padding=[(pad, pad), (pad, pad)],
                dimension_numbers=("NCHW", "OIHW", "NCHW"))
            return y + b[None, :, None, None]

        def avgpool2(x):
            n, c, h, w = x.shape
            return x.reshape(n, c, h // 2, 2, w // 2, 2).mean(axis=(3, 5))

        residual = x_nchw
        if self.has_conv_res:
            residual = conv(residual, self.w_res, self.b_res, 0)
        if self.downsample:
            residual = avgpool2(residual)
        out = jax.nn.relu(x_nchw)
        out = conv(out, self.w0, self.b0, 1)
        out = jax.nn.relu(out)
        out = conv(out, self.w1, self.b1, 1)
        if self.downsample:
            out = avgpool2(out)
        return out + residual


# ----------------------------------------------------------------------------
if __name__ == "__main__":
    key = jax.random.PRNGKey(0)
    k_x, k_x2, k_p, k_p2 = jax.random.split(key, 4)

    # Case 1: module defaults — downsample block with a 1x1-conv residual.
    N, Cin, H, W = 2, 4, 16, 16
    Cout = 8
    x = jax.random.normal(k_x, (N, Cin, H, W), jnp.float32)        # NCHW, like PyTorch
    block = BasicBlockDiscriminatorPallas(Cin, Cout, downsample=True, key=k_p)
    y = jax.block_until_ready(block(x))
    assert y.shape == (N, Cout, H // 2, W // 2)
    y_ref = jax.block_until_ready(block.reference(x))
    # bf16 MXU operands vs. f32 reference -> relaxed tolerance.
    np.testing.assert_allclose(np.asarray(y), np.asarray(y_ref), rtol=2e-2, atol=2e-2)

    # Case 2: no downsample, identity residual (in == out).
    block2 = BasicBlockDiscriminatorPallas(Cout, Cout, downsample=False, key=k_p2)
    x2 = jax.random.normal(k_x2, (N, Cout, H, W), jnp.float32)
    y2 = jax.block_until_ready(block2(x2))
    assert y2.shape == (N, Cout, H, W)
    y2_ref = jax.block_until_ready(block2.reference(x2))
    np.testing.assert_allclose(np.asarray(y2), np.asarray(y2_ref), rtol=2e-2, atol=2e-2)

    print("KERNEL_OK")
</pallas_src>

<mosaic_0001>
module attributes {stable_mosaic.version = 11 : i64} {
  func.func @_block_kernel(%arg0: i32, %arg1: memref<1x16x16x4xf32, #tpu.memory_space<vmem>>, %arg2: memref<3x3x4x8xbf16, #tpu.memory_space<vmem>>, %arg3: memref<1x8xf32, #tpu.memory_space<vmem>>, %arg4: memref<3x3x8x8xbf16, #tpu.memory_space<vmem>>, %arg5: memref<1x8xf32, #tpu.memory_space<vmem>>, %arg6: memref<4x8xbf16, #tpu.memory_space<vmem>>, %arg7: memref<1x8xf32, #tpu.memory_space<vmem>>, %arg8: memref<1x8x8x8xf32, #tpu.memory_space<vmem>>, %arg9: memref<18x32x4xbf16, #tpu.memory_space<vmem>>, %arg10: memref<18x32x8xbf16, #tpu.memory_space<vmem>>, %arg11: memref<128x8xf32, #tpu.memory_space<vmem>>, %arg12: memref<128x4xf32, #tpu.memory_space<vmem>>) attributes {dimension_semantics = [#tpu.dimension_semantics<parallel>], iteration_bounds = array<i64: 2>, scalar_prefetch = 0 : i64, scratch_operands = 4 : i64, tpu.core_type = #tpu.core_type<tc>, window_params = [{transform_indices = @transform_0, window_bounds = array<i64: 1, 16, 16, 4>}, {pipeline_mode = #tpu.pipeline_mode<synchronous>, transform_indices = @transform_1, window_bounds = array<i64: 3, 3, 4, 8>}, {pipeline_mode = #tpu.pipeline_mode<synchronous>, transform_indices = @transform_2, window_bounds = array<i64: 1, 8>}, {pipeline_mode = #tpu.pipeline_mode<synchronous>, transform_indices = @transform_3, window_bounds = array<i64: 3, 3, 8, 8>}, {pipeline_mode = #tpu.pipeline_mode<synchronous>, transform_indices = @transform_4, window_bounds = array<i64: 1, 8>}, {pipeline_mode = #tpu.pipeline_mode<synchronous>, transform_indices = @transform_5, window_bounds = array<i64: 4, 8>}, {pipeline_mode = #tpu.pipeline_mode<synchronous>, transform_indices = @transform_6, window_bounds = array<i64: 1, 8>}, {transform_indices = @transform_7, window_bounds = array<i64: 1, 8, 8, 8>}]} {
    %cst = arith.constant 0.000000e+00 : bf16
    %0 = vector.broadcast %cst : bf16 to vector<1x32x4xbf16>
    %c0 = arith.constant 0 : index
    %c0_0 = arith.constant 0 : index
    %c0_1 = arith.constant 0 : index
    %1 = vector.load %arg9[%c0, %c0_0, %c0_1] : memref<18x32x4xbf16, #tpu.memory_space<vmem>>, vector<1x32x4xbf16>
    tpu.vector_store %arg9[%c0, %c0_0, %c0_1], %0 {strides = array<i32>} : memref<18x32x4xbf16, #tpu.memory_space<vmem>>, vector<1x32x4xbf16>,
    %c17 = arith.constant 17 : index
    %c0_2 = arith.constant 0 : index
    %c0_3 = arith.constant 0 : index
    %2 = vector.load %arg9[%c17, %c0_2, %c0_3] : memref<18x32x4xbf16, #tpu.memory_space<vmem>>, vector<1x32x4xbf16>
    tpu.vector_store %arg9[%c17, %c0_2, %c0_3], %0 {strides = array<i32>} : memref<18x32x4xbf16, #tpu.memory_space<vmem>>, vector<1x32x4xbf16>,
    %cst_4 = arith.constant 0.000000e+00 : bf16
    %3 = vector.broadcast %cst_4 : bf16 to vector<16x8x4xbf16>
    %c1 = arith.constant 1 : index
    %c0_5 = arith.constant 0 : index
    %c0_6 = arith.constant 0 : index
    %4 = vector.load %arg9[%c1, %c0_5, %c0_6] : memref<18x32x4xbf16, #tpu.memory_space<vmem>>, vector<16x8x4xbf16>
    tpu.vector_store %arg9[%c1, %c0_5, %c0_6], %3 {strides = array<i32>} : memref<18x32x4xbf16, #tpu.memory_space<vmem>>, vector<16x8x4xbf16>,
    %c1_7 = arith.constant 1 : index
    %c24 = arith.constant 24 : index
    %c0_8 = arith.constant 0 : index
    %5 = vector.load %arg9[%c1_7, %c24, %c0_8] : memref<18x32x4xbf16, #tpu.memory_space<vmem>>, vector<16x8x4xbf16>
    tpu.vector_store %arg9[%c1_7, %c24, %c0_8], %3 {strides = array<i32>} : memref<18x32x4xbf16, #tpu.memory_space<vmem>>, vector<16x8x4xbf16>,
    %c0_9 = arith.constant 0 : index
    %c0_10 = arith.constant 0 : index
    %c0_11 = arith.constant 0 : index
    %c0_12 = arith.constant 0 : index
    %6 = vector.load %arg1[%c0_9, %c0_10, %c0_11, %c0_12] : memref<1x16x16x4xf32, #tpu.memory_space<vmem>>, vector<1x16x16x4xf32>
    %7 = vector.shape_cast %6 : vector<1x16x16x4xf32> to vector<16x16x4xf32>
    %cst_13 = arith.constant 0.000000e+00 : f32
    %8 = vector.broadcast %cst_13 : f32 to vector<16x16x4xf32>
    %9 = arith.maximumf %7, %8 : vector<16x16x4xf32>
    %10 = arith.truncf %9 : vector<16x16x4xf32> to vector<16x16x4xbf16>
    %c1_14 = arith.constant 1 : index
    %c8 = arith.constant 8 : index
    %c0_15 = arith.constant 0 : index
    %11 = vector.load %arg9[%c1_14, %c8, %c0_15] : memref<18x32x4xbf16, #tpu.memory_space<vmem>>, vector<16x16x4xbf16>
    tpu.vector_store %arg9[%c1_14, %c8, %c0_15], %10 {strides = array<i32>} : memref<18x32x4xbf16, #tpu.memory_space<vmem>>, vector<16x16x4xbf16>,
    %c0_16 = arith.constant 0 : index
    %c7 = arith.constant 7 : index
    %c0_17 = arith.constant 0 : index
    %12 = vector.load %arg9[%c0_16, %c7, %c0_17] : memref<18x32x4xbf16, #tpu.memory_space<vmem>>, vector<16x16x4xbf16>
    %13 = vector.shape_cast %12 : vector<16x16x4xbf16> to vector<256x4xbf16>
    %c0_18 = arith.constant 0 : index
    %c0_19 = arith.constant 0 : index
    %c0_20 = arith.constant 0 : index
    %c0_21 = arith.constant 0 : index
    %14 = vector.load %arg2[%c0_18, %c0_19, %c0_20, %c0_21] : memref<3x3x4x8xbf16, #tpu.memory_space<vmem>>, vector<1x1x4x8xbf16>
    %15 = vector.shape_cast %14 : vector<1x1x4x8xbf16> to vector<4x8xbf16>
    %cst_22 = arith.constant dense<0.000000e+00> : vector<256x8xf32>
    %16 = tpu.matmul %13, %15, %cst_22 {dimension_numbers = #tpu.dot_dimension_numbers<[1], [0], [0], [1], [0, 0, 1, 1], [], []>} : vector<256x4xbf16>, vector<4x8xbf16>, vector<256x8xf32> -> vector<256x8xf32>
    %c0_23 = arith.constant 0 : index
    %c8_24 = arith.constant 8 : index
    %c0_25 = arith.constant 0 : index
    %17 = vector.load %arg9[%c0_23, %c8_24, %c0_25] : memref<18x32x4xbf16, #tpu.memory_space<vmem>>, vector<16x16x4xbf16>
    %18 = vector.shape_cast %17 : vector<16x16x4xbf16> to vector<256x4xbf16>
    %c0_26 = arith.constant 0 : index
    %c1_27 = arith.constant 1 : index
    %c0_28 = arith.constant 0 : index
    %c0_29 = arith.constant 0 : index
    %19 = vector.load %arg2[%c0_26, %c1_27, %c0_28, %c0_29] : memref<3x3x4x8xbf16, #tpu.memory_space<vmem>>, vector<1x1x4x8xbf16>
    %20 = vector.shape_cast %19 : vector<1x1x4x8xbf16> to vector<4x8xbf16>
    %cst_30 = arith.constant dense<0.000000e+00> : vector<256x8xf32>
    %21 = tpu.matmul %18, %20, %cst_30 {dimension_numbers = #tpu.dot_dimension_numbers<[1], [0], [0], [1], [0, 0, 1, 1], [], []>} : vector<256x4xbf16>, vector<4x8xbf16>, vector<256x8xf32> -> vector<256x8xf32>
    %22 = arith.addf %16, %21 : vector<256x8xf32>
    %c0_31 = arith.constant 0 : index
    %c9 = arith.constant 9 : index
    %c0_32 = arith.constant 0 : index
    %23 = vector.load %arg9[%c0_31, %c9, %c0_32] : memref<18x32x4xbf16, #tpu.memory_space<vmem>>, vector<16x16x4xbf16>
    %24 = vector.shape_cast %23 : vector<16x16x4xbf16> to vector<256x4xbf16>
    %c0_33 = arith.constant 0 : index
    %c2 = arith.constant 2 : index
    %c0_34 = arith.constant 0 : index
    %c0_35 = arith.constant 0 : index
    %25 = vector.load %arg2[%c0_33, %c2, %c0_34, %c0_35] : memref<3x3x4x8xbf16, #tpu.memory_space<vmem>>, vector<1x1x4x8xbf16>
    %26 = vector.shape_cast %25 : vector<1x1x4x8xbf16> to vector<4x8xbf16>
    %cst_36 = arith.constant dense<0.000000e+00> : vector<256x8xf32>
    %27 = tpu.matmul %24, %26, %cst_36 {dimension_numbers = #tpu.dot_dimension_numbers<[1], [0], [0], [1], [0, 0, 1, 1], [], []>} : vector<256x4xbf16>, vector<4x8xbf16>, vector<256x8xf32> -> vector<256x8xf32>
    %28 = arith.addf %22, %27 : vector<256x8xf32>
    %c1_37 = arith.constant 1 : index
    %c7_38 = arith.constant 7 : index
    %c0_39 = arith.constant 0 : index
    %29 = vector.load %arg9[%c1_37, %c7_38, %c0_39] : memref<18x32x4xbf16, #tpu.memory_space<vmem>>, vector<16x16x4xbf16>
    %30 = vector.shape_cast %29 : vector<16x16x4xbf16> to vector<256x4xbf16>
    %c1_40 = arith.constant 1 : index
    %c0_41 = arith.constant 0 : index
    %c0_42 = arith.constant 0 : index
    %c0_43 = arith.constant 0 : index
    %31 = vector.load %arg2[%c1_40, %c0_41, %c0_42, %c0_43] : memref<3x3x4x8xbf16, #tpu.memory_space<vmem>>, vector<1x1x4x8xbf16>
    %32 = vector.shape_cast %31 : vector<1x1x4x8xbf16> to vector<4x8xbf16>
    %cst_44 = arith.constant dense<0.000000e+00> : vector<256x8xf32>
    %33 = tpu.matmul %30, %32, %cst_44 {dimension_numbers = #tpu.dot_dimension_numbers<[1], [0], [0], [1], [0, 0, 1, 1], [], []>} : vector<256x4xbf16>, vector<4x8xbf16>, vector<256x8xf32> -> vector<256x8xf32>
    %34 = arith.addf %28, %33 : vector<256x8xf32>
    %c1_45 = arith.constant 1 : index
    %c8_46 = arith.constant 8 : index
    %c0_47 = arith.constant 0 : index
    %35 = vector.load %arg9[%c1_45, %c8_46, %c0_47] : memref<18x32x4xbf16, #tpu.memory_space<vmem>>, vector<16x16x4xbf16>
    %36 = vector.shape_cast %35 : vector<16x16x4xbf16> to vector<256x4xbf16>
    %c1_48 = arith.constant 1 : index
    %c1_49 = arith.constant 1 : index
    %c0_50 = arith.constant 0 : index
    %c0_51 = arith.constant 0 : index
    %37 = vector.load %arg2[%c1_48, %c1_49, %c0_50, %c0_51] : memref<3x3x4x8xbf16, #tpu.memory_space<vmem>>, vector<1x1x4x8xbf16>
    %38 = vector.shape_cast %37 : vector<1x1x4x8xbf16> to vector<4x8xbf16>
    %cst_52 = arith.constant dense<0.000000e+00> : vector<256x8xf32>
    %39 = tpu.matmul %36, %38, %cst_52 {dimension_numbers = #tpu.dot_dimension_numbers<[1], [0], [0], [1], [0, 0, 1, 1], [], []>} : vector<256x4xbf16>, vector<4x8xbf16>, vector<256x8xf32> -> vector<256x8xf32>
    %40 = arith.addf %34, %39 : vector<256x8xf32>
    %c1_53 = arith.constant 1 : index
    %c9_54 = arith.constant 9 : index
    %c0_55 = arith.constant 0 : index
    %41 = vector.load %arg9[%c1_53, %c9_54, %c0_55] : memref<18x32x4xbf16, #tpu.memory_space<vmem>>, vector<16x16x4xbf16>
    %42 = vector.shape_cast %41 : vector<16x16x4xbf16> to vector<256x4xbf16>
    %c1_56 = arith.constant 1 : index
    %c2_57 = arith.constant 2 : index
    %c0_58 = arith.constant 0 : index
    %c0_59 = arith.constant 0 : index
    %43 = vector.load %arg2[%c1_56, %c2_57, %c0_58, %c0_59] : memref<3x3x4x8xbf16, #tpu.memory_space<vmem>>, vector<1x1x4x8xbf16>
    %44 = vector.shape_cast %43 : vector<1x1x4x8xbf16> to vector<4x8xbf16>
    %cst_60 = arith.constant dense<0.000000e+00> : vector<256x8xf32>
    %45 = tpu.matmul %42, %44, %cst_60 {dimension_numbers = #tpu.dot_dimension_numbers<[1], [0], [0], [1], [0, 0, 1, 1], [], []>} : vector<256x4xbf16>, vector<4x8xbf16>, vector<256x8xf32> -> vector<256x8xf32>
    %46 = arith.addf %40, %45 : vector<256x8xf32>
    %c2_61 = arith.constant 2 : index
    %c7_62 = arith.constant 7 : index
    %c0_63 = arith.constant 0 : index
    %47 = vector.load %arg9[%c2_61, %c7_62, %c0_63] : memref<18x32x4xbf16, #tpu.memory_space<vmem>>, vector<16x16x4xbf16>
    %48 = vector.shape_cast %47 : vector<16x16x4xbf16> to vector<256x4xbf16>
    %c2_64 = arith.constant 2 : index
    %c0_65 = arith.constant 0 : index
    %c0_66 = arith.constant 0 : index
    %c0_67 = arith.constant 0 : index
    %49 = vector.load %arg2[%c2_64, %c0_65, %c0_66, %c0_67] : memref<3x3x4x8xbf16, #tpu.memory_space<vmem>>, vector<1x1x4x8xbf16>
    %50 = vector.shape_cast %49 : vector<1x1x4x8xbf16> to vector<4x8xbf16>
    %cst_68 = arith.constant dense<0.000000e+00> : vector<256x8xf32>
    %51 = tpu.matmul %48, %50, %cst_68 {dimension_numbers = #tpu.dot_dimension_numbers<[1], [0], [0], [1], [0, 0, 1, 1], [], []>} : vector<256x4xbf16>, vector<4x8xbf16>, vector<256x8xf32> -> vector<256x8xf32>
    %52 = arith.addf %46, %51 : vector<256x8xf32>
    %c2_69 = arith.constant 2 : index
    %c8_70 = arith.constant 8 : index
    %c0_71 = arith.constant 0 : index
    %53 = vector.load %arg9[%c2_69, %c8_70, %c0_71] : memref<18x32x4xbf16, #tpu.memory_space<vmem>>, vector<16x16x4xbf16>
    %54 = vector.shape_cast %53 : vector<16x16x4xbf16> to vector<256x4xbf16>
    %c2_72 = arith.constant 2 : index
    %c1_73 = arith.constant 1 : index
    %c0_74 = arith.constant 0 : index
    %c0_75 = arith.constant 0 : index
    %55 = vector.load %arg2[%c2_72, %c1_73, %c0_74, %c0_75] : memref<3x3x4x8xbf16, #tpu.memory_space<vmem>>, vector<1x1x4x8xbf16>
    %56 = vector.shape_cast %55 : vector<1x1x4x8xbf16> to vector<4x8xbf16>
    %cst_76 = arith.constant dense<0.000000e+00> : vector<256x8xf32>
    %57 = tpu.matmul %54, %56, %cst_76 {dimension_numbers = #tpu.dot_dimension_numbers<[1], [0], [0], [1], [0, 0, 1, 1], [], []>} : vector<256x4xbf16>, vector<4x8xbf16>, vector<256x8xf32> -> vector<256x8xf32>
    %58 = arith.addf %52, %57 : vector<256x8xf32>
    %c2_77 = arith.constant 2 : index
    %c9_78 = arith.constant 9 : index
    %c0_79 = arith.constant 0 : index
    %59 = vector.load %arg9[%c2_77, %c9_78, %c0_79] : memref<18x32x4xbf16, #tpu.memory_space<vmem>>, vector<16x16x4xbf16>
    %60 = vector.shape_cast %59 : vector<16x16x4xbf16> to vector<256x4xbf16>
    %c2_80 = arith.constant 2 : index
    %c2_81 = arith.constant 2 : index
    %c0_82 = arith.constant 0 : index
    %c0_83 = arith.constant 0 : index
    %61 = vector.load %arg2[%c2_80, %c2_81, %c0_82, %c0_83] : memref<3x3x4x8xbf16, #tpu.memory_space<vmem>>, vector<1x1x4x8xbf16>
    %62 = vector.shape_cast %61 : vector<1x1x4x8xbf16> to vector<4x8xbf16>
    %cst_84 = arith.constant dense<0.000000e+00> : vector<256x8xf32>
    %63 = tpu.matmul %60, %62, %cst_84 {dimension_numbers = #tpu.dot_dimension_numbers<[1], [0], [0], [1], [0, 0, 1, 1], [], []>} : vector<256x4xbf16>, vector<4x8xbf16>, vector<256x8xf32> -> vector<256x8xf32>
    %64 = arith.addf %58, %63 : vector<256x8xf32>
    %c0_85 = arith.constant 0 : index
    %c0_86 = arith.constant 0 : index
    %65 = vector.load %arg3[%c0_85, %c0_86] : memref<1x8xf32, #tpu.memory_space<vmem>>, vector<1x8xf32>
    %66 = vector.broadcast %65 : vector<1x8xf32> to vector<256x8xf32>
    %67 = arith.addf %64, %66 : vector<256x8xf32>
    %cst_87 = arith.constant 0.000000e+00 : bf16
    %68 = vector.broadcast %cst_87 : bf16 to vector<1x32x8xbf16>
    %c0_88 = arith.constant 0 : index
    %c0_89 = arith.constant 0 : index
    %c0_90 = arith.constant 0 : index
    %69 = vector.load %arg10[%c0_88, %c0_89, %c0_90] : memref<18x32x8xbf16, #tpu.memory_space<vmem>>, vector<1x32x8xbf16>
    tpu.vector_store %arg10[%c0_88, %c0_89, %c0_90], %68 {strides = array<i32>} : memref<18x32x8xbf16, #tpu.memory_space<vmem>>, vector<1x32x8xbf16>,
    %c17_91 = arith.constant 17 : index
    %c0_92 = arith.constant 0 : index
    %c0_93 = arith.constant 0 : index
    %70 = vector.load %arg10[%c17_91, %c0_92, %c0_93] : memref<18x32x8xbf16, #tpu.memory_space<vmem>>, vector<1x32x8xbf16>
    tpu.vector_store %arg10[%c17_91, %c0_92, %c0_93], %68 {strides = array<i32>} : memref<18x32x8xbf16, #tpu.memory_space<vmem>>, vector<1x32x8xbf16>,
    %cst_94 = arith.constant 0.000000e+00 : bf16
    %71 = vector.broadcast %cst_94 : bf16 to vector<16x8x8xbf16>
    %c1_95 = arith.constant 1 : index
    %c0_96 = arith.constant 0 : index
    %c0_97 = arith.constant 0 : index
    %72 = vector.load %arg10[%c1_95, %c0_96, %c0_97] : memref<18x32x8xbf16, #tpu.memory_space<vmem>>, vector<16x8x8xbf16>
    tpu.vector_store %arg10[%c1_95, %c0_96, %c0_97], %71 {strides = array<i32>} : memref<18x32x8xbf16, #tpu.memory_space<vmem>>, vector<16x8x8xbf16>,
    %c1_98 = arith.constant 1 : index
    %c24_99 = arith.constant 24 : index
    %c0_100 = arith.constant 0 : index
    %73 = vector.load %arg10[%c1_98, %c24_99, %c0_100] : memref<18x32x8xbf16, #tpu.memory_space<vmem>>, vector<16x8x8xbf16>
    tpu.vector_store %arg10[%c1_98, %c24_99, %c0_100], %71 {strides = array<i32>} : memref<18x32x8xbf16, #tpu.memory_space<vmem>>, vector<16x8x8xbf16>,
    %cst_101 = arith.constant 0.000000e+00 : f32
    %74 = vector.broadcast %cst_101 : f32 to vector<256x8xf32>
    %75 = arith.maximumf %67, %74 : vector<256x8xf32>
    %76 = vector.shape_cast %75 : vector<256x8xf32> to vector<16x16x8xf32>
    %77 = arith.truncf %76 : vector<16x16x8xf32> to vector<16x16x8xbf16>
    %c1_102 = arith.constant 1 : index
    %c8_103 = arith.constant 8 : index
    %c0_104 = arith.constant 0 : index
    %78 = vector.load %arg10[%c1_102, %c8_103, %c0_104] : memref<18x32x8xbf16, #tpu.memory_space<vmem>>, vector<16x16x8xbf16>
    tpu.vector_store %arg10[%c1_102, %c8_103, %c0_104], %77 {strides = array<i32>} : memref<18x32x8xbf16, #tpu.memory_space<vmem>>, vector<16x16x8xbf16>,
    %c0_105 = arith.constant 0 : index
    %c7_106 = arith.constant 7 : index
    %c0_107 = arith.constant 0 : index
    %79 = vector.load %arg10[%c0_105, %c7_106, %c0_107] : memref<18x32x8xbf16, #tpu.memory_space<vmem>>, vector<16x16x8xbf16>
    %80 = vector.shape_cast %79 : vector<16x16x8xbf16> to vector<256x8xbf16>
    %c0_108 = arith.constant 0 : index
    %c0_109 = arith.constant 0 : index
    %c0_110 = arith.constant 0 : index
    %c0_111 = arith.constant 0 : index
    %81 = vector.load %arg4[%c0_108, %c0_109, %c0_110, %c0_111] : memref<3x3x8x8xbf16, #tpu.memory_space<vmem>>, vector<1x1x8x8xbf16>
    %82 = vector.shape_cast %81 : vector<1x1x8x8xbf16> to vector<8x8xbf16>
    %cst_112 = arith.constant dense<0.000000e+00> : vector<256x8xf32>
    %83 = tpu.matmul %80, %82, %cst_112 {dimension_numbers = #tpu.dot_dimension_numbers<[1], [0], [0], [1], [0, 0, 1, 1], [], []>} : vector<256x8xbf16>, vector<8x8xbf16>, vector<256x8xf32> -> vector<256x8xf32>
    %c0_113 = arith.constant 0 : index
    %c8_114 = arith.constant 8 : index
    %c0_115 = arith.constant 0 : index
    %84 = vector.load %arg10[%c0_113, %c8_114, %c0_115] : memref<18x32x8xbf16, #tpu.memory_space<vmem>>, vector<16x16x8xbf16>
    %85 = vector.shape_cast %84 : vector<16x16x8xbf16> to vector<256x8xbf16>
    %c0_116 = arith.constant 0 : index
    %c1_117 = arith.constant 1 : index
    %c0_118 = arith.constant 0 : index
    %c0_119 = arith.constant 0 : index
    %86 = vector.load %arg4[%c0_116, %c1_117, %c0_118, %c0_119] : memref<3x3x8x8xbf16, #tpu.memory_space<vmem>>, vector<1x1x8x8xbf16>
    %87 = vector.shape_cast %86 : vector<1x1x8x8xbf16> to vector<8x8xbf16>
    %cst_120 = arith.constant dense<0.000000e+00> : vector<256x8xf32>
    %88 = tpu.matmul %85, %87, %cst_120 {dimension_numbers = #tpu.dot_dimension_numbers<[1], [0], [0], [1], [0, 0, 1, 1], [], []>} : vector<256x8xbf16>, vector<8x8xbf16>, vector<256x8xf32> -> vector<256x8xf32>
    %89 = arith.addf %83, %88 : vector<256x8xf32>
    %c0_121 = arith.constant 0 : index
    %c9_122 = arith.constant 9 : index
    %c0_123 = arith.constant 0 : index
    %90 = vector.load %arg10[%c0_121, %c9_122, %c0_123] : memref<18x32x8xbf16, #tpu.memory_space<vmem>>, vector<16x16x8xbf16>
    %91 = vector.shape_cast %90 : vector<16x16x8xbf16> to vector<256x8xbf16>
    %c0_124 = arith.constant 0 : index
    %c2_125 = arith.constant 2 : index
    %c0_126 = arith.constant 0 : index
    %c0_127 = arith.constant 0 : index
    %92 = vector.load %arg4[%c0_124, %c2_125, %c0_126, %c0_127] : memref<3x3x8x8xbf16, #tpu.memory_space<vmem>>, vector<1x1x8x8xbf16>
    %93 = vector.shape_cast %92 : vector<1x1x8x8xbf16> to vector<8x8xbf16>
    %cst_128 = arith.constant dense<0.000000e+00> : vector<256x8xf32>
    %94 = tpu.matmul %91, %93, %cst_128 {dimension_numbers = #tpu.dot_dimension_numbers<[1], [0], [0], [1], [0, 0, 1, 1], [], []>} : vector<256x8xbf16>, vector<8x8xbf16>, vector<256x8xf32> -> vector<256x8xf32>
    %95 = arith.addf %89, %94 : vector<256x8xf32>
    %c1_129 = arith.constant 1 : index
    %c7_130 = arith.constant 7 : index
    %c0_131 = arith.constant 0 : index
    %96 = vector.load %arg10[%c1_129, %c7_130, %c0_131] : memref<18x32x8xbf16, #tpu.memory_space<vmem>>, vector<16x16x8xbf16>
    %97 = vector.shape_cast %96 : vector<16x16x8xbf16> to vector<256x8xbf16>
    %c1_132 = arith.constant 1 : index
    %c0_133 = arith.constant 0 : index
    %c0_134 = arith.constant 0 : index
    %c0_135 = arith.constant 0 : index
    %98 = vector.load %arg4[%c1_132, %c0_133, %c0_134, %c0_135] : memref<3x3x8x8xbf16, #tpu.memory_space<vmem>>, vector<1x1x8x8xbf16>
    %99 = vector.shape_cast %98 : vector<1x1x8x8xbf16> to vector<8x8xbf16>
    %cst_136 = arith.constant dense<0.000000e+00> : vector<256x8xf32>
    %100 = tpu.matmul %97, %99, %cst_136 {dimension_numbers = #tpu.dot_dimension_numbers<[1], [0], [0], [1], [0, 0, 1, 1], [], []>} : vector<256x8xbf16>, vector<8x8xbf16>, vector<256x8xf32> -> vector<256x8xf32>
    %101 = arith.addf %95, %100 : vector<256x8xf32>
    %c1_137 = arith.constant 1 : index
    %c8_138 = arith.constant 8 : index
    %c0_139 = arith.constant 0 : index
    %102 = vector.load %arg10[%c1_137, %c8_138, %c0_139] : memref<18x32x8xbf16, #tpu.memory_space<vmem>>, vector<16x16x8xbf16>
    %103 = vector.shape_cast %102 : vector<16x16x8xbf16> to vector<256x8xbf16>
    %c1_140 = arith.constant 1 : index
    %c1_141 = arith.constant 1 : index
    %c0_142 = arith.constant 0 : index
    %c0_143 = arith.constant 0 : index
    %104 = vector.load %arg4[%c1_140, %c1_141, %c0_142, %c0_143] : memref<3x3x8x8xbf16, #tpu.memory_space<vmem>>, vector<1x1x8x8xbf16>
    %105 = vector.shape_cast %104 : vector<1x1x8x8xbf16> to vector<8x8xbf16>
    %cst_144 = arith.constant dense<0.000000e+00> : vector<256x8xf32>
    %106 = tpu.matmul %103, %105, %cst_144 {dimension_numbers = #tpu.dot_dimension_numbers<[1], [0], [0], [1], [0, 0, 1, 1], [], []>} : vector<256x8xbf16>, vector<8x8xbf16>, vector<256x8xf32> -> vector<256x8xf32>
    %107 = arith.addf %101, %106 : vector<256x8xf32>
    %c1_145 = arith.constant 1 : index
    %c9_146 = arith.constant 9 : index
    %c0_147 = arith.constant 0 : index
    %108 = vector.load %arg10[%c1_145, %c9_146, %c0_147] : memref<18x32x8xbf16, #tpu.memory_space<vmem>>, vector<16x16x8xbf16>
    %109 = vector.shape_cast %108 : vector<16x16x8xbf16> to vector<256x8xbf16>
    %c1_148 = arith.constant 1 : index
    %c2_149 = arith.constant 2 : index
    %c0_150 = arith.constant 0 : index
    %c0_151 = arith.constant 0 : index
    %110 = vector.load %arg4[%c1_148, %c2_149, %c0_150, %c0_151] : memref<3x3x8x8xbf16, #tpu.memory_space<vmem>>, vector<1x1x8x8xbf16>
    %111 = vector.shape_cast %110 : vector<1x1x8x8xbf16> to vector<8x8xbf16>
    %cst_152 = arith.constant dense<0.000000e+00> : vector<256x8xf32>
    %112 = tpu.matmul %109, %111, %cst_152 {dimension_numbers = #tpu.dot_dimension_numbers<[1], [0], [0], [1], [0, 0, 1, 1], [], []>} : vector<256x8xbf16>, vector<8x8xbf16>, vector<256x8xf32> -> vector<256x8xf32>
    %113 = arith.addf %107, %112 : vector<256x8xf32>
    %c2_153 = arith.constant 2 : index
    %c7_154 = arith.constant 7 : index
    %c0_155 = arith.constant 0 : index
    %114 = vector.load %arg10[%c2_153, %c7_154, %c0_155] : memref<18x32x8xbf16, #tpu.memory_space<vmem>>, vector<16x16x8xbf16>
    %115 = vector.shape_cast %114 : vector<16x16x8xbf16> to vector<256x8xbf16>
    %c2_156 = arith.constant 2 : index
    %c0_157 = arith.constant 0 : index
    %c0_158 = arith.constant 0 : index
    %c0_159 = arith.constant 0 : index
    %116 = vector.load %arg4[%c2_156, %c0_157, %c0_158, %c0_159] : memref<3x3x8x8xbf16, #tpu.memory_space<vmem>>, vector<1x1x8x8xbf16>
    %117 = vector.shape_cast %116 : vector<1x1x8x8xbf16> to vector<8x8xbf16>
    %cst_160 = arith.constant dense<0.000000e+00> : vector<256x8xf32>
    %118 = tpu.matmul %115, %117, %cst_160 {dimension_numbers = #tpu.dot_dimension_numbers<[1], [0], [0], [1], [0, 0, 1, 1], [], []>} : vector<256x8xbf16>, vector<8x8xbf16>, vector<256x8xf32> -> vector<256x8xf32>
    %119 = arith.addf %113, %118 : vector<256x8xf32>
    %c2_161 = arith.constant 2 : index
    %c8_162 = arith.constant 8 : index
    %c0_163 = arith.constant 0 : index
    %120 = vector.load %arg10[%c2_161, %c8_162, %c0_163] : memref<18x32x8xbf16, #tpu.memory_space<vmem>>, vector<16x16x8xbf16>
    %121 = vector.shape_cast %120 : vector<16x16x8xbf16> to vector<256x8xbf16>
    %c2_164 = arith.constant 2 : index
    %c1_165 = arith.constant 1 : index
    %c0_166 = arith.constant 0 : index
    %c0_167 = arith.constant 0 : index
    %122 = vector.load %arg4[%c2_164, %c1_165, %c0_166, %c0_167] : memref<3x3x8x8xbf16, #tpu.memory_space<vmem>>, vector<1x1x8x8xbf16>
    %123 = vector.shape_cast %122 : vector<1x1x8x8xbf16> to vector<8x8xbf16>
    %cst_168 = arith.constant dense<0.000000e+00> : vector<256x8xf32>
    %124 = tpu.matmul %121, %123, %cst_168 {dimension_numbers = #tpu.dot_dimension_numbers<[1], [0], [0], [1], [0, 0, 1, 1], [], []>} : vector<256x8xbf16>, vector<8x8xbf16>, vector<256x8xf32> -> vector<256x8xf32>
    %125 = arith.addf %119, %124 : vector<256x8xf32>
    %c2_169 = arith.constant 2 : index
    %c9_170 = arith.constant 9 : index
    %c0_171 = arith.constant 0 : index
    %126 = vector.load %arg10[%c2_169, %c9_170, %c0_171] : memref<18x32x8xbf16, #tpu.memory_space<vmem>>, vector<16x16x8xbf16>
    %127 = vector.shape_cast %126 : vector<16x16x8xbf16> to vector<256x8xbf16>
    %c2_172 = arith.constant 2 : index
    %c2_173 = arith.constant 2 : index
    %c0_174 = arith.constant 0 : index
    %c0_175 = arith.constant 0 : index
    %128 = vector.load %arg4[%c2_172, %c2_173, %c0_174, %c0_175] : memref<3x3x8x8xbf16, #tpu.memory_space<vmem>>, vector<1x1x8x8xbf16>
    %129 = vector.shape_cast %128 : vector<1x1x8x8xbf16> to vector<8x8xbf16>
    %cst_176 = arith.constant dense<0.000000e+00> : vector<256x8xf32>
    %130 = tpu.matmul %127, %129, %cst_176 {dimension_numbers = #tpu.dot_dimension_numbers<[1], [0], [0], [1], [0, 0, 1, 1], [], []>} : vector<256x8xbf16>, vector<8x8xbf16>, vector<256x8xf32> -> vector<256x8xf32>
    %131 = arith.addf %125, %130 : vector<256x8xf32>
    %132 = vector.shape_cast %131 : vector<256x8xf32> to vector<8x2x16x8xf32>
    %133 = vector.extract_strided_slice %132 {offsets = [0, 0, 0, 0], sizes = [8, 1, 16, 8], strides = [1, 1, 1, 1]} : vector<8x2x16x8xf32> to vector<8x1x16x8xf32>
    %134 = vector.shape_cast %133 : vector<8x1x16x8xf32> to vector<8x16x8xf32>
    %135 = vector.extract_strided_slice %132 {offsets = [0, 1, 0, 0], sizes = [8, 1, 16, 8], strides = [1, 1, 1, 1]} : vector<8x2x16x8xf32> to vector<8x1x16x8xf32>
    %136 = vector.shape_cast %135 : vector<8x1x16x8xf32> to vector<8x16x8xf32>
    %137 = arith.addf %134, %136 : vector<8x16x8xf32>
    %138 = vector.shape_cast %137 : vector<8x16x8xf32> to vector<128x8xf32>
    %c0_177 = arith.constant 0 : index
    %c0_178 = arith.constant 0 : index
    %139 = vector.load %arg11[%c0_177, %c0_178] : memref<128x8xf32, #tpu.memory_space<vmem>>, vector<128x8xf32>
    tpu.vector_store %arg11[%c0_177, %c0_178], %138 {strides = array<i32>} : memref<128x8xf32, #tpu.memory_space<vmem>>, vector<128x8xf32>,
    %c0_179 = arith.constant 0 : index
    %c0_180 = arith.constant 0 : index
    %140 = tpu.strided_load %arg11[%c0_179, %c0_180] {strides = array<i32: 2, 1>} : memref<128x8xf32, #tpu.memory_space<vmem>>, vector<64x8xf32>
    %c1_181 = arith.constant 1 : index
    %c0_182 = arith.constant 0 : index
    %141 = tpu.strided_load %arg11[%c1_181, %c0_182] {strides = array<i32: 2, 1>} : memref<128x8xf32, #tpu.memory_space<vmem>>, vector<64x8xf32>
    %142 = arith.addf %140, %141 : vector<64x8xf32>
    %c0_183 = arith.constant 0 : index
    %c0_184 = arith.constant 0 : index
    %c0_185 = arith.constant 0 : index
    %c0_186 = arith.constant 0 : index
    %143 = vector.load %arg1[%c0_183, %c0_184, %c0_185, %c0_186] : memref<1x16x16x4xf32, #tpu.memory_space<vmem>>, vector<1x16x16x4xf32>
    %144 = vector.shape_cast %143 : vector<1x16x16x4xf32> to vector<16x16x4xf32>
    %145 = vector.shape_cast %144 : vector<16x16x4xf32> to vector<256x4xf32>
    %146 = vector.shape_cast %145 : vector<256x4xf32> to vector<8x2x16x4xf32>
    %147 = vector.extract_strided_slice %146 {offsets = [0, 0, 0, 0], sizes = [8, 1, 16, 4], strides = [1, 1, 1, 1]} : vector<8x2x16x4xf32> to vector<8x1x16x4xf32>
    %148 = vector.shape_cast %147 : vector<8x1x16x4xf32> to vector<8x16x4xf32>
    %149 = vector.extract_strided_slice %146 {offsets = [0, 1, 0, 0], sizes = [8, 1, 16, 4], strides = [1, 1, 1, 1]} : vector<8x2x16x4xf32> to vector<8x1x16x4xf32>
    %150 = vector.shape_cast %149 : vector<8x1x16x4xf32> to vector<8x16x4xf32>
    %151 = arith.addf %148, %150 : vector<8x16x4xf32>
    %152 = vector.shape_cast %151 : vector<8x16x4xf32> to vector<128x4xf32>
    %c0_187 = arith.constant 0 : index
    %c0_188 = arith.constant 0 : index
    %153 = vector.load %arg12[%c0_187, %c0_188] : memref<128x4xf32, #tpu.memory_space<vmem>>, vector<128x4xf32>
    tpu.vector_store %arg12[%c0_187, %c0_188], %152 {strides = array<i32>} : memref<128x4xf32, #tpu.memory_space<vmem>>, vector<128x4xf32>,
    %c0_189 = arith.constant 0 : index
    %c0_190 = arith.constant 0 : index
    %154 = tpu.strided_load %arg12[%c0_189, %c0_190] {strides = array<i32: 2, 1>} : memref<128x4xf32, #tpu.memory_space<vmem>>, vector<64x4xf32>
    %c1_191 = arith.constant 1 : index
    %c0_192 = arith.constant 0 : index
    %155 = tpu.strided_load %arg12[%c1_191, %c0_192] {strides = array<i32: 2, 1>} : memref<128x4xf32, #tpu.memory_space<vmem>>, vector<64x4xf32>
    %156 = arith.addf %154, %155 : vector<64x4xf32>
    %157 = arith.truncf %156 : vector<64x4xf32> to vector<64x4xbf16>
    %c0_193 = arith.constant 0 : index
    %c0_194 = arith.constant 0 : index
    %158 = vector.load %arg6[%c0_193, %c0_194] : memref<4x8xbf16, #tpu.memory_space<vmem>>, vector<4x8xbf16>
    %cst_195 = arith.constant dense<0.000000e+00> : vector<64x8xf32>
    %159 = tpu.matmul %157, %158, %cst_195 {dimension_numbers = #tpu.dot_dimension_numbers<[1], [0], [0], [1], [0, 0, 1, 1], [], []>} : vector<64x4xbf16>, vector<4x8xbf16>, vector<64x8xf32> -> vector<64x8xf32>
    %c0_196 = arith.constant 0 : index
    %c0_197 = arith.constant 0 : index
    %160 = vector.load %arg7[%c0_196, %c0_197] : memref<1x8xf32, #tpu.memory_space<vmem>>, vector<1x8xf32>
    %161 = vector.broadcast %160 : vector<1x8xf32> to vector<64x8xf32>
    %162 = arith.addf %159, %161 : vector<64x8xf32>
    %c0_198 = arith.constant 0 : index
    %c0_199 = arith.constant 0 : index
    %163 = vector.load %arg5[%c0_198, %c0_199] : memref<1x8xf32, #tpu.memory_space<vmem>>, vector<1x8xf32>
    %164 = vector.broadcast %163 : vector<1x8xf32> to vector<64x8xf32>
    %165 = arith.addf %142, %164 : vector<64x8xf32>
    %166 = arith.addf %165, %162 : vector<64x8xf32>
    %167 = vector.shape_cast %166 : vector<64x8xf32> to vector<8x8x8xf32>
    %c0_200 = arith.constant 0 : index
    %c0_201 = arith.constant 0 : index
    %c0_202 = arith.constant 0 : index
    %c0_203 = arith.constant 0 : index
    %168 = vector.load %arg8[%c0_200, %c0_201, %c0_202, %c0_203] : memref<1x8x8x8xf32, #tpu.memory_space<vmem>>, vector<1x8x8x8xf32>
    %169 = vector.shape_cast %168 : vector<1x8x8x8xf32> to vector<8x8x8xf32>
    %170 = vector.shape_cast %167 : vector<8x8x8xf32> to vector<1x8x8x8xf32>
    tpu.vector_store %arg8[%c0_200, %c0_201, %c0_202, %c0_203], %170 {strides = array<i32>} : memref<1x8x8x8xf32, #tpu.memory_space<vmem>>, vector<1x8x8x8xf32>,
    return
  }
  func.func @transform_0(%arg0: i32) -> (i32, i32, i32, i32) {
    %c0_i32 = arith.constant 0 : i32
    %c0_i32_0 = arith.constant 0 : i32
    %c0_i32_1 = arith.constant 0 : i32
    %c0_i32_2 = arith.constant 0 : i32
    return %arg0, %c0_i32, %c0_i32_0, %c0_i32_1 : i32, i32, i32, i32
  }
  func.func @transform_1(%arg0: i32) -> (i32, i32, i32, i32) {
    %c0_i32 = arith.constant 0 : i32
    %c0_i32_0 = arith.constant 0 : i32
    %c0_i32_1 = arith.constant 0 : i32
    %c0_i32_2 = arith.constant 0 : i32
    %c0_i32_3 = arith.constant 0 : i32
    return %c0_i32, %c0_i32_0, %c0_i32_1, %c0_i32_2 : i32, i32, i32, i32
  }
  func.func @transform_2(%arg0: i32) -> (i32, i32) {
    %c0_i32 = arith.constant 0 : i32
    %c0_i32_0 = arith.constant 0 : i32
    %c0_i32_1 = arith.constant 0 : i32
    return %c0_i32, %c0_i32_0 : i32, i32
  }
  func.func @transform_3(%arg0: i32) -> (i32, i32, i32, i32) {
    %c0_i32 = arith.constant 0 : i32
    %c0_i32_0 = arith.constant 0 : i32
    %c0_i32_1 = arith.constant 0 : i32
    %c0_i32_2 = arith.constant 0 : i32
    %c0_i32_3 = arith.constant 0 : i32
    return %c0_i32, %c0_i32_0, %c0_i32_1, %c0_i32_2 : i32, i32, i32, i32
  }
  func.func @transform_4(%arg0: i32) -> (i32, i32) {
    %c0_i32 = arith.constant 0 : i32
    %c0_i32_0 = arith.constant 0 : i32
    %c0_i32_1 = arith.constant 0 : i32
    return %c0_i32, %c0_i32_0 : i32, i32
  }
  func.func @transform_5(%arg0: i32) -> (i32, i32) {
    %c0_i32 = arith.constant 0 : i32
    %c0_i32_0 = arith.constant 0 : i32
    %c0_i32_1 = arith.constant 0 : i32
    return %c0_i32, %c0_i32_0 : i32, i32
  }
  func.func @transform_6(%arg0: i32) -> (i32, i32) {
    %c0_i32 = arith.constant 0 : i32
    %c0_i32_0 = arith.constant 0 : i32
    %c0_i32_1 = arith.constant 0 : i32
    return %c0_i32, %c0_i32_0 : i32, i32
  }
  func.func @transform_7(%arg0: i32) -> (i32, i32, i32, i32) {
    %c0_i32 = arith.constant 0 : i32
    %c0_i32_0 = arith.constant 0 : i32
    %c0_i32_1 = arith.constant 0 : i32
    %c0_i32_2 = arith.constant 0 : i32
    return %arg0, %c0_i32, %c0_i32_0, %c0_i32_1 : i32, i32, i32, i32
  }
}

</mosaic_0001>

<bundles_post_ra>
// kernel: tpu_custom_call.1
= control target key start
LH: loop header
LB: loop body
LE: loop exit
PB: predicated region body
PF: predicated region fallthrough
CT: control target
= control target key end

     0   :  { %12 = vsyncpa [#allocation7], 0  ;;  %s18149_s0 = inlined_call_operand.vmem [shape: f32[2,16,16,4], index: 0, kind: input, shape index: {}]   ;;  %s18150_s1 = inlined_call_operand.vmem [shape: bf16[3,3,4,8], index: 1, kind: input, shape index: {}]   ;;  %s18151_s2 = inlined_call_operand.vmem [shape: f32[1,8], index: 2, kind: input, shape index: {}]   ;;  %s18152_s3 = inlined_call_operand.vmem [shape: bf16[3,3,8,8], index: 3, kind: input, shape index: {}]   ;;  %s18153_s4 = inlined_call_operand.vmem [shape: f32[1,8], index: 4, kind: input, shape index: {}]   ;;  %s18154_s5 = inlined_call_operand.vmem [shape: bf16[4,8], index: 5, kind: input, shape index: {}]   ;;  %s18155_s6 = inlined_call_operand.vmem [shape: f32[1,8], index: 6, kind: input, shape index: {}]   ;;  %s18156_s7 = inlined_call_operand.hbm [shape: f32[2,8,8,8], index: 7, kind: output, shape index: {}]  }
   0x1   :  { %14 = vsyncpa [#allocation7 + $0x1], 0  ;;  %s13582_s24 = smov 0   ;;  %s13584_s25 = smov 0  }
   0x2   :  { %s13586_s26 = smov 0   ;;  %s13588_s27 = smov 0  }
   0x3 LB: > { %s13603_s28 = sadd.s32 4294967295, %s13536_s27   ;;  %s11550_s29 = sadd.s32 4294967294, %s13536_s27   ;;  %s13536_s27 = sphi %s13588_s27, %s18662_s27   ;;  %s13532_s26 = sphi %s13586_s26, %s18661_s26   ;;  %s13528_s25 = sphi %s13584_s25, %s18660_s25   ;;  %s13524_s24 = sphi %s13582_s24, %s18659_s24  }
   0x4   : > { %s13607_s30 = sadd.s32 1, %s13536_s27   ;;  %s179_s8 = sadd.s32 1, %s13532_s26 }
   0x5   : > { %s176_s9 = ssub.s32 %s13536_s27, %s13607_s30  ;;  %p189_p0 = scmp.ne.s32.totalorder %s13532_s26, %s13528_s25 }
   0x6   : > { %p177_p1 = scmp.eq.s32.totalorder %s176_s9, 0  ;;  %p190_p2 = scmp.eq.s32.totalorder %s13603_s28, 1 }
   0x7   : > { %p195_p3 = scmp.ne.s32.totalorder %s13528_s25, %s13524_s24  ;;  %p196_p4 = scmp.eq.s32.totalorder %s11550_s29, 1 }
   0x8   : > { %s13618_s10 = scalar_select %p177_p1, %s13532_s26, %s179_s8  }
   0x9   : > { %p13620_p5 = por %p190_p2, %p189_p0  ;;  %p13624_p6 = por %p196_p4, %p195_p3 }
   0xa   : > { %p11553_p7 = scmp.ge.s32.totalorder %s13536_s27, 1  ;;  %p240_p8 = scmp.lt.s32.totalorder %s13536_s27, 3 }
   0xc   : > { %p241_p9 = pnand %p11553_p7, %p240_p8 }
   0xe   : > { %244 = sbr.rel (%p241_p9) target bundleno = 1259 (0x4eb), region = 48 }
  0x13   : > { %v11605_v0 = vld [vmem:[%s18150_s1 + $0x2] sm:$0x3]  ;;  %vm1080_vm0 = vcmask 1041408   ;;  %vm278_vm1 = vcmask 27648   ;;  %v18157_v2 = vmov 0   ;;  %p272_p10 = scmp.lt.s32.totalorder %s13603_s28, 1 }
  0x14   : > { %13322 = vmatprep.subr.msk.bf16.mxu0 %vm1080_vm0, %v11605_v0  ;;  %v1082_v1 = vsel %vm1080_vm0, %v11605_v0, 0  ;;  %13323 = vmatprep.subr.msk.bf16.mxu1 %vm1080_vm0, %v11605_v0  ;;  %280 = vst.msk [vmem:[#allocation2 + $0x4] sm:$0xf] %vm278_vm1, %v18157_v2  ;;  %281 = vst.msk [vmem:[#allocation2 + $0x8] sm:$0xf] %vm278_vm1, %v18157_v2  ;;  %vm1031_vm2 = vcmask 31744  }
  0x15   : > { %279 = vst.msk [vmem:[#allocation2] sm:$0xf] %vm278_vm1, %v18157_v2  ;;  %282 = vst.msk [vmem:[#allocation2 + $0xc] sm:$0xf] %vm278_vm1, %v18157_v2  ;;  %v11670_v3 = vld [vmem:[%s18150_s1 + $0x4] sm:$0x3]  ;;  %12699 = vmatpush3.bf16.msra.mxu0 %v1082_v1  ;;  %13321 = vmatpush3.bf16.msra.mxu1 %v1082_v1 }
  0x16   : > { %284 = vst.msk [vmem:[#allocation2 + $0x110] sm:$0xf] %vm278_vm1, %v18157_v2  ;;  %285 = vst.msk [vmem:[#allocation2 + $0x114] sm:$0xf] %vm278_vm1, %v18157_v2  ;;  %v948_v4 = vld [vmem:[%s18150_s1] sm:$0x3]  ;;  %13325 = vmatprep.subr.msk.bf16.mxu0 %vm1080_vm0, %v11670_v3 }
  0x17   : > { %286 = vst.msk [vmem:[#allocation2 + $0x118] sm:$0xf] %vm278_vm1, %v18157_v2  ;;  %287 = vst.msk [vmem:[#allocation2 + $0x11c] sm:$0xf] %vm278_vm1, %v18157_v2  ;;  %s273_s19 = scalar_select %p272_p10, %s13603_s28, 1  ;;  %13324 = vmatprep.subr.msk.bf16.mxu1 %vm1080_vm0, %v948_v4  ;;  %v13737_v6 = vsel %vm1080_vm0, %v11670_v3, 0 }
  0x18   : > { %289 = vst.msk [vmem:[#allocation2 + $0x10] sm:$0xf] %vm278_vm1, %v18157_v2  ;;  %290 = vst.msk [vmem:[#allocation2 + $0x20] sm:$0xf] %vm278_vm1, %v18157_v2  ;;  %v13729_v5 = vld [vmem:[%s18150_s1 + $0x6] sm:$0x3] }
  0x19   : > { %291 = vst.msk [vmem:[#allocation2 + $0x30] sm:$0xf] %vm278_vm1, %v18157_v2  ;;  %292 = vst.msk [vmem:[#allocation2 + $0x40] sm:$0xf] %vm278_vm1, %v18157_v2  ;;  %s12321_s22 = sshll.u32 %s273_s19, 8  ;;  %v13740_v7 = vsel %vm1080_vm0, %v948_v4, 0 }
  0x1a   : > { %293 = vst.msk [vmem:[#allocation2 + $0x50] sm:$0xf] %vm278_vm1, %v18157_v2  ;;  %294 = vst.msk [vmem:[#allocation2 + $0x60] sm:$0xf] %vm278_vm1, %v18157_v2  ;;  %s13734_s8 = scalar_lea.vmem %s18149_s0, %s12321_s22  ;;  %vm593_vm3 = vsmask.f32 256 }
  0x1b   : > { %295 = vst.msk [vmem:[#allocation2 + $0x70] sm:$0xf] %vm278_vm1, %v18157_v2  ;;  %296 = vst.msk [vmem:[#allocation2 + $0x80] sm:$0xf] %vm278_vm1, %v18157_v2  ;;  %v321_v8 = vld [vmem:[%s13734_s8] sm:$0xff]  ;;  %v322_v9 = vld [vmem:[%s13734_s8 + $0x8] sm:$0xff] }
  0x1c   : > { %297 = vst.msk [vmem:[#allocation2 + $0x90] sm:$0xf] %vm278_vm1, %v18157_v2  ;;  %298 = vst.msk [vmem:[#allocation2 + $0xa0] sm:$0xf] %vm278_vm1, %v18157_v2  ;;  %v347_v10 = vld [vmem:[%s13734_s8 + $0xd0] sm:$0xff]  ;;  %v13747_v11 = vsel %vm1080_vm0, %v13729_v5, 0 }
  0x1d   : > { %299 = vst.msk [vmem:[#allocation2 + $0xb0] sm:$0xf] %vm278_vm1, %v18157_v2  ;;  %300 = vst.msk [vmem:[#allocation2 + $0xc0] sm:$0xf] %vm278_vm1, %v18157_v2  ;;  %vm594_vm4 = vsmask.f32 4368 }
  0x1e   : > { %301 = vst.msk [vmem:[#allocation2 + $0xd0] sm:$0xf] %vm278_vm1, %v18157_v2  ;;  %302 = vst.msk [vmem:[#allocation2 + $0xe0] sm:$0xf] %vm278_vm1, %v18157_v2  ;;  %v546_v12 = vld [vmem:[#allocation2 + $0x4] sm:$0xf] }
  0x1f   : > { %303 = vst.msk [vmem:[#allocation2 + $0xf0] sm:$0xf] %vm278_vm1, %v18157_v2  ;;  %304 = vst.msk [vmem:[#allocation2 + $0x100] sm:$0xf] %vm278_vm1, %v18157_v2  ;;  %v547_v13 = vld [vmem:[#allocation2 + $0x8] sm:$0xf] }
  0x20   : > { %305 = vst.msk [vmem:[#allocation2 + $0x1c] sm:$0xf] %vm278_vm1, %v18157_v2  ;;  %306 = vst.msk [vmem:[#allocation2 + $0x2c] sm:$0xf] %vm278_vm1, %v18157_v2  ;;  %v353_v14 = vmax.f32 %v321_v8, 0.0  ;;  %v354_v15 = vmax.f32 %v322_v9, 0.0  ;;  %v11606_v23 = vcombine.low %v546_v12, %v547_v13 }
  0x21   : > { %307 = vst.msk [vmem:[#allocation2 + $0x3c] sm:$0xf] %vm278_vm1, %v18157_v2  ;;  %308 = vst.msk [vmem:[#allocation2 + $0x4c] sm:$0xf] %vm278_vm1, %v18157_v2  ;;  %v13752_v16 = vld [vmem:[%s18150_s1 + $0x8] sm:$0x3] }
  0x22   : > { %309 = vst.msk [vmem:[#allocation2 + $0x5c] sm:$0xf] %vm278_vm1, %v18157_v2  ;;  %310 = vst.msk [vmem:[#allocation2 + $0x6c] sm:$0xf] %vm278_vm1, %v18157_v2  ;;  %v602_v17 = vshrl.u32 %v546_v12, 16  ;;  %v605_v18 = vshll.u32 %v546_v12, 16  ;;  %v12322_v24 = vpack.c.bf16 %v353_v14, %v353_v14  ;;  %v12323_v25 = vpack.c.bf16 %v354_v15, %v354_v15  ;;  %12700 = vmatprep.mubr.msk.bf16.mxu0 %vm1031_vm2, %v11606_v23 }
  0x23   : > { %311 = vst.msk [vmem:[#allocation2 + $0x7c] sm:$0xf] %vm278_vm1, %v18157_v2  ;;  %312 = vst.msk [vmem:[#allocation2 + $0x8c] sm:$0xf] %vm278_vm1, %v18157_v2  ;;  %v611_v19 = vshrl.u32 %v547_v13, 16  ;;  %v614_v20 = vshll.u32 %v547_v13, 16 }
  0x24   : > { %313 = vst.msk [vmem:[#allocation2 + $0x9c] sm:$0xf] %vm278_vm1, %v18157_v2  ;;  %314 = vst.msk [vmem:[#allocation2 + $0xac] sm:$0xf] %vm278_vm1, %v18157_v2  ;;  %v348_v21 = vld [vmem:[%s13734_s8 + $0xd8] sm:$0xff]  ;;  %v349_v22 = vld [vmem:[%s13734_s8 + $0xe0] sm:$0xff] }
  0x25   : > { %315 = vst.msk [vmem:[#allocation2 + $0xbc] sm:$0xf] %vm278_vm1, %v18157_v2  ;;  %316 = vst.msk [vmem:[#allocation2 + $0xcc] sm:$0xf] %vm278_vm1, %v18157_v2  ;;  %v379_v26 = vmax.f32 %v347_v10, 0.0  ;;  %v350_v27 = vld [vmem:[%s13734_s8 + $0xe8] sm:$0xff] }
  0x26   : > { %317 = vst.msk [vmem:[#allocation2 + $0xdc] sm:$0xf] %vm278_vm1, %v18157_v2  ;;  %318 = vst.msk [vmem:[#allocation2 + $0xec] sm:$0xf] %vm278_vm1, %v18157_v2  ;;  %v323_v28 = vld [vmem:[%s13734_s8 + $0x10] sm:$0xff]  ;;  %v324_v29 = vld [vmem:[%s13734_s8 + $0x18] sm:$0xff] }
  0x27   : > { %319 = vst.msk [vmem:[#allocation2 + $0xfc] sm:$0xf] %vm278_vm1, %v18157_v2  ;;  %320 = vst.msk [vmem:[#allocation2 + $0x10c] sm:$0xf] %vm278_vm1, %v18157_v2  ;;  %v604_v30 = vrot.slane %v602_v17, 7  ;;  %v613_v31 = vrot.slane %v611_v19, 7  ;;  %v12348_v36 = vpack.c.bf16 %v379_v26, %v379_v26 }
  0x28   : > { %v380_v32 = vmax.f32 %v348_v21, 0.0  ;;  %v381_v33 = vmax.f32 %v349_v22, 0.0  ;;  %v325_v34 = vld [vmem:[%s13734_s8 + $0x20] sm:$0xff]  ;;  %v326_v35 = vld [vmem:[%s13734_s8 + $0x28] sm:$0xff]  ;;  %513 = vst.msk [vmem:[#allocation2 + $0x14] sm:$0xf] %vm278_vm1, %v12322_v24  ;;  %vm13776_vm5 = vmor %vm593_vm3, %vm594_vm4 }
  0x29   : > { %514 = vst.msk [vmem:[#allocation2 + $0x18] sm:$0xf] %vm278_vm1, %v12323_v25  ;;  %v382_v37 = vmax.f32 %v350_v27, 0.0  ;;  %v355_v38 = vmax.f32 %v323_v28, 0.0  ;;  %v356_v39 = vmax.f32 %v324_v29, 0.0  ;;  %v327_v41 = vld [vmem:[%s13734_s8 + $0x30] sm:$0xff]  ;;  %v616_v43 = vor.u32 %v614_v20, %v613_v31 }
  0x2a   : > { %v545_v40 = vld [vmem:[#allocation2] sm:$0x8]  ;;  %v609_v42 = vrot.slane %v604_v30, 4  ;;  %v12349_v44 = vpack.c.bf16 %v380_v32, %v380_v32  ;;  %v548_v45 = vld [vmem:[#allocation2 + $0x10] sm:$0x8]  ;;  %v328_v46 = vld [vmem:[%s13734_s8 + $0x38] sm:$0xff]  ;;  %v12350_v49 = vpack.c.bf16 %v381_v33, %v381_v33  ;;  %v607_v54 = vor.u32 %v605_v18, %v604_v30 }
  0x2b   : > { %v329_v47 = vld [vmem:[%s13734_s8 + $0x40] sm:$0xff]  ;;  %v13769_v48 = vsel %vm1080_vm0, %v13752_v16, 0  ;;  %539 = vst.msk [vmem:[#allocation2 + $0xe4] sm:$0xf] %vm278_vm1, %v12348_v36  ;;  %v12351_v50 = vpack.c.bf16 %v382_v37, %v382_v37  ;;  %v12324_v51 = vpack.c.bf16 %v355_v38, %v355_v38  ;;  %v12325_v52 = vpack.c.bf16 %v356_v39, %v356_v39  ;;  %v330_v53 = vld [vmem:[%s13734_s8 + $0x48] sm:$0xff]  ;;  %s12386_s13 = sshll.u32 %s13603_s28, 10 }
  0x2c   : > { %540 = vst.msk [vmem:[#allocation2 + $0xe8] sm:$0xf] %vm278_vm1, %v12349_v44  ;;  %v357_v55 = vmax.f32 %v325_v34, 0.0  ;;  %v358_v56 = vmax.f32 %v326_v35, 0.0  ;;  %v18170_v57 = vmov 0  ;;  %v597_v58 = vshrl.u32 %v545_v40, 16  ;;  %s18101_s17 = scalar_lea.hbm %s18156_s7, %s12386_s13 }
  0x2d   : > { %v18171_v57 = vsel %vm13776_vm5, 4294967295, %v18170_v57  ;;  %v551_v59 = vld [vmem:[#allocation2 + $0x20] sm:$0x8]  ;;  %541 = vst.msk [vmem:[#allocation2 + $0xf4] sm:$0xf] %vm278_vm1, %v12350_v49  ;;  %v619_v60 = vshrl.u32 %v548_v45, 16  ;;  %v617_v9 = vsel %vm13776_vm5, %v609_v42, %v616_v43 }
  0x2e   : > { %18172 = vst [vmem:[#allocation9_spill] sm:$0xff] %v18171_v57  ;;  %542 = vst.msk [vmem:[#allocation2 + $0xf8] sm:$0xf] %vm278_vm1, %v12351_v50  ;;  %v359_v61 = vmax.f32 %v327_v41, 0.0  ;;  %v360_v62 = vmax.f32 %v328_v46, 0.0  ;;  %v361_v63 = vmax.f32 %v329_v47, 0.0  ;;  %v12326_v1 = vpack.c.bf16 %v357_v55, %v357_v55 }
  0x2f   : > { %515 = vst.msk [vmem:[#allocation2 + $0x24] sm:$0xf] %vm278_vm1, %v12324_v51  ;;  %516 = vst.msk [vmem:[#allocation2 + $0x28] sm:$0xf] %vm278_vm1, %v12325_v52  ;;  %v554_v0 = vld [vmem:[#allocation2 + $0x30] sm:$0x8]  ;;  %v12327_v3 = vpack.c.bf16 %v358_v56, %v358_v56 }
  0x30   : > { %v11589_v4 = vrot.slane %v597_v58, 11  ;;  %v362_v8 = vmax.f32 %v330_v53, 0.0  ;;  %v12328_v10 = vpack.c.bf16 %v359_v61, %v359_v61  ;;  %v12329_v12 = vpack.c.bf16 %v360_v62, %v360_v62  ;;  %v549_v14 = vld [vmem:[#allocation2 + $0x14] sm:$0xf]  ;;  %v550_v15 = vld [vmem:[#allocation2 + $0x18] sm:$0xf] }
  0x31   : > { %v12330_v13 = vpack.c.bf16 %v361_v63, %v361_v63  ;;  %517 = vst.msk [vmem:[#allocation2 + $0x34] sm:$0xf] %vm278_vm1, %v12326_v1  ;;  %518 = vst.msk [vmem:[#allocation2 + $0x38] sm:$0xf] %vm278_vm1, %v12327_v3  ;;  %v641_v19 = vshrl.u32 %v551_v59, 16  ;;  %v663_v20 = vshrl.u32 %v554_v0, 16  ;;  %v11607_v25 = vcombine.low %v549_v14, %v550_v15 }
  0x32   : > { %v608_v17 = vsel %vm13776_vm5, %v11589_v4, %v607_v54  ;;  %v12331_v18 = vpack.c.bf16 %v362_v8, %v362_v8  ;;  %v624_v21 = vshrl.u32 %v549_v14, 16  ;;  %v627_v22 = vshll.u32 %v549_v14, 16  ;;  %519 = vst.msk [vmem:[#allocation2 + $0x44] sm:$0xf] %vm278_vm1, %v12328_v10  ;;  %520 = vst.msk [vmem:[#allocation2 + $0x48] sm:$0xf] %vm278_vm1, %v12329_v12 }
  0x33   : > { %v633_v23 = vshrl.u32 %v550_v15, 16  ;;  %v636_v24 = vshll.u32 %v550_v15, 16  ;;  %521 = vst.msk [vmem:[#allocation2 + $0x54] sm:$0xf] %vm278_vm1, %v12330_v13  ;;  %v588_v26 = vld [vmem:[#allocation2 + $0xe4] sm:$0xf]  ;;  %12701 = vmatmul.mubr.msk.bf16.vlgmr.msra.gmra.mxu0 %vm1031_vm2, %v11607_v25  ;;  %v11638_v40 = vcombine.low %v608_v17, %v617_v9 }
  0x34   : > { %v13793_v27 = vrot.slane %v619_v60, 11  ;;  %522 = vst.msk [vmem:[#allocation2 + $0x58] sm:$0xf] %vm278_vm1, %v12331_v18  ;;  %v13796_v28 = vrot.slane %v641_v19, 11  ;;  %v13798_v29 = vrot.slane %v663_v20, 11  ;;  %v626_v30 = vrot.slane %v624_v21, 7  ;;  %12767 = vmatpush3.bf16.msra.mxu0 %v13737_v6 }
  0x35   : > { %v635_v31 = vrot.slane %v633_v23, 7  ;;  %v589_v32 = vld [vmem:[#allocation2 + $0xe8] sm:$0xf]  ;;  %v910_v33 = vshrl.u32 %v588_v26, 16  ;;  %v913_v34 = vshll.u32 %v588_v26, 16  ;;  %13327 = vmatprep.subr.msk.bf16.mxu0 %vm1080_vm0, %v13752_v16  ;;  %vm6533_vm9 = vcmask 1043456  }
  0x36   : > { %v919_v35 = vshrl.u32 %v589_v32, 16  ;;  %v922_v36 = vshll.u32 %v589_v32, 16  ;;  %v11620_v37 = vcombine.low %v588_v26, %v589_v32  ;;  %v13801_v38 = vld [vmem:[#allocation2 + $0xf4] sm:$0xf]  ;;  %v13803_v39 = vld [vmem:[#allocation2 + $0xf8] sm:$0xf]  ;;  %v629_v41 = vor.u32 %v627_v22, %v626_v30 }
  0x37   : > { %v631_v42 = vrot.slane %v626_v30, 4  ;;  %v638_v43 = vor.u32 %v636_v24, %v635_v31  ;;  %v13805_v44 = vrot.slane %v910_v33, 7  ;;  %v552_v45 = vld [vmem:[#allocation2 + $0x24] sm:$0xf]  ;;  %v932_v47 = vshrl.u32 %v13801_v38, 16  ;;  %s13539_s19 = smov [#allocation6]  }
  0x38   : > { %v921_v46 = vrot.slane %v919_v35, 7  ;;  %12728 = vmatprep.mubr.msk.bf16.mxu1 %vm1031_vm2, %v11620_v37  ;;  %v935_v49 = vshll.u32 %v13801_v38, 16  ;;  %v941_v50 = vshrl.u32 %v13803_v39, 16  ;;  %v553_v51 = vld [vmem:[#allocation2 + $0x28] sm:$0xf]  ;;  %v944_v6 = vshll.u32 %v13803_v39, 16 }
  0x39   : > { %v13815_v52 = vor.u32 %v913_v34, %v13805_v44  ;;  %v917_v53 = vrot.slane %v13805_v44, 4  ;;  %v11621_v54 = vcombine.low %v13801_v38, %v13803_v39  ;;  %v555_v55 = vld [vmem:[#allocation2 + $0x34] sm:$0xf]  ;;  %v13823_v58 = vrot.slane %v932_v47, 7  ;;  %v556_v61 = vld [vmem:[#allocation2 + $0x38] sm:$0xf] }
  0x3a   : > { %v13821_v56 = vor.u32 %v922_v36, %v921_v46  ;;  %v13825_v59 = vrot.slane %v941_v50, 7  ;;  %v646_v60 = vshrl.u32 %v552_v45, 16  ;;  %v649_v16 = vshll.u32 %v552_v45, 16  ;;  %v558_v9 = vld [vmem:[#allocation2 + $0x44] sm:$0xf]  ;;  %v331_v35 = vld [vmem:[%s13734_s8 + $0x50] sm:$0xff] }
  0x3b   : > { %12729 = vmatmul.mubr.msk.bf16.vlgmr.msra.gmra.mxu1 %vm1031_vm2, %v11621_v54  ;;  %v655_v62 = vshrl.u32 %v553_v51, 16  ;;  %v658_v63 = vshll.u32 %v553_v51, 16  ;;  %v11608_v0 = vcombine.low %v552_v45, %v553_v51  ;;  %v668_v3 = vshrl.u32 %v555_v55, 16  ;;  %v13834_v15 = vld [vmem:[#allocation2 + $0x48] sm:$0xf]  ;;  %v332_v36 = vld [vmem:[%s13734_s8 + $0x58] sm:$0xff] }
  0x3c   : > { %12733 = vmatpush3.bf16.msra.mxu1 %v13740_v7  ;;  %v648_v1 = vrot.slane %v646_v60, 7  ;;  %v671_v4 = vshll.u32 %v555_v55, 16  ;;  %v677_v8 = vshrl.u32 %v556_v61, 16  ;;  %12734 = vmatprep.mubr.msk.bf16.mxu1 %vm1031_vm2, %v11638_v40  ;;  %v680_v12 = vshll.u32 %v556_v61, 16  ;;  %v13836_v17 = vld [vmem:[#allocation2 + $0x54] sm:$0xf] }
  0x3d   : > { %v657_v10 = vrot.slane %v655_v62, 7  ;;  %12704 = vmatprep.mubr.msk.bf16.mxu0 %vm1031_vm2, %v11608_v0  ;;  %v11609_v13 = vcombine.low %v555_v55, %v556_v61  ;;  %v630_v14 = vsel %vm13776_vm5, %v13793_v27, %v629_v41  ;;  %13326 = vmatprep.subr.msk.bf16.mxu1 %vm1080_vm0, %v13729_v5  ;;  %v670_v7 = vrot.slane %v668_v3, 7  ;;  %v13842_v21 = vld [vmem:[#allocation2 + $0x58] sm:$0xf]  ;;  %v334_v51 = vld [vmem:[%s13734_s8 + $0x68] sm:$0xff]  ;;  %s13480_s20 = sshll.u32 %s13539_s19, 4  ;;  %s13481_s20 = int_to_ptr.vmem [resolvable:$false] %s13480_s20 }
  0x3e   : > { %v679_v18 = vrot.slane %v677_v8, 7  ;;  %v639_v19 = vsel %vm13776_vm5, %v631_v42, %v638_v43  ;;  %v690_v20 = vshrl.u32 %v558_v9, 16  ;;  %v693_v23 = vshll.u32 %v558_v9, 16  ;;  %v333_v43 = vld [vmem:[%s13734_s8 + $0x60] sm:$0xff]  ;;  %s13482_s21 = scalar_lea.vmem %s13481_s20, 2048 }
  0x3f   : > { %12705 = vmatmul.mubr.msk.bf16.gmra.mxu0 %vm1031_vm2, %v11609_v13  ;;  %v11639_v22 = vcombine.low %v630_v14, %v639_v19  ;;  %v699_v24 = vshrl.u32 %v13834_v15, 16  ;;  %v702_v25 = vshll.u32 %v13834_v15, 16  ;;  %v11610_v26 = vcombine.low %v558_v9, %v13834_v15  ;;  %v336_v14 = vld [vmem:[%s13734_s8 + $0x78] sm:$0xff]  ;;  %v337_v15 = vld [vmem:[%s13734_s8 + $0x80] sm:$0xff] }
  0x40   : > { %v692_v5 = vrot.slane %v690_v20, 7  ;;  %v712_v27 = vshrl.u32 %v13836_v17, 16  ;;  %v715_v30 = vshll.u32 %v13836_v17, 16  ;;  %v721_v32 = vshrl.u32 %v13842_v21, 16  ;;  %v338_v20 = vld [vmem:[%s13734_s8 + $0x88] sm:$0xff] }
  0x41   : > { %v701_v31 = vrot.slane %v699_v24, 7  ;;  %v724_v33 = vshll.u32 %v13842_v21, 16  ;;  %v11611_v34 = vcombine.low %v13836_v17, %v13842_v21  ;;  %12708 = vmatprep.mubr.msk.bf16.mxu0 %vm1031_vm2, %v11610_v26  ;;  %v651_v40 = vor.u32 %v649_v16, %v648_v1  ;;  %v557_v16 = vld [vmem:[#allocation2 + $0x40] sm:$0x8] }
  0x42   : > { %v714_v37 = vrot.slane %v712_v27, 7  ;;  %v653_v41 = vrot.slane %v648_v1, 4  ;;  %v660_v42 = vor.u32 %v658_v63, %v657_v10  ;;  %v723_v45 = vrot.slane %v721_v32, 7  ;;  %v335_v10 = vld [vmem:[%s13734_s8 + $0x70] sm:$0xff] }
  0x43   : > { %12735 = vmatmul.mubr.msk.bf16.vlgmr.msra.gmra.mxu1 %vm1031_vm2, %v11639_v22  ;;  %v673_v46 = vor.u32 %v671_v4, %v670_v7  ;;  %v675_v47 = vrot.slane %v670_v7, 4  ;;  %v682_v50 = vor.u32 %v680_v12, %v679_v18  ;;  %v652_v54 = vsel %vm13776_vm5, %v13796_v28, %v651_v40  ;;  %v560_v28 = vld [vmem:[#allocation2 + $0x50] sm:$0x8]  ;;  %v341_v40 = vld [vmem:[%s13734_s8 + $0xa0] sm:$0xff] }
  0x44   : > { %v661_v55 = vsel %vm13776_vm5, %v653_v41, %v660_v42  ;;  %v363_v60 = vmax.f32 %v331_v35, 0.0  ;;  %v364_v61 = vmax.f32 %v332_v36, 0.0  ;;  %12801 = vmatpush3.bf16.msra.mxu1 %v13747_v11  ;;  %v365_v1 = vmax.f32 %v333_v43, 0.0  ;;  %v339_v32 = vld [vmem:[%s13734_s8 + $0x90] sm:$0xff]  ;;  %v342_v41 = vld [vmem:[%s13734_s8 + $0xa8] sm:$0xff] }
  0x45   : > { %v11640_v62 = vcombine.low %v652_v54, %v661_v55  ;;  %v674_v63 = vsel %vm13776_vm5, %v13798_v29, %v673_v46  ;;  %v683_v0 = vsel %vm13776_vm5, %v675_v47, %v682_v50  ;;  %v366_v9 = vmax.f32 %v334_v51, 0.0 }
  0x46   : > { %v11641_v3 = vcombine.low %v674_v63, %v683_v0  ;;  %v12332_v4 = vpack.c.bf16 %v363_v60, %v363_v60  ;;  %v12333_v8 = vpack.c.bf16 %v364_v61, %v364_v61  ;;  %v12334_v11 = vpack.c.bf16 %v365_v1, %v365_v1 }
  0x47   : > { %12709 = vmatmul.mubr.msk.bf16.gmra.mxu0 %vm1031_vm2, %v11611_v34  ;;  %12738 = vmatprep.mubr.msk.bf16.mxu1 %vm1031_vm2, %v11640_v62  ;;  %v685_v12 = vshrl.u32 %v557_v16, 16  ;;  %v695_v13 = vor.u32 %v693_v23, %v692_v5  ;;  %v697_v29 = vrot.slane %v692_v5, 4  ;;  %v12335_v17 = vpack.c.bf16 %v366_v9, %v366_v9  ;;  %v563_v5 = vld [vmem:[#allocation2 + $0x60] sm:$0x8] }
  0x48   : > { %523 = vst.msk [vmem:[#allocation2 + $0x64] sm:$0xf] %vm278_vm1, %v12332_v4  ;;  %524 = vst.msk [vmem:[#allocation2 + $0x68] sm:$0xf] %vm278_vm1, %v12333_v8  ;;  %v704_v7 = vor.u32 %v702_v25, %v701_v31  ;;  %v707_v18 = vshrl.u32 %v560_v28, 16  ;;  %v717_v19 = vor.u32 %v715_v30, %v714_v37  ;;  %v719_v22 = vrot.slane %v714_v37, 4 }
  0x49   : > { %525 = vst.msk [vmem:[#allocation2 + $0x74] sm:$0xf] %vm278_vm1, %v12334_v11  ;;  %v11593_v21 = vrot.slane %v685_v12, 11  ;;  %v726_v24 = vor.u32 %v724_v33, %v723_v45  ;;  %v367_v23 = vmax.f32 %v335_v10, 0.0  ;;  %526 = vst.msk [vmem:[#allocation2 + $0x78] sm:$0xf] %vm278_vm1, %v12335_v17  ;;  %v13906_v28 = vsel %vm13776_vm5, %v917_v53, %v13821_v56 }
  0x4a   : > { %v705_v26 = vsel %vm13776_vm5, %v697_v29, %v704_v7  ;;  %v11594_v25 = vrot.slane %v707_v18, 11  ;;  %v368_v27 = vmax.f32 %v336_v14, 0.0  ;;  %v369_v31 = vmax.f32 %v337_v15, 0.0  ;;  %v566_v30 = vld [vmem:[#allocation2 + $0x70] sm:$0x8]  ;;  %v340_v37 = vld [vmem:[%s13734_s8 + $0x98] sm:$0xff] }
  0x4b   : > { %12739 = vmatmul.mubr.msk.bf16.gmra.mxu1 %vm1031_vm2, %v11641_v3  ;;  %v696_v34 = vsel %vm13776_vm5, %v11593_v21, %v695_v13  ;;  %v727_v33 = vsel %vm13776_vm5, %v719_v22, %v726_v24  ;;  %v12336_v35 = vpack.c.bf16 %v367_v23, %v367_v23  ;;  %v370_v36 = vmax.f32 %v338_v20, 0.0 }
  0x4c   : > { %v11642_v42 = vcombine.low %v696_v34, %v705_v26  ;;  %v718_v43 = vsel %vm13776_vm5, %v11594_v25, %v717_v19  ;;  %v12337_v45 = vpack.c.bf16 %v368_v27, %v368_v27  ;;  %v12338_v46 = vpack.c.bf16 %v369_v31, %v369_v31 }
  0x4d   : > { %v11643_v47 = vcombine.low %v718_v43, %v727_v33  ;;  %527 = vst.msk [vmem:[#allocation2 + $0x84] sm:$0xf] %vm278_vm1, %v12336_v35  ;;  %v12339_v50 = vpack.c.bf16 %v370_v36, %v370_v36  ;;  %v729_v51 = vshrl.u32 %v563_v5, 16  ;;  %v751_v54 = vshrl.u32 %v566_v30, 16 }
  0x4e   : > { %12742 = vmatprep.mubr.msk.bf16.mxu1 %vm1031_vm2, %v11642_v42  ;;  %528 = vst.msk [vmem:[#allocation2 + $0x88] sm:$0xf] %vm278_vm1, %v12337_v45  ;;  %529 = vst.msk [vmem:[#allocation2 + $0x94] sm:$0xf] %vm278_vm1, %v12338_v46  ;;  %v371_v55 = vmax.f32 %v339_v32, 0.0  ;;  %v372_v60 = vmax.f32 %v340_v37, 0.0  ;;  %v13911_v3 = vor.u32 %v935_v49, %v13823_v58 }
  0x4f   : > { %v373_v61 = vmax.f32 %v341_v40, 0.0  ;;  %v374_v16 = vmax.f32 %v342_v41, 0.0  ;;  %v564_v62 = vld [vmem:[#allocation2 + $0x64] sm:$0xf]  ;;  %v565_v63 = vld [vmem:[#allocation2 + $0x68] sm:$0xf] }
  0x50   : > { %530 = vst.msk [vmem:[#allocation2 + $0x98] sm:$0xf] %vm278_vm1, %v12339_v50  ;;  %v11595_v0 = vrot.slane %v729_v51, 11  ;;  %v13899_v1 = vrot.slane %v751_v54, 11  ;;  %v734_v4 = vshrl.u32 %v564_v62, 16  ;;  %v737_v8 = vshll.u32 %v564_v62, 16 }
  0x51   : > { %v743_v9 = vshrl.u32 %v565_v63, 16  ;;  %v746_v10 = vshll.u32 %v565_v63, 16  ;;  %v567_v11 = vld [vmem:[#allocation2 + $0x74] sm:$0xf]  ;;  %v11612_v12 = vcombine.low %v564_v62, %v565_v63  ;;  %v568_v13 = vld [vmem:[#allocation2 + $0x78] sm:$0xf]  ;;  %v12340_v15 = vpack.c.bf16 %v371_v55, %v371_v55 }
  0x52   : > { %v756_v29 = vshrl.u32 %v567_v11, 16  ;;  %v759_v14 = vshll.u32 %v567_v11, 16  ;;  %v736_v44 = vrot.slane %v734_v4, 7  ;;  %v765_v7 = vshrl.u32 %v568_v13, 16  ;;  %v569_v42 = vld [vmem:[#allocation2 + $0x80] sm:$0x8] }
  0x53   : > { %v745_v17 = vrot.slane %v743_v9, 7  ;;  %v768_v53 = vshll.u32 %v568_v13, 16  ;;  %12712 = vmatprep.mubr.msk.bf16.mxu0 %vm1031_vm2, %v11612_v12  ;;  %v11613_v38 = vcombine.low %v567_v11, %v568_v13  ;;  %12743 = vmatmul.mubr.msk.bf16.gmra.mxu1 %vm1031_vm2, %v11643_v47  ;;  %v12341_v49 = vpack.c.bf16 %v372_v60, %v372_v60  ;;  %531 = vst.msk [vmem:[#allocation2 + $0xa4] sm:$0xf] %vm278_vm1, %v12340_v15  ;;  %v572_v60 = vld [vmem:[#allocation2 + $0x90] sm:$0x8] }
  0x54   : > { %v758_v56 = vrot.slane %v756_v29, 7  ;;  %v12342_v18 = vpack.c.bf16 %v373_v61, %v373_v61  ;;  %v767_v19 = vrot.slane %v765_v7, 7  ;;  %v570_v20 = vld [vmem:[#allocation2 + $0x84] sm:$0xf]  ;;  %v739_v21 = vor.u32 %v737_v8, %v736_v44 }
  0x55   : > { %v741_v22 = vrot.slane %v736_v44, 4  ;;  %v748_v24 = vor.u32 %v746_v10, %v745_v17  ;;  %12713 = vmatmul.mubr.msk.bf16.gmra.mxu0 %vm1031_vm2, %v11613_v38  ;;  %v571_v23 = vld [vmem:[#allocation2 + $0x88] sm:$0xf]  ;;  %v778_v5 = vshrl.u32 %v570_v20, 16  ;;  %v781_v26 = vshll.u32 %v570_v20, 16 }
  0x56   : > { %v573_v25 = vld [vmem:[#allocation2 + $0x94] sm:$0xf]  ;;  %v761_v27 = vor.u32 %v759_v14, %v758_v56  ;;  %532 = vst.msk [vmem:[#allocation2 + $0xa8] sm:$0xf] %vm278_vm1, %v12341_v49  ;;  %v12343_v31 = vpack.c.bf16 %v374_v16, %v374_v16  ;;  %533 = vst.msk [vmem:[#allocation2 + $0xb4] sm:$0xf] %vm278_vm1, %v12342_v18  ;;  %v11614_v34 = vcombine.low %v570_v20, %v571_v23 }
  0x57   : > { %v787_v30 = vshrl.u32 %v571_v23, 16  ;;  %v790_v32 = vshll.u32 %v571_v23, 16  ;;  %v574_v33 = vld [vmem:[#allocation2 + $0x98] sm:$0xf]  ;;  %v800_v35 = vshrl.u32 %v573_v25, 16  ;;  %v780_v36 = vrot.slane %v778_v5, 7 }
  0x58   : > { %v803_v37 = vshll.u32 %v573_v25, 16  ;;  %v809_v40 = vshrl.u32 %v574_v33, 16  ;;  %v812_v41 = vshll.u32 %v574_v33, 16  ;;  %534 = vst.msk [vmem:[#allocation2 + $0xb8] sm:$0xf] %vm278_vm1, %v12343_v31  ;;  %12716 = vmatprep.mubr.msk.bf16.mxu0 %vm1031_vm2, %v11614_v34  ;;  %v11615_v46 = vcombine.low %v573_v25, %v574_v33  ;;  %v344_v23 = vld [vmem:[%s13734_s8 + $0xb8] sm:$0xff] }
  0x59   : > { %v789_v43 = vrot.slane %v787_v30, 7  ;;  %v802_v45 = vrot.slane %v800_v35, 7  ;;  %v740_v47 = vsel %vm13776_vm5, %v11595_v0, %v739_v21  ;;  %v749_v51 = vsel %vm13776_vm5, %v741_v22, %v748_v24  ;;  %v345_v5 = vld [vmem:[%s13734_s8 + $0xc0] sm:$0xff] }
  0x5a   : > { %v811_v50 = vrot.slane %v809_v40, 7  ;;  %v762_v54 = vsel %vm13776_vm5, %v13899_v1, %v761_v27  ;;  %v763_v55 = vrot.slane %v758_v56, 4  ;;  %v11644_v61 = vcombine.low %v740_v47, %v749_v51  ;;  %v576_v62 = vld [vmem:[#allocation2 + $0xa4] sm:$0xf] }
  0x5b   : > { %v770_v16 = vor.u32 %v768_v53, %v767_v19  ;;  %v773_v63 = vshrl.u32 %v569_v42, 16  ;;  %v783_v4 = vor.u32 %v781_v26, %v780_v36  ;;  %v822_v8 = vshrl.u32 %v576_v62, 16  ;;  %v343_v19 = vld [vmem:[%s13734_s8 + $0xb0] sm:$0xff]  ;;  %v346_v26 = vld [vmem:[%s13734_s8 + $0xc8] sm:$0xff] }
  0x5c   : > { %v825_v9 = vshll.u32 %v576_v62, 16  ;;  %v785_v10 = vrot.slane %v780_v36, 4  ;;  %v792_v11 = vor.u32 %v790_v32, %v789_v43  ;;  %12746 = vmatprep.mubr.msk.bf16.mxu1 %vm1031_vm2, %v11644_v61  ;;  %v795_v29 = vshrl.u32 %v572_v60, 16  ;;  %v575_v32 = vld [vmem:[#allocation2 + $0xa0] sm:$0x8] }
  0x5d   : > { %v771_v0 = vsel %vm13776_vm5, %v763_v55, %v770_v16  ;;  %v577_v12 = vld [vmem:[#allocation2 + $0xa8] sm:$0xf]  ;;  %v579_v13 = vld [vmem:[#allocation2 + $0xb4] sm:$0xf]  ;;  %v11597_v1 = vrot.slane %v773_v63, 11  ;;  %v805_v14 = vor.u32 %v803_v37, %v802_v45  ;;  %12717 = vmatmul.mubr.msk.bf16.gmra.mxu0 %vm1031_vm2, %v11615_v46  ;;  %v13932_v44 = vrot.slane %v822_v8, 7 }
  0x5e   : > { %v11645_v15 = vcombine.low %v762_v54, %v771_v0  ;;  %v831_v17 = vshrl.u32 %v577_v12, 16  ;;  %v834_v7 = vshll.u32 %v577_v12, 16  ;;  %v11616_v53 = vcombine.low %v576_v62, %v577_v12  ;;  %v578_v46 = vld [vmem:[#allocation2 + $0xb0] sm:$0x8]  ;;  %v1505_v55 = vld [vmem:[#allocation2 + $0x4] sm:$0xf] }
  0x5f   : > { %v580_v56 = vld [vmem:[#allocation2 + $0xb8] sm:$0xf]  ;;  %v844_v38 = vshrl.u32 %v579_v13, 16  ;;  %v847_v49 = vshll.u32 %v579_v13, 16  ;;  %v784_v18 = vsel %vm13776_vm5, %v11597_v1, %v783_v4  ;;  %v793_v27 = vsel %vm13776_vm5, %v785_v10, %v792_v11  ;;  %v1506_v8 = vld [vmem:[#allocation2 + $0x8] sm:$0xf] }
  0x60   : > { %12747 = vmatmul.mubr.msk.bf16.gmra.mxu1 %vm1031_vm2, %v11645_v15  ;;  %v833_v20 = vrot.slane %v831_v17, 7  ;;  %v853_v21 = vshrl.u32 %v580_v56, 16  ;;  %v856_v22 = vshll.u32 %v580_v56, 16  ;;  %v11617_v24 = vcombine.low %v579_v13, %v580_v56  ;;  %12720 = vmatprep.mubr.msk.bf16.mxu0 %vm1031_vm2, %v11616_v53  ;;  %v1507_v0 = vld [vmem:[#allocation2 + $0xc] sm:$0x1] }
  0x61   : > { %v846_v25 = vrot.slane %v844_v38, 7  ;;  %v11598_v31 = vrot.slane %v795_v29, 11  ;;  %v807_v30 = vrot.slane %v802_v45, 4  ;;  %v11646_v33 = vcombine.low %v784_v18, %v793_v27  ;;  %v581_v15 = vld [vmem:[#allocation2 + $0xc0] sm:$0x8] }
  0x62   : > { %v855_v34 = vrot.slane %v853_v21, 7  ;;  %v814_v35 = vor.u32 %v812_v41, %v811_v50  ;;  %v375_v36 = vmax.f32 %v343_v19, 0.0  ;;  %v376_v40 = vmax.f32 %v344_v23, 0.0 }
  0x63   : > { %v806_v37 = vsel %vm13776_vm5, %v11598_v31, %v805_v14  ;;  %v377_v42 = vmax.f32 %v345_v5, 0.0  ;;  %v378_v43 = vmax.f32 %v346_v26, 0.0  ;;  %12750 = vmatprep.mubr.msk.bf16.mxu1 %vm1031_vm2, %v11646_v33  ;;  %v817_v54 = vshrl.u32 %v575_v32, 16 }
  0x64   : > { %v815_v47 = vsel %vm13776_vm5, %v807_v30, %v814_v35  ;;  %v12344_v51 = vpack.c.bf16 %v375_v36, %v375_v36  ;;  %v827_v45 = vor.u32 %v825_v9, %v13932_v44  ;;  %v12345_v41 = vpack.c.bf16 %v376_v40, %v376_v40 }
  0x65   : > { %v11647_v60 = vcombine.low %v806_v37, %v815_v47  ;;  %v12346_v50 = vpack.c.bf16 %v377_v42, %v377_v42  ;;  %v12347_v61 = vpack.c.bf16 %v378_v43, %v378_v43  ;;  %vm1553_vm6 = vsmask.f32 3328  ;;  %12721 = vmatmul.mubr.msk.bf16.gmra.mxu0 %vm1031_vm2, %v11617_v24 }
  0x66   : > { %vm1554_vm7 = vsmask.f32 7440  ;;  %535 = vst.msk [vmem:[#allocation2 + $0xc4] sm:$0xf] %vm278_vm1, %v12344_v51  ;;  %v11599_v16 = vrot.slane %v817_v54, 11  ;;  %v829_v62 = vrot.slane %v13932_v44, 4  ;;  %v836_v63 = vor.u32 %v834_v7, %v833_v20 }
  0x67   : > { %v839_v4 = vshrl.u32 %v578_v46, 16  ;;  %536 = vst.msk [vmem:[#allocation2 + $0xc8] sm:$0xf] %vm278_vm1, %v12345_v41  ;;  %537 = vst.msk [vmem:[#allocation2 + $0xd4] sm:$0xf] %vm278_vm1, %v12346_v50  ;;  %v849_v9 = vor.u32 %v847_v49, %v846_v25  ;;  %v851_v10 = vrot.slane %v846_v25, 4  ;;  %v858_v11 = vor.u32 %v856_v22, %v855_v34 }
  0x68   : > { %538 = vst.msk [vmem:[#allocation2 + $0xd8] sm:$0xf] %vm278_vm1, %v12347_v61  ;;  %v1557_v12 = vshrl.u32 %v1505_v55, 16  ;;  %12751 = vmatmul.mubr.msk.bf16.gmra.mxu1 %vm1031_vm2, %v11647_v60  ;;  %v828_v13 = vsel %vm13776_vm5, %v11599_v16, %v827_v45  ;;  %v837_v1 = vsel %vm13776_vm5, %v829_v62, %v836_v63  ;;  %v1560_v14 = vshll.u32 %v1505_v55, 16  ;;  %v1508_v44 = vld [vmem:[#allocation2 + $0x14] sm:$0xf]  ;;  %vm13974_vm8 = vmor %vm1553_vm6, %vm1554_vm7 }
  0x69   : > { %v11600_v29 = vrot.slane %v839_v4, 11  ;;  %v11648_v17 = vcombine.low %v828_v13, %v837_v1  ;;  %v859_v7 = vsel %vm13776_vm5, %v851_v10, %v858_v11  ;;  %v1566_v56 = vshll.u32 %v1506_v8, 16  ;;  %v1509_v20 = vld [vmem:[#allocation2 + $0x18] sm:$0xf]  ;;  %v1510_v62 = vld [vmem:[#allocation2 + $0x1c] sm:$0x1] }
  0x6a   : > { %v1559_v53 = vrot.slane %v1557_v12, 4  ;;  %v1562_v49 = vrot.slane %v1560_v14, 5  ;;  %v1570_v18 = vshrl.u32 %v1506_v8, 16  ;;  %v1576_v19 = vshll.u32 %v1507_v0, 16  ;;  %v584_v10 = vld [vmem:[#allocation2 + $0xd0] sm:$0x8] }
  0x6b   : > { %v850_v38 = vsel %vm13776_vm5, %v11600_v29, %v849_v9  ;;  %12754 = vmatprep.mubr.msk.bf16.mxu1 %vm1031_vm2, %v11648_v17  ;;  %v1568_v22 = vrot.slane %v1566_v56, 5  ;;  %v861_v24 = vshrl.u32 %v581_v15, 16  ;;  %v1581_v23 = vshrl.u32 %v1508_v44, 16  ;;  %v1511_v56 = vld [vmem:[#allocation2 + $0x24] sm:$0xf] }
  0x6c   : > { %v11649_v21 = vcombine.low %v850_v38, %v859_v7  ;;  %v1563_v5 = vor.u32 %v1562_v49, %v1559_v53  ;;  %v1572_v26 = vrot.slane %v1570_v18, 4  ;;  %v1578_v25 = vrot.slane %v1576_v19, 5  ;;  %v1512_v38 = vld [vmem:[#allocation2 + $0x28] sm:$0xf] }
  0x6d   : > { %v1584_v27 = vshll.u32 %v1508_v44, 16  ;;  %v582_v31 = vld [vmem:[#allocation2 + $0xc4] sm:$0xf]  ;;  %v11601_v30 = vrot.slane %v861_v24, 11  ;;  %v1583_v32 = vrot.slane %v1581_v23, 4  ;;  %v1590_v34 = vshll.u32 %v1509_v20, 16 }
  0x6e   : > { %v1594_v33 = vshrl.u32 %v1509_v20, 16  ;;  %v583_v35 = vld [vmem:[#allocation2 + $0xc8] sm:$0xf]  ;;  %v866_v36 = vshrl.u32 %v582_v31, 16  ;;  %v869_v37 = vshll.u32 %v582_v31, 16  ;;  %v1573_v42 = vor.u32 %v1572_v26, %v1568_v22 }
  0x6f   : > { %v585_v40 = vld [vmem:[#allocation2 + $0xd4] sm:$0xf]  ;;  %v13969_v43 = vor.u32 %v944_v6, %v13825_v59  ;;  %v875_v46 = vshrl.u32 %v583_v35, 16  ;;  %v878_v47 = vshll.u32 %v583_v35, 16  ;;  %v11618_v51 = vcombine.low %v582_v31, %v583_v35  ;;  %v586_v54 = vld [vmem:[#allocation2 + $0xd8] sm:$0xf] }
  0x70   : > { %v888_v45 = vshrl.u32 %v585_v40, 16  ;;  %v868_v55 = vrot.slane %v866_v36, 7  ;;  %v891_v60 = vshll.u32 %v585_v40, 16  ;;  %v897_v41 = vshrl.u32 %v586_v54, 16  ;;  %12755 = vmatmul.mubr.msk.bf16.gmra.mxu1 %vm1031_vm2, %v11649_v21  ;;  %v1513_v26 = vld [vmem:[#allocation2 + $0x2c] sm:$0x1] }
  0x71   : > { %v900_v50 = vshll.u32 %v586_v54, 16  ;;  %v18173_v61 = vmov 0  ;;  %v877_v39 = vrot.slane %v875_v46, 7  ;;  %12724 = vmatprep.mubr.msk.bf16.mxu0 %vm1031_vm2, %v11618_v51  ;;  %v11619_v59 = vcombine.low %v585_v40, %v586_v54  ;;  %v587_v35 = vld [vmem:[#allocation2 + $0xe0] sm:$0x8] }
  0x72   : > { %v18174_v61 = vsel %vm13974_vm8, 4294967295, %v18173_v61  ;;  %v890_v6 = vrot.slane %v888_v45, 7  ;;  %v1564_v16 = vrot.slane %v1563_v5, 4  ;;  %v899_v63 = vrot.slane %v897_v41, 7  ;;  %v1514_v36 = vld [vmem:[#allocation2 + $0x34] sm:$0xf] }
  0x73   : > { %18175 = vst [vmem:[#allocation10_spill] sm:$0xff] %v18174_v61  ;;  %v1574_v4 = vrot.slane %v1573_v42, 4  ;;  %v871_v8 = vor.u32 %v869_v37, %v868_v55  ;;  %v873_v9 = vrot.slane %v868_v55, 4  ;;  %12725 = vmatmul.mubr.msk.bf16.gmra.mxu0 %vm1031_vm2, %v11619_v59  ;;  %v880_v0 = vor.u32 %v878_v47, %v877_v39  ;;  %v1515_v47 = vld [vmem:[#allocation2 + $0x38] sm:$0xf] }
  0x74   : > { %v1569_v11 = vsel %vm13974_vm8, %v1564_v16, %v1568_v22  ;;  %v1586_v12 = vrot.slane %v1584_v27, 5  ;;  %v1592_v13 = vrot.slane %v1590_v34, 5  ;;  %v1596_v14 = vrot.slane %v1594_v33, 4 }
  0x75   : > { %v1579_v1 = vsel %vm13974_vm8, %v1574_v4, %v1578_v25  ;;  %v872_v29 = vsel %vm13776_vm5, %v11601_v30, %v871_v8  ;;  %v1600_v15 = vshll.u32 %v1510_v62, 16  ;;  %v881_v17 = vsel %vm13776_vm5, %v873_v9, %v880_v0  ;;  %v590_v4 = vld [vmem:[#allocation2 + $0xf0] sm:$0x8] }
  0x76   : > { %v11671_v44 = vcombine.low %v1569_v11, %v1579_v1  ;;  %v1587_v7 = vor.u32 %v1586_v12, %v1583_v32  ;;  %v883_v53 = vshrl.u32 %v584_v10, 16  ;;  %v11650_v49 = vcombine.low %v872_v29, %v881_v17  ;;  %v1517_v17 = vld [vmem:[#allocation2 + $0x44] sm:$0xf] }
  0x77   : > { %v1597_v18 = vor.u32 %v1596_v14, %v1592_v13  ;;  %v1602_v19 = vrot.slane %v1600_v15, 5  ;;  %v893_v20 = vor.u32 %v891_v60, %v890_v6  ;;  %v895_v24 = vrot.slane %v890_v6, 4 }
  0x78   : > { %12768 = vmatprep.mubr.msk.bf16.mxu0 %vm1031_vm2, %v11671_v44  ;;  %v1588_v21 = vrot.slane %v1587_v7, 4  ;;  %v11602_v22 = vrot.slane %v883_v53, 11  ;;  %v902_v23 = vor.u32 %v900_v50, %v899_v63  ;;  %12758 = vmatprep.mubr.msk.bf16.mxu1 %vm1031_vm2, %v11650_v49  ;;  %v1605_v25 = vshrl.u32 %v1511_v56, 16  ;;  %v1516_v50 = vld [vmem:[#allocation2 + $0x3c] sm:$0x1] }
  0x79   : > { %v1598_v5 = vrot.slane %v1597_v18, 4  ;;  %v1608_v27 = vshll.u32 %v1511_v56, 16  ;;  %v1614_v31 = vshll.u32 %v1512_v38, 16  ;;  %v1618_v33 = vshrl.u32 %v1512_v38, 16  ;;  %v1518_v7 = vld [vmem:[#allocation2 + $0x48] sm:$0xf] }
  0x7a   : > { %v1593_v30 = vsel %vm13974_vm8, %v1588_v21, %v1592_v13  ;;  %v894_v32 = vsel %vm13776_vm5, %v11602_v22, %v893_v20  ;;  %v903_v34 = vsel %vm13776_vm5, %v895_v24, %v902_v23  ;;  %v1607_v42 = vrot.slane %v1605_v25, 4  ;;  %v1519_v21 = vld [vmem:[#allocation2 + $0x4c] sm:$0x1] }
  0x7b   : > { %v1603_v37 = vsel %vm13974_vm8, %v1598_v5, %v1602_v19  ;;  %v11651_v40 = vcombine.low %v894_v32, %v903_v34  ;;  %v1610_v46 = vrot.slane %v1608_v27, 5  ;;  %v1616_v54 = vrot.slane %v1614_v31, 5  ;;  %v1520_v5 = vld [vmem:[#allocation2 + $0x54] sm:$0xf]  ;;  %v1521_v27 = vld [vmem:[#allocation2 + $0x58] sm:$0xf] }
  0x7c   : > { %v11672_v51 = vcombine.low %v1593_v30, %v1603_v37  ;;  %v1620_v45 = vrot.slane %v1618_v33, 4  ;;  %v1624_v55 = vshll.u32 %v1513_v26, 16  ;;  %v905_v41 = vshrl.u32 %v587_v35, 16  ;;  %v1522_v31 = vld [vmem:[#allocation2 + $0x5c] sm:$0x1] }
  0x7d   : > { %12759 = vmatmul.mubr.msk.bf16.gmra.mxu1 %vm1031_vm2, %v11651_v40  ;;  %v1611_v60 = vor.u32 %v1610_v46, %v1607_v42  ;;  %v1629_v39 = vshrl.u32 %v1514_v36, 16  ;;  %v1632_v6 = vshll.u32 %v1514_v36, 16  ;;  %v1638_v62 = vshll.u32 %v1515_v47, 16  ;;  %v14025_v35 = vld [vmem:[%s18150_s1 + $0xa] sm:$0x3] }
  0x7e   : > { %12769 = vmatmul.mubr.msk.bf16.vlgmr.msra.gmra.mxu0 %vm1031_vm2, %v11672_v51  ;;  %v1621_v59 = vor.u32 %v1620_v45, %v1616_v54  ;;  %v1626_v16 = vrot.slane %v1624_v55, 5  ;;  %v1642_v63 = vshrl.u32 %v1515_v47, 16  ;;  %v11603_v9 = vrot.slane %v905_v41, 11  ;;  %13328 = vmatprep.subr.msk.bf16.mxu1 %vm1080_vm0, %v14025_v35 }
  0x7f   : > { %12835 = vmatpush3.bf16.msra.mxu0 %v13769_v48  ;;  %v1612_v8 = vrot.slane %v1611_v60, 4  ;;  %v1631_v10 = vrot.slane %v1629_v39, 4  ;;  %v1634_v11 = vrot.slane %v1632_v6, 5  ;;  %v1640_v12 = vrot.slane %v1638_v62, 5  ;;  %v14040_v62 = vld [vmem:[#allocation2 + $0x18] sm:$0xf] }
  0x80   : > { %v1622_v0 = vrot.slane %v1621_v59, 4  ;;  %v1644_v13 = vrot.slane %v1642_v63, 4  ;;  %v1648_v1 = vshll.u32 %v1516_v50, 16  ;;  %v916_v14 = vsel %vm13776_vm5, %v11603_v9, %v13815_v52  ;;  %v14038_v50 = vld [vmem:[#allocation2 + $0x14] sm:$0xf] }
  0x81   : > { %v1617_v29 = vsel %vm13974_vm8, %v1612_v8, %v1616_v54  ;;  %v1635_v15 = vor.u32 %v1634_v11, %v1631_v10  ;;  %v927_v44 = vshrl.u32 %v590_v4, 16  ;;  %v11652_v53 = vcombine.low %v916_v14, %v13906_v28  ;;  %v2234_v54 = vld [vmem:[#allocation2 + $0x10] sm:$0x8] }
  0x82   : > { %v1627_v48 = vsel %vm13974_vm8, %v1622_v0, %v1626_v16  ;;  %v1645_v56 = vor.u32 %v1644_v13, %v1640_v12  ;;  %v1650_v38 = vrot.slane %v1648_v1, 5  ;;  %v939_v20 = vrot.slane %v13823_v58, 4  ;;  %v2237_v13 = vld [vmem:[#allocation2 + $0x20] sm:$0x8]  ;;  %v14046_v1 = vld [vmem:[#allocation2 + $0x24] sm:$0xf] }
  0x83   : > { %v11673_v49 = vcombine.low %v1617_v29, %v1627_v48  ;;  %v1636_v18 = vrot.slane %v1635_v15, 4  ;;  %v11604_v19 = vrot.slane %v927_v44, 11  ;;  %12762 = vmatprep.mubr.msk.bf16.mxu1 %vm1031_vm2, %v11652_v53  ;;  %v1653_v22 = vshrl.u32 %v1517_v17, 16 }
  0x84   : > { %v1646_v52 = vrot.slane %v1645_v56, 4  ;;  %v1656_v24 = vshll.u32 %v1517_v17, 16  ;;  %v1662_v23 = vshll.u32 %v1518_v7, 16  ;;  %v947_v58 = vsel %vm13776_vm5, %v939_v20, %v13969_v43 }
  0x85   : > { %12772 = vmatprep.mubr.msk.bf16.mxu0 %vm1031_vm2, %v11673_v49  ;;  %v1641_v28 = vsel %vm13974_vm8, %v1636_v18, %v1640_v12  ;;  %v938_v26 = vsel %vm13776_vm5, %v11604_v19, %v13911_v3  ;;  %v1666_v25 = vshrl.u32 %v1518_v7, 16  ;;  %v1655_v34 = vrot.slane %v1653_v22, 4  ;;  %v14030_v3 = vld [vmem:[%s18150_s1 + $0xc] sm:$0x3]  ;;  %v14052_v49 = vld [vmem:[#allocation2 + $0x28] sm:$0xf] }
  0x86   : > { %v1651_v30 = vsel %vm13974_vm8, %v1646_v52, %v1650_v38  ;;  %v11653_v32 = vcombine.low %v938_v26, %v947_v58  ;;  %v1658_v33 = vrot.slane %v1656_v24, 5  ;;  %v1664_v36 = vrot.slane %v1662_v23, 5  ;;  %13329 = vmatprep.subr.msk.bf16.mxu0 %vm1080_vm0, %v14030_v3  ;;  %v1523_v24 = vld [vmem:[#allocation2 + $0x64] sm:$0xf]  ;;  %v1524_v58 = vld [vmem:[#allocation2 + $0x68] sm:$0xf] }
  0x87   : > { %v11674_v43 = vcombine.low %v1641_v28, %v1651_v30  ;;  %v1668_v37 = vrot.slane %v1666_v25, 4  ;;  %v1672_v40 = vshll.u32 %v1519_v21, 16  ;;  %v1677_v46 = vshrl.u32 %v1520_v5, 16 }
  0x88   : > { %12763 = vmatmul.mubr.msk.bf16.gmra.mxu1 %vm1031_vm2, %v11653_v32  ;;  %v1659_v42 = vor.u32 %v1658_v33, %v1655_v34  ;;  %v1680_v47 = vshll.u32 %v1520_v5, 16  ;;  %v1686_v51 = vshll.u32 %v1521_v27, 16  ;;  %v1690_v60 = vshrl.u32 %v1521_v27, 16  ;;  %v1525_v32 = vld [vmem:[#allocation2 + $0x6c] sm:$0x1] }
  0x89   : > { %12773 = vmatmul.mubr.msk.bf16.gmra.mxu0 %vm1031_vm2, %v11674_v43  ;;  %v1669_v45 = vor.u32 %v1668_v37, %v1664_v36  ;;  %v1674_v55 = vrot.slane %v1672_v40, 5  ;;  %v1696_v41 = vshll.u32 %v1522_v31, 16  ;;  %v1679_v6 = vrot.slane %v1677_v46, 4  ;;  %v1526_v37 = vld [vmem:[#allocation2 + $0x74] sm:$0xf] }
  0x8a   : > { %v1660_v39 = vrot.slane %v1659_v42, 4  ;;  %v1682_v59 = vrot.slane %v1680_v47, 5  ;;  %v1688_v16 = vrot.slane %v1686_v51, 5  ;;  %v1692_v4 = vrot.slane %v1690_v60, 4  ;;  %v1527_v51 = vld [vmem:[#allocation2 + $0x78] sm:$0xf] }
  0x8b   : > { %v1670_v63 = vrot.slane %v1669_v45, 4  ;;  %v1698_v8 = vrot.slane %v1696_v41, 5  ;;  %v2283_v9 = vshrl.u32 %v2234_v54, 16  ;;  %v2288_v0 = vshrl.u32 %v14038_v50, 16 }
  0x8c   : > { %v1665_v10 = vsel %vm13974_vm8, %v1660_v39, %v1664_v36  ;;  %v1683_v11 = vor.u32 %v1682_v59, %v1679_v6  ;;  %v2291_v12 = vshll.u32 %v14038_v50, 16  ;;  %v1693_v14 = vor.u32 %v1692_v4, %v1688_v16  ;;  %v1528_v59 = vld [vmem:[#allocation2 + $0x7c] sm:$0x1] }
  0x8d   : > { %v1675_v29 = vsel %vm13974_vm8, %v1670_v63, %v1674_v55  ;;  %v11703_v15 = vrot.slane %v2283_v9, 11  ;;  %v2297_v44 = vshrl.u32 %v14040_v62, 16  ;;  %v2290_v48 = vrot.slane %v2288_v0, 7 }
  0x8e   : > { %v11675_v17 = vcombine.low %v1665_v10, %v1675_v29  ;;  %v1684_v7 = vrot.slane %v1683_v11, 4  ;;  %v2300_v53 = vshll.u32 %v14040_v62, 16  ;;  %v1694_v56 = vrot.slane %v1693_v14, 4  ;;  %v2240_v10 = vld [vmem:[#allocation2 + $0x30] sm:$0x8] }
  0x8f   : > { %v2299_v38 = vrot.slane %v2297_v44, 7  ;;  %v2305_v18 = vshrl.u32 %v2237_v13, 16  ;;  %v2310_v19 = vshrl.u32 %v14046_v1, 16  ;;  %v2293_v21 = vor.u32 %v2291_v12, %v2290_v48  ;;  %v14073_v29 = vld [vmem:[#allocation2 + $0x34] sm:$0xf] }
  0x90   : > { %12776 = vmatprep.mubr.msk.bf16.mxu0 %vm1031_vm2, %v11675_v17  ;;  %v1689_v20 = vsel %vm13974_vm8, %v1684_v7, %v1688_v16  ;;  %v2295_v52 = vrot.slane %v2290_v48, 4  ;;  %v2313_v22 = vshll.u32 %v14046_v1, 16  ;;  %v1699_v23 = vsel %vm13974_vm8, %v1694_v56, %v1698_v8  ;;  %v14075_v56 = vld [vmem:[#allocation2 + $0x38] sm:$0xf] }
  0x91   : > { %v2302_v5 = vor.u32 %v2300_v53, %v2299_v38  ;;  %v11704_v28 = vrot.slane %v2305_v18, 11  ;;  %v2312_v26 = vrot.slane %v2310_v19, 7  ;;  %v11676_v25 = vcombine.low %v1689_v20, %v1699_v23 }
  0x92   : > { %v2294_v27 = vsel %vm13776_vm5, %v11703_v15, %v2293_v21  ;;  %v2319_v31 = vshrl.u32 %v14052_v49, 16  ;;  %v2322_v30 = vshll.u32 %v14052_v49, 16  ;;  %v1701_v36 = vshrl.u32 %v1523_v24, 16 }
  0x93   : > { %v2303_v34 = vsel %vm13776_vm5, %v2295_v52, %v2302_v5  ;;  %v2315_v33 = vor.u32 %v2313_v22, %v2312_v26  ;;  %v2317_v43 = vrot.slane %v2312_v26, 4  ;;  %12777 = vmatmul.mubr.msk.bf16.gmra.mxu0 %vm1031_vm2, %v11676_v25  ;;  %v1704_v46 = vshll.u32 %v1523_v24, 16  ;;  %v2243_v52 = vld [vmem:[#allocation2 + $0x40] sm:$0x8] }
  0x94   : > { %v11720_v40 = vcombine.low %v2294_v27, %v2303_v34  ;;  %v2321_v42 = vrot.slane %v2319_v31, 7  ;;  %v1710_v47 = vshll.u32 %v1524_v58, 16  ;;  %v1703_v45 = vrot.slane %v1701_v36, 4  ;;  %v14085_v27 = vld [vmem:[#allocation2 + $0x44] sm:$0xf] }
  0x95   : > { %v2316_v54 = vsel %vm13776_vm5, %v11704_v28, %v2315_v33  ;;  %v1714_v55 = vshrl.u32 %v1524_v58, 16  ;;  %v1720_v60 = vshll.u32 %v1525_v32, 16  ;;  %v1706_v39 = vrot.slane %v1704_v46, 5  ;;  %v14088_v34 = vld [vmem:[#allocation2 + $0x48] sm:$0xf] }
  0x96   : > { %12802 = vmatprep.mubr.msk.bf16.mxu1 %vm1031_vm2, %v11720_v40  ;;  %v2324_v41 = vor.u32 %v2322_v30, %v2321_v42  ;;  %v1712_v6 = vrot.slane %v1710_v47, 5  ;;  %v1725_v16 = vshrl.u32 %v1526_v37, 16  ;;  %v1728_v8 = vshll.u32 %v1526_v37, 16  ;;  %v1529_v42 = vld [vmem:[#allocation2 + $0x84] sm:$0xf] }
  0x97   : > { %v1716_v63 = vrot.slane %v1714_v55, 4  ;;  %v1722_v4 = vrot.slane %v1720_v60, 5  ;;  %v1734_v9 = vshll.u32 %v1527_v51, 16  ;;  %v1707_v0 = vor.u32 %v1706_v39, %v1703_v45  ;;  %v1530_v45 = vld [vmem:[#allocation2 + $0x88] sm:$0xf] }
  0x98   : > { %v2325_v11 = vsel %vm13776_vm5, %v2317_v43, %v2324_v41  ;;  %v1727_v12 = vrot.slane %v1725_v16, 4  ;;  %v1738_v13 = vshrl.u32 %v1527_v51, 16  ;;  %v1730_v44 = vrot.slane %v1728_v8, 5  ;;  %v1531_v16 = vld [vmem:[#allocation2 + $0x8c] sm:$0x1] }
  0x99   : > { %v11721_v14 = vcombine.low %v2316_v54, %v2325_v11  ;;  %v1717_v15 = vor.u32 %v1716_v63, %v1712_v6  ;;  %v1736_v17 = vrot.slane %v1734_v9, 5  ;;  %v1708_v7 = vrot.slane %v1707_v0, 4  ;;  %v1532_v0 = vld [vmem:[#allocation2 + $0x94] sm:$0xf] }
  0x9a   : > { %v1740_v48 = vrot.slane %v1738_v13, 4  ;;  %v1744_v53 = vshll.u32 %v1528_v59, 16  ;;  %v2327_v38 = vshrl.u32 %v2240_v10, 16  ;;  %v1731_v19 = vor.u32 %v1730_v44, %v1727_v12  ;;  %v1533_v44 = vld [vmem:[#allocation2 + $0x98] sm:$0xf] }
  0x9b   : > { %12803 = vmatmul.mubr.msk.bf16.vlgmr.msra.gmra.mxu1 %vm1031_vm2, %v11721_v14  ;;  %v1718_v18 = vrot.slane %v1717_v15, 4  ;;  %v2332_v20 = vshrl.u32 %v14073_v29, 16  ;;  %v2335_v21 = vshll.u32 %v14073_v29, 16  ;;  %v1713_v22 = vsel %vm13974_vm8, %v1708_v7, %v1712_v6 }
  0x9c   : > { %v1741_v24 = vor.u32 %v1740_v48, %v1736_v17  ;;  %v1746_v23 = vrot.slane %v1744_v53, 5  ;;  %v11705_v5 = vrot.slane %v2327_v38, 11  ;;  %v1732_v26 = vrot.slane %v1731_v19, 4  ;;  %v1534_v19 = vld [vmem:[#allocation2 + $0x9c] sm:$0x1] }
  0x9d   : > { %v1723_v28 = vsel %vm13974_vm8, %v1718_v18, %v1722_v4  ;;  %v2334_v58 = vrot.slane %v2332_v20, 7  ;;  %v2341_v25 = vshrl.u32 %v14075_v56, 16  ;;  %v2344_v32 = vshll.u32 %v14075_v56, 16 }
  0x9e   : > { %v11677_v31 = vcombine.low %v1713_v22, %v1723_v28  ;;  %v1742_v30 = vrot.slane %v1741_v24, 4  ;;  %v2349_v33 = vshrl.u32 %v2243_v52, 16  ;;  %v1737_v43 = vsel %vm13974_vm8, %v1732_v26, %v1736_v17  ;;  %v14109_v28 = vld [vmem:[#allocation2 + $0x54] sm:$0xf] }
  0x9f   : > { %v2337_v36 = vor.u32 %v2335_v21, %v2334_v58  ;;  %v2339_v37 = vrot.slane %v2334_v58, 4  ;;  %v2343_v40 = vrot.slane %v2341_v25, 7  ;;  %v2354_v51 = vshrl.u32 %v14085_v27, 16 }
  0xa0   : > { %12780 = vmatprep.mubr.msk.bf16.mxu0 %vm1031_vm2, %v11677_v31  ;;  %v1747_v46 = vsel %vm13974_vm8, %v1742_v30, %v1746_v23  ;;  %v11706_v47 = vrot.slane %v2349_v33, 11  ;;  %v2357_v54 = vshll.u32 %v14085_v27, 16  ;;  %v2363_v39 = vshrl.u32 %v14088_v34, 16 }
  0xa1   : > { %v11678_v55 = vcombine.low %v1737_v43, %v1747_v46  ;;  %v2338_v60 = vsel %vm13776_vm5, %v11705_v5, %v2337_v36  ;;  %v2346_v41 = vor.u32 %v2344_v32, %v2343_v40  ;;  %v2356_v6 = vrot.slane %v2354_v51, 7  ;;  %v2246_v5 = vld [vmem:[#allocation2 + $0x50] sm:$0x8]  ;;  %v14112_v40 = vld [vmem:[#allocation2 + $0x58] sm:$0xf] }
  0xa2   : > { %v2366_v59 = vshll.u32 %v14088_v34, 16  ;;  %v1749_v63 = vshrl.u32 %v1529_v42, 16  ;;  %v1752_v4 = vshll.u32 %v1529_v42, 16  ;;  %v2365_v9 = vrot.slane %v2363_v39, 7 }
  0xa3   : > { %12781 = vmatmul.mubr.msk.bf16.gmra.mxu0 %vm1031_vm2, %v11678_v55  ;;  %v2347_v8 = vsel %vm13776_vm5, %v2339_v37, %v2346_v41  ;;  %v1758_v10 = vshll.u32 %v1530_v45, 16  ;;  %v1762_v11 = vshrl.u32 %v1530_v45, 16  ;;  %v2359_v13 = vor.u32 %v2357_v54, %v2356_v6  ;;  %v2249_v55 = vld [vmem:[#allocation2 + $0x60] sm:$0x8] }
  0xa4   : > { %v11722_v12 = vcombine.low %v2338_v60, %v2347_v8  ;;  %v2361_v14 = vrot.slane %v2356_v6, 4  ;;  %v1751_v15 = vrot.slane %v1749_v63, 4  ;;  %v2368_v17 = vor.u32 %v2366_v59, %v2365_v9  ;;  %v14120_v60 = vld [vmem:[#allocation2 + $0x64] sm:$0xf]  ;;  %v14124_v9 = vld [vmem:[#allocation2 + $0x68] sm:$0xf] }
  0xa5   : > { %v1754_v7 = vrot.slane %v1752_v4, 5  ;;  %v1760_v48 = vrot.slane %v1758_v10, 5  ;;  %v1764_v53 = vrot.slane %v1762_v11, 4  ;;  %v2360_v38 = vsel %vm13776_vm5, %v11706_v47, %v2359_v13  ;;  %v1535_v13 = vld [vmem:[#allocation2 + $0xa4] sm:$0xf] }
  0xa6   : > { %12806 = vmatprep.mubr.msk.bf16.mxu1 %vm1031_vm2, %v11722_v12  ;;  %v1768_v18 = vshll.u32 %v1531_v16, 16  ;;  %v1773_v20 = vshrl.u32 %v1532_v0, 16  ;;  %v1776_v21 = vshll.u32 %v1532_v0, 16  ;;  %v2369_v52 = vsel %vm13776_vm5, %v2361_v14, %v2368_v17 }
  0xa7   : > { %v1755_v22 = vor.u32 %v1754_v7, %v1751_v15  ;;  %v1765_v24 = vor.u32 %v1764_v53, %v1760_v48  ;;  %v1782_v23 = vshll.u32 %v1533_v44, 16  ;;  %v11723_v26 = vcombine.low %v2360_v38, %v2369_v52 }
  0xa8   : > { %v1770_v58 = vrot.slane %v1768_v18, 5  ;;  %v1775_v25 = vrot.slane %v1773_v20, 4  ;;  %v1778_v31 = vrot.slane %v1776_v21, 5  ;;  %v1786_v43 = vshrl.u32 %v1533_v44, 16  ;;  %v1536_v18 = vld [vmem:[#allocation2 + $0xa8] sm:$0xf] }
  0xa9   : > { %v1756_v30 = vrot.slane %v1755_v22, 4  ;;  %v1766_v32 = vrot.slane %v1765_v24, 4  ;;  %v1784_v33 = vrot.slane %v1782_v23, 5  ;;  %12807 = vmatmul.mubr.msk.bf16.gmra.mxu1 %vm1031_vm2, %v11723_v26  ;;  %v1792_v37 = vshll.u32 %v1534_v19, 16  ;;  %v1537_v26 = vld [vmem:[#allocation2 + $0xac] sm:$0x1] }
  0xaa   : > { %v1779_v36 = vor.u32 %v1778_v31, %v1775_v25  ;;  %v2371_v42 = vshrl.u32 %v2246_v5, 16  ;;  %v2376_v46 = vshrl.u32 %v14109_v28, 16  ;;  %v1788_v54 = vrot.slane %v1786_v43, 4 }
  0xab   : > { %v1761_v47 = vsel %vm13974_vm8, %v1756_v30, %v1760_v48  ;;  %v1771_v51 = vsel %vm13974_vm8, %v1766_v32, %v1770_v58  ;;  %v2379_v45 = vshll.u32 %v14109_v28, 16  ;;  %v1794_v6 = vrot.slane %v1792_v37, 5  ;;  %v1538_v58 = vld [vmem:[#allocation2 + $0xb4] sm:$0xf] }
  0xac   : > { %v11679_v41 = vcombine.low %v1761_v47, %v1771_v51  ;;  %v1780_v39 = vrot.slane %v1779_v36, 4  ;;  %v11707_v59 = vrot.slane %v2371_v42, 11  ;;  %v1789_v16 = vor.u32 %v1788_v54, %v1784_v33 }
  0xad   : > { %v2378_v63 = vrot.slane %v2376_v46, 7  ;;  %v2385_v4 = vshrl.u32 %v14112_v40, 16  ;;  %v2388_v8 = vshll.u32 %v14112_v40, 16  ;;  %v2393_v11 = vshrl.u32 %v2249_v55, 16  ;;  %v1540_v46 = vld [vmem:[#allocation2 + $0xbc] sm:$0x1] }
  0xae   : > { %12784 = vmatprep.mubr.msk.bf16.mxu0 %vm1031_vm2, %v11679_v41  ;;  %v1785_v10 = vsel %vm13974_vm8, %v1780_v39, %v1784_v33  ;;  %v2398_v0 = vshrl.u32 %v14120_v60, 16  ;;  %v2401_v12 = vshll.u32 %v14120_v60, 16  ;;  %v1790_v14 = vrot.slane %v1789_v16, 4  ;;  %v1539_v33 = vld [vmem:[#allocation2 + $0xb8] sm:$0xf] }
  0xaf   : > { %v2381_v15 = vor.u32 %v2379_v45, %v2378_v63  ;;  %v2383_v44 = vrot.slane %v2378_v63, 4  ;;  %v2387_v17 = vrot.slane %v2385_v4, 7  ;;  %v11708_v7 = vrot.slane %v2393_v11, 11  ;;  %v2252_v55 = vld [vmem:[#allocation2 + $0x70] sm:$0x8] }
  0xb0   : > { %v2400_v48 = vrot.slane %v2398_v0, 7  ;;  %v2407_v53 = vshrl.u32 %v14124_v9, 16  ;;  %v2410_v38 = vshll.u32 %v14124_v9, 16  ;;  %v1795_v19 = vsel %vm13974_vm8, %v1790_v14, %v1794_v6  ;;  %v14145_v16 = vld [vmem:[#allocation2 + $0x74] sm:$0xf] }
  0xb1   : > { %v2382_v20 = vsel %vm13776_vm5, %v11707_v59, %v2381_v15  ;;  %v2390_v21 = vor.u32 %v2388_v8, %v2387_v17  ;;  %v1797_v52 = vshrl.u32 %v1535_v13, 16  ;;  %v11680_v22 = vcombine.low %v1785_v10, %v1795_v19 }
  0xb2   : > { %v2403_v24 = vor.u32 %v2401_v12, %v2400_v48  ;;  %v2405_v23 = vrot.slane %v2400_v48, 4  ;;  %v2409_v5 = vrot.slane %v2407_v53, 7  ;;  %v1800_v30 = vshll.u32 %v1535_v13, 16 }
  0xb3   : > { %v2391_v25 = vsel %vm13776_vm5, %v2383_v44, %v2390_v21  ;;  %v1799_v31 = vrot.slane %v1797_v52, 4  ;;  %v1806_v32 = vshll.u32 %v1536_v18, 16  ;;  %12785 = vmatmul.mubr.msk.bf16.gmra.mxu0 %vm1031_vm2, %v11680_v22  ;;  %v1810_v42 = vshrl.u32 %v1536_v18, 16  ;;  %v14148_v44 = vld [vmem:[#allocation2 + $0x78] sm:$0xf] }
  0xb4   : > { %v11724_v43 = vcombine.low %v2382_v20, %v2391_v25  ;;  %v2404_v36 = vsel %vm13776_vm5, %v11708_v7, %v2403_v24  ;;  %v2412_v37 = vor.u32 %v2410_v38, %v2409_v5  ;;  %v1802_v47 = vrot.slane %v1800_v30, 5  ;;  %v2255_v22 = vld [vmem:[#allocation2 + $0x80] sm:$0x8]  ;;  %v14159_v25 = vld [vmem:[#allocation2 + $0x88] sm:$0xf] }
  0xb5   : > { %v1808_v51 = vrot.slane %v1806_v32, 5  ;;  %v1816_v54 = vshll.u32 %v1537_v26, 16  ;;  %v1821_v45 = vshrl.u32 %v1538_v58, 16  ;;  %v1812_v39 = vrot.slane %v1810_v42, 4 }
  0xb6   : > { %12810 = vmatprep.mubr.msk.bf16.mxu1 %vm1031_vm2, %v11724_v43  ;;  %v2413_v41 = vsel %vm13776_vm5, %v2405_v23, %v2412_v37  ;;  %v1824_v6 = vshll.u32 %v1538_v58, 16  ;;  %v1830_v59 = vshll.u32 %v1539_v33, 16  ;;  %v1803_v4 = vor.u32 %v1802_v47, %v1799_v31  ;;  %v14157_v58 = vld [vmem:[#allocation2 + $0x84] sm:$0xf] }
  0xb7   : > { %v11725_v63 = vcombine.low %v2404_v36, %v2413_v41  ;;  %v1818_v8 = vrot.slane %v1816_v54, 5  ;;  %v1823_v10 = vrot.slane %v1821_v45, 4  ;;  %v1813_v11 = vor.u32 %v1812_v39, %v1808_v51 }
  0xb8   : > { %v1826_v0 = vrot.slane %v1824_v6, 5  ;;  %v1832_v12 = vrot.slane %v1830_v59, 5  ;;  %v1834_v13 = vshrl.u32 %v1539_v33, 16  ;;  %v1804_v14 = vrot.slane %v1803_v4, 4 }
  0xb9   : > { %12811 = vmatmul.mubr.msk.bf16.gmra.mxu1 %vm1031_vm2, %v11725_v63  ;;  %v1840_v15 = vshll.u32 %v1540_v46, 16  ;;  %v2415_v17 = vshrl.u32 %v2252_v55, 16  ;;  %v2420_v7 = vshrl.u32 %v14145_v16, 16  ;;  %v1814_v48 = vrot.slane %v1813_v11, 4  ;;  %v1541_v46 = vld [vmem:[#allocation2 + $0xc4] sm:$0xf] }
  0xba   : > { %v1827_v53 = vor.u32 %v1826_v0, %v1823_v10  ;;  %v1836_v38 = vrot.slane %v1834_v13, 4  ;;  %v2423_v18 = vshll.u32 %v14145_v16, 16  ;;  %v1809_v19 = vsel %vm13974_vm8, %v1804_v14, %v1808_v51  ;;  %v1542_v55 = vld [vmem:[#allocation2 + $0xc8] sm:$0xf]  ;;  %v1543_v10 = vld [vmem:[#allocation2 + $0xcc] sm:$0x1] }
  0xbb   : > { %v1842_v20 = vrot.slane %v1840_v15, 5  ;;  %v11709_v21 = vrot.slane %v2415_v17, 11  ;;  %v2422_v52 = vrot.slane %v2420_v7, 7  ;;  %v1819_v24 = vsel %vm13974_vm8, %v1814_v48, %v1818_v8  ;;  %v1544_v15 = vld [vmem:[#allocation2 + $0xd4] sm:$0xf] }
  0xbc   : > { %v1828_v23 = vrot.slane %v1827_v53, 4  ;;  %v1837_v5 = vor.u32 %v1836_v38, %v1832_v12  ;;  %v2429_v26 = vshrl.u32 %v14148_v44, 16  ;;  %v11681_v31 = vcombine.low %v1809_v19, %v1819_v24 }
  0xbd   : > { %v2425_v30 = vor.u32 %v2423_v18, %v2422_v52  ;;  %v2427_v32 = vrot.slane %v2422_v52, 4  ;;  %v2432_v33 = vshll.u32 %v14148_v44, 16  ;;  %v2437_v42 = vshrl.u32 %v2255_v22, 16 }
  0xbe   : > { %v1833_v43 = vsel %vm13974_vm8, %v1828_v23, %v1832_v12  ;;  %v1838_v36 = vrot.slane %v1837_v5, 4  ;;  %v2431_v37 = vrot.slane %v2429_v26, 7  ;;  %12788 = vmatprep.mubr.msk.bf16.mxu0 %vm1031_vm2, %v11681_v31  ;;  %v2442_v51 = vshrl.u32 %v14157_v58, 16  ;;  %v1546_v23 = vld [vmem:[#allocation2 + $0xdc] sm:$0x1] }
  0xbf   : > { %v2426_v47 = vsel %vm13776_vm5, %v11709_v21, %v2425_v30  ;;  %v2445_v54 = vshll.u32 %v14157_v58, 16  ;;  %v2451_v45 = vshrl.u32 %v14159_v25, 16  ;;  %v11710_v6 = vrot.slane %v2437_v42, 11  ;;  %v1545_v21 = vld [vmem:[#allocation2 + $0xd8] sm:$0xf] }
  0xc0   : > { %v1843_v41 = vsel %vm13974_vm8, %v1838_v36, %v1842_v20  ;;  %v2434_v39 = vor.u32 %v2432_v33, %v2431_v37  ;;  %v2454_v59 = vshll.u32 %v14159_v25, 16  ;;  %v2444_v4 = vrot.slane %v2442_v51, 7  ;;  %v2258_v33 = vld [vmem:[#allocation2 + $0x90] sm:$0x8] }
  0xc1   : > { %v11682_v63 = vcombine.low %v1833_v43, %v1843_v41  ;;  %v2453_v8 = vrot.slane %v2451_v45, 7  ;;  %v1845_v11 = vshrl.u32 %v1541_v46, 16  ;;  %v1848_v12 = vshll.u32 %v1541_v46, 16  ;;  %v14181_v43 = vld [vmem:[#allocation2 + $0x94] sm:$0xf] }
  0xc2   : > { %v2435_v0 = vsel %vm13776_vm5, %v2427_v32, %v2434_v39  ;;  %v1854_v13 = vshll.u32 %v1542_v55, 16  ;;  %v1858_v14 = vshrl.u32 %v1542_v55, 16  ;;  %v2447_v7 = vor.u32 %v2445_v54, %v2444_v4  ;;  %v14184_v39 = vld [vmem:[#allocation2 + $0x98] sm:$0xf] }
  0xc3   : > { %12789 = vmatmul.mubr.msk.bf16.gmra.mxu0 %vm1031_vm2, %v11682_v63  ;;  %v11726_v17 = vcombine.low %v2426_v47, %v2435_v0  ;;  %v2449_v48 = vrot.slane %v2444_v4, 4  ;;  %v2456_v53 = vor.u32 %v2454_v59, %v2453_v8  ;;  %v1847_v38 = vrot.slane %v1845_v11, 4  ;;  %v2261_v11 = vld [vmem:[#allocation2 + $0xa0] sm:$0x8]  ;;  %v14191_v0 = vld [vmem:[#allocation2 + $0xa4] sm:$0xf] }
  0xc4   : > { %v1850_v18 = vrot.slane %v1848_v12, 5  ;;  %v1856_v19 = vrot.slane %v1854_v13, 5  ;;  %v1860_v20 = vrot.slane %v1858_v14, 4  ;;  %v2448_v52 = vsel %vm13776_vm5, %v11710_v6, %v2447_v7 }
  0xc5   : > { %12814 = vmatprep.mubr.msk.bf16.mxu1 %vm1031_vm2, %v11726_v17  ;;  %v2457_v22 = vsel %vm13776_vm5, %v2449_v48, %v2456_v53  ;;  %v1864_v24 = vshll.u32 %v1543_v10, 16  ;;  %v1869_v5 = vshrl.u32 %v1544_v15, 16  ;;  %v1872_v32 = vshll.u32 %v1544_v15, 16 }
  0xc6   : > { %v11727_v26 = vcombine.low %v2448_v52, %v2457_v22  ;;  %v1851_v31 = vor.u32 %v1850_v18, %v1847_v38  ;;  %v1861_v30 = vor.u32 %v1860_v20, %v1856_v19  ;;  %v1878_v42 = vshll.u32 %v1545_v21, 16  ;;  %v14196_v38 = vld [vmem:[#allocation2 + $0xa8] sm:$0xf] }
  0xc7   : > { %v1866_v36 = vrot.slane %v1864_v24, 5  ;;  %v1871_v37 = vrot.slane %v1869_v5, 4  ;;  %v1882_v46 = vshrl.u32 %v1545_v21, 16  ;;  %v1874_v54 = vrot.slane %v1872_v32, 5  ;;  %v1547_v5 = vld [vmem:[#allocation2 + $0xe4] sm:$0xf] }
  0xc8   : > { %12815 = vmatmul.mubr.msk.bf16.gmra.mxu1 %vm1031_vm2, %v11727_v26  ;;  %v1852_v47 = vrot.slane %v1851_v31, 4  ;;  %v1862_v51 = vrot.slane %v1861_v30, 4  ;;  %v1888_v45 = vshll.u32 %v1546_v23, 16  ;;  %v1880_v55 = vrot.slane %v1878_v42, 5 }
  0xc9   : > { %v1884_v41 = vrot.slane %v1882_v46, 4  ;;  %v2459_v6 = vshrl.u32 %v2258_v33, 16  ;;  %v2464_v59 = vshrl.u32 %v14181_v43, 16  ;;  %v1875_v8 = vor.u32 %v1874_v54, %v1871_v37  ;;  %v1548_v33 = vld [vmem:[#allocation2 + $0xe8] sm:$0xf] }
  0xca   : > { %v1857_v63 = vsel %vm13974_vm8, %v1852_v47, %v1856_v19  ;;  %v1867_v4 = vsel %vm13974_vm8, %v1862_v51, %v1866_v36  ;;  %v1890_v10 = vrot.slane %v1888_v45, 5  ;;  %v2467_v7 = vshll.u32 %v14181_v43, 16  ;;  %v1549_v47 = vld [vmem:[#allocation2 + $0xec] sm:$0x1] }
  0xcb   : > { %v11683_v12 = vcombine.low %v1857_v63, %v1867_v4  ;;  %v1885_v13 = vor.u32 %v1884_v41, %v1880_v55  ;;  %v11711_v14 = vrot.slane %v2459_v6, 11  ;;  %v2466_v15 = vrot.slane %v2464_v59, 7  ;;  %v1550_v41 = vld [vmem:[#allocation2 + $0xf4] sm:$0xf] }
  0xcc   : > { %v1876_v17 = vrot.slane %v1875_v8, 4  ;;  %v2473_v48 = vshrl.u32 %v14184_v39, 16  ;;  %v2476_v53 = vshll.u32 %v14184_v39, 16  ;;  %v2481_v20 = vshrl.u32 %v2261_v11, 16  ;;  %v1551_v8 = vld [vmem:[#allocation2 + $0xf8] sm:$0xf] }
  0xcd   : > { %12792 = vmatprep.mubr.msk.bf16.mxu0 %vm1031_vm2, %v11683_v12  ;;  %v1886_v18 = vrot.slane %v1885_v13, 4  ;;  %v2471_v19 = vrot.slane %v2466_v15, 4  ;;  %v2486_v21 = vshrl.u32 %v14191_v0, 16  ;;  %v2469_v22 = vor.u32 %v2467_v7, %v2466_v15 }
  0xce   : > { %v1881_v52 = vsel %vm13974_vm8, %v1876_v17, %v1880_v55  ;;  %v2475_v24 = vrot.slane %v2473_v48, 7  ;;  %v2489_v23 = vshll.u32 %v14191_v0, 16  ;;  %v11712_v31 = vrot.slane %v2481_v20, 11  ;;  %v1552_v48 = vld [vmem:[#allocation2 + $0xfc] sm:$0x1] }
  0xcf   : > { %v1891_v26 = vsel %vm13974_vm8, %v1886_v18, %v1890_v10  ;;  %v2488_v30 = vrot.slane %v2486_v21, 7  ;;  %v2495_v32 = vshrl.u32 %v14196_v38, 16  ;;  %v2470_v37 = vsel %vm13776_vm5, %v11711_v14, %v2469_v22  ;;  %v2264_v21 = vld [vmem:[#allocation2 + $0xb0] sm:$0x8] }
  0xd0   : > { %v11684_v36 = vcombine.low %v1881_v52, %v1891_v26  ;;  %v2478_v42 = vor.u32 %v2476_v53, %v2475_v24  ;;  %v2498_v46 = vshll.u32 %v14196_v38, 16  ;;  %v1893_v55 = vshrl.u32 %v1547_v5, 16 }
  0xd1   : > { %v2491_v51 = vor.u32 %v2489_v23, %v2488_v30  ;;  %v2493_v54 = vrot.slane %v2488_v30, 4  ;;  %v2497_v45 = vrot.slane %v2495_v32, 7  ;;  %v1896_v59 = vshll.u32 %v1547_v5, 16  ;;  %v14217_v5 = vld [vmem:[#allocation2 + $0xb4] sm:$0xf] }
  0xd2   : > { %12793 = vmatmul.mubr.msk.bf16.gmra.mxu0 %vm1031_vm2, %v11684_v36  ;;  %v2479_v6 = vsel %vm13776_vm5, %v2471_v19, %v2478_v42  ;;  %v1902_v63 = vshll.u32 %v1548_v33, 16  ;;  %v1906_v4 = vshrl.u32 %v1548_v33, 16  ;;  %v1895_v13 = vrot.slane %v1893_v55, 4  ;;  %v14219_v33 = vld [vmem:[#allocation2 + $0xb8] sm:$0xf] }
  0xd3   : > { %v11728_v10 = vcombine.low %v2470_v37, %v2479_v6  ;;  %v2492_v11 = vsel %vm13776_vm5, %v11712_v31, %v2491_v51  ;;  %v2500_v12 = vor.u32 %v2498_v46, %v2497_v45  ;;  %v1898_v14 = vrot.slane %v1896_v59, 5 }
  0xd4   : > { %v1904_v15 = vrot.slane %v1902_v63, 5  ;;  %v1908_v17 = vrot.slane %v1906_v4, 4  ;;  %v1912_v7 = vshll.u32 %v1549_v47, 16  ;;  %v1917_v18 = vshrl.u32 %v1550_v41, 16  ;;  %v2267_v47 = vld [vmem:[#allocation2 + $0xc0] sm:$0x8] }
  0xd5   : > { %12818 = vmatprep.mubr.msk.bf16.mxu1 %vm1031_vm2, %v11728_v10  ;;  %v2501_v53 = vsel %vm13776_vm5, %v2493_v54, %v2500_v12  ;;  %v1920_v19 = vshll.u32 %v1550_v41, 16  ;;  %v1926_v20 = vshll.u32 %v1551_v8, 16  ;;  %v1899_v22 = vor.u32 %v1898_v14, %v1895_v13  ;;  %v14224_v41 = vld [vmem:[#allocation2 + $0xc4] sm:$0xf] }
  0xd6   : > { %v11729_v52 = vcombine.low %v2492_v11, %v2501_v53  ;;  %v1909_v24 = vor.u32 %v1908_v17, %v1904_v15  ;;  %v1914_v23 = vrot.slane %v1912_v7, 5  ;;  %v1919_v26 = vrot.slane %v1917_v18, 4  ;;  %v14232_v17 = vld [vmem:[#allocation2 + $0xc8] sm:$0xf] }
  0xd7   : > { %v1922_v31 = vrot.slane %v1920_v19, 5  ;;  %v1928_v30 = vrot.slane %v1926_v20, 5  ;;  %v1930_v32 = vshrl.u32 %v1551_v8, 16  ;;  %v1900_v36 = vrot.slane %v1899_v22, 4 }
  0xd8   : > { %12819 = vmatmul.mubr.msk.bf16.gmra.mxu1 %vm1031_vm2, %v11729_v52  ;;  %v1910_v37 = vrot.slane %v1909_v24, 4  ;;  %v1936_v42 = vshll.u32 %v1552_v48, 16  ;;  %v2503_v46 = vshrl.u32 %v2264_v21, 16  ;;  %v2508_v45 = vshrl.u32 %v14217_v5, 16  ;;  %v2270_v24 = vld [vmem:[#allocation2 + $0xd0] sm:$0x8] }
  0xd9   : > { %v1923_v51 = vor.u32 %v1922_v31, %v1919_v26  ;;  %v1932_v54 = vrot.slane %v1930_v32, 4  ;;  %v2511_v55 = vshll.u32 %v14217_v5, 16  ;;  %v1905_v6 = vsel %vm13974_vm8, %v1900_v36, %v1904_v15 }
  0xda   : > { %v1915_v59 = vsel %vm13974_vm8, %v1910_v37, %v1914_v23  ;;  %v1938_v63 = vrot.slane %v1936_v42, 5  ;;  %v11713_v4 = vrot.slane %v2503_v46, 11  ;;  %v2510_v12 = vrot.slane %v2508_v45, 7 }
  0xdb   : > { %v11685_v8 = vcombine.low %v1905_v6, %v1915_v59  ;;  %v1924_v10 = vrot.slane %v1923_v51, 4  ;;  %v1933_v11 = vor.u32 %v1932_v54, %v1928_v30  ;;  %v2517_v13 = vshrl.u32 %v14219_v33, 16  ;;  %v14252_v51 = vld [vmem:[%s18150_s1 + $0xe] sm:$0x3] }
  0xdc   : > { %v2520_v14 = vshll.u32 %v14219_v33, 16  ;;  %v2525_v7 = vshrl.u32 %v2267_v47, 16  ;;  %v2530_v48 = vshrl.u32 %v14224_v41, 16  ;;  %v2513_v18 = vor.u32 %v2511_v55, %v2510_v12  ;;  %v14247_v47 = vld [vmem:[#allocation2 + $0xd8] sm:$0xf] }
  0xdd   : > { %12796 = vmatprep.mubr.msk.bf16.mxu0 %vm1031_vm2, %v11685_v8  ;;  %v1929_v15 = vsel %vm13974_vm8, %v1924_v10, %v1928_v30  ;;  %v1934_v53 = vrot.slane %v1933_v11, 4  ;;  %v2515_v19 = vrot.slane %v2510_v12, 4  ;;  %v2519_v20 = vrot.slane %v2517_v13, 7  ;;  %v14245_v30 = vld [vmem:[#allocation2 + $0xd4] sm:$0xf] }
  0xde   : > { %v11714_v21 = vrot.slane %v2525_v7, 11  ;;  %v2532_v52 = vrot.slane %v2530_v48, 7  ;;  %v2533_v22 = vshll.u32 %v14224_v41, 16  ;;  %v2514_v26 = vsel %vm13776_vm5, %v11713_v4, %v2513_v18  ;;  %v2273_v10 = vld [vmem:[#allocation2 + $0xe0] sm:$0x8] }
  0xdf   : > { %v1939_v23 = vsel %vm13974_vm8, %v1934_v53, %v1938_v63  ;;  %v2539_v31 = vshrl.u32 %v14232_v17, 16  ;;  %v2542_v32 = vshll.u32 %v14232_v17, 16  ;;  %v2522_v37 = vor.u32 %v2520_v14, %v2519_v20  ;;  %v14265_v11 = vld [vmem:[#allocation2 + $0xe4] sm:$0xf] }
  0xe0   : > { %v11686_v36 = vcombine.low %v1929_v15, %v1939_v23  ;;  %v2535_v42 = vor.u32 %v2533_v22, %v2532_v52  ;;  %v2537_v46 = vrot.slane %v2532_v52, 4  ;;  %v3785_v45 = vsel %vm1080_vm0, %v14025_v35, 0  ;;  %v14276_v15 = vld [vmem:[#allocation2 + $0xe8] sm:$0xf] }
  0xe1   : > { %v2541_v54 = vrot.slane %v2539_v31, 7  ;;  %v11753_v55 = vcombine.low %v14038_v50, %v14040_v62  ;;  %v2547_v6 = vshrl.u32 %v2270_v24, 16  ;;  %v2523_v59 = vsel %vm13776_vm5, %v2515_v19, %v2522_v37  ;;  %12869 = vmatpush3.bf16.msra.mxu1 %v3785_v45  ;;  %v14284_v31 = vld [vmem:[#allocation2 + $0xf4] sm:$0xf] }
  0xe2   : > { %12797 = vmatmul.mubr.msk.bf16.gmra.mxu0 %vm1031_vm2, %v11686_v36  ;;  %v2536_v63 = vsel %vm13776_vm5, %v11714_v21, %v2535_v42  ;;  %v2552_v4 = vshrl.u32 %v14245_v30, 16  ;;  %v2555_v8 = vshll.u32 %v14245_v30, 16  ;;  %v11730_v35 = vcombine.low %v2514_v26, %v2523_v59  ;;  %13330 = vmatprep.subr.msk.bf16.mxu1 %vm1080_vm0, %v14252_v51  ;;  %v2276_v21 = vld [vmem:[#allocation2 + $0xf0] sm:$0x8]  ;;  %v14292_v42 = vld [vmem:[#allocation2 + $0xf8] sm:$0xf] }
  0xe3   : > { %v2544_v12 = vor.u32 %v2542_v32, %v2541_v54  ;;  %12836 = vmatprep.mubr.msk.bf16.mxu0 %vm1031_vm2, %v11753_v55  ;;  %v11715_v50 = vrot.slane %v2547_v6, 11  ;;  %v2561_v62 = vshrl.u32 %v14247_v47, 16  ;;  %v2564_v14 = vshll.u32 %v14247_v47, 16  ;;  %v351_v59 = vld [vmem:[%s13734_s8 + $0xf0] sm:$0xff] }
  0xe4   : > { %v2554_v13 = vrot.slane %v2552_v4, 7  ;;  %v11754_v7 = vcombine.low %v14046_v1, %v14052_v49  ;;  %v4480_v48 = vsel %vm1080_vm0, %v14030_v3, 0  ;;  %12822 = vmatprep.mubr.msk.bf16.mxu1 %vm1031_vm2, %v11730_v35  ;;  %v2569_v19 = vshrl.u32 %v2273_v10, 16  ;;  %v14301_v4 = vld [vmem:[%s18150_s1 + $0x10] sm:$0x3] }
  0xe5   : > { %v2545_v53 = vsel %vm13776_vm5, %v2537_v46, %v2544_v12  ;;  %v2563_v18 = vrot.slane %v2561_v62, 7  ;;  %v2574_v20 = vshrl.u32 %v14265_v11, 16  ;;  %v2577_v1 = vshll.u32 %v14265_v11, 16  ;;  %v2279_v35 = vld [vmem:[#allocation2 + $0x100] sm:$0x8] }
  0xe6   : > { %v11731_v52 = vcombine.low %v2536_v63, %v2545_v53  ;;  %v2557_v22 = vor.u32 %v2555_v8, %v2554_v13  ;;  %v2559_v24 = vrot.slane %v2554_v13, 4  ;;  %v11716_v3 = vrot.slane %v2569_v19, 11  ;;  %v352_v63 = vld [vmem:[%s13734_s8 + $0xf8] sm:$0xff] }
  0xe7   : > { %v2566_v49 = vor.u32 %v2564_v14, %v2563_v18  ;;  %v2576_v23 = vrot.slane %v2574_v20, 7  ;;  %v2583_v26 = vshrl.u32 %v14276_v15, 16  ;;  %v2586_v36 = vshll.u32 %v14276_v15, 16 }
  0xe8   : > { %12823 = vmatmul.mubr.msk.bf16.gmra.mxu1 %vm1031_vm2, %v11731_v52  ;;  %v2558_v32 = vsel %vm13776_vm5, %v11715_v50, %v2557_v22  ;;  %v11755_v37 = vcombine.low %v14073_v29, %v14075_v56  ;;  %v2591_v46 = vshrl.u32 %v2276_v21, 16  ;;  %v2596_v56 = vshrl.u32 %v14284_v31, 16  ;;  %v3254_v52 = vld [vmem:[#allocation2 + $0x14] sm:$0xf]  ;;  %v3255_v22 = vld [vmem:[#allocation2 + $0x18] sm:$0xf] }
  0xe9   : > { %v2567_v54 = vsel %vm13776_vm5, %v2559_v24, %v2566_v49  ;;  %v2579_v45 = vor.u32 %v2577_v1, %v2576_v23  ;;  %v2581_v55 = vrot.slane %v2576_v23, 4  ;;  %v2585_v6 = vrot.slane %v2583_v26, 7 }
  0xea   : > { %v11732_v8 = vcombine.low %v2558_v32, %v2567_v54  ;;  %12837 = vmatmul.mubr.msk.bf16.vlgmr.msra.gmra.mxu0 %vm1031_vm2, %v11754_v7  ;;  %v11717_v29 = vrot.slane %v2591_v46, 11  ;;  %v2599_v10 = vshll.u32 %v14284_v31, 16  ;;  %v2605_v62 = vshrl.u32 %v14292_v42, 16  ;;  %v3258_v54 = vld [vmem:[#allocation2 + $0x28] sm:$0xf] }
  0xeb   : > { %12903 = vmatpush3.bf16.msra.mxu0 %v4480_v48  ;;  %v2580_v12 = vsel %vm13776_vm5, %v11716_v3, %v2579_v45  ;;  %v2588_v50 = vor.u32 %v2586_v36, %v2585_v6  ;;  %12840 = vmatprep.mubr.msk.bf16.mxu0 %vm1031_vm2, %v11755_v37  ;;  %v2608_v13 = vshll.u32 %v14292_v42, 16  ;;  %v2598_v14 = vrot.slane %v2596_v56, 7 }
  0xec   : > { %12826 = vmatprep.mubr.msk.bf16.mxu1 %vm1031_vm2, %v11732_v8  ;;  %v11756_v7 = vcombine.low %v14085_v27, %v14088_v34  ;;  %v383_v53 = vmax.f32 %v351_v59, 0.0  ;;  %v384_v18 = vmax.f32 %v352_v63, 0.0  ;;  %13331 = vmatprep.subr.msk.bf16.mxu0 %vm1080_vm0, %v14301_v4  ;;  %v2607_v19 = vrot.slane %v2605_v62, 7  ;;  %v3256_v27 = vld [vmem:[#allocation2 + $0x1c] sm:$0x1] }
  0xed   : > { %v2589_v48 = vsel %vm13776_vm5, %v2581_v55, %v2588_v50  ;;  %v2613_v20 = vshrl.u32 %v2279_v35, 16  ;;  %v11757_v21 = vcombine.low %v14109_v28, %v14112_v40  ;;  %v2601_v1 = vor.u32 %v2599_v10, %v2598_v14  ;;  %v3257_v34 = vld [vmem:[#allocation2 + $0x24] sm:$0xf]  ;;  %v3259_v59 = vld [vmem:[#allocation2 + $0x2c] sm:$0x1] }
  0xee   : > { %v11733_v24 = vcombine.low %v2580_v12, %v2589_v48  ;;  %v2603_v49 = vrot.slane %v2598_v14, 4  ;;  %v12352_v3 = vpack.c.bf16 %v383_v53, %v383_v53  ;;  %v2610_v23 = vor.u32 %v2608_v13, %v2607_v19  ;;  %v3260_v53 = vld [vmem:[#allocation2 + $0x34] sm:$0xf] }
  0xef   : > { %v12353_v26 = vpack.c.bf16 %v384_v18, %v384_v18  ;;  %v14320_v32 = vrot.slane %v2613_v20, 11  ;;  %v11758_v36 = vcombine.low %v14120_v60, %v14124_v9  ;;  %v2602_v28 = vsel %vm13776_vm5, %v11717_v29, %v2601_v1 }
  0xf0   : > { %12827 = vmatmul.mubr.msk.bf16.gmra.mxu1 %vm1031_vm2, %v11733_v24  ;;  %543 = vst.msk [vmem:[#allocation2 + $0x104] sm:$0xf] %vm278_vm1, %v12352_v3  ;;  %v3303_v40 = vshrl.u32 %v3254_v52, 16  ;;  %v3306_v37 = vshll.u32 %v3254_v52, 16  ;;  %v3312_v46 = vshll.u32 %v3255_v22, 16  ;;  %v2611_v45 = vsel %vm13776_vm5, %v2603_v49, %v2610_v23 }
  0xf1   : > { %544 = vst.msk [vmem:[#allocation2 + $0x108] sm:$0xf] %vm278_vm1, %v12353_v26  ;;  %v3316_v55 = vshrl.u32 %v3255_v22, 16  ;;  %v3322_v6 = vshll.u32 %v3256_v27, 16  ;;  %v3327_v60 = vshrl.u32 %v3257_v34, 16  ;;  %v11734_v9 = vcombine.low %v2602_v28, %v2611_v45 }
  0xf2   : > { %12841 = vmatmul.mubr.msk.bf16.gmra.mxu0 %vm1031_vm2, %v11756_v7  ;;  %v3305_v63 = vrot.slane %v3303_v40, 4  ;;  %v3308_v8 = vrot.slane %v3306_v37, 5  ;;  %v3314_v29 = vrot.slane %v3312_v46, 5  ;;  %v3330_v12 = vshll.u32 %v3257_v34, 16  ;;  %v3261_v28 = vld [vmem:[#allocation2 + $0x38] sm:$0xf] }
  0xf3   : > { %12844 = vmatprep.mubr.msk.bf16.mxu0 %vm1031_vm2, %v11757_v21  ;;  %v3318_v56 = vrot.slane %v3316_v55, 4  ;;  %v3324_v10 = vrot.slane %v3322_v6, 5  ;;  %v3329_v35 = vrot.slane %v3327_v60, 4  ;;  %12830 = vmatprep.mubr.msk.bf16.mxu1 %vm1031_vm2, %v11734_v9  ;;  %v3336_v62 = vshll.u32 %v3258_v54, 16  ;;  %v14346_v40 = vpop.f32.mrf.mxu0  ;;  %v3262_v60 = vld [vmem:[#allocation2 + $0x3c] sm:$0x1] }
  0xf4   : > { %v3309_v50 = vor.u32 %v3308_v8, %v3305_v63  ;;  %v3340_v13 = vshrl.u32 %v3258_v54, 16  ;;  %v3346_v14 = vshll.u32 %v3259_v59, 16  ;;  %v3332_v48 = vrot.slane %v3330_v12, 5  ;;  %v3263_v12 = vld [vmem:[#allocation2 + $0x44] sm:$0xf] }
  0xf5   : > { %v3319_v18 = vor.u32 %v3318_v56, %v3314_v29  ;;  %v11759_v7 = vcombine.low %v14145_v16, %v14148_v44  ;;  %v11760_v19 = vcombine.low %v14157_v58, %v14159_v25  ;;  %v3338_v21 = vrot.slane %v3336_v62, 5  ;;  %v14353_v63 = vpop.f32.mrf.mxu0 }
  0xf6   : > { %v3310_v20 = vrot.slane %v3309_v50, 4  ;;  %v3342_v52 = vrot.slane %v3340_v13, 4  ;;  %v3348_v22 = vrot.slane %v3346_v14, 5  ;;  %v3333_v49 = vor.u32 %v3332_v48, %v3329_v35  ;;  %v3264_v13 = vld [vmem:[#allocation2 + $0x48] sm:$0xf] }
  0xf7   : > { %v14338_v24 = vld [vmem:[#allocation2 + $0x104] sm:$0xf]  ;;  %v3320_v1 = vrot.slane %v3319_v18, 4  ;;  %v3351_v3 = vshrl.u32 %v3260_v53, 16  ;;  %v3354_v27 = vshll.u32 %v3260_v53, 16  ;;  %v3360_v35 = vshll.u32 %v3261_v28, 16  ;;  %v14360_v14 = vpop.f32.mrf.mxu0 }
  0xf8   : > { %v14340_v34 = vld [vmem:[#allocation2 + $0x108] sm:$0xf]  ;;  %v2618_v23 = vshrl.u32 %v14338_v24, 16  ;;  %v2621_v26 = vshll.u32 %v14338_v24, 16  ;;  %v3315_v16 = vsel %vm13974_vm8, %v3310_v20, %v3314_v29  ;;  %v3343_v44 = vor.u32 %v3342_v52, %v3338_v21 }
  0xf9   : > { %v2627_v37 = vshrl.u32 %v14340_v34, 16  ;;  %v2630_v46 = vshll.u32 %v14340_v34, 16  ;;  %v3325_v54 = vsel %vm13974_vm8, %v3320_v1, %v3324_v10  ;;  %v3334_v45 = vrot.slane %v3333_v49, 4 }
  0xfa   : > { %v2620_v55 = vrot.slane %v2618_v23, 7  ;;  %12845 = vmatmul.mubr.msk.bf16.gmra.mxu0 %vm1031_vm2, %v11758_v36  ;;  %v11786_v6 = vcombine.low %v3315_v16, %v3325_v54  ;;  %v3344_v59 = vrot.slane %v3343_v44, 4  ;;  %v3353_v9 = vrot.slane %v3351_v3, 4  ;;  %v14369_v3 = vpop.f32.mrf.mxu0  ;;  %v3265_v23 = vld [vmem:[#allocation2 + $0x4c] sm:$0x1] }
  0xfb   : > { %v2629_v8 = vrot.slane %v2627_v37, 7  ;;  %v3339_v29 = vsel %vm13974_vm8, %v3334_v45, %v3338_v21  ;;  %12848 = vmatprep.mubr.msk.bf16.mxu0 %vm1031_vm2, %v11759_v7  ;;  %v3356_v56 = vrot.slane %v3354_v27, 5  ;;  %v3364_v62 = vshrl.u32 %v3261_v28, 16  ;;  %v14364_v21 = vpop.f32.mrf.mxu1  ;;  %18177 = vst [vmem:[#allocation12_spill] sm:$0xff] %v14369_v3  ;;  %v3266_v45 = vld [vmem:[#allocation2 + $0x54] sm:$0xf] }
  0xfc   : > { %v2623_v10 = vor.u32 %v2621_v26, %v2620_v55  ;;  %v2625_v50 = vrot.slane %v2620_v55, 4  ;;  %v3349_v36 = vsel %vm13974_vm8, %v3344_v59, %v3348_v22  ;;  %v3362_v20 = vrot.slane %v3360_v35, 5  ;;  %18176 = vst [vmem:[#allocation11_spill] sm:$0xff] %v14364_v21  ;;  %v14542_v3 = vld [vmem:[#allocation2 + $0x34] sm:$0xf] }
  0xfd   : > { %v2632_v53 = vor.u32 %v2630_v46, %v2629_v8  ;;  %v14362_v18 = vcombine.low %v3339_v29, %v3349_v36  ;;  %v3357_v48 = vor.u32 %v3356_v56, %v3353_v9  ;;  %v3366_v52 = vrot.slane %v3364_v62, 4  ;;  %v14373_v44 = vpop.f32.mrf.mxu1  ;;  %v3267_v9 = vld [vmem:[#allocation2 + $0x58] sm:$0xf]  ;;  %v3268_v62 = vld [vmem:[#allocation2 + $0x5c] sm:$0x1] }
  0xfe   : > { %v2624_v7 = vsel %vm13776_vm5, %v14320_v32, %v2623_v10  ;;  %v3370_v1 = vshll.u32 %v3262_v60, 16  ;;  %v3375_v49 = vshrl.u32 %v3263_v12, 16  ;;  %v3378_v26 = vshll.u32 %v3263_v12, 16  ;;  %18178 = vst [vmem:[#allocation13_spill] sm:$0xff] %v14373_v44  ;;  %v14550_v21 = vld [vmem:[#allocation2 + $0x38] sm:$0xf] }
  0xff   : > { %v2633_v22 = vsel %vm13776_vm5, %v2625_v50, %v2632_v53  ;;  %v3358_v27 = vrot.slane %v3357_v48, 4  ;;  %v3384_v16 = vshll.u32 %v3264_v13, 16  ;;  %v3367_v37 = vor.u32 %v3366_v52, %v3362_v20  ;;  %v14377_v8 = vpop.f32.mrf.mxu1  ;;  %v14379_v29 = vpop.f32.mrf.mxu0  ;;  %v3270_v52 = vld [vmem:[#allocation2 + $0x68] sm:$0xf] }
 0x100   : > { %v11735_v28 = vcombine.low %v2624_v7, %v2633_v22  ;;  %v3372_v46 = vrot.slane %v3370_v1, 5  ;;  %v3377_v54 = vrot.slane %v3375_v49, 4  ;;  %v3380_v55 = vrot.slane %v3378_v26, 5  ;;  %18179 = vst [vmem:[#allocation14_spill] sm:$0xff] %v14377_v8 }
 0x101   : > { %v3363_v32 = vsel %vm13974_vm8, %v3358_v27, %v3362_v20  ;;  %v3386_v59 = vrot.slane %v3384_v16, 5  ;;  %v3388_v60 = vshrl.u32 %v3264_v13, 16  ;;  %v3368_v56 = vrot.slane %v3367_v37, 4  ;;  %v14391_v48 = vpop.f32.mrf.mxu1  ;;  %v14393_v58 = vpop.f32.mrf.mxu0 }
 0x102   : > { %12831 = vmatmul.mubr.msk.bf16.gmra.mxu1 %vm1031_vm2, %v11735_v28  ;;  %12849 = vmatmul.mubr.msk.bf16.gmra.mxu0 %vm1031_vm2, %v11760_v19  ;;  %v3394_v35 = vshll.u32 %v3265_v23, 16  ;;  %v11761_v12 = vcombine.low %v14181_v43, %v14184_v39  ;;  %v11762_v10 = vcombine.low %v14191_v0, %v14196_v38  ;;  %v3381_v50 = vor.u32 %v3380_v55, %v3377_v54  ;;  %v3269_v0 = vld [vmem:[#allocation2 + $0x64] sm:$0xf] }
 0x103   : > { %12870 = vmatprep.mubr.msk.bf16.mxu1 %vm1031_vm2, %v11786_v6  ;;  %v3390_v36 = vrot.slane %v3388_v60, 4  ;;  %v3399_v13 = vshrl.u32 %v3266_v45, 16  ;;  %v3402_v53 = vshll.u32 %v3266_v45, 16  ;;  %18180 = vst [vmem:[#allocation15_spill] sm:$0xff] %v14391_v48  ;;  %v3373_v25 = vsel %vm13974_vm8, %v3368_v56, %v3372_v46  ;;  %v14398_v1 = vpop.f32.mrf.mxu1  ;;  %v14400_v49 = vpop.f32.mrf.mxu0 }
 0x104   : > { %v3396_v19 = vrot.slane %v3394_v35, 5  ;;  %12852 = vmatprep.mubr.msk.bf16.mxu0 %vm1031_vm2, %v11761_v12  ;;  %v3408_v43 = vshll.u32 %v3267_v9, 16  ;;  %v3412_v39 = vshrl.u32 %v3267_v9, 16  ;;  %v11788_v38 = vcombine.low %v3363_v32, %v3373_v25  ;;  %v3271_v9 = vld [vmem:[#allocation2 + $0x6c] sm:$0x1] }
 0x105   : > { %v3382_v6 = vrot.slane %v3381_v50, 4  ;;  %v3391_v20 = vor.u32 %v3390_v36, %v3386_v59  ;;  %v3401_v7 = vrot.slane %v3399_v13, 4  ;;  %v3404_v22 = vrot.slane %v3402_v53, 5  ;;  %v14404_v54 = vpop.f32.mrf.mxu1  ;;  %v14406_v45 = vpop.f32.mrf.mxu0 }
 0x106   : > { %v3410_v27 = vrot.slane %v3408_v43, 5  ;;  %v3414_v23 = vrot.slane %v3412_v39, 4  ;;  %v3418_v26 = vshll.u32 %v3268_v62, 16  ;;  %v3423_v37 = vshrl.u32 %v3269_v0, 16  ;;  %18181 = vst [vmem:[#allocation16_spill] sm:$0xff] %v14406_v45 }
 0x107   : > { %v3387_v16 = vsel %vm13974_vm8, %v3382_v6, %v3386_v59  ;;  %v3392_v28 = vrot.slane %v3391_v20, 4  ;;  %v3426_v46 = vshll.u32 %v3269_v0, 16  ;;  %v3405_v32 = vor.u32 %v3404_v22, %v3401_v7  ;;  %v3272_v62 = vld [vmem:[#allocation2 + $0x74] sm:$0xf]  ;;  %v14410_v59 = vpop.f32.mrf.mxu1  ;;  %v14412_v13 = vpop.f32.mrf.mxu0  ;;  %v3273_v7 = vld [vmem:[#allocation2 + $0x78] sm:$0xf] }
 0x108   : > { %v3415_v55 = vor.u32 %v3414_v23, %v3410_v27  ;;  %v3420_v60 = vrot.slane %v3418_v26, 5  ;;  %v3432_v56 = vshll.u32 %v3270_v52, 16  ;;  %v3425_v12 = vrot.slane %v3423_v37, 4  ;;  %v3274_v23 = vld [vmem:[#allocation2 + $0x7c] sm:$0x1] }
 0x109   : > { %v3397_v35 = vsel %vm13974_vm8, %v3392_v28, %v3396_v19  ;;  %v3428_v50 = vrot.slane %v3426_v46, 5  ;;  %v3436_v36 = vshrl.u32 %v3270_v52, 16  ;;  %v3406_v25 = vrot.slane %v3405_v32, 4  ;;  %v14420_v52 = vpop.f32.mrf.mxu1  ;;  %v14422_v22 = vpop.f32.mrf.mxu0 }
 0x10a   : > { %12871 = vmatmul.mubr.msk.bf16.vlgmr.msra.gmra.mxu1 %vm1031_vm2, %v14362_v18  ;;  %v11789_v53 = vcombine.low %v3387_v16, %v3397_v35  ;;  %12853 = vmatmul.mubr.msk.bf16.gmra.mxu0 %vm1031_vm2, %v11762_v10  ;;  %v3416_v43 = vrot.slane %v3415_v55, 4  ;;  %v3434_v39 = vrot.slane %v3432_v56, 5  ;;  %v3442_v6 = vshll.u32 %v3271_v9, 16  ;;  %18182 = vst [vmem:[#allocation17_spill] sm:$0xff] %v14420_v52  ;;  %v3275_v16 = vld [vmem:[#allocation2 + $0x84] sm:$0xf] }
 0x10b   : > { %12874 = vmatprep.mubr.msk.bf16.mxu1 %vm1031_vm2, %v11788_v38  ;;  %v3429_v19 = vor.u32 %v3428_v50, %v3425_v12  ;;  %v3438_v0 = vrot.slane %v3436_v36, 4  ;;  %v11763_v20 = vcombine.low %v14217_v5, %v14219_v33  ;;  %v3411_v18 = vsel %vm13974_vm8, %v3406_v25, %v3410_v27  ;;  %v14431_v46 = vpop.f32.mrf.mxu1  ;;  %v3276_v56 = vld [vmem:[#allocation2 + $0x88] sm:$0xf]  ;;  %v14437_v50 = vpop.f32.mrf.mxu0 }
 0x10c   : > { %v3421_v10 = vsel %vm13974_vm8, %v3416_v43, %v3420_v60  ;;  %v11764_v38 = vcombine.low %v14224_v41, %v14232_v17  ;;  %v3447_v26 = vshrl.u32 %v3272_v62, 16  ;;  %v3444_v33 = vrot.slane %v3442_v6, 5 }
 0x10d   : > { %v11790_v28 = vcombine.low %v3411_v18, %v3421_v10  ;;  %v3430_v37 = vrot.slane %v3429_v19, 4  ;;  %v3439_v5 = vor.u32 %v3438_v0, %v3434_v39  ;;  %12856 = vmatprep.mubr.msk.bf16.mxu0 %vm1031_vm2, %v11763_v20  ;;  %v3450_v55 = vshll.u32 %v3272_v62, 16  ;;  %v14435_v12 = vpop.f32.mrf.mxu1  ;;  %v3277_v19 = vld [vmem:[#allocation2 + $0x8c] sm:$0x1] }
 0x10e   : > { %v3449_v32 = vrot.slane %v3447_v26, 4  ;;  %v3456_v27 = vshll.u32 %v3273_v7, 16  ;;  %v3460_v9 = vshrl.u32 %v3273_v7, 16  ;;  %v3466_v17 = vshll.u32 %v3274_v23, 16 }
 0x10f   : > { %v3435_v60 = vsel %vm13974_vm8, %v3430_v37, %v3434_v39  ;;  %v3440_v41 = vrot.slane %v3439_v5, 4  ;;  %v3471_v35 = vshrl.u32 %v3275_v16, 16  ;;  %v3452_v36 = vrot.slane %v3450_v55, 5  ;;  %v14441_v18 = vpop.f32.mrf.mxu1  ;;  %v3278_v37 = vld [vmem:[#allocation2 + $0x94] sm:$0xf] }
 0x110   : > { %v3458_v25 = vrot.slane %v3456_v27, 5  ;;  %v3462_v43 = vrot.slane %v3460_v9, 4  ;;  %v3474_v0 = vshll.u32 %v3275_v16, 16  ;;  %v3468_v6 = vrot.slane %v3466_v17, 5  ;;  %v3279_v27 = vld [vmem:[#allocation2 + $0x98] sm:$0xf]  ;;  %v14448_v9 = vpop.f32.mrf.mxu0 }
 0x111   : > { %v3445_v62 = vsel %vm13974_vm8, %v3440_v41, %v3444_v33  ;;  %v3473_v20 = vrot.slane %v3471_v35, 4  ;;  %v3480_v7 = vshll.u32 %v3276_v56, 16  ;;  %v3453_v10 = vor.u32 %v3452_v36, %v3449_v32  ;;  %18183 = vst [vmem:[#allocation18_spill] sm:$0xff] %v14448_v9  ;;  %v14450_v41 = vpop.f32.mrf.mxu1 }
 0x112   : > { %12875 = vmatmul.mubr.msk.bf16.gmra.mxu1 %vm1031_vm2, %v11789_v53  ;;  %v11791_v39 = vcombine.low %v3435_v60, %v3445_v62  ;;  %12857 = vmatmul.mubr.msk.bf16.gmra.mxu0 %vm1031_vm2, %v11764_v38  ;;  %v3463_v23 = vor.u32 %v3462_v43, %v3458_v25  ;;  %v3476_v26 = vrot.slane %v3474_v0, 5  ;;  %v3484_v5 = vshrl.u32 %v3276_v56, 16  ;;  %18184 = vst [vmem:[#allocation19_spill] sm:$0xff] %v14450_v41  ;;  %v3281_v62 = vld [vmem:[#allocation2 + $0xa4] sm:$0xf] }
 0x113   : > { %12878 = vmatprep.mubr.msk.bf16.mxu1 %vm1031_vm2, %v11790_v28  ;;  %v3482_v16 = vrot.slane %v3480_v7, 5  ;;  %v3490_v55 = vshll.u32 %v3277_v19, 16  ;;  %v11765_v33 = vcombine.low %v14245_v30, %v14247_v47  ;;  %v3454_v53 = vrot.slane %v3453_v10, 4  ;;  %v3280_v28 = vld [vmem:[#allocation2 + $0x9c] sm:$0x1]  ;;  %v14455_v43 = vpop.f32.mrf.mxu1 }
 0x114   : > { %v3464_v60 = vrot.slane %v3463_v23, 4  ;;  %v3477_v38 = vor.u32 %v3476_v26, %v3473_v20  ;;  %v11766_v32 = vcombine.low %v14265_v11, %v14276_v15  ;;  %v3486_v17 = vrot.slane %v3484_v5, 4  ;;  %v3282_v10 = vld [vmem:[#allocation2 + $0xa8] sm:$0xf] }
 0x115   : > { %v3492_v35 = vrot.slane %v3490_v55, 5  ;;  %12860 = vmatprep.mubr.msk.bf16.mxu0 %vm1031_vm2, %v11765_v33  ;;  %v3495_v56 = vshrl.u32 %v3278_v37, 16  ;;  %v3498_v36 = vshll.u32 %v3278_v37, 16  ;;  %v3459_v30 = vsel %vm13974_vm8, %v3454_v53, %v3458_v25  ;;  %v14461_v23 = vpop.f32.mrf.mxu0  ;;  %v14463_v26 = vpop.f32.mrf.mxu1 }
 0x116   : > { %v3469_v47 = vsel %vm13974_vm8, %v3464_v60, %v3468_v6  ;;  %v3478_v19 = vrot.slane %v3477_v38, 4  ;;  %v3504_v0 = vshll.u32 %v3279_v27, 16  ;;  %v3487_v11 = vor.u32 %v3486_v17, %v3482_v16 }
 0x117   : > { %v11792_v20 = vcombine.low %v3459_v30, %v3469_v47  ;;  %v3497_v15 = vrot.slane %v3495_v56, 4  ;;  %v3500_v7 = vrot.slane %v3498_v36, 5  ;;  %v3508_v25 = vshrl.u32 %v3279_v27, 16  ;;  %v14467_v38 = vpop.f32.mrf.mxu0  ;;  %v14469_v17 = vpop.f32.mrf.mxu1  ;;  %v3283_v30 = vld [vmem:[#allocation2 + $0xac] sm:$0x1] }
 0x118   : > { %v3483_v37 = vsel %vm13974_vm8, %v3478_v19, %v3482_v16  ;;  %v3506_v5 = vrot.slane %v3504_v0, 5  ;;  %v3514_v55 = vshll.u32 %v3280_v28, 16  ;;  %v3488_v33 = vrot.slane %v3487_v11, 4 }
 0x119   : > { %v3501_v6 = vor.u32 %v3500_v7, %v3497_v15  ;;  %v3519_v53 = vshrl.u32 %v3281_v62, 16  ;;  %v3522_v60 = vshll.u32 %v3281_v62, 16  ;;  %v3510_v56 = vrot.slane %v3508_v25, 4  ;;  %v3284_v62 = vld [vmem:[#allocation2 + $0xb4] sm:$0xf]  ;;  %v14476_v11 = vpop.f32.mrf.mxu0 }
 0x11a   : > { %12879 = vmatmul.mubr.msk.bf16.gmra.mxu1 %vm1031_vm2, %v11791_v39  ;;  %12861 = vmatmul.mubr.msk.bf16.gmra.mxu0 %vm1031_vm2, %v11766_v32  ;;  %v3516_v36 = vrot.slane %v3514_v55, 5  ;;  %v3528_v47 = vshll.u32 %v3282_v10, 16  ;;  %v3532_v16 = vshrl.u32 %v3282_v10, 16  ;;  %v3493_v27 = vsel %vm13974_vm8, %v3488_v33, %v3492_v35  ;;  %v3285_v25 = vld [vmem:[#allocation2 + $0xb8] sm:$0xf]  ;;  %v14484_v33 = vpop.f32.mrf.mxu1 }
 0x11b   : > { %12882 = vmatprep.mubr.msk.bf16.mxu1 %vm1031_vm2, %v11792_v20  ;;  %v3502_v28 = vrot.slane %v3501_v6, 4  ;;  %v3521_v19 = vrot.slane %v3519_v53, 4  ;;  %v3524_v0 = vrot.slane %v3522_v60, 5  ;;  %v11793_v15 = vcombine.low %v3483_v37, %v3493_v27  ;;  %v14482_v35 = vpop.f32.mrf.mxu0  ;;  %18186 = vst [vmem:[#allocation21_spill] sm:$0xff] %v14484_v33 }
 0x11c   : > { %v3511_v39 = vor.u32 %v3510_v56, %v3506_v5  ;;  %v3530_v7 = vrot.slane %v3528_v47, 5  ;;  %v3534_v32 = vrot.slane %v3532_v16, 4  ;;  %v3538_v2 = vshll.u32 %v3283_v30, 16  ;;  %18185 = vst [vmem:[#allocation20_spill] sm:$0xff] %v14482_v35  ;;  %v3287_v56 = vld [vmem:[#allocation2 + $0xc4] sm:$0xf] }
 0x11d   : > { %v3507_v55 = vsel %vm13974_vm8, %v3502_v28, %v3506_v5  ;;  %v3525_v10 = vor.u32 %v3524_v0, %v3521_v19  ;;  %v11767_v20 = vcombine.low %v14284_v31, %v14292_v42  ;;  %v11768_v37 = vcombine.low %v14338_v24, %v14340_v34  ;;  %v3286_v5 = vld [vmem:[#allocation2 + $0xbc] sm:$0x1]  ;;  %v14489_v28 = vpop.f32.mrf.mxu0 }
 0x11e   : > { %v3512_v6 = vrot.slane %v3511_v39, 4  ;;  %v3535_v53 = vor.u32 %v3534_v32, %v3530_v7  ;;  %v3543_v60 = vshrl.u32 %v3284_v62, 16  ;;  %v3540_v16 = vrot.slane %v3538_v2, 5  ;;  %v3288_v39 = vld [vmem:[#allocation2 + $0xc8] sm:$0xf] }
 0x11f   : > { %v3526_v47 = vrot.slane %v3525_v10, 4  ;;  %12864 = vmatprep.mubr.msk.bf16.mxu0 %vm1031_vm2, %v11767_v20  ;;  %v3546_v30 = vshll.u32 %v3284_v62, 16  ;;  %v3552_v27 = vshll.u32 %v3285_v25, 16  ;;  %v3556_v0 = vshrl.u32 %v3285_v25, 16  ;;  %v14497_v20 = vpop.f32.mrf.mxu0 }
 0x120   : > { %v3517_v31 = vsel %vm13974_vm8, %v3512_v6, %v3516_v36  ;;  %v3536_v42 = vrot.slane %v3535_v53, 4  ;;  %v3545_v19 = vrot.slane %v3543_v60, 4  ;;  %v14495_v10 = vpop.f32.mrf.mxu1  ;;  %18187 = vst [vmem:[#allocation22_spill] sm:$0xff] %v14497_v20  ;;  %v3562_v25 = vshll.u32 %v3286_v5, 16  ;;  %v3289_v6 = vld [vmem:[#allocation2 + $0xcc] sm:$0x1] }
 0x121   : > { %v11794_v32 = vcombine.low %v3507_v55, %v3517_v31  ;;  %v3531_v24 = vsel %vm13974_vm8, %v3526_v47, %v3530_v7  ;;  %v3548_v34 = vrot.slane %v3546_v30, 5  ;;  %v3554_v2 = vrot.slane %v3552_v27, 5  ;;  %v3981_v30 = vld [vmem:[#allocation2 + $0x20] sm:$0x8]  ;;  %v14506_v31 = vpop.f32.mrf.mxu0 }
 0x122   : > { %12883 = vmatmul.mubr.msk.bf16.gmra.mxu1 %vm1031_vm2, %v11793_v15  ;;  %v3541_v62 = vsel %vm13974_vm8, %v3536_v42, %v3540_v16  ;;  %12865 = vmatmul.mubr.msk.bf16.gmra.mxu0 %vm1031_vm2, %v11768_v37  ;;  %v3558_v36 = vrot.slane %v3556_v0, 4  ;;  %v3567_v55 = vshrl.u32 %v3287_v56, 16  ;;  %v3570_v60 = vshll.u32 %v3287_v56, 16  ;;  %v14504_v27 = vpop.f32.mrf.mxu1  ;;  %18188 = vst [vmem:[#allocation23_spill] sm:$0xff] %v14506_v31  ;;  %v14508_v37 = vld [vmem:[#allocation2 + $0x24] sm:$0xf] }
 0x123   : > { %12886 = vmatprep.mubr.msk.bf16.mxu1 %vm1031_vm2, %v11794_v32  ;;  %v11795_v7 = vcombine.low %v3531_v24, %v3541_v62  ;;  %v3549_v53 = vor.u32 %v3548_v34, %v3545_v19  ;;  %v3576_v47 = vshll.u32 %v3288_v39, 16  ;;  %v3564_v48 = vrot.slane %v3562_v25, 5  ;;  %v14512_v19 = vpop.f32.mrf.mxu0  ;;  %v14516_v62 = vld [vmem:[#allocation2 + $0x28] sm:$0xf] }
 0x124   : > { %v3559_v15 = vor.u32 %v3558_v36, %v3554_v2  ;;  %v3569_v16 = vrot.slane %v3567_v55, 4  ;;  %v3580_v42 = vshrl.u32 %v3288_v39, 16  ;;  %v3572_v0 = vrot.slane %v3570_v60, 5  ;;  %v14510_v32 = vpop.f32.mrf.mxu1  ;;  %18189 = vst [vmem:[#allocation24_spill] sm:$0xff] %v14512_v19 }
 0x125   : > { %v3550_v5 = vrot.slane %v3549_v53, 4  ;;  %v3578_v35 = vrot.slane %v3576_v47, 5  ;;  %v3586_v33 = vshll.u32 %v3289_v6, 16  ;;  %v4806_v34 = vsel %vm1080_vm0, %v14252_v51, 0  ;;  %v3290_v53 = vld [vmem:[#allocation2 + $0xd4] sm:$0xf]  ;;  %v14523_v47 = vpop.f32.mrf.mxu0 }
 0x126   : > { %v3560_v56 = vrot.slane %v3559_v15, 4  ;;  %v3582_v24 = vrot.slane %v3580_v42, 4  ;;  %v4030_v36 = vshrl.u32 %v3981_v30, 16  ;;  %v3573_v25 = vor.u32 %v3572_v0, %v3569_v16  ;;  %12937 = vmatpush3.bf16.msra.mxu1 %v4806_v34  ;;  %v14521_v60 = vpop.f32.mrf.mxu1  ;;  %18191 = vst [vmem:[#allocation26_spill] sm:$0xff] %v14523_v47  ;;  %v3291_v16 = vld [vmem:[#allocation2 + $0xd8] sm:$0xf] }
 0x127   : > { %v3555_v39 = vsel %vm13974_vm8, %v3550_v5, %v3554_v2  ;;  %v3588_v55 = vrot.slane %v3586_v33, 5  ;;  %v4035_v6 = vshrl.u32 %v14508_v37, 16  ;;  %18190 = vst [vmem:[#allocation25_spill] sm:$0xff] %v14521_v60  ;;  %v4038_v30 = vshll.u32 %v14508_v37, 16  ;;  %v14531_v0 = vpop.f32.mrf.mxu0  ;;  %v3987_v47 = vld [vmem:[#allocation2 + $0x40] sm:$0x8] }
 0x128   : > { %v3565_v15 = vsel %vm13974_vm8, %v3560_v56, %v3564_v48  ;;  %v3583_v51 = vor.u32 %v3582_v24, %v3578_v35  ;;  %v11818_v42 = vrot.slane %v4030_v36, 11  ;;  %v3574_v9 = vrot.slane %v3573_v25, 4  ;;  %v14529_v5 = vpop.f32.mrf.mxu1  ;;  %18193 = vst [vmem:[#allocation28_spill] sm:$0xff] %v14531_v0 }
 0x129   : > { %v11796_v19 = vcombine.low %v3555_v39, %v3565_v15  ;;  %v4037_v2 = vrot.slane %v4035_v6, 7  ;;  %v4044_v33 = vshrl.u32 %v14516_v62, 16  ;;  %18192 = vst [vmem:[#allocation27_spill] sm:$0xff] %v14529_v5  ;;  %v4047_v60 = vshll.u32 %v14516_v62, 16  ;;  %v3292_v6 = vld [vmem:[#allocation2 + $0xdc] sm:$0x1] }
 0x12a   : > { %12887 = vmatmul.mubr.msk.bf16.gmra.mxu1 %vm1031_vm2, %v11795_v7  ;;  %v3584_v34 = vrot.slane %v3583_v51, 4  ;;  %v3591_v48 = vshrl.u32 %v3290_v53, 16  ;;  %v3594_v56 = vshll.u32 %v3290_v53, 16  ;;  %v3579_v24 = vsel %vm13974_vm8, %v3574_v9, %v3578_v35  ;;  %v3984_v15 = vld [vmem:[#allocation2 + $0x30] sm:$0x8]  ;;  %v14538_v41 = vpop.f32.mrf.mxu1  ;;  %v14544_v53 = vpop.f32.mrf.mxu0 }
 0x12b   : > { %12890 = vmatprep.mubr.msk.bf16.mxu1 %vm1031_vm2, %v11796_v19  ;;  %v4040_v36 = vor.u32 %v4038_v30, %v4037_v2  ;;  %v4042_v39 = vrot.slane %v4037_v2, 4  ;;  %v4046_v25 = vrot.slane %v4044_v33, 7  ;;  %18194 = vst [vmem:[#allocation29_spill] sm:$0xff] %v14538_v41  ;;  %v3600_v52 = vshll.u32 %v3291_v16, 16  ;;  %18195 = vst [vmem:[#allocation30_spill] sm:$0xff] %v14544_v53 }
 0x12c   : > { %v3589_v7 = vsel %vm13974_vm8, %v3584_v34, %v3588_v55  ;;  %v3593_v51 = vrot.slane %v3591_v48, 4  ;;  %v3596_v45 = vrot.slane %v3594_v56, 5  ;;  %v3604_v30 = vshrl.u32 %v3291_v16, 16  ;;  %v14548_v2 = vpop.f32.mrf.mxu1  ;;  %v3996_v5 = vld [vmem:[#allocation2 + $0x70] sm:$0x8] }
 0x12d   : > { %v11797_v19 = vcombine.low %v3579_v24, %v3589_v7  ;;  %v4041_v9 = vsel %vm13776_vm5, %v11818_v42, %v4040_v36  ;;  %v4049_v35 = vor.u32 %v4047_v60, %v4046_v25  ;;  %18196 = vst [vmem:[#allocation31_spill] sm:$0xff] %v14548_v2  ;;  %v3602_v8 = vrot.slane %v3600_v52, 5  ;;  %v3293_v7 = vld [vmem:[#allocation2 + $0xe4] sm:$0xf]  ;;  %v14558_v52 = vpop.f32.mrf.mxu0 }
 0x12e   : > { %v3597_v33 = vor.u32 %v3596_v45, %v3593_v51  ;;  %v3610_v44 = vshll.u32 %v3292_v6, 16  ;;  %v4052_v55 = vshrl.u32 %v3984_v15, 16  ;;  %v3606_v48 = vrot.slane %v3604_v30, 4  ;;  %v14556_v42 = vpop.f32.mrf.mxu1  ;;  %18198 = vst [vmem:[#allocation33_spill] sm:$0xff] %v14558_v52  ;;  %v3294_v51 = vld [vmem:[#allocation2 + $0xe8] sm:$0xf] }
 0x12f   : > { %v4050_v34 = vsel %vm13776_vm5, %v4042_v39, %v4049_v35  ;;  %v4057_v56 = vshrl.u32 %v14542_v3, 16  ;;  %v4060_v24 = vshll.u32 %v14542_v3, 16  ;;  %18197 = vst [vmem:[#allocation32_spill] sm:$0xff] %v14556_v42  ;;  %v4066_v15 = vshrl.u32 %v14550_v21, 16  ;;  %v3295_v30 = vld [vmem:[#allocation2 + $0xec] sm:$0x1] }
 0x130   : > { %v11835_v60 = vcombine.low %v4041_v9, %v4050_v34  ;;  %v3598_v16 = vrot.slane %v3597_v33, 4  ;;  %v3612_v36 = vrot.slane %v3610_v44, 5  ;;  %v11819_v45 = vrot.slane %v4052_v55, 11  ;;  %v14562_v35 = vpop.f32.mrf.mxu1  ;;  %v14570_v42 = vld [vmem:[#allocation2 + $0x44] sm:$0xf] }
 0x131   : > { %v3607_v25 = vor.u32 %v3606_v48, %v3602_v8  ;;  %v4059_v6 = vrot.slane %v4057_v56, 7  ;;  %v4069_v39 = vshll.u32 %v14550_v21, 16  ;;  %18199 = vst [vmem:[#allocation34_spill] sm:$0xff] %v14562_v35  ;;  %v5532_v44 = vsel %vm1080_vm0, %v14301_v4, 0 }
 0x132   : > { %12891 = vmatmul.mubr.msk.bf16.gmra.mxu1 %vm1031_vm2, %v11797_v19  ;;  %12904 = vmatprep.mubr.msk.bf16.mxu0 %vm1031_vm2, %v11835_v60  ;;  %v3603_v9 = vsel %vm13974_vm8, %v3598_v16, %v3602_v8  ;;  %v3615_v33 = vshrl.u32 %v3293_v7, 16  ;;  %v3618_v55 = vshll.u32 %v3293_v7, 16  ;;  %v4068_v52 = vrot.slane %v4066_v15, 7  ;;  %v14572_v53 = vpop.f32.mrf.mxu1 }
 0x133   : > { %v3608_v34 = vrot.slane %v3607_v25, 4  ;;  %v4062_v48 = vor.u32 %v4060_v24, %v4059_v6  ;;  %v4064_v56 = vrot.slane %v4059_v6, 4  ;;  %18200 = vst [vmem:[#allocation35_spill] sm:$0xff] %v14572_v53  ;;  %v3624_v60 = vshll.u32 %v3294_v51, 16  ;;  %v14574_v8 = vpop.f32.mrf.mxu0 }
 0x134   : > { %v3617_v19 = vrot.slane %v3615_v33, 4  ;;  %v3620_v0 = vrot.slane %v3618_v55, 5  ;;  %v3628_v35 = vshrl.u32 %v3294_v51, 16  ;;  %18201 = vst [vmem:[#allocation36_spill] sm:$0xff] %v14574_v8  ;;  %v4071_v24 = vor.u32 %v4069_v39, %v4068_v52  ;;  %v14580_v25 = vpop.f32.mrf.mxu1  ;;  %v14582_v55 = vld [vmem:[#allocation2 + $0x48] sm:$0xf] }
 0x135   : > { %v3613_v4 = vsel %vm13974_vm8, %v3608_v34, %v3612_v36  ;;  %v4063_v7 = vsel %vm13776_vm5, %v11819_v45, %v4062_v48  ;;  %v3634_v16 = vshll.u32 %v3295_v30, 16  ;;  %18202 = vst [vmem:[#allocation37_spill] sm:$0xff] %v14580_v25  ;;  %v3626_v53 = vrot.slane %v3624_v60, 5  ;;  %v14584_v51 = vpop.f32.mrf.mxu0  ;;  %v3296_v45 = vld [vmem:[#allocation2 + $0xf4] sm:$0xf] }
 0x136   : > { %v11798_v6 = vcombine.low %v3603_v9, %v3613_v4  ;;  %v3621_v15 = vor.u32 %v3620_v0, %v3617_v19  ;;  %v3630_v33 = vrot.slane %v3628_v35, 4  ;;  %18203 = vst [vmem:[#allocation38_spill] sm:$0xff] %v14584_v51  ;;  %v4072_v8 = vsel %vm13776_vm5, %v4064_v56, %v4071_v24  ;;  %v3297_v35 = vld [vmem:[#allocation2 + $0xf8] sm:$0xf]  ;;  %v3990_v51 = vld [vmem:[#allocation2 + $0x50] sm:$0x8] }
 0x137   : > { %v3636_v2 = vrot.slane %v3634_v16, 5  ;;  %v4074_v36 = vshrl.u32 %v3987_v47, 16  ;;  %v4079_v34 = vshrl.u32 %v14570_v42, 16  ;;  %v11836_v52 = vcombine.low %v4063_v7, %v4072_v8  ;;  %v14591_v30 = vpop.f32.mrf.mxu0  ;;  %v14595_v47 = vpop.f32.mrf.mxu1  ;;  %v3298_v7 = vld [vmem:[#allocation2 + $0xfc] sm:$0x1] }
 0x138   : > { %12894 = vmatprep.mubr.msk.bf16.mxu1 %vm1031_vm2, %v11798_v6  ;;  %v3622_v39 = vrot.slane %v3621_v15, 4  ;;  %v3631_v9 = vor.u32 %v3630_v33, %v3626_v53  ;;  %v4082_v0 = vshll.u32 %v14570_v42, 16  ;;  %18204 = vst [vmem:[#allocation39_spill] sm:$0xff] %v14591_v30  ;;  %v4088_v60 = vshrl.u32 %v14582_v55, 16  ;;  %18205 = vst [vmem:[#allocation40_spill] sm:$0xff] %v14595_v47 }
 0x139   : > { %v11820_v48 = vrot.slane %v4074_v36, 11  ;;  %v4081_v19 = vrot.slane %v4079_v34, 7  ;;  %v4091_v56 = vshll.u32 %v14582_v55, 16  ;;  %12905 = vmatmul.mubr.msk.bf16.vlgmr.msra.gmra.mxu0 %vm1031_vm2, %v11836_v52  ;;  %v3639_v24 = vshrl.u32 %v3296_v45, 16  ;;  %v14600_v6 = vld [vmem:[#allocation2 + $0x54] sm:$0xf]  ;;  %v14602_v15 = vpop.f32.mrf.mxu0 }
 0x13a   : > { %v3627_v8 = vsel %vm13974_vm8, %v3622_v39, %v3626_v53  ;;  %v3632_v4 = vrot.slane %v3631_v9, 4  ;;  %v3642_v16 = vshll.u32 %v3296_v45, 16  ;;  %18206 = vst [vmem:[#allocation41_spill] sm:$0xff] %v14602_v15  ;;  %12971 = vmatpush3.bf16.msra.mxu0 %v5532_v44  ;;  %v4090_v34 = vrot.slane %v4088_v60, 7  ;;  %v14606_v39 = vld [vmem:[#allocation2 + $0x58] sm:$0xf] }
 0x13b   : > { %v4084_v33 = vor.u32 %v4082_v0, %v4081_v19  ;;  %v4086_v36 = vrot.slane %v4081_v19, 4  ;;  %v3648_v30 = vshll.u32 %v3297_v35, 16  ;;  %v3641_v47 = vrot.slane %v3639_v24, 4 }
 0x13c   : > { %v3637_v52 = vsel %vm13974_vm8, %v3632_v4, %v3636_v2  ;;  %v3644_v25 = vrot.slane %v3642_v16, 5  ;;  %v3652_v53 = vshrl.u32 %v3297_v35, 16  ;;  %v4093_v31 = vor.u32 %v4091_v56, %v4090_v34 }
 0x13d   : > { %v11799_v9 = vcombine.low %v3627_v8, %v3637_v52  ;;  %v4085_v45 = vsel %vm13776_vm5, %v11820_v48, %v4084_v33  ;;  %v3650_v15 = vrot.slane %v3648_v30, 5  ;;  %v14610_v44 = vpop.f32.mrf.mxu1  ;;  %v3658_v60 = vshll.u32 %v3298_v7, 16  ;;  %v3299_v30 = vld [vmem:[#allocation2 + $0x104] sm:$0xf]  ;;  %v3300_v7 = vld [vmem:[#allocation2 + $0x108] sm:$0xf] }
 0x13e   : > { %18207 = vst [vmem:[#allocation42_spill] sm:$0xff] %v14610_v44  ;;  %v3645_v0 = vor.u32 %v3644_v25, %v3641_v47  ;;  %v3654_v19 = vrot.slane %v3652_v53, 4  ;;  %v4096_v41 = vshrl.u32 %v3990_v51, 16  ;;  %v14612_v20 = vpop.f32.mrf.mxu0  ;;  %v4094_v2 = vsel %vm13776_vm5, %v4086_v36, %v4093_v31  ;;  %v3301_v53 = vld [vmem:[#allocation2 + $0x10c] sm:$0x1] }
 0x13f   : > { %18208 = vst [vmem:[#allocation43_spill] sm:$0xff] %v14612_v20  ;;  %12895 = vmatmul.mubr.msk.bf16.gmra.mxu1 %vm1031_vm2, %v11799_v9  ;;  %v4101_v35 = vshrl.u32 %v14600_v6, 16  ;;  %v4104_v8 = vshll.u32 %v14600_v6, 16  ;;  %v4110_v48 = vshrl.u32 %v14606_v39, 16  ;;  %v14620_v56 = vpop.f32.mrf.mxu1  ;;  %v11837_v25 = vcombine.low %v4085_v45, %v4094_v2  ;;  %v3993_v44 = vld [vmem:[#allocation2 + $0x60] sm:$0x8] }
 0x140   : > { %18209 = vst [vmem:[#allocation44_spill] sm:$0xff] %v14620_v56  ;;  %v3646_v47 = vrot.slane %v3645_v0, 4  ;;  %v3655_v4 = vor.u32 %v3654_v19, %v3650_v15  ;;  %v3660_v51 = vrot.slane %v3658_v60, 5  ;;  %v14622_v24 = vpop.f32.mrf.mxu0  ;;  %v11821_v16 = vrot.slane %v4096_v41, 11  ;;  %v14630_v41 = vld [vmem:[#allocation2 + $0x64] sm:$0xf] }
 0x141   : > { %18210 = vst [vmem:[#allocation45_spill] sm:$0xff] %v14622_v24  ;;  %v4103_v33 = vrot.slane %v4101_v35, 7  ;;  %v4112_v34 = vrot.slane %v4110_v48, 7  ;;  %v4113_v31 = vshll.u32 %v14606_v39, 16  ;;  %12908 = vmatprep.mubr.msk.bf16.mxu0 %vm1031_vm2, %v11837_v25  ;;  %v3663_v9 = vshrl.u32 %v3299_v30, 16  ;;  %v14634_v48 = vpop.f32.mrf.mxu1 }
 0x142   : > { %v3651_v36 = vsel %vm13974_vm8, %v3646_v47, %v3650_v15  ;;  %v3656_v52 = vrot.slane %v3655_v4, 4  ;;  %v3666_v45 = vshll.u32 %v3299_v30, 16  ;;  %v14628_v0 = vpop.f32.mrf.mxu0  ;;  %v3672_v56 = vshll.u32 %v3300_v7, 16  ;;  %v14632_v35 = vld [vmem:[#allocation2 + $0x68] sm:$0xf]  ;;  %18212 = vst [vmem:[#allocation47_spill] sm:$0xff] %v14634_v48 }
 0x143   : > { %18211 = vst [vmem:[#allocation46_spill] sm:$0xff] %v14628_v0  ;;  %v4106_v19 = vor.u32 %v4104_v8, %v4103_v33  ;;  %v4108_v60 = vrot.slane %v4103_v33, 4  ;;  %v4115_v2 = vor.u32 %v4113_v31, %v4112_v34  ;;  %v3665_v15 = vrot.slane %v3663_v9, 4  ;;  %v14650_v9 = vpop.f32.mrf.mxu1 }
 0x144   : > { %v3661_v25 = vsel %vm13974_vm8, %v3656_v52, %v3660_v51  ;;  %v3668_v47 = vrot.slane %v3666_v45, 5  ;;  %v3676_v4 = vshrl.u32 %v3300_v7, 16  ;;  %v3674_v34 = vrot.slane %v3672_v56, 5  ;;  %v14642_v31 = vpop.f32.mrf.mxu0  ;;  %v14648_v52 = vld [vmem:[#allocation2 + $0x74] sm:$0xf]  ;;  %18214 = vst [vmem:[#allocation49_spill] sm:$0xff] %v14650_v9 }
 0x145   : > { %v11800_v30 = vcombine.low %v3651_v36, %v3661_v25  ;;  %v4107_v8 = vsel %vm13776_vm5, %v11821_v16, %v4106_v19  ;;  %v4116_v33 = vsel %vm13776_vm5, %v4108_v60, %v4115_v2  ;;  %18213 = vst [vmem:[#allocation48_spill] sm:$0xff] %v14642_v31  ;;  %v3682_v20 = vshll.u32 %v3301_v53, 16  ;;  %v14654_v25 = vld [vmem:[#allocation2 + $0x78] sm:$0xf]  ;;  %v14678_v31 = vld [vmem:[#allocation2 + $0x84] sm:$0xf] }
 0x146   : > { %v11838_v0 = vcombine.low %v4107_v8, %v4116_v33  ;;  %v3669_v24 = vor.u32 %v3668_v47, %v3665_v15  ;;  %v3678_v48 = vrot.slane %v3676_v4, 4  ;;  %v4118_v51 = vshrl.u32 %v3993_v44, 16 }
 0x147   : > { %12898 = vmatprep.mubr.msk.bf16.mxu1 %vm1031_vm2, %v11800_v30  ;;  %v4123_v7 = vshrl.u32 %v14630_v41, 16  ;;  %v4126_v36 = vshll.u32 %v14630_v41, 16  ;;  %v4132_v16 = vshrl.u32 %v14632_v35, 16  ;;  %v3684_v19 = vrot.slane %v3682_v20, 5 }
 0x148   : > { %12909 = vmatmul.mubr.msk.bf16.gmra.mxu0 %vm1031_vm2, %v11838_v0  ;;  %v3670_v56 = vrot.slane %v3669_v24, 4  ;;  %v3679_v45 = vor.u32 %v3678_v48, %v3674_v34  ;;  %v4135_v53 = vshll.u32 %v14632_v35, 16  ;;  %v11822_v60 = vrot.slane %v4118_v51, 11  ;;  %v14662_v51 = vpop.f32.mrf.mxu1 }
 0x149   : > { %v4125_v2 = vrot.slane %v4123_v7, 7  ;;  %v4134_v44 = vrot.slane %v4132_v16, 7  ;;  %v4140_v15 = vshrl.u32 %v3996_v5, 16  ;;  %v14656_v47 = vpop.f32.mrf.mxu0  ;;  %v4145_v8 = vshrl.u32 %v14648_v52, 16  ;;  %18216 = vst [vmem:[#allocation51_spill] sm:$0xff] %v14662_v51 }
 0x14a   : > { %18215 = vst [vmem:[#allocation50_spill] sm:$0xff] %v14656_v47  ;;  %v3675_v4 = vsel %vm13974_vm8, %v3670_v56, %v3674_v34  ;;  %v3680_v30 = vrot.slane %v3679_v45, 4  ;;  %v4148_v24 = vshll.u32 %v14648_v52, 16  ;;  %v4154_v9 = vshrl.u32 %v14654_v25, 16  ;;  %v14680_v51 = vld [vmem:[#allocation2 + $0x88] sm:$0xf] }
 0x14b   : > { %v4128_v0 = vor.u32 %v4126_v36, %v4125_v2  ;;  %v4130_v20 = vrot.slane %v4125_v2, 4  ;;  %v4137_v48 = vor.u32 %v4135_v53, %v4134_v44  ;;  %v11823_v33 = vrot.slane %v4140_v15, 11  ;;  %v14664_v7 = vpop.f32.mrf.mxu0  ;;  %v3999_v2 = vld [vmem:[#allocation2 + $0x80] sm:$0x8]  ;;  %v14797_v47 = vld [vmem:[#allocation2 + $0xe4] sm:$0xf] }
 0x14c   : > { %18217 = vst [vmem:[#allocation52_spill] sm:$0xff] %v14664_v7  ;;  %v3685_v5 = vsel %vm13974_vm8, %v3680_v30, %v3684_v19  ;;  %v4147_v16 = vrot.slane %v4145_v8, 7  ;;  %v4157_v34 = vshll.u32 %v14654_v25, 16  ;;  %v11868_v53 = vcombine.low %v14508_v37, %v14516_v62 }
 0x14d   : > { %v11801_v56 = vcombine.low %v3675_v4, %v3685_v5  ;;  %v4129_v45 = vsel %vm13776_vm5, %v11822_v60, %v4128_v0  ;;  %v4138_v36 = vsel %vm13776_vm5, %v4130_v20, %v4137_v48  ;;  %v14676_v44 = vpop.f32.mrf.mxu0  ;;  %v4156_v8 = vrot.slane %v4154_v9, 7  ;;  %v4002_v60 = vld [vmem:[#allocation2 + $0x90] sm:$0x8]  ;;  %v14683_v4 = vld [vmem:[#allocation2 + $0x94] sm:$0xf]  ;;  %v14685_v0 = vpop.f32.mrf.mxu1 }
 0x14e   : > { %18218 = vst [vmem:[#allocation53_spill] sm:$0xff] %v14676_v44  ;;  %v11839_v15 = vcombine.low %v4129_v45, %v4138_v36  ;;  %v4150_v19 = vor.u32 %v4148_v24, %v4147_v16  ;;  %v4152_v30 = vrot.slane %v4147_v16, 4  ;;  %18219 = vst [vmem:[#allocation54_spill] sm:$0xff] %v14685_v0  ;;  %v11869_v9 = vcombine.low %v14542_v3, %v14550_v21  ;;  %v14699_v45 = vld [vmem:[#allocation2 + $0x98] sm:$0xf] }
 0x14f   : > { %12899 = vmatmul.mubr.msk.bf16.gmra.mxu1 %vm1031_vm2, %v11801_v56  ;;  %v4159_v62 = vor.u32 %v4157_v34, %v4156_v8  ;;  %v4162_v24 = vshrl.u32 %v3999_v2, 16  ;;  %v14693_v20 = vpop.f32.mrf.mxu0  ;;  %v4167_v48 = vshrl.u32 %v14678_v31, 16  ;;  %v4170_v5 = vshll.u32 %v14678_v31, 16 }
 0x150   : > { %12912 = vmatprep.mubr.msk.bf16.mxu0 %vm1031_vm2, %v11839_v15  ;;  %v4151_v37 = vsel %vm13776_vm5, %v11823_v33, %v4150_v19  ;;  %12938 = vmatprep.mubr.msk.bf16.mxu1 %vm1031_vm2, %v11868_v53  ;;  %18220 = vst [vmem:[#allocation55_spill] sm:$0xff] %v14693_v20  ;;  %v4176_v16 = vshrl.u32 %v14680_v51, 16  ;;  %v4179_v56 = vshll.u32 %v14680_v51, 16  ;;  %v4184_v36 = vshrl.u32 %v4002_v60, 16  ;;  %v14705_v19 = vpop.f32.mrf.mxu1 }
 0x151   : > { %v4160_v33 = vsel %vm13776_vm5, %v4152_v30, %v4159_v62  ;;  %v11824_v34 = vrot.slane %v4162_v24, 11  ;;  %v4189_v21 = vshrl.u32 %v14683_v4, 16  ;;  %v4169_v53 = vrot.slane %v4167_v48, 7  ;;  %18221 = vst [vmem:[#allocation56_spill] sm:$0xff] %v14705_v19 }
 0x152   : > { %v11840_v3 = vcombine.low %v4151_v37, %v4160_v33  ;;  %v4178_v2 = vrot.slane %v4176_v16, 7  ;;  %v4192_v15 = vshll.u32 %v14683_v4, 16  ;;  %v11825_v8 = vrot.slane %v4184_v36, 11  ;;  %v4005_v33 = vld [vmem:[#allocation2 + $0xa0] sm:$0x8] }
 0x153   : > { %v4191_v20 = vrot.slane %v4189_v21, 7  ;;  %v4198_v0 = vshrl.u32 %v14699_v45, 16  ;;  %v4201_v44 = vshll.u32 %v14699_v45, 16  ;;  %v14709_v7 = vpop.f32.mrf.mxu0  ;;  %v4172_v30 = vor.u32 %v4170_v5, %v4169_v53  ;;  %v14714_v36 = vld [vmem:[#allocation2 + $0xa4] sm:$0xf] }
 0x154   : > { %18222 = vst [vmem:[#allocation57_spill] sm:$0xff] %v14709_v7  ;;  %12913 = vmatmul.mubr.msk.bf16.gmra.mxu0 %vm1031_vm2, %v11840_v3  ;;  %v4174_v60 = vrot.slane %v4169_v53, 4  ;;  %v4181_v62 = vor.u32 %v4179_v56, %v4178_v2  ;;  %v11870_v37 = vcombine.low %v14570_v42, %v14582_v55  ;;  %v14721_v5 = vld [vmem:[#allocation2 + $0xa8] sm:$0xf]  ;;  %v4008_v56 = vld [vmem:[#allocation2 + $0xb0] sm:$0x8]  ;;  %v14723_v53 = vpop.f32.mrf.mxu1 }
 0x155   : > { %v4194_v24 = vor.u32 %v4192_v15, %v4191_v20  ;;  %v4196_v48 = vrot.slane %v4191_v20, 4  ;;  %v4200_v16 = vrot.slane %v4198_v0, 7  ;;  %v4173_v21 = vsel %vm13776_vm5, %v11824_v34, %v4172_v30  ;;  %18223 = vst [vmem:[#allocation58_spill] sm:$0xff] %v14723_v53  ;;  %v14728_v20 = vld [vmem:[#allocation2 + $0xb4] sm:$0xf] }
 0x156   : > { %v4182_v3 = vsel %vm13776_vm5, %v4174_v60, %v4181_v62  ;;  %v11871_v34 = vcombine.low %v14600_v6, %v14606_v39  ;;  %v4206_v2 = vshrl.u32 %v4005_v33, 16  ;;  %v4211_v15 = vshrl.u32 %v14714_v36, 16  ;;  %v14736_v60 = vld [vmem:[#allocation2 + $0xb8] sm:$0xf] }
 0x157   : > { %12939 = vmatmul.mubr.msk.bf16.vlgmr.msra.gmra.mxu1 %vm1031_vm2, %v11869_v9  ;;  %v11841_v42 = vcombine.low %v4173_v21, %v4182_v3  ;;  %v4195_v55 = vsel %vm13776_vm5, %v11825_v8, %v4194_v24  ;;  %v4203_v0 = vor.u32 %v4201_v44, %v4200_v16  ;;  %v14730_v9 = vpop.f32.mrf.mxu0  ;;  %v4214_v30 = vshll.u32 %v14714_v36, 16 }
 0x158   : > { %12942 = vmatprep.mubr.msk.bf16.mxu1 %vm1031_vm2, %v11870_v37  ;;  %18224 = vst [vmem:[#allocation59_spill] sm:$0xff] %v14730_v9  ;;  %v4220_v8 = vshrl.u32 %v14721_v5, 16  ;;  %v4223_v62 = vshll.u32 %v14721_v5, 16  ;;  %v4228_v37 = vshrl.u32 %v4008_v56, 16  ;;  %v11826_v16 = vrot.slane %v4206_v2, 11 }
 0x159   : > { %12916 = vmatprep.mubr.msk.bf16.mxu0 %vm1031_vm2, %v11841_v42  ;;  %v4204_v44 = vsel %vm13776_vm5, %v4196_v48, %v4203_v0  ;;  %v4213_v6 = vrot.slane %v4211_v15, 7  ;;  %v4233_v39 = vshrl.u32 %v14728_v20, 16  ;;  %v4236_v53 = vshll.u32 %v14728_v20, 16  ;;  %v14748_v19 = vpop.f32.mrf.mxu0 }
 0x15a   : > { %v11842_v24 = vcombine.low %v4195_v55, %v4204_v44  ;;  %v4222_v21 = vrot.slane %v4220_v8, 7  ;;  %v11827_v3 = vrot.slane %v4228_v37, 11  ;;  %v4242_v42 = vshrl.u32 %v14736_v60, 16  ;;  %18225 = vst [vmem:[#allocation60_spill] sm:$0xff] %v14748_v19  ;;  %v4011_v8 = vld [vmem:[#allocation2 + $0xc0] sm:$0x8] }
 0x15b   : > { %v14744_v33 = vpop.f32.mrf.mxu1  ;;  %v4216_v48 = vor.u32 %v4214_v30, %v4213_v6  ;;  %v4218_v0 = vrot.slane %v4213_v6, 4  ;;  %v4235_v56 = vrot.slane %v4233_v39, 7  ;;  %v4245_v55 = vshll.u32 %v14736_v60, 16  ;;  %v14759_v30 = vld [vmem:[#allocation2 + $0xc4] sm:$0xf] }
 0x15c   : > { %12917 = vmatmul.mubr.msk.bf16.gmra.mxu0 %vm1031_vm2, %v11842_v24  ;;  %v4225_v2 = vor.u32 %v4223_v62, %v4222_v21  ;;  %v4244_v15 = vrot.slane %v4242_v42, 7  ;;  %v11872_v44 = vcombine.low %v14630_v41, %v14632_v35  ;;  %v14761_v6 = vld [vmem:[#allocation2 + $0xc8] sm:$0xf]  ;;  %v4014_v41 = vld [vmem:[#allocation2 + $0xd0] sm:$0x8]  ;;  %v14766_v35 = vpop.f32.mrf.mxu0  ;;  %vm5766_vm10 = vcmask 60416  }
 0x15d   : > { %v14754_v37 = vpop.f32.mrf.mxu1  ;;  %v4217_v19 = vsel %vm13776_vm5, %v11826_v16, %v4216_v48  ;;  %v4238_v9 = vor.u32 %v4236_v53, %v4235_v56  ;;  %v4240_v24 = vrot.slane %v4235_v56, 4  ;;  %18226 = vst [vmem:[#allocation61_spill] sm:$0xff] %v14766_v35  ;;  %v11873_v53 = vcombine.low %v14648_v52, %v14654_v25  ;;  %v14772_v42 = vld [vmem:[#allocation2 + $0xd4] sm:$0xf] }
 0x15e   : > { %v4226_v62 = vsel %vm13776_vm5, %v4218_v0, %v4225_v2  ;;  %v4247_v39 = vor.u32 %v4245_v55, %v4244_v15  ;;  %v4250_v16 = vshrl.u32 %v4011_v8, 16  ;;  %v4255_v0 = vshrl.u32 %v14759_v30, 16  ;;  %v14779_v2 = vld [vmem:[#allocation2 + $0xd8] sm:$0xf] }
 0x15f   : > { %12943 = vmatmul.mubr.msk.bf16.gmra.mxu1 %vm1031_vm2, %v11871_v34  ;;  %v11843_v21 = vcombine.low %v4217_v19, %v4226_v62  ;;  %v4239_v34 = vsel %vm13776_vm5, %v11827_v3, %v4238_v9  ;;  %v4258_v56 = vshll.u32 %v14759_v30, 16  ;;  %v4264_v55 = vshrl.u32 %v14761_v6, 16  ;;  %v14781_v19 = vpop.f32.mrf.mxu1 }
 0x160   : > { %12946 = vmatprep.mubr.msk.bf16.mxu1 %vm1031_vm2, %v11872_v44  ;;  %v4248_v48 = vsel %vm13776_vm5, %v4240_v24, %v4247_v39  ;;  %18227 = vst [vmem:[#allocation62_spill] sm:$0xff] %v14781_v19  ;;  %v11828_v52 = vrot.slane %v4250_v16, 11  ;;  %v4267_v25 = vshll.u32 %v14761_v6, 16  ;;  %v4272_v3 = vshrl.u32 %v4014_v41, 16 }
 0x161   : > { %12920 = vmatprep.mubr.msk.bf16.mxu0 %vm1031_vm2, %v11843_v21  ;;  %v11844_v9 = vcombine.low %v4239_v34, %v4248_v48  ;;  %v4257_v15 = vrot.slane %v4255_v0, 7  ;;  %v4266_v44 = vrot.slane %v4264_v55, 7  ;;  %v4277_v8 = vshrl.u32 %v14772_v42, 16  ;;  %v14794_v55 = vpop.f32.mrf.mxu1 }
 0x162   : > { %v4280_v24 = vshll.u32 %v14772_v42, 16  ;;  %v11829_v39 = vrot.slane %v4272_v3, 11  ;;  %v4286_v35 = vshrl.u32 %v14779_v2, 16  ;;  %v4289_v21 = vshll.u32 %v14779_v2, 16  ;;  %18229 = vst [vmem:[#allocation64_spill] sm:$0xff] %v14794_v55 }
 0x163   : > { %v14787_v62 = vpop.f32.mrf.mxu0  ;;  %v11874_v34 = vcombine.low %v14678_v31, %v14680_v51  ;;  %v4260_v16 = vor.u32 %v4258_v56, %v4257_v15  ;;  %v4262_v41 = vrot.slane %v4257_v15, 4  ;;  %v4269_v48 = vor.u32 %v4267_v25, %v4266_v44  ;;  %v14804_v51 = vld [vmem:[#allocation2 + $0xe8] sm:$0xf]  ;;  %v4020_v56 = vld [vmem:[#allocation2 + $0xf0] sm:$0x8] }
 0x164   : > { %18228 = vst [vmem:[#allocation63_spill] sm:$0xff] %v14787_v62  ;;  %12921 = vmatmul.mubr.msk.bf16.gmra.mxu0 %vm1031_vm2, %v11844_v9  ;;  %v4279_v0 = vrot.slane %v4277_v8, 7  ;;  %v4288_v7 = vrot.slane %v4286_v35, 7  ;;  %v4017_v62 = vld [vmem:[#allocation2 + $0xe0] sm:$0x8]  ;;  %v11875_v15 = vcombine.low %v14683_v4, %v14699_v45  ;;  %v4308_v4 = vshrl.u32 %v14804_v51, 16 }
 0x165   : > { %v4261_v9 = vsel %vm13776_vm5, %v11828_v52, %v4260_v16  ;;  %v4270_v3 = vsel %vm13776_vm5, %v4262_v41, %v4269_v48  ;;  %v14806_v25 = vpop.f32.mrf.mxu0  ;;  %v14810_v44 = vld [vmem:[#allocation2 + $0xf4] sm:$0xf]  ;;  %v4294_v8 = vshrl.u32 %v4017_v62, 16  ;;  %v14816_v16 = vld [vmem:[#allocation2 + $0xf8] sm:$0xf]  ;;  %v4311_v45 = vshll.u32 %v14804_v51, 16 }
 0x166   : > { %v4282_v19 = vor.u32 %v4280_v24, %v4279_v0  ;;  %v4284_v31 = vrot.slane %v4279_v0, 4  ;;  %18230 = vst [vmem:[#allocation65_spill] sm:$0xff] %v14806_v25  ;;  %v4291_v35 = vor.u32 %v4289_v21, %v4288_v7  ;;  %v4299_v24 = vshrl.u32 %v14797_v47, 16 }
 0x167   : > { %12947 = vmatmul.mubr.msk.bf16.gmra.mxu1 %vm1031_vm2, %v11873_v53  ;;  %v11845_v53 = vcombine.low %v4261_v9, %v4270_v3  ;;  %v4316_v21 = vshrl.u32 %v4020_v56, 16  ;;  %v11830_v62 = vrot.slane %v4294_v8, 11  ;;  %v4321_v48 = vshrl.u32 %v14810_v44, 16  ;;  %v14826_v0 = vpop.f32.mrf.mxu0 }
 0x168   : > { %12950 = vmatprep.mubr.msk.bf16.mxu1 %vm1031_vm2, %v11874_v34  ;;  %v4283_v52 = vsel %vm13776_vm5, %v11829_v39, %v4282_v19  ;;  %v4302_v34 = vshll.u32 %v14797_v47, 16  ;;  %v4292_v7 = vsel %vm13776_vm5, %v4284_v31, %v4291_v35  ;;  %v4301_v39 = vrot.slane %v4299_v24, 7  ;;  %18232 = vst [vmem:[#allocation67_spill] sm:$0xff] %v14826_v0 }
 0x169   : > { %v14818_v41 = vpop.f32.mrf.mxu1  ;;  %12924 = vmatprep.mubr.msk.bf16.mxu0 %vm1031_vm2, %v11845_v53  ;;  %v11846_v19 = vcombine.low %v4283_v52, %v4292_v7  ;;  %v4310_v9 = vrot.slane %v4308_v4, 7  ;;  %v11831_v3 = vrot.slane %v4316_v21, 11  ;;  %v4324_v55 = vshll.u32 %v14810_v44, 16  ;;  %v4023_v4 = vld [vmem:[#allocation2 + $0x100] sm:$0x8] }
 0x16a   : > { %18231 = vst [vmem:[#allocation66_spill] sm:$0xff] %v14818_v41  ;;  %v4330_v53 = vshrl.u32 %v14816_v16, 16  ;;  %v4304_v31 = vor.u32 %v4302_v34, %v4301_v39  ;;  %v4306_v35 = vrot.slane %v4301_v39, 4  ;;  %v4323_v56 = vrot.slane %v4321_v48, 7  ;;  %v14839_v41 = vld [vmem:[#allocation2 + $0x104] sm:$0xf] }
 0x16b   : > { %v14830_v25 = vpop.f32.mrf.mxu1  ;;  %v4333_v52 = vshll.u32 %v14816_v16, 16  ;;  %v4313_v8 = vor.u32 %v4311_v45, %v4310_v9  ;;  %v11876_v7 = vcombine.low %v14714_v36, %v14721_v5  ;;  %v14841_v34 = vld [vmem:[#allocation2 + $0x108] sm:$0xf]  ;;  %v4026_v39 = vld [vmem:[#allocation2 + $0x110] sm:$0x8]  ;;  %v4338_v48 = vshrl.u32 %v4023_v4, 16 }
 0x16c   : > { %18233 = vst [vmem:[#allocation68_spill] sm:$0xff] %v14830_v25  ;;  %12925 = vmatmul.mubr.msk.bf16.gmra.mxu0 %vm1031_vm2, %v11846_v19  ;;  %v4332_v24 = vrot.slane %v4330_v53, 7  ;;  %v4305_v21 = vsel %vm13776_vm5, %v11830_v62, %v4304_v31  ;;  %v4326_v0 = vor.u32 %v4324_v55, %v4323_v56  ;;  %v4328_v25 = vrot.slane %v4323_v56, 4  ;;  %v14843_v19 = vpop.f32.mrf.mxu0  ;;  %v14854_v9 = vld [vmem:[#allocation2 + $0x114] sm:$0xf] }
 0x16d   : > { %18234 = vst [vmem:[#allocation69_spill] sm:$0xff] %v14843_v19  ;;  %v14848_v36 = vpop.f32.mrf.mxu1  ;;  %v11877_v62 = vcombine.low %v14728_v20, %v14736_v60  ;;  %v4343_v31 = vshrl.u32 %v14839_v41, 16  ;;  %v4352_v56 = vshrl.u32 %v14841_v34, 16  ;;  %v4355_v20 = vshll.u32 %v14841_v34, 16 }
 0x16e   : > { %v4335_v45 = vor.u32 %v4333_v52, %v4332_v24  ;;  %v4327_v55 = vsel %vm13776_vm5, %v11831_v3, %v4326_v0  ;;  %v14861_v52 = vld [vmem:[#allocation2 + $0x118] sm:$0xf]  ;;  %v11832_v3 = vrot.slane %v4338_v48, 11  ;;  %v4360_v60 = vshrl.u32 %v4026_v39, 16 }
 0x16f   : > { %12951 = vmatmul.mubr.msk.bf16.gmra.mxu1 %vm1031_vm2, %v11875_v15  ;;  %v4314_v15 = vsel %vm13776_vm5, %v4306_v35, %v4313_v8  ;;  %v4346_v35 = vshll.u32 %v14839_v41, 16  ;;  %v4345_v24 = vrot.slane %v4343_v31, 7  ;;  %v4368_v4 = vshll.u32 %v14854_v9, 16 }
 0x170   : > { %12954 = vmatprep.mubr.msk.bf16.mxu1 %vm1031_vm2, %v11876_v7  ;;  %v11847_v5 = vcombine.low %v4305_v21, %v4314_v15  ;;  %v4336_v53 = vsel %vm13776_vm5, %v4328_v25, %v4335_v45  ;;  %v4354_v7 = vrot.slane %v4352_v56, 7  ;;  %v4365_v25 = vshrl.u32 %v14854_v9, 16  ;;  %v14869_v21 = vpop.f32.mrf.mxu1 }
 0x171   : > { %v11848_v0 = vcombine.low %v4327_v55, %v4336_v53  ;;  %18236 = vst [vmem:[#allocation71_spill] sm:$0xff] %v14869_v21  ;;  %v11833_v15 = vrot.slane %v4360_v60, 11  ;;  %v4374_v45 = vshrl.u32 %v14861_v52, 16  ;;  %v11878_v39 = vcombine.low %v14759_v30, %v14761_v6  ;;  %v5002_v60 = vld [vmem:[#allocation2 + $0x28] sm:$0xf] }
 0x172   : > { %12928 = vmatprep.mubr.msk.bf16.mxu0 %vm1031_vm2, %v11847_v5  ;;  %v4377_v5 = vshll.u32 %v14861_v52, 16  ;;  %v4348_v55 = vor.u32 %v4346_v35, %v4345_v24  ;;  %v4350_v48 = vrot.slane %v4345_v24, 4  ;;  %v4357_v53 = vor.u32 %v4355_v20, %v4354_v7 }
 0x173   : > { %v14865_v8 = vpop.f32.mrf.mxu0  ;;  %v4367_v31 = vrot.slane %v4365_v25, 7  ;;  %v4376_v19 = vrot.slane %v4374_v45, 7  ;;  %v11879_v7 = vcombine.low %v14772_v42, %v14779_v2  ;;  %v5005_v2 = vld [vmem:[#allocation2 + $0x38] sm:$0xf]  ;;  %vm6484_vm11 = vcmask 64512  }
 0x174   : > { %18235 = vst [vmem:[#allocation70_spill] sm:$0xff] %v14865_v8  ;;  %12929 = vmatmul.mubr.msk.bf16.gmra.mxu0 %vm1031_vm2, %v11848_v0  ;;  %v5001_v0 = vld [vmem:[#allocation2 + $0x24] sm:$0xf]  ;;  %v4349_v21 = vsel %vm13776_vm5, %v11832_v3, %v4348_v55  ;;  %v4358_v8 = vsel %vm13776_vm5, %v4350_v48, %v4357_v53  ;;  %v5004_v3 = vld [vmem:[#allocation2 + $0x34] sm:$0xf] }
 0x175   : > { %v14877_v56 = vpop.f32.mrf.mxu0  ;;  %v4370_v30 = vor.u32 %v4368_v4, %v4367_v31  ;;  %v4372_v6 = vrot.slane %v4367_v31, 4  ;;  %v11849_v20 = vcombine.low %v4349_v21, %v4358_v8  ;;  %v4379_v24 = vor.u32 %v4377_v5, %v4376_v19  ;;  %v5006_v31 = vld [vmem:[#allocation2 + $0x3c] sm:$0x1] }
 0x176   : > { %18237 = vst [vmem:[#allocation72_spill] sm:$0xff] %v14877_v56  ;;  %v5050_v45 = vshrl.u32 %v5001_v0, 16  ;;  %v5059_v56 = vshll.u32 %v5002_v60, 16  ;;  %v14894_v4 = vadd.f32 %v14398_v1, %v14346_v40  ;;  %v5063_v8 = vshrl.u32 %v5002_v60, 16 }
 0x177   : > { %12955 = vmatmul.mubr.msk.bf16.gmra.mxu1 %vm1031_vm2, %v11877_v62  ;;  %v5003_v62 = vld [vmem:[#allocation2 + $0x2c] sm:$0x1]  ;;  %v4371_v25 = vsel %vm13776_vm5, %v11833_v15, %v4370_v30  ;;  %v14890_v55 = vpop.f32.mrf.mxu0  ;;  %12932 = vmatprep.mubr.msk.bf16.mxu0 %vm1031_vm2, %v11849_v20  ;;  %v4380_v19 = vsel %vm13776_vm5, %v4372_v6, %v4379_v24  ;;  %v11880_v1 = vcombine.low %v14797_v47, %v14804_v51  ;;  %v5074_v30 = vshrl.u32 %v5004_v3, 16 }
 0x178   : > { %12958 = vmatprep.mubr.msk.bf16.mxu1 %vm1031_vm2, %v11878_v39  ;;  %v5053_v39 = vshll.u32 %v5001_v0, 16  ;;  %v5069_v42 = vshll.u32 %v5003_v62, 16  ;;  %v11850_v15 = vcombine.low %v4371_v25, %v4380_v19  ;;  %v5052_v5 = vrot.slane %v5050_v45, 4 }
 0x179   : > { %v14884_v35 = vpop.f32.mrf.mxu1  ;;  %v5061_v53 = vrot.slane %v5059_v56, 5  ;;  %v14903_v0 = vadd.f32 %v14404_v54, %v14353_v63  ;;  %v5065_v40 = vrot.slane %v5063_v8, 4  ;;  %v5077_v6 = vshll.u32 %v5004_v3, 16  ;;  %v14909_v24 = vpop.f32.mrf.mxu0 }
 0x17a   : > { %v5055_v48 = vrot.slane %v5053_v39, 5  ;;  %v5083_v62 = vshll.u32 %v5005_v2, 16  ;;  %v5087_v20 = vshrl.u32 %v5005_v2, 16  ;;  %18238 = vst [vmem:[#allocation73_spill] sm:$0xff] %v14909_v24  ;;  %v5071_v25 = vrot.slane %v5069_v42, 5 }
 0x17b   : > { %v14899_v21 = vpop.f32.mrf.mxu1  ;;  %v5066_v56 = vor.u32 %v5065_v40, %v5061_v53  ;;  %v5076_v63 = vrot.slane %v5074_v30, 4  ;;  %v5093_v54 = vshll.u32 %v5006_v31, 16  ;;  %v5079_v51 = vrot.slane %v5077_v6, 5  ;;  %v5007_v31 = vld [vmem:[#allocation2 + $0x44] sm:$0xf] }
 0x17c   : > { %12933 = vmatmul.mubr.msk.bf16.gmra.mxu0 %vm1031_vm2, %v11850_v15  ;;  %v5056_v60 = vor.u32 %v5055_v48, %v5052_v5  ;;  %v5085_v39 = vrot.slane %v5083_v62, 5  ;;  %v5089_v19 = vrot.slane %v5087_v20, 4  ;;  %v14920_v3 = vadd.f32 %v14431_v46, %v14379_v29  ;;  %v5008_v40 = vld [vmem:[#allocation2 + $0x48] sm:$0xf]  ;;  %v5010_v62 = vld [vmem:[#allocation2 + $0x54] sm:$0xf] }
 0x17d   : > { %v14912_v45 = vpop.f32.mrf.mxu1  ;;  %v5067_v8 = vrot.slane %v5066_v56, 4  ;;  %v5095_v42 = vrot.slane %v5093_v54, 5  ;;  %v5080_v15 = vor.u32 %v5079_v51, %v5076_v63  ;;  %v11881_v48 = vcombine.low %v14810_v44, %v14816_v16  ;;  %v5009_v44 = vld [vmem:[#allocation2 + $0x4c] sm:$0x1]  ;;  %v5011_v56 = vld [vmem:[#allocation2 + $0x58] sm:$0xf] }
 0x17e   : > { %v5057_v47 = vrot.slane %v5056_v60, 4  ;;  %v5090_v5 = vor.u32 %v5089_v19, %v5085_v39  ;;  %v14934_v29 = vadd.f32 %v14441_v18, %v14400_v49  ;;  %v5098_v60 = vshrl.u32 %v5007_v31, 16  ;;  %v5012_v51 = vld [vmem:[#allocation2 + $0x5c] sm:$0x1] }
 0x17f   : > { %12959 = vmatmul.mubr.msk.bf16.gmra.mxu1 %vm1031_vm2, %v11879_v7  ;;  %v14916_v7 = vadd.f32 %v14410_v59, %v14360_v14  ;;  %v14930_v14 = vadd.f32 %v14435_v12, %v14393_v58  ;;  %v14938_v59 = vadd.f32 %v14455_v43, %v14412_v13  ;;  %v5072_v46 = vsel %vm13974_vm8, %v5067_v8, %v5071_v25  ;;  %v14942_v16 = vpop.f32.mrf.mxu1 }
 0x180   : > { %12962 = vmatprep.mubr.msk.bf16.mxu1 %vm1031_vm2, %v11880_v1  ;;  %v5062_v2 = vsel %vm13974_vm8, %v5057_v47, %v5061_v53  ;;  %18239 = vst [vmem:[#allocation74_spill] sm:$0xff] %v14942_v16  ;;  %v14946_v53 = vadd.f32 %v14463_v26, %v14422_v22  ;;  %v5081_v12 = vrot.slane %v5080_v15, 4  ;;  %v5091_v30 = vrot.slane %v5090_v5, 4  ;;  %v18258_v16 = vld [vmem:[#allocation66_spill] sm:$0xff] }
 0x181   : > { %v11901_v58 = vcombine.low %v5062_v2, %v5072_v46  ;;  %v5101_v49 = vshll.u32 %v5007_v31, 16  ;;  %v5107_v18 = vshll.u32 %v5008_v40, 16  ;;  %v5111_v6 = vshrl.u32 %v5008_v40, 16 }
 0x182   : > { %v14952_v43 = vadd.f32 %v14469_v17, %v14437_v50  ;;  %v5086_v22 = vsel %vm13974_vm8, %v5081_v12, %v5085_v39  ;;  %v5096_v26 = vsel %vm13974_vm8, %v5091_v30, %v5095_v42  ;;  %v5117_v20 = vshll.u32 %v5009_v44, 16 }
 0x183   : > { %v14926_v1 = vpop.f32.mrf.mxu0  ;;  %12972 = vmatprep.mubr.msk.bf16.mxu0 %vm1031_vm2, %v11901_v58  ;;  %v11902_v25 = vcombine.low %v5086_v22, %v5096_v26  ;;  %v5100_v63 = vrot.slane %v5098_v60, 4  ;;  %v5103_v54 = vrot.slane %v5101_v49, 5  ;;  %v5109_v47 = vrot.slane %v5107_v18, 5  ;;  %v5013_v26 = vld [vmem:[#allocation2 + $0x64] sm:$0xf] }
 0x184   : > { %v14964_v50 = vadd.f32 %v14495_v10, %v14461_v23  ;;  %v5113_v17 = vrot.slane %v5111_v6, 4  ;;  %v11882_v39 = vcombine.low %v14839_v41, %v14841_v34  ;;  %v5122_v8 = vshrl.u32 %v5010_v62, 16 }
 0x185   : > { %v14948_v13 = vpop.f32.mrf.mxu0  ;;  %12973 = vmatmul.mubr.msk.bf16.vlgmr.msra.gmra.mxu0 %vm1031_vm2, %v11902_v25  ;;  %v5104_v42 = vor.u32 %v5103_v54, %v5100_v63  ;;  %v5125_v2 = vshll.u32 %v5010_v62, 16  ;;  %v5131_v15 = vshll.u32 %v5011_v56, 16  ;;  %v5135_v5 = vshrl.u32 %v5011_v56, 16  ;;  %v18244_v63 = vld [vmem:[#allocation23_spill] sm:$0xff] }
 0x186   : > { %v5114_v31 = vor.u32 %v5113_v17, %v5109_v47  ;;  %v5119_v40 = vrot.slane %v5117_v20, 5  ;;  %v5124_v46 = vrot.slane %v5122_v8, 4  ;;  %v5141_v23 = vshll.u32 %v5012_v51, 16  ;;  %v5014_v20 = vld [vmem:[#allocation2 + $0x68] sm:$0xf]  ;;  %v18246_v51 = vld [vmem:[#allocation43_spill] sm:$0xff] }
 0x187   : > { %12963 = vmatmul.mubr.msk.bf16.gmra.mxu1 %vm1031_vm2, %v11881_v48  ;;  %v14969_v48 = vpop.f32.mrf.mxu0  ;;  %v5105_v10 = vrot.slane %v5104_v42, 4  ;;  %v5127_v44 = vrot.slane %v5125_v2, 5  ;;  %v5133_v58 = vrot.slane %v5131_v15, 5  ;;  %v5137_v12 = vrot.slane %v5135_v5, 4 }
 0x188   : > { %v14960_v19 = vpop.f32.mrf.mxu1  ;;  %12966 = vmatprep.mubr.msk.bf16.mxu1 %vm1031_vm2, %v11882_v39  ;;  %v14976_v34 = vadd.f32 %v14504_v27, %v14467_v38  ;;  %v14980_v30 = vadd.f32 %v14510_v32, %v14476_v11  ;;  %v5115_v60 = vrot.slane %v5114_v31, 4  ;;  %v11883_v49 = vcombine.low %v14854_v9, %v14861_v52  ;;  %v18241_v38 = vld [vmem:[#allocation27_spill] sm:$0xff]  ;;  %v18242_v11 = vld [vmem:[#allocation22_spill] sm:$0xff]  ;;  %v18243_v32 = vld [vmem:[#allocation29_spill] sm:$0xff] }
 0x189   : > { %v5110_v18 = vsel %vm13974_vm8, %v5105_v10, %v5109_v47  ;;  %v5128_v6 = vor.u32 %v5127_v44, %v5124_v46  ;;  %v5138_v62 = vor.u32 %v5137_v12, %v5133_v58  ;;  %v5143_v22 = vrot.slane %v5141_v23, 5  ;;  %v14986_v56 = vpop.f32.mrf.mxu0  ;;  %v18245_v9 = vld [vmem:[#allocation31_spill] sm:$0xff]  ;;  %v5015_v47 = vld [vmem:[#allocation2 + $0x6c] sm:$0x1]  ;;  %v18247_v23 = vld [vmem:[#allocation45_spill] sm:$0xff] }
 0x18a   : > { %v14972_v41 = vpop.f32.mrf.mxu1  ;;  %18240 = vst [vmem:[#allocation75_spill] sm:$0xff] %v14986_v56  ;;  %v14990_v27 = vadd.f32 %v18241_v38, %v14489_v28  ;;  %v14994_v25 = vadd.f32 %v18243_v32, %v18242_v11  ;;  %v14998_v52 = vadd.f32 %v18245_v9, %v18244_v63  ;;  %v5120_v54 = vsel %vm13974_vm8, %v5115_v60, %v5119_v40  ;;  %v5016_v46 = vld [vmem:[#allocation2 + $0x74] sm:$0xf]  ;;  %v5017_v12 = vld [vmem:[#allocation2 + $0x78] sm:$0xf] }
 0x18b   : > { %v2204_v17 = vadd.f32 %v18246_v51, %v14894_v4  ;;  %v11903_v39 = vcombine.low %v5110_v18, %v5120_v54  ;;  %v5129_v28 = vrot.slane %v5128_v6, 4  ;;  %v5139_v8 = vrot.slane %v5138_v62, 4  ;;  %v5018_v60 = vld [vmem:[#allocation2 + $0x7c] sm:$0x1] }
 0x18c   : > { %v15005_v42 = vpop.f32.mrf.mxu1  ;;  %v5146_v2 = vshrl.u32 %v5013_v26, 16  ;;  %v5149_v15 = vshll.u32 %v5013_v26, 16  ;;  %v5155_v5 = vshll.u32 %v5014_v20, 16  ;;  %v5159_v31 = vshrl.u32 %v5014_v20, 16 }
 0x18d   : > { %v2202_v10 = vadd.f32 %v18247_v23, %v14903_v0  ;;  %12976 = vmatprep.mubr.msk.bf16.mxu0 %vm1031_vm2, %v11903_v39  ;;  %v5134_v40 = vsel %vm13974_vm8, %v5129_v28, %v5133_v58  ;;  %v5144_v4 = vsel %vm13974_vm8, %v5139_v8, %v5143_v22  ;;  %v5165_v44 = vshll.u32 %v5015_v47, 16  ;;  %v18249_v8 = vld [vmem:[#allocation46_spill] sm:$0xff] }
 0x18e   : > { %v11904_v18 = vcombine.low %v5134_v40, %v5144_v4  ;;  %v5148_v6 = vrot.slane %v5146_v2, 4  ;;  %v5151_v62 = vrot.slane %v5149_v15, 5  ;;  %v5157_v26 = vrot.slane %v5155_v5, 5  ;;  %v15016_v32 = vpop.f32.mrf.mxu1  ;;  %v18251_v23 = vld [vmem:[#allocation34_spill] sm:$0xff] }
 0x18f   : > { %12967 = vmatmul.mubr.msk.bf16.gmra.mxu1 %vm1031_vm2, %v11883_v49  ;;  %v5161_v20 = vrot.slane %v5159_v31, 4  ;;  %v5167_v38 = vrot.slane %v5165_v44, 5  ;;  %v5170_v0 = vshrl.u32 %v5016_v46, 16  ;;  %v5173_v11 = vshll.u32 %v5016_v46, 16  ;;  %18248 = vst [vmem:[#allocation27_spill] sm:$0xff] %v15016_v32  ;;  %v18250_v46 = vld [vmem:[#allocation26_spill] sm:$0xff] }
 0x190   : > { %12977 = vmatmul.mubr.msk.bf16.gmra.mxu0 %vm1031_vm2, %v11904_v18  ;;  %v5152_v58 = vor.u32 %v5151_v62, %v5148_v6  ;;  %v5179_v63 = vshll.u32 %v5017_v12, 16  ;;  %v5183_v22 = vshrl.u32 %v5017_v12, 16  ;;  %v5189_v9 = vshll.u32 %v5018_v60, 16  ;;  %v5019_v60 = vld [vmem:[#allocation2 + $0x84] sm:$0xf]  ;;  %v18252_v6 = vld [vmem:[#allocation62_spill] sm:$0xff] }
 0x191   : > { %v5162_v54 = vor.u32 %v5161_v20, %v5157_v26  ;;  %v5172_v47 = vrot.slane %v5170_v0, 4  ;;  %v5175_v51 = vrot.slane %v5173_v11, 5  ;;  %v15020_v39 = vadd.f32 %v14744_v33, %v2204_v17  ;;  %v5020_v20 = vld [vmem:[#allocation2 + $0x88] sm:$0xf]  ;;  %v5021_v0 = vld [vmem:[#allocation2 + $0x8c] sm:$0x1] }
 0x192   : > { %v15014_v49 = vpop.f32.mrf.mxu0  ;;  %v2205_v2 = vadd.f32 %v18249_v8, %v14916_v7  ;;  %v5153_v15 = vrot.slane %v5152_v58, 4  ;;  %v5181_v5 = vrot.slane %v5179_v63, 5  ;;  %v5185_v31 = vrot.slane %v5183_v22, 4  ;;  %v18253_v11 = vld [vmem:[#allocation28_spill] sm:$0xff]  ;;  %v18254_v58 = vld [vmem:[#allocation35_spill] sm:$0xff] }
 0x193   : > { %v15028_v40 = vadd.f32 %v18251_v23, %v18250_v46  ;;  %v5163_v4 = vrot.slane %v5162_v54, 4  ;;  %v5176_v44 = vor.u32 %v5175_v51, %v5172_v47  ;;  %v15031_v12 = vadd.f32 %v14754_v37, %v2202_v10  ;;  %v18255_v37 = vld [vmem:[#allocation50_spill] sm:$0xff] }
 0x194   : > { %v15022_v28 = vpop.f32.mrf.mxu0  ;;  %v5158_v17 = vsel %vm13974_vm8, %v5153_v15, %v5157_v26  ;;  %v5186_v18 = vor.u32 %v5185_v31, %v5181_v5  ;;  %v5191_v7 = vrot.slane %v5189_v9, 5  ;;  %v15038_v62 = vadd.f32 %v18252_v6, %v2205_v2  ;;  %v5022_v2 = vld [vmem:[#allocation2 + $0x94] sm:$0xf]  ;;  %v5023_v6 = vld [vmem:[#allocation2 + $0x98] sm:$0xf] }
 0x195   : > { %v15042_v63 = vadd.f32 %v18254_v58, %v18253_v11  ;;  %v2208_v10 = vadd.f32 %v18255_v37, %v14920_v3  ;;  %v5168_v22 = vsel %vm13974_vm8, %v5163_v4, %v5167_v38  ;;  %v5177_v54 = vrot.slane %v5176_v44, 4  ;;  %v18256_v3 = vld [vmem:[#allocation52_spill] sm:$0xff] }
 0x196   : > { %v15048_v47 = vpop.f32.mrf.mxu0  ;;  %v11905_v26 = vcombine.low %v5158_v17, %v5168_v22  ;;  %v5187_v9 = vrot.slane %v5186_v18, 4  ;;  %v5194_v51 = vshrl.u32 %v5019_v60, 16  ;;  %v5197_v8 = vshll.u32 %v5019_v60, 16  ;;  %v5024_v17 = vld [vmem:[#allocation2 + $0x9c] sm:$0x1] }
 0x197   : > { %v5182_v15 = vsel %vm13974_vm8, %v5177_v54, %v5181_v5  ;;  %v5203_v31 = vshll.u32 %v5020_v20, 16  ;;  %v5207_v46 = vshrl.u32 %v5020_v20, 16  ;;  %v5213_v23 = vshll.u32 %v5021_v0, 16 }
 0x198   : > { %v15033_v33 = vpop.f32.mrf.mxu1  ;;  %v2206_v38 = vadd.f32 %v18256_v3, %v14930_v14  ;;  %12980 = vmatprep.mubr.msk.bf16.mxu0 %vm1031_vm2, %v11905_v26  ;;  %v5192_v4 = vsel %vm13974_vm8, %v5187_v9, %v5191_v7  ;;  %v5196_v44 = vrot.slane %v5194_v51, 4  ;;  %v5199_v60 = vrot.slane %v5197_v8, 5  ;;  %v15059_v20 = vpop.f32.mrf.mxu0 }
 0x199   : > { %v11906_v18 = vcombine.low %v5182_v15, %v5192_v4  ;;  %v5205_v58 = vrot.slane %v5203_v31, 5  ;;  %v5209_v5 = vrot.slane %v5207_v46, 4  ;;  %v5215_v37 = vrot.slane %v5213_v23, 5  ;;  %18257 = vst [vmem:[#allocation22_spill] sm:$0xff] %v15059_v20  ;;  %v18260_v46 = vld [vmem:[#allocation30_spill] sm:$0xff]  ;;  %v18261_v23 = vld [vmem:[#allocation37_spill] sm:$0xff] }
 0x19a   : > { %v15052_v11 = vpop.f32.mrf.mxu1  ;;  %v5200_v0 = vor.u32 %v5199_v60, %v5196_v44  ;;  %v5218_v22 = vshrl.u32 %v5022_v2, 16  ;;  %v5221_v54 = vshll.u32 %v5022_v2, 16  ;;  %v5227_v32 = vshll.u32 %v5023_v6, 16  ;;  %v18262_v2 = vld [vmem:[#allocation53_spill] sm:$0xff] }
 0x19b   : > { %12981 = vmatmul.mubr.msk.bf16.gmra.mxu0 %vm1031_vm2, %v11906_v18  ;;  %v5210_v14 = vor.u32 %v5209_v5, %v5205_v58  ;;  %v5231_v26 = vshrl.u32 %v5023_v6, 16  ;;  %v5237_v3 = vshll.u32 %v5024_v17, 16  ;;  %v15063_v7 = vadd.f32 %v18258_v16, %v2208_v10  ;;  %v5025_v6 = vld [vmem:[#allocation2 + $0xa4] sm:$0xf]  ;;  %v18263_v16 = vld [vmem:[#allocation36_spill] sm:$0xff]  ;;  %v18264_v10 = vld [vmem:[#allocation42_spill] sm:$0xff] }
 0x19c   : > { %v15065_v9 = vpop.f32.mrf.mxu1  ;;  %v5201_v51 = vrot.slane %v5200_v0, 4  ;;  %v5220_v8 = vrot.slane %v5218_v22, 4  ;;  %v5223_v15 = vrot.slane %v5221_v54, 5  ;;  %v5229_v31 = vrot.slane %v5227_v32, 5  ;;  %v18265_v22 = vld [vmem:[#allocation68_spill] sm:$0xff] }
 0x19d   : > { %18259 = vst [vmem:[#allocation29_spill] sm:$0xff] %v15063_v7  ;;  %v15069_v4 = vadd.f32 %v18261_v23, %v18260_v46  ;;  %v2209_v44 = vadd.f32 %v18262_v2, %v14934_v29  ;;  %v5211_v60 = vrot.slane %v5210_v14, 4  ;;  %v5233_v18 = vrot.slane %v5231_v26, 4  ;;  %v5026_v46 = vld [vmem:[#allocation2 + $0xa8] sm:$0xf] }
 0x19e   : > { %v15077_v5 = vadd.f32 %v18264_v10, %v18263_v16  ;;  %v5206_v0 = vsel %vm13974_vm8, %v5201_v51, %v5205_v58  ;;  %v5224_v32 = vor.u32 %v5223_v15, %v5220_v8  ;;  %v15082_v54 = vadd.f32 %v18265_v22, %v2206_v38  ;;  %v5027_v2 = vld [vmem:[#allocation2 + $0xac] sm:$0x1]  ;;  %v15089_v20 = vpop.f32.mrf.mxu1  ;;  %v18269_v58 = vld [vmem:[#allocation57_spill] sm:$0xff] }
 0x19f   : > { %v5216_v29 = vsel %vm13974_vm8, %v5211_v60, %v5215_v37  ;;  %v5234_v14 = vor.u32 %v5233_v18, %v5229_v31  ;;  %v5239_v26 = vrot.slane %v5237_v3, 5  ;;  %v15087_v23 = vadd.f32 %v14848_v36, %v2209_v44  ;;  %18268 = vst [vmem:[#allocation43_spill] sm:$0xff] %v15089_v20  ;;  %v5028_v60 = vld [vmem:[#allocation2 + $0xb4] sm:$0xf] }
 0x1a0   : > { %18266 = vst [vmem:[#allocation23_spill] sm:$0xff] %v15082_v54  ;;  %v2212_v51 = vadd.f32 %v18269_v58, %v14938_v59  ;;  %v11907_v8 = vcombine.low %v5206_v0, %v5216_v29  ;;  %v5225_v38 = vrot.slane %v5224_v32, 4  ;;  %v5242_v15 = vshrl.u32 %v5025_v6, 16  ;;  %v18271_v36 = vld [vmem:[#allocation59_spill] sm:$0xff]  ;;  %v5029_v0 = vld [vmem:[#allocation2 + $0xb8] sm:$0xf] }
 0x1a1   : > { %18267 = vst [vmem:[#allocation31_spill] sm:$0xff] %v15087_v23  ;;  %v5235_v10 = vrot.slane %v5234_v14, 4  ;;  %v5245_v22 = vshll.u32 %v5025_v6, 16  ;;  %v5251_v56 = vshll.u32 %v5026_v46, 16  ;;  %v5255_v37 = vshrl.u32 %v5026_v46, 16 }
 0x1a2   : > { %v15073_v17 = vpop.f32.mrf.mxu0  ;;  %v2210_v44 = vadd.f32 %v18271_v36, %v14946_v53  ;;  %12984 = vmatprep.mubr.msk.bf16.mxu0 %vm1031_vm2, %v11907_v8  ;;  %v5230_v18 = vsel %vm13974_vm8, %v5225_v38, %v5229_v31  ;;  %v5244_v20 = vrot.slane %v5242_v15, 4  ;;  %v5261_v59 = vshll.u32 %v5027_v2, 16  ;;  %v5030_v14 = vld [vmem:[#allocation2 + $0xbc] sm:$0x1] }
 0x1a3   : > { %v5240_v32 = vsel %vm13974_vm8, %v5235_v10, %v5239_v26  ;;  %v5247_v6 = vrot.slane %v5245_v22, 5  ;;  %v5253_v29 = vrot.slane %v5251_v56, 5  ;;  %v5257_v46 = vrot.slane %v5255_v37, 4 }
 0x1a4   : > { %v15091_v16 = vpop.f32.mrf.mxu0  ;;  %v11908_v53 = vcombine.low %v5230_v18, %v5240_v32  ;;  %v5263_v36 = vrot.slane %v5261_v59, 5  ;;  %v5266_v8 = vshrl.u32 %v5028_v60, 16  ;;  %v5269_v57 = vshll.u32 %v5028_v60, 16 }
 0x1a5   : > { %v5248_v23 = vor.u32 %v5247_v6, %v5244_v20  ;;  %v5258_v31 = vor.u32 %v5257_v46, %v5253_v29  ;;  %v5275_v38 = vshll.u32 %v5029_v0, 16  ;;  %v5279_v2 = vshrl.u32 %v5029_v0, 16  ;;  %v18274_v0 = vld [vmem:[#allocation38_spill] sm:$0xff]  ;;  %v18275_v6 = vld [vmem:[#allocation44_spill] sm:$0xff] }
 0x1a6   : > { %v15095_v3 = vpop.f32.mrf.mxu0  ;;  %12985 = vmatmul.mubr.msk.bf16.gmra.mxu0 %vm1031_vm2, %v11908_v53  ;;  %v5268_v56 = vrot.slane %v5266_v8, 4  ;;  %v5271_v26 = vrot.slane %v5269_v57, 5  ;;  %v5285_v10 = vshll.u32 %v5030_v14, 16  ;;  %v15114_v22 = vadd.f32 %v14884_v35, %v2212_v51  ;;  %v18276_v53 = vld [vmem:[#allocation60_spill] sm:$0xff]  ;;  %v5031_v35 = vld [vmem:[#allocation2 + $0xc4] sm:$0xf] }
 0x1a7   : > { %18270 = vst [vmem:[#allocation45_spill] sm:$0xff] %v15095_v3  ;;  %v5249_v37 = vrot.slane %v5248_v23, 4  ;;  %v5259_v18 = vrot.slane %v5258_v31, 4  ;;  %v5277_v59 = vrot.slane %v5275_v38, 5  ;;  %v5281_v60 = vrot.slane %v5279_v2, 4 }
 0x1a8   : > { %v15104_v58 = vpop.f32.mrf.mxu1  ;;  %v15106_v24 = vpop.f32.mrf.mxu0  ;;  %18273 = vst [vmem:[#allocation26_spill] sm:$0xff] %v15114_v22  ;;  %v15122_v46 = vadd.f32 %v18275_v6, %v18274_v0  ;;  %v2213_v8 = vadd.f32 %v18276_v53, %v14952_v43  ;;  %v5272_v57 = vor.u32 %v5271_v26, %v5268_v56  ;;  %v15127_v14 = vadd.f32 %v14899_v21, %v2210_v44  ;;  %v5032_v2 = vld [vmem:[#allocation2 + $0xc8] sm:$0xf]  ;;  %v18279_v43 = vld [vmem:[#allocation39_spill] sm:$0xff] }
 0x1a9   : > { %18272 = vst [vmem:[#allocation46_spill] sm:$0xff] %v15106_v24  ;;  %v5254_v23 = vsel %vm13974_vm8, %v5249_v37, %v5253_v29  ;;  %v5264_v51 = vsel %vm13974_vm8, %v5259_v18, %v5263_v36  ;;  %v5282_v31 = vor.u32 %v5281_v60, %v5277_v59  ;;  %v5287_v38 = vrot.slane %v5285_v10, 5  ;;  %v5033_v24 = vld [vmem:[#allocation2 + $0xcc] sm:$0x1]  ;;  %v18280_v56 = vld [vmem:[#allocation47_spill] sm:$0xff] }
 0x1aa   : > { %v15108_v15 = vpop.f32.mrf.mxu1  ;;  %v15110_v54 = vpop.f32.mrf.mxu0  ;;  %18277 = vst [vmem:[#allocation34_spill] sm:$0xff] %v15127_v14  ;;  %v15139_v26 = vadd.f32 %v18280_v56, %v18279_v43  ;;  %v11909_v21 = vcombine.low %v5254_v23, %v5264_v51  ;;  %v5273_v44 = vrot.slane %v5272_v57, 4  ;;  %v15142_v53 = vadd.f32 %v14912_v45, %v2213_v8  ;;  %v18282_v29 = vld [vmem:[#allocation63_spill] sm:$0xff]  ;;  %v5035_v51 = vld [vmem:[#allocation2 + $0xd8] sm:$0xf]  ;;  %v18284_v45 = vld [vmem:[#allocation65_spill] sm:$0xff] }
 0x1ab   : > { %v2216_v36 = vadd.f32 %v18282_v29, %v14964_v50  ;;  %v5283_v37 = vrot.slane %v5282_v31, 4  ;;  %v5290_v10 = vshrl.u32 %v5031_v35, 16  ;;  %v5293_v18 = vshll.u32 %v5031_v35, 16  ;;  %v5034_v60 = vld [vmem:[#allocation2 + $0xd4] sm:$0xf] }
 0x1ac   : > { %v15116_v20 = vpop.f32.mrf.mxu1  ;;  %v15118_v32 = vpop.f32.mrf.mxu0  ;;  %18281 = vst [vmem:[#allocation28_spill] sm:$0xff] %v15142_v53  ;;  %12988 = vmatprep.mubr.msk.bf16.mxu0 %vm1031_vm2, %v11909_v21  ;;  %v5278_v43 = vsel %vm13974_vm8, %v5273_v44, %v5277_v59  ;;  %v5299_v56 = vshll.u32 %v5032_v2, 16  ;;  %v5303_v23 = vshrl.u32 %v5032_v2, 16  ;;  %v5309_v57 = vshll.u32 %v5033_v24, 16  ;;  %v5036_v29 = vld [vmem:[#allocation2 + $0xdc] sm:$0x1] }
 0x1ad   : > { %v2214_v8 = vadd.f32 %v18284_v45, %v14976_v34  ;;  %v5288_v50 = vsel %vm13974_vm8, %v5283_v37, %v5287_v38  ;;  %v5292_v31 = vrot.slane %v5290_v10, 4  ;;  %v5295_v35 = vrot.slane %v5293_v18, 5 }
 0x1ae   : > { %v15133_v0 = vpop.f32.mrf.mxu1  ;;  %v15135_v6 = vpop.f32.mrf.mxu0  ;;  %v11910_v21 = vcombine.low %v5278_v43, %v5288_v50  ;;  %v5301_v53 = vrot.slane %v5299_v56, 5  ;;  %v5305_v59 = vrot.slane %v5303_v23, 4  ;;  %v5311_v44 = vrot.slane %v5309_v57, 5  ;;  %v18288_v50 = vld [vmem:[#allocation51_spill] sm:$0xff] }
 0x1af   : > { %18278 = vst [vmem:[#allocation62_spill] sm:$0xff] %v15133_v0  ;;  %v5296_v2 = vor.u32 %v5295_v35, %v5292_v31  ;;  %v5314_v24 = vshrl.u32 %v5034_v60, 16  ;;  %v5317_v22 = vshll.u32 %v5034_v60, 16  ;;  %v5323_v7 = vshll.u32 %v5035_v51, 16  ;;  %v18287_v60 = vld [vmem:[#allocation11_spill] sm:$0xff] }
 0x1b0   : > { %v15146_v14 = vpop.f32.mrf.mxu0  ;;  %v15155_v0 = vpop.f32.mrf.mxu1  ;;  %12989 = vmatmul.mubr.msk.bf16.gmra.mxu0 %vm1031_vm2, %v11910_v21  ;;  %v5306_v34 = vor.u32 %v5305_v59, %v5301_v53  ;;  %v5327_v38 = vshrl.u32 %v5035_v51, 16  ;;  %v5333_v37 = vshll.u32 %v5036_v29, 16  ;;  %v15163_v10 = vadd.f32 %v14960_v19, %v2216_v36  ;;  %v18289_v35 = vld [vmem:[#allocation67_spill] sm:$0xff]  ;;  %v5037_v59 = vld [vmem:[#allocation2 + $0xe4] sm:$0xf]  ;;  %v18291_v36 = vld [vmem:[#allocation54_spill] sm:$0xff] }
 0x1b1   : > { %18283 = vst [vmem:[#allocation35_spill] sm:$0xff] %v15146_v14  ;;  %v5297_v18 = vrot.slane %v5296_v2, 4  ;;  %v5316_v45 = vrot.slane %v5314_v24, 4  ;;  %v5319_v43 = vrot.slane %v5317_v22, 5  ;;  %v5325_v56 = vrot.slane %v5323_v7, 5  ;;  %v18290_v19 = vld [vmem:[#allocation13_spill] sm:$0xff] }
 0x1b2   : > { %v15157_v14 = vpop.f32.mrf.mxu0  ;;  %18285 = vst [vmem:[#allocation50_spill] sm:$0xff] %v15163_v10  ;;  %v15165_v23 = vpop.f32.mrf.mxu1  ;;  %v15171_v31 = vadd.f32 %v18288_v50, %v18287_v60  ;;  %v2217_v21 = vadd.f32 %v18289_v35, %v14980_v30  ;;  %v5307_v51 = vrot.slane %v5306_v34, 4  ;;  %v5329_v29 = vrot.slane %v5327_v38, 4  ;;  %v5038_v10 = vld [vmem:[#allocation2 + $0xe8] sm:$0xf] }
 0x1b3   : > { %v15177_v2 = vadd.f32 %v18291_v36, %v18290_v19  ;;  %v5302_v7 = vsel %vm13974_vm8, %v5297_v18, %v5301_v53  ;;  %v5320_v22 = vor.u32 %v5319_v43, %v5316_v45  ;;  %v15182_v24 = vadd.f32 %v14972_v41, %v2214_v8  ;;  %v5039_v35 = vld [vmem:[#allocation2 + $0xec] sm:$0x1] }
 0x1b4   : > { %v15159_v3 = vpop.f32.mrf.mxu0  ;;  %v5312_v30 = vsel %vm13974_vm8, %v5307_v51, %v5311_v44  ;;  %v5330_v34 = vor.u32 %v5329_v29, %v5325_v56  ;;  %v5335_v38 = vrot.slane %v5333_v37, 5  ;;  %v15189_v50 = vadd.f32 %v15005_v42, %v2217_v21  ;;  %v18295_v19 = vld [vmem:[#allocation70_spill] sm:$0xff]  ;;  %v15193_v41 = vpop.f32.mrf.mxu1  ;;  %v5040_v51 = vld [vmem:[#allocation2 + $0xf4] sm:$0xf]  ;;  %v18297_v37 = vld [vmem:[#allocation72_spill] sm:$0xff] }
 0x1b5   : > { %18292 = vst [vmem:[#allocation66_spill] sm:$0xff] %v15182_v24  ;;  %v2220_v36 = vadd.f32 %v18295_v19, %v14990_v27  ;;  %v11911_v53 = vcombine.low %v5302_v7, %v5312_v30  ;;  %v5321_v18 = vrot.slane %v5320_v22, 4  ;;  %v5338_v45 = vshrl.u32 %v5037_v59, 16  ;;  %v5041_v7 = vld [vmem:[#allocation2 + $0xf8] sm:$0xf] }
 0x1b6   : > { %v15167_v57 = vpop.f32.mrf.mxu0  ;;  %18294 = vst [vmem:[#allocation37_spill] sm:$0xff] %v15189_v50  ;;  %v5331_v43 = vrot.slane %v5330_v34, 4  ;;  %v5347_v24 = vshll.u32 %v5038_v10, 16  ;;  %v5351_v44 = vshrl.u32 %v5038_v10, 16  ;;  %v2218_v42 = vadd.f32 %v18297_v37, %v14994_v25  ;;  %v5042_v19 = vld [vmem:[#allocation2 + $0xfc] sm:$0x1] }
 0x1b7   : > { %18286 = vst [vmem:[#allocation52_spill] sm:$0xff] %v15167_v57  ;;  %12992 = vmatprep.mubr.msk.bf16.mxu0 %vm1031_vm2, %v11911_v53  ;;  %v5326_v27 = vsel %vm13974_vm8, %v5321_v18, %v5325_v56  ;;  %v5340_v21 = vrot.slane %v5338_v45, 4  ;;  %v5357_v29 = vshll.u32 %v5039_v35, 16  ;;  %v5362_v25 = vshrl.u32 %v5040_v51, 16  ;;  %v15206_v53 = vpop.f32.mrf.mxu1 }
 0x1b8   : > { %v15184_v60 = vpop.f32.mrf.mxu0  ;;  %v5336_v30 = vsel %vm13974_vm8, %v5331_v43, %v5335_v38  ;;  %v5349_v34 = vrot.slane %v5347_v24, 5  ;;  %v5353_v10 = vrot.slane %v5351_v44, 4  ;;  %v5365_v37 = vshll.u32 %v5040_v51, 16  ;;  %18299 = vst [vmem:[#allocation42_spill] sm:$0xff] %v15206_v53  ;;  %v18302_v53 = vld [vmem:[#allocation56_spill] sm:$0xff] }
 0x1b9   : > { %18293 = vst [vmem:[#allocation30_spill] sm:$0xff] %v15184_v60  ;;  %v5341_v60 = vshll.u32 %v5037_v59, 16  ;;  %v11912_v50 = vcombine.low %v5326_v27, %v5336_v30  ;;  %v5371_v18 = vshll.u32 %v5041_v7, 16  ;;  %v5375_v45 = vshrl.u32 %v5041_v7, 16  ;;  %v18301_v30 = vld [vmem:[#allocation14_spill] sm:$0xff] }
 0x1ba   : > { %v15195_v8 = vpop.f32.mrf.mxu0  ;;  %v5354_v35 = vor.u32 %v5353_v10, %v5349_v34  ;;  %v5367_v38 = vrot.slane %v5365_v37, 5  ;;  %v15212_v24 = vadd.f32 %v15033_v33, %v2220_v36  ;;  %v2221_v7 = vadd.f32 %v14890_v55, %v14998_v52  ;;  %v5043_v10 = vld [vmem:[#allocation2 + $0x104] sm:$0xf] }
 0x1bb   : > { %18296 = vst [vmem:[#allocation53_spill] sm:$0xff] %v15195_v8  ;;  %v5343_v59 = vrot.slane %v5341_v60, 5  ;;  %v5359_v8 = vrot.slane %v5357_v29, 5  ;;  %12993 = vmatmul.mubr.msk.bf16.gmra.mxu0 %vm1031_vm2, %v11912_v50  ;;  %v5381_v60 = vshll.u32 %v5042_v19, 16  ;;  %v5373_v27 = vrot.slane %v5371_v18, 5 }
 0x1bc   : > { %v15202_v22 = vpop.f32.mrf.mxu0  ;;  %v5355_v51 = vrot.slane %v5354_v35, 4  ;;  %v5377_v29 = vrot.slane %v5375_v45, 4  ;;  %v5045_v35 = vld [vmem:[#allocation2 + $0x10c] sm:$0x1]  ;;  %v2224_v55 = vadd.f32 %v14926_v1, %v15028_v40  ;;  %v5386_v45 = vshrl.u32 %v5043_v10, 16 }
 0x1bd   : > { %18298 = vst [vmem:[#allocation36_spill] sm:$0xff] %v15202_v22  ;;  %v5344_v56 = vor.u32 %v5343_v59, %v5340_v21  ;;  %v5364_v22 = vrot.slane %v5362_v25, 4  ;;  %v15218_v21 = vadd.f32 %v18302_v53, %v18301_v30  ;;  %v15223_v59 = vadd.f32 %v15052_v11, %v2218_v42 }
 0x1be   : > { %v15208_v57 = vpop.f32.mrf.mxu0  ;;  %v5360_v25 = vsel %vm13974_vm8, %v5355_v51, %v5359_v8  ;;  %v5378_v37 = vor.u32 %v5377_v29, %v5373_v27  ;;  %v5383_v53 = vrot.slane %v5381_v60, 5  ;;  %v15236_v42 = vadd.f32 %v15065_v9, %v2221_v7  ;;  %v5046_v60 = vld [vmem:[#allocation2 + $0x114] sm:$0xf]  ;;  %v5047_v51 = vld [vmem:[#allocation2 + $0x118] sm:$0xf] }
 0x1bf   : > { %v5345_v44 = vrot.slane %v5344_v56, 4  ;;  %v5368_v50 = vor.u32 %v5367_v38, %v5364_v22  ;;  %v5044_v56 = vld [vmem:[#allocation2 + $0x108] sm:$0xf]  ;;  %v5389_v38 = vshll.u32 %v5043_v10, 16  ;;  %v5405_v9 = vshll.u32 %v5045_v35, 16 }
 0x1c0   : > { %v15214_v43 = vpop.f32.mrf.mxu0  ;;  %18303 = vst [vmem:[#allocation57_spill] sm:$0xff] %v15236_v42  ;;  %v5379_v8 = vrot.slane %v5378_v37, 4  ;;  %v5395_v40 = vshll.u32 %v5044_v56, 16  ;;  %v5388_v7 = vrot.slane %v5386_v45, 4  ;;  %v5048_v10 = vld [vmem:[#allocation2 + $0x11c] sm:$0x1] }
 0x1c1   : > { %18300 = vst [vmem:[#allocation68_spill] sm:$0xff] %v15214_v43  ;;  %v5350_v19 = vsel %vm13974_vm8, %v5345_v44, %v5349_v34  ;;  %v5369_v11 = vrot.slane %v5368_v50, 4  ;;  %v2222_v34 = vadd.f32 %v14948_v13, %v15042_v63  ;;  %v5399_v44 = vshrl.u32 %v5044_v56, 16 }
 0x1c2   : > { %v15225_v33 = vpop.f32.mrf.mxu1  ;;  %v15227_v36 = vpop.f32.mrf.mxu0  ;;  %v11913_v52 = vcombine.low %v5350_v19, %v5360_v25  ;;  %v2225_v13 = vadd.f32 %v14969_v48, %v15069_v4  ;;  %v5384_v63 = vsel %vm13974_vm8, %v5379_v8, %v5383_v53  ;;  %v5391_v50 = vrot.slane %v5389_v38, 5 }
 0x1c3   : > { %v5374_v1 = vsel %vm13974_vm8, %v5369_v11, %v5373_v27  ;;  %v5397_v25 = vrot.slane %v5395_v40, 5  ;;  %v5401_v27 = vrot.slane %v5399_v44, 4  ;;  %v5407_v37 = vrot.slane %v5405_v9, 5 }
 0x1c4   : > { %v15238_v22 = vpop.f32.mrf.mxu1  ;;  %v15240_v18 = vpop.f32.mrf.mxu0  ;;  %12996 = vmatprep.mubr.msk.bf16.mxu0 %vm1031_vm2, %v11913_v52  ;;  %v11914_v19 = vcombine.low %v5374_v1, %v5384_v63  ;;  %v5392_v52 = vor.u32 %v5391_v50, %v5388_v7  ;;  %v5410_v11 = vshrl.u32 %v5046_v60, 16  ;;  %v5413_v43 = vshll.u32 %v5046_v60, 16 }
 0x1c5   : > { %v5419_v42 = vshll.u32 %v5047_v51, 16  ;;  %v5402_v48 = vor.u32 %v5401_v27, %v5397_v25  ;;  %v5423_v4 = vshrl.u32 %v5047_v51, 16  ;;  %v5429_v53 = vshll.u32 %v5048_v10, 16 }
 0x1c6   : > { %v15247_v29 = vpop.f32.mrf.mxu1  ;;  %v15249_v30 = vpop.f32.mrf.mxu0  ;;  %12997 = vmatmul.mubr.msk.bf16.gmra.mxu0 %vm1031_vm2, %v11914_v19  ;;  %v15261_v8 = vadd.f32 %v15104_v58, %v2224_v55  ;;  %v5393_v1 = vrot.slane %v5392_v52, 4  ;;  %v5412_v40 = vrot.slane %v5410_v11, 4  ;;  %v5415_v44 = vrot.slane %v5413_v43, 5 }
 0x1c7   : > { %v5421_v9 = vrot.slane %v5419_v42, 5  ;;  %v2228_v63 = vadd.f32 %v15014_v49, %v15077_v5  ;;  %v2226_v60 = vadd.f32 %v15022_v28, %v15122_v46  ;;  %v5403_v7 = vrot.slane %v5402_v48, 4 }
 0x1c8   : > { %v15255_v56 = vpop.f32.mrf.mxu1  ;;  %v15257_v35 = vpop.f32.mrf.mxu0  ;;  %v5425_v50 = vrot.slane %v5423_v4, 4  ;;  %v2229_v58 = vadd.f32 %v15048_v47, %v15139_v26  ;;  %v5398_v55 = vsel %vm13974_vm8, %v5393_v1, %v5397_v25  ;;  %v5416_v19 = vor.u32 %v5415_v44, %v5412_v40  ;;  %v18307_v1 = vld [vmem:[#allocation31_spill] sm:$0xff]  ;;  %v18310_v44 = vld [vmem:[#allocation53_spill] sm:$0xff] }
 0x1c9   : > { %v2916_v43 = vadd.f32 %v15108_v15, %v2222_v34  ;;  %v5408_v49 = vsel %vm13974_vm8, %v5403_v7, %v5407_v37  ;;  %v5431_v42 = vrot.slane %v5429_v53, 5  ;;  %v2919_v28 = vadd.f32 %v15116_v20, %v2225_v13  ;;  %v18312_v7 = vld [vmem:[#allocation36_spill] sm:$0xff] }
 0x1ca   : > { %v15263_v45 = vpop.f32.mrf.mxu1  ;;  %v12854_v38 = vpop.f32.mrf.mxu0  ;;  %v5426_v5 = vor.u32 %v5425_v50, %v5421_v9  ;;  %v11915_v52 = vcombine.low %v5398_v55, %v5408_v49  ;;  %v2232_v47 = vadd.f32 %v15073_v17, %v15171_v31  ;;  %v5417_v26 = vrot.slane %v5416_v19, 4  ;;  %v18305_v31 = vld [vmem:[#allocation29_spill] sm:$0xff]  ;;  %v18314_v55 = vld [vmem:[#allocation50_spill] sm:$0xff] }
 0x1cb   : > { %v15285_v25 = vadd.f32 %v15110_v54, %v15020_v39  ;;  %v2922_v34 = vadd.f32 %v15155_v0, %v2228_v63  ;;  %v15290_v37 = vadd.f32 %v15118_v32, %v15031_v12  ;;  %v15293_v20 = vadd.f32 %v15165_v23, %v2226_v60  ;;  %v18304_v0 = vld [vmem:[#allocation45_spill] sm:$0xff] }
 0x1cc   : > { %v15269_v51 = vpop.f32.mrf.mxu1  ;;  %v3159_v10 = vpop.f32.mrf.mxu0  ;;  %v5427_v15 = vrot.slane %v5426_v5, 4  ;;  %13000 = vmatprep.mubr.msk.bf16.mxu0 %vm1031_vm2, %v11915_v52  ;;  %v5422_v39 = vsel %vm13974_vm8, %v5417_v26, %v5421_v9  ;;  %v2230_v17 = vadd.f32 %v15091_v16, %v15177_v2  ;;  %v15306_v54 = vadd.f32 %v15135_v6, %v15038_v62  ;;  %v18306_v2 = vld [vmem:[#allocation23_spill] sm:$0xff]  ;;  %v18315_v5 = vld [vmem:[#allocation66_spill] sm:$0xff]  ;;  %v18316_v52 = vld [vmem:[#allocation37_spill] sm:$0xff] }
 0x1cd   : > { %v15309_v12 = vadd.f32 %v15193_v41, %v2229_v58  ;;  %v2233_v23 = vadd.f32 %v18304_v0, %v15218_v21  ;;  %v15317_v48 = vadd.f32 %v15157_v14, %v18305_v31  ;;  %v15320_v4 = vadd.f32 %v15225_v33, %v2232_v47  ;;  %v18308_v21 = vld [vmem:[#allocation52_spill] sm:$0xff]  ;;  %v18309_v33 = vld [vmem:[#allocation26_spill] sm:$0xff] }
 0x1ce   : > { %v15279_v46 = vpop.f32.mrf.mxu1  ;;  %v12855_v27 = vpop.f32.mrf.mxu0  ;;  %v5432_v32 = vsel %vm13974_vm8, %v5427_v15, %v5431_v42  ;;  %v15326_v41 = vadd.f32 %v15159_v3, %v18306_v2  ;;  %v15329_v53 = vadd.f32 %v15238_v22, %v2230_v17  ;;  %v15333_v40 = vadd.f32 %v18308_v21, %v18307_v1  ;;  %v18311_v3 = vld [vmem:[#allocation34_spill] sm:$0xff]  ;;  %v18313_v22 = vld [vmem:[#allocation28_spill] sm:$0xff] }
 0x1cf   : > { %v11916_v6 = vcombine.low %v5422_v39, %v5432_v32  ;;  %v15336_v14 = vadd.f32 %v15247_v29, %v2233_v23  ;;  %v3232_v9 = vadd.f32 %v18310_v44, %v18309_v33  ;;  %v15345_v50 = vadd.f32 %v18312_v7, %v18311_v3  ;;  %v11982_v39 = vld [vmem:[%s18152_s3 + $0x4] sm:$0xf] }
 0x1d0   : > { %v15295_v13 = vpop.f32.mrf.mxu1  ;;  %v15297_v11 = vpop.f32.mrf.mxu0  ;;  %v15349_v58 = vadd.f32 %v15208_v57, %v18313_v22  ;;  %v15353_v29 = vadd.f32 %v15227_v36, %v18314_v55  ;;  %v15359_v42 = vadd.f32 %v15240_v18, %v18315_v5  ;;  %v15363_v47 = vadd.f32 %v15249_v30, %v18316_v52  ;;  %v18317_v18 = vld [vmem:[#allocation57_spill] sm:$0xff]  ;;  %13332 = vmatprep.subr.msk.bf16.mxu1 %vm6533_vm9, %v11982_v39 }
 0x1d1   : > { %13001 = vmatmul.mubr.msk.bf16.gmra.mxu0 %vm1031_vm2, %v11916_v6  ;;  %v15368_v57 = vadd.f32 %v12854_v38, %v15212_v24  ;;  %v15371_v15 = vadd.f32 %v3159_v10, %v15223_v59  ;;  %v15379_v17 = vadd.f32 %v12855_v27, %v18317_v18  ;;  %v6535_v23 = vsel %vm6533_vm9, %v11982_v39, 0 }
 0x1d2   : > { %v15322_v16 = vpop.f32.mrf.mxu1  ;;  %v12858_v62 = vpop.f32.mrf.mxu0  ;;  %13005 = vmatpush3.bf16.msra.mxu1 %v6535_v23 }
 0x1d3   : > { %v15382_v30 = vadd.f32 %v12858_v62, %v15261_v8  ;;  %v18318_v8 = vmov 0  }
 0x1d4   : > { %v15340_v63 = vpop.f32.mrf.mxu1  ;;  %v3175_v60 = vpop.f32.mrf.mxu0  ;;  %5767 = vst.msk [vmem:[#allocation3] sm:$0xf] %vm5766_vm10, %v18318_v8  ;;  %5768 = vst.msk [vmem:[#allocation3 + $0x4] sm:$0xf] %vm5766_vm10, %v18318_v8 }
 0x1d5   : > { %v15384_v0 = vadd.f32 %v3175_v60, %v2916_v43  ;;  %5769 = vst.msk [vmem:[#allocation3 + $0x8] sm:$0xf] %vm5766_vm10, %v18318_v8  ;;  %5770 = vst.msk [vmem:[#allocation3 + $0xc] sm:$0xf] %vm5766_vm10, %v18318_v8 }
 0x1d6   : > { %v15355_v19 = vpop.f32.mrf.mxu1  ;;  %v12859_v49 = vpop.f32.mrf.mxu0  ;;  %5772 = vst.msk [vmem:[#allocation3 + $0x110] sm:$0xf] %vm5766_vm10, %v18318_v8  ;;  %5773 = vst.msk [vmem:[#allocation3 + $0x114] sm:$0xf] %vm5766_vm10, %v18318_v8 }
 0x1d7   : > { %v15386_v24 = vadd.f32 %v12859_v49, %v2919_v28  ;;  %5774 = vst.msk [vmem:[#allocation3 + $0x118] sm:$0xf] %vm5766_vm10, %v18318_v8  ;;  %5775 = vst.msk [vmem:[#allocation3 + $0x11c] sm:$0xf] %vm5766_vm10, %v18318_v8 }
 0x1d8   : > { %v15365_v26 = vpop.f32.mrf.mxu1  ;;  %v15373_v36 = vpop.f32.mrf.mxu0  ;;  %5777 = vst.msk [vmem:[#allocation3 + $0x10] sm:$0xf] %vm5766_vm10, %v18318_v8  ;;  %5778 = vst.msk [vmem:[#allocation3 + $0x20] sm:$0xf] %vm5766_vm10, %v18318_v8 }
 0x1d9   : > { %5779 = vst.msk [vmem:[#allocation3 + $0x30] sm:$0xf] %vm5766_vm10, %v18318_v8  ;;  %5780 = vst.msk [vmem:[#allocation3 + $0x40] sm:$0xf] %vm5766_vm10, %v18318_v8 }
 0x1da   : > { %v12880_v32 = vpop.f32.mrf.mxu1  ;;  %v12862_v38 = vpop.f32.mrf.mxu0  ;;  %5781 = vst.msk [vmem:[#allocation3 + $0x50] sm:$0xf] %vm5766_vm10, %v18318_v8  ;;  %5782 = vst.msk [vmem:[#allocation3 + $0x60] sm:$0xf] %vm5766_vm10, %v18318_v8 }
 0x1db   : > { %v15388_v59 = vadd.f32 %v12880_v32, %v3232_v9  ;;  %v15390_v10 = vadd.f32 %v12862_v38, %v2922_v34  ;;  %5783 = vst.msk [vmem:[#allocation3 + $0x70] sm:$0xf] %vm5766_vm10, %v18318_v8  ;;  %5784 = vst.msk [vmem:[#allocation3 + $0x80] sm:$0xf] %vm5766_vm10, %v18318_v8  ;;  %v6002_v18 = vld [vmem:[#allocation3 + $0x4] sm:$0xf] }
 0x1dc   : > { %v3853_v27 = vpop.f32.mrf.mxu1  ;;  %v3191_v31 = vpop.f32.mrf.mxu0  ;;  %5785 = vst.msk [vmem:[#allocation3 + $0x90] sm:$0xf] %vm5766_vm10, %v18318_v8  ;;  %5786 = vst.msk [vmem:[#allocation3 + $0xa0] sm:$0xf] %vm5766_vm10, %v18318_v8  ;;  %v6003_v32 = vld [vmem:[#allocation3 + $0x8] sm:$0xf] }
 0x1dd   : > { %5787 = vst.msk [vmem:[#allocation3 + $0xb0] sm:$0xf] %vm5766_vm10, %v18318_v8  ;;  %5788 = vst.msk [vmem:[#allocation3 + $0xc0] sm:$0xf] %vm5766_vm10, %v18318_v8  ;;  %v15475_v43 = vadd.f32 %v3853_v27, %v15345_v50  ;;  %v15478_v28 = vadd.f32 %v3191_v31, %v15293_v20  ;;  %v6055_v38 = vshrl.u32 %v6002_v18, 16  ;;  %v11983_v23 = vcombine.low %v6002_v18, %v6003_v32 }
 0x1de   : > { %5789 = vst.msk [vmem:[#allocation3 + $0xd0] sm:$0xf] %vm5766_vm10, %v18318_v8  ;;  %5790 = vst.msk [vmem:[#allocation3 + $0xe0] sm:$0xf] %vm5766_vm10, %v18318_v8  ;;  %v12881_v34 = vpop.f32.mrf.mxu1  ;;  %v12863_v62 = vpop.f32.mrf.mxu0  ;;  %v6058_v31 = vshll.u32 %v6002_v18, 16 }
 0x1df   : > { %5791 = vst.msk [vmem:[#allocation3 + $0xf0] sm:$0xf] %vm5766_vm10, %v18318_v8  ;;  %5792 = vst.msk [vmem:[#allocation3 + $0x100] sm:$0xf] %vm5766_vm10, %v18318_v8  ;;  %v15481_v6 = vadd.f32 %v12881_v34, %v15349_v58  ;;  %v15484_v2 = vadd.f32 %v12863_v62, %v15309_v12  ;;  %v15532_v34 = vld [vmem:[%s18152_s3 + $0x8] sm:$0xf]  ;;  %13006 = vmatprep.mubr.msk.bf16.mxu1 %vm6484_vm11, %v11983_v23 }
 0x1e0   : > { %5793 = vst.msk [vmem:[#allocation3 + $0x1c] sm:$0xf] %vm5766_vm10, %v18318_v8  ;;  %5794 = vst.msk [vmem:[#allocation3 + $0x2c] sm:$0xf] %vm5766_vm10, %v18318_v8  ;;  %v15486_v1 = vpop.f32.mrf.mxu1  ;;  %v15488_v21 = vpop.f32.mrf.mxu0  ;;  %13334 = vmatprep.subr.msk.bf16.mxu1 %vm6533_vm9, %v15532_v34 }
 0x1e1   : > { %5795 = vst.msk [vmem:[#allocation3 + $0x3c] sm:$0xf] %vm5766_vm10, %v18318_v8  ;;  %5796 = vst.msk [vmem:[#allocation3 + $0x4c] sm:$0xf] %vm5766_vm10, %v18318_v8 }
 0x1e2   : > { %5797 = vst.msk [vmem:[#allocation3 + $0x5c] sm:$0xf] %vm5766_vm10, %v18318_v8  ;;  %5798 = vst.msk [vmem:[#allocation3 + $0x6c] sm:$0xf] %vm5766_vm10, %v18318_v8  ;;  %v12884_v33 = vpop.f32.mrf.mxu1  ;;  %v12866_v44 = vpop.f32.mrf.mxu0 }
 0x1e3   : > { %5799 = vst.msk [vmem:[#allocation3 + $0x7c] sm:$0xf] %vm5766_vm10, %v18318_v8  ;;  %5800 = vst.msk [vmem:[#allocation3 + $0x8c] sm:$0xf] %vm5766_vm10, %v18318_v8  ;;  %v15491_v9 = vadd.f32 %v12884_v33, %v15353_v29  ;;  %v15494_v20 = vadd.f32 %v12866_v44, %v15320_v4  ;;  %v6057_v33 = vrot.slane %v6055_v38, 7 }
 0x1e4   : > { %5801 = vst.msk [vmem:[#allocation3 + $0x9c] sm:$0xf] %vm5766_vm10, %v18318_v8  ;;  %5802 = vst.msk [vmem:[#allocation3 + $0xac] sm:$0xf] %vm5766_vm10, %v18318_v8  ;;  %v3869_v60 = vpop.f32.mrf.mxu1  ;;  %v3207_v3 = vpop.f32.mrf.mxu0 }
 0x1e5   : > { %5803 = vst.msk [vmem:[#allocation3 + $0xbc] sm:$0xf] %vm5766_vm10, %v18318_v8  ;;  %5804 = vst.msk [vmem:[#allocation3 + $0xcc] sm:$0xf] %vm5766_vm10, %v18318_v8  ;;  %v15497_v7 = vadd.f32 %v3869_v60, %v15359_v42  ;;  %v15500_v12 = vadd.f32 %v3207_v3, %v15329_v53 }
 0x1e6   : > { %5805 = vst.msk [vmem:[#allocation3 + $0xdc] sm:$0xf] %vm5766_vm10, %v18318_v8  ;;  %5806 = vst.msk [vmem:[#allocation3 + $0xec] sm:$0xf] %vm5766_vm10, %v18318_v8  ;;  %v12885_v50 = vpop.f32.mrf.mxu1  ;;  %v12867_v22 = vpop.f32.mrf.mxu0 }
 0x1e7   : > { %5807 = vst.msk [vmem:[#allocation3 + $0xfc] sm:$0xf] %vm5766_vm10, %v18318_v8  ;;  %5808 = vst.msk [vmem:[#allocation3 + $0x10c] sm:$0xf] %vm5766_vm10, %v18318_v8  ;;  %v15503_v58 = vadd.f32 %v12885_v50, %v15363_v47  ;;  %v15506_v55 = vadd.f32 %v12867_v22, %v15336_v14  ;;  %v6401_v47 = vld [vmem:[%s18152_s3] sm:$0xf] }
 0x1e8   : > { %v15508_v29 = vpop.f32.mrf.mxu1  ;;  %13333 = vmatprep.subr.msk.bf16.mxu0 %vm6533_vm9, %v6401_v47  ;;  %v6795_v39 = vsel %vm6533_vm9, %v6401_v47, 0  ;;  %v6067_v8 = vshll.u32 %v6003_v32, 16  ;;  %v15540_v3 = vpop.f32.mrf.mxu0 }
 0x1e9   : > { %13039 = vmatpush3.bf16.msra.mxu0 %v6795_v39 }
 0x1ea   : > { %v12888_v4 = vpop.f32.mrf.mxu1 }
 0x1eb   : > { %v15511_v49 = vadd.f32 %v12888_v4, %v15368_v57  ;;  %v6060_v4 = vor.u32 %v6058_v31, %v6057_v33 }
 0x1ec   : > { %v3885_v5 = vpop.f32.mrf.mxu1 }
 0x1ed   : > { %v15514_v42 = vadd.f32 %v3885_v5, %v15371_v15  ;;  %v6062_v5 = vrot.slane %v6057_v33, 4 }
 0x1ee   : > { %v12889_v53 = vpop.f32.mrf.mxu1 }
 0x1ef   : > { %v15517_v52 = vadd.f32 %v12889_v53, %v15379_v17  ;;  %v6064_v17 = vshrl.u32 %v6003_v32, 16 }
 0x1f0   : > { %v15522_v14 = vpop.f32.mrf.mxu1 }
 0x1f1   : > { %v6066_v44 = vrot.slane %v6064_v17, 7 }
 0x1f2   : > { %v12892_v57 = vpop.f32.mrf.mxu1 }
 0x1f3   : > { %v15527_v15 = vadd.f32 %v12892_v57, %v15382_v30  ;;  %v6001_v30 = vld [vmem:[#allocation3] sm:$0x8]  ;;  %v6069_v53 = vor.u32 %v6067_v8, %v6066_v44 }
 0x1f4   : > { %v3901_v27 = vpop.f32.mrf.mxu1  ;;  %v6050_v50 = vshrl.u32 %v6001_v30, 16 }
 0x1f5   : > { %v15535_v62 = vadd.f32 %v3901_v27, %v15384_v0  ;;  %v6070_v39 = vsel %vm13776_vm5, %v6062_v5, %v6069_v53 }
 0x1f6   : > { %v12893_v60 = vpop.f32.mrf.mxu1  ;;  %v11966_v0 = vrot.slane %v6050_v50, 11 }
 0x1f7   : > { %v15543_v22 = vadd.f32 %v12893_v60, %v15386_v24 }
 0x1f8   : > { %v6061_v18 = vsel %vm13776_vm5, %v11966_v0, %v6060_v4  ;;  %v15551_v32 = vpop.f32.mrf.mxu1 }
 0x1f9   : > { %v15547_v57 = vpop.f32.mrf.mxu0  ;;  %v12015_v38 = vcombine.low %v6061_v18, %v6070_v39 }
 0x1fb   : > { %v15553_v17 = vpop.f32.mrf.mxu0  ;;  %13040 = vmatprep.mubr.msk.bf16.mxu0 %vm6484_vm11, %v12015_v38 }
 0x1fd   : > { %v15559_v27 = vpop.f32.mrf.mxu0 }
 0x1ff   : > { %v12896_v24 = vpop.f32.mrf.mxu1  ;;  %v15567_v30 = vpop.f32.mrf.mxu0 }
 0x200   : > { %v15557_v23 = vadd.f32 %v12896_v24, %v15390_v10 }
 0x201   : > { %v3917_v31 = vpop.f32.mrf.mxu1 }
 0x202   : > { %v15562_v8 = vadd.f32 %v3917_v31, %v15478_v28 }
 0x203   : > { %v12897_v33 = vpop.f32.mrf.mxu1 }
 0x204   : > { %v15565_v44 = vadd.f32 %v12897_v33, %v15484_v2 }
 0x205   : > { %v15573_v4 = vpop.f32.mrf.mxu1 }
 0x206   : > { %18320 = vst [vmem:[#allocation59_spill] sm:$0xff] %v15565_v44 }
 0x208   : > { %v15569_v60 = vpop.f32.mrf.mxu0 }
 0x20a   : > { %v15571_v50 = vpop.f32.mrf.mxu0 }
 0x20b   : > { %18321 = vst [vmem:[#allocation38_spill] sm:$0xff] %v15571_v50  ;;  %v18383_v50 = vld [vmem:[#allocation30_spill] sm:$0xff] }
 0x20c   : > { %v15575_v10 = vpop.f32.mrf.mxu0 }
 0x20d   : > { %18322 = vst [vmem:[#allocation44_spill] sm:$0xff] %v15575_v10 }
 0x20e   : > { %v15580_v0 = vpop.f32.mrf.mxu0 }
 0x20f   : > { %v12900_v5 = vpop.f32.mrf.mxu1  ;;  %18324 = vst [vmem:[#allocation39_spill] sm:$0xff] %v15580_v0 }
 0x210   : > { %v15578_v53 = vadd.f32 %v12900_v5, %v15494_v20 }
 0x211   : > { %v3933_v28 = vpop.f32.mrf.mxu1 }
 0x212   : > { %18323 = vst [vmem:[#allocation60_spill] sm:$0xff] %v15578_v53  ;;  %v15583_v2 = vadd.f32 %v3933_v28, %v15500_v12 }
 0x213   : > { %v12901_v39 = vpop.f32.mrf.mxu1 }
 0x214   : > { %18325 = vst [vmem:[#allocation47_spill] sm:$0xff] %v15583_v2  ;;  %v15586_v18 = vadd.f32 %v12901_v39, %v15506_v55  ;;  %v12914_v24 = vpop.f32.mrf.mxu0 }
 0x215   : > { %v15588_v38 = vpop.f32.mrf.mxu1  ;;  %v15591_v31 = vadd.f32 %v12914_v24, %v15388_v59 }
 0x216   : > { %18326 = vst [vmem:[#allocation63_spill] sm:$0xff] %v15586_v18  ;;  %18327 = vst [vmem:[#allocation65_spill] sm:$0xff] %v15588_v38  ;;  %v4548_v20 = vpop.f32.mrf.mxu0  ;;  %v18362_v38 = vld [vmem:[#allocation55_spill] sm:$0xff] }
 0x217   : > { %18328 = vst [vmem:[#allocation11_spill] sm:$0xff] %v15591_v31  ;;  %v15593_v33 = vpop.f32.mrf.mxu1  ;;  %v15596_v5 = vadd.f32 %v4548_v20, %v15475_v43 }
 0x218   : > { %18329 = vst [vmem:[#allocation51_spill] sm:$0xff] %v15593_v33  ;;  %v12915_v12 = vpop.f32.mrf.mxu0 }
 0x219   : > { %18330 = vst [vmem:[#allocation67_spill] sm:$0xff] %v15596_v5  ;;  %v15598_v47 = vpop.f32.mrf.mxu1  ;;  %v15601_v28 = vadd.f32 %v12915_v12, %v15481_v6 }
 0x21a   : > { %18331 = vst [vmem:[#allocation13_spill] sm:$0xff] %v15598_v47  ;;  %v15605_v39 = vpop.f32.mrf.mxu0 }
 0x21b   : > { %18332 = vst [vmem:[#allocation54_spill] sm:$0xff] %v15601_v28  ;;  %v15603_v55 = vpop.f32.mrf.mxu1  ;;  %18334 = vst [vmem:[#allocation72_spill] sm:$0xff] %v15605_v39  ;;  %v18352_v39 = vld [vmem:[#allocation20_spill] sm:$0xff] }
 0x21c   : > { %18333 = vst [vmem:[#allocation70_spill] sm:$0xff] %v15603_v55  ;;  %v12918_v59 = vpop.f32.mrf.mxu0  ;;  %v18355_v55 = vld [vmem:[#allocation32_spill] sm:$0xff] }
 0x21d   : > { %v15607_v61 = vpop.f32.mrf.mxu1  ;;  %v15610_v24 = vadd.f32 %v12918_v59, %v15491_v9 }
 0x21e   : > { %18335 = vst [vmem:[#allocation14_spill] sm:$0xff] %v15607_v61  ;;  %v4564_v43 = vpop.f32.mrf.mxu0 }
 0x21f   : > { %18336 = vst [vmem:[#allocation56_spill] sm:$0xff] %v15610_v24  ;;  %v15612_v31 = vpop.f32.mrf.mxu1  ;;  %v15615_v20 = vadd.f32 %v4564_v43, %v15497_v7  ;;  %v18345_v24 = vld [vmem:[#allocation12_spill] sm:$0xff] }
 0x220   : > { %18337 = vst [vmem:[#allocation45_spill] sm:$0xff] %v15612_v31  ;;  %v12919_v6 = vpop.f32.mrf.mxu0  ;;  %v18346_v31 = vld [vmem:[#allocation17_spill] sm:$0xff]  ;;  %v18347_v43 = vld [vmem:[#allocation16_spill] sm:$0xff] }
 0x221   : > { %18338 = vst [vmem:[#allocation29_spill] sm:$0xff] %v15615_v20  ;;  %v15617_v5 = vpop.f32.mrf.mxu1  ;;  %v15620_v12 = vadd.f32 %v12919_v6, %v15503_v58  ;;  %v1382_v7 = vadd.f32 %v18346_v31, %v18345_v24  ;;  %v18348_v20 = vld [vmem:[#allocation19_spill] sm:$0xff]  ;;  %v18350_v6 = vld [vmem:[#allocation18_spill] sm:$0xff]  ;;  %v18358_v31 = vld [vmem:[#allocation40_spill] sm:$0xff] }
 0x222   : > { %18339 = vst [vmem:[#allocation23_spill] sm:$0xff] %v15617_v5  ;;  %v15624_v18 = vpop.f32.mrf.mxu0  ;;  %v1398_v5 = vadd.f32 %v18348_v20, %v18347_v43  ;;  %v18360_v43 = vld [vmem:[#allocation41_spill] sm:$0xff] }
 0x223   : > { %18340 = vst [vmem:[#allocation31_spill] sm:$0xff] %v15620_v12  ;;  %v15622_v28 = vpop.f32.mrf.mxu1  ;;  %18342 = vst [vmem:[#allocation26_spill] sm:$0xff] %v15624_v18  ;;  %v18351_v12 = vld [vmem:[#allocation21_spill] sm:$0xff] }
 0x224   : > { %18341 = vst [vmem:[#allocation52_spill] sm:$0xff] %v15622_v28  ;;  %v12922_v9 = vpop.f32.mrf.mxu0  ;;  %v1414_v28 = vadd.f32 %v18351_v12, %v18350_v6  ;;  %v18353_v18 = vld [vmem:[#allocation25_spill] sm:$0xff]  ;;  %v2207_v0 = vadd.f32 %v18362_v38, %v1398_v5  ;;  %v18372_v38 = vld [vmem:[#allocation22_spill] sm:$0xff] }
 0x225   : > { %v15626_v2 = vpop.f32.mrf.mxu1  ;;  %v15629_v59 = vadd.f32 %v12922_v9, %v15511_v49  ;;  %v1430_v53 = vadd.f32 %v18353_v18, %v18352_v39  ;;  %v18357_v9 = vld [vmem:[#allocation33_spill] sm:$0xff]  ;;  %v18364_v18 = vld [vmem:[#allocation15_spill] sm:$0xff]  ;;  %v18365_v39 = vld [vmem:[#allocation58_spill] sm:$0xff] }
 0x226   : > { %18343 = vst [vmem:[#allocation53_spill] sm:$0xff] %v15626_v2  ;;  %v4580_v58 = vpop.f32.mrf.mxu0  ;;  %v18354_v2 = vld [vmem:[#allocation24_spill] sm:$0xff]  ;;  %v1462_v24 = vadd.f32 %v18358_v31, %v18357_v9  ;;  %v1494_v10 = vadd.f32 %v18365_v39, %v18364_v18  ;;  %v18375_v18 = vld [vmem:[#allocation71_spill] sm:$0xff] }
 0x227   : > { %18344 = vst [vmem:[#allocation34_spill] sm:$0xff] %v15629_v59  ;;  %v15635_v61 = vpop.f32.mrf.mxu1  ;;  %v1446_v47 = vadd.f32 %v18355_v55, %v18354_v2  ;;  %v15644_v49 = vadd.f32 %v4580_v58, %v15514_v42  ;;  %v18359_v59 = vld [vmem:[#allocation48_spill] sm:$0xff]  ;;  %v18366_v2 = vld [vmem:[#allocation61_spill] sm:$0xff]  ;;  %v2901_v39 = vadd.f32 %v18375_v18, %v2207_v0 }
 0x228   : > { %18349 = vst [vmem:[#allocation36_spill] sm:$0xff] %v15635_v61  ;;  %v2203_v20 = vadd.f32 %v18359_v59, %v1382_v7  ;;  %v18361_v61 = vld [vmem:[#allocation49_spill] sm:$0xff]  ;;  %v12923_v6 = vpop.f32.mrf.mxu0  ;;  %v2211_v55 = vadd.f32 %v18366_v2, %v1414_v28  ;;  %v18369_v9 = vld [vmem:[#allocation64_spill] sm:$0xff]  ;;  %v18376_v28 = vld [vmem:[#allocation74_spill] sm:$0xff] }
 0x229   : > { %18356 = vst [vmem:[#allocation28_spill] sm:$0xff] %v15644_v49  ;;  %v1478_v33 = vadd.f32 %v18361_v61, %v18360_v43  ;;  %v15652_v12 = vpop.f32.mrf.mxu1  ;;  %v18367_v42 = vld [vmem:[#allocation69_spill] sm:$0xff]  ;;  %v15659_v49 = vadd.f32 %v12923_v6, %v15517_v52  ;;  %v18371_v61 = vld [vmem:[#allocation75_spill] sm:$0xff]  ;;  %v18378_v52 = vld [vmem:[#allocation46_spill] sm:$0xff]  ;;  %v3227_v0 = vadd.f32 %v18383_v50, %v2901_v39 }
 0x22a   : > { %18363 = vst [vmem:[#allocation50_spill] sm:$0xff] %v15652_v12  ;;  %v2215_v58 = vadd.f32 %v18367_v42, %v1430_v53  ;;  %v2897_v59 = vadd.f32 %v18369_v9, %v2203_v20  ;;  %v18370_v7 = vld [vmem:[#allocation73_spill] sm:$0xff]  ;;  %v2223_v43 = vadd.f32 %v18371_v61, %v1462_v24  ;;  %v15667_v44 = vpop.f32.mrf.mxu0  ;;  %v2905_v2 = vadd.f32 %v18376_v28, %v2211_v55  ;;  %v18377_v53 = vld [vmem:[#allocation27_spill] sm:$0xff]  ;;  %v18380_v9 = vld [vmem:[#allocation62_spill] sm:$0xff] }
 0x22b   : > { %18368 = vst [vmem:[#allocation66_spill] sm:$0xff] %v15659_v49  ;;  %v2219_v31 = vadd.f32 %v18370_v7, %v1446_v47  ;;  %v2227_v5 = vadd.f32 %v18372_v38, %v1478_v33  ;;  %v15665_v12 = vpop.f32.mrf.mxu1  ;;  %18374 = vst [vmem:[#allocation57_spill] sm:$0xff] %v15667_v44  ;;  %v2231_v6 = vadd.f32 %v18378_v52, %v1494_v10  ;;  %v18379_v49 = vld [vmem:[#allocation43_spill] sm:$0xff]  ;;  %v18382_v61 = vld [vmem:[#allocation42_spill] sm:$0xff]  ;;  %v15739_v52 = vsel %vm6533_vm9, %v15532_v34, 0 }
 0x22c   : > { %18373 = vst [vmem:[#allocation37_spill] sm:$0xff] %v15665_v12  ;;  %v2909_v42 = vadd.f32 %v18377_v53, %v2215_v58  ;;  %v2917_v47 = vadd.f32 %v18380_v9, %v2223_v43  ;;  %v18381_v7 = vld [vmem:[#allocation35_spill] sm:$0xff]  ;;  %v6007_v44 = vld [vmem:[#allocation3 + $0x20] sm:$0x8]  ;;  %v3950_v58 = vadd.f32 %v15263_v45, %v15285_v25  ;;  %v3948_v10 = vadd.f32 %v15269_v51, %v15290_v37  ;;  %v18384_v43 = vld [vmem:[#allocation68_spill] sm:$0xff] }
 0x22d   : > { %v2913_v20 = vadd.f32 %v18379_v49, %v2219_v31  ;;  %v3223_v24 = vadd.f32 %v18381_v7, %v2897_v59  ;;  %v2921_v33 = vadd.f32 %v18382_v61, %v2227_v5  ;;  %v15677_v38 = vpop.f32.mrf.mxu1  ;;  %v6004_v12 = vld [vmem:[#allocation3 + $0x10] sm:$0x8]  ;;  %v2925_v55 = vadd.f32 %v15255_v56, %v2231_v6  ;;  %v12926_v49 = vpop.f32.mrf.mxu0  ;;  %v15688_v59 = vld [vmem:[%s18152_s3 + $0xc] sm:$0xf]  ;;  %v6013_v51 = vld [vmem:[#allocation3 + $0x40] sm:$0x8] }
 0x22e   : > { %v3951_v31 = vadd.f32 %v15279_v46, %v15306_v54  ;;  %v3231_v5 = vadd.f32 %v18384_v43, %v2905_v2  ;;  %v15695_v56 = vadd.f32 %v12926_v49, %v15527_v15  ;;  %v6010_v25 = vld [vmem:[#allocation3 + $0x30] sm:$0x8]  ;;  %13335 = vmatprep.subr.msk.bf16.mxu0 %vm6533_vm9, %v15688_v59  ;;  %v3954_v37 = vadd.f32 %v15322_v16, %v15317_v48  ;;  %v6959_v7 = vld [vmem:[#allocation3 + $0x8] sm:$0xf] }
 0x22f   : > { %v3949_v50 = vadd.f32 %v15295_v13, %v3223_v24  ;;  %v15697_v45 = vpop.f32.mrf.mxu1  ;;  %v15705_v46 = vadd.f32 %v15340_v63, %v15326_v41  ;;  %v4596_v54 = vpop.f32.mrf.mxu0  ;;  %v6072_v18 = vshrl.u32 %v6004_v12, 16  ;;  %v6094_v13 = vshrl.u32 %v6007_v44, 16  ;;  %v6016_v53 = vld [vmem:[#allocation3 + $0x50] sm:$0x8]  ;;  %18385 = vst [vmem:[#allocation12_spill] sm:$0xff] %v15739_v52  ;;  %v18419_v52 = vld [vmem:[#allocation36_spill] sm:$0xff] }
 0x230   : > { %v15709_v15 = vadd.f32 %v15355_v19, %v15333_v40  ;;  %v3235_v39 = vadd.f32 %v15257_v35, %v2909_v42  ;;  %v15713_v28 = vadd.f32 %v15365_v26, %v3227_v0  ;;  %v15716_v2 = vadd.f32 %v4596_v54, %v15535_v62  ;;  %v6019_v40 = vld [vmem:[#allocation3 + $0x60] sm:$0x8] }
 0x231   : > { %v15718_v48 = vpop.f32.mrf.mxu1  ;;  %v3239_v16 = vadd.f32 %v15297_v11, %v2913_v20  ;;  %v3243_v41 = vadd.f32 %v15373_v36, %v2917_v47  ;;  %v12927_v63 = vpop.f32.mrf.mxu0  ;;  %v6116_v44 = vshrl.u32 %v6010_v25, 16  ;;  %v6138_v12 = vshrl.u32 %v6013_v51, 16  ;;  %v6958_v47 = vld [vmem:[#allocation3 + $0x4] sm:$0xf] }
 0x232   : > { %v15723_v19 = vadd.f32 %v15486_v1, %v3231_v5  ;;  %v15726_v35 = vadd.f32 %v15508_v29, %v3235_v39  ;;  %v3247_v26 = vadd.f32 %v15488_v21, %v2921_v33  ;;  %v15730_v62 = vadd.f32 %v12927_v63, %v15543_v22  ;;  %v6025_v29 = vld [vmem:[#allocation3 + $0x80] sm:$0x8] }
 0x233   : > { %v15732_v42 = vpop.f32.mrf.mxu1  ;;  %v3251_v11 = vadd.f32 %v15540_v3, %v2925_v55  ;;  %v15735_v36 = vpop.f32.mrf.mxu0  ;;  %v15741_v1 = vrot.slane %v6072_v18, 11  ;;  %v15743_v6 = vrot.slane %v6094_v13, 11  ;;  %v15746_v21 = vadd.f32 %v15522_v14, %v3239_v16  ;;  %v6022_v14 = vld [vmem:[#allocation3 + $0x70] sm:$0x8] }
 0x234   : > { %v15749_v22 = vadd.f32 %v15551_v32, %v3243_v41  ;;  %v6160_v3 = vshrl.u32 %v6016_v53, 16  ;;  %v6182_v9 = vshrl.u32 %v6019_v40, 16  ;;  %v4645_v34 = vadd.f32 %v15547_v57, %v3950_v58  ;;  %v6028_v57 = vld [vmem:[#allocation3 + $0x90] sm:$0x8]  ;;  %v6031_v58 = vld [vmem:[#allocation3 + $0xa0] sm:$0x8] }
 0x235   : > { %18386 = vst [vmem:[#allocation17_spill] sm:$0xff] %v15741_v1  ;;  %v15751_v20 = vpop.f32.mrf.mxu1  ;;  %v4643_v24 = vadd.f32 %v15553_v17, %v3948_v10  ;;  %v12930_v61 = vpop.f32.mrf.mxu0  ;;  %v15755_v33 = vrot.slane %v6116_v44, 11  ;;  %v15757_v0 = vrot.slane %v6138_v12, 11  ;;  %v4646_v55 = vadd.f32 %v15559_v27, %v3951_v31  ;;  %v6037_v10 = vld [vmem:[#allocation3 + $0xc0] sm:$0x8]  ;;  %v18391_v12 = vld [vmem:[#allocation38_spill] sm:$0xff] }
 0x236   : > { %v15761_v32 = vadd.f32 %v15567_v30, %v3949_v50  ;;  %v15764_v49 = vadd.f32 %v12930_v61, %v15557_v23  ;;  %v6226_v5 = vshrl.u32 %v6025_v29, 16  ;;  %v7007_v25 = vshrl.u32 %v6958_v47, 16  ;;  %v6034_v44 = vld [vmem:[#allocation3 + $0xb0] sm:$0x8]  ;;  %v18394_v61 = vld [vmem:[#allocation44_spill] sm:$0xff] }
 0x237   : > { %18387 = vst [vmem:[#allocation16_spill] sm:$0xff] %v15755_v33  ;;  %18388 = vst [vmem:[#allocation19_spill] sm:$0xff] %v15757_v0  ;;  %v15766_v43 = vpop.f32.mrf.mxu1  ;;  %v4612_v17 = vpop.f32.mrf.mxu0  ;;  %v7010_v51 = vshll.u32 %v6958_v47, 16  ;;  %v7016_v54 = vshll.u32 %v6959_v7, 16  ;;  %v7020_v18 = vshrl.u32 %v6959_v7, 16  ;;  %v15773_v30 = vrot.slane %v6160_v3, 11 }
 0x238   : > { %v15769_v13 = vadd.f32 %v4612_v17, %v15562_v8  ;;  %v15775_v23 = vrot.slane %v6182_v9, 11  ;;  %v6204_v31 = vshrl.u32 %v6022_v14, 16  ;;  %v15778_v50 = vadd.f32 %v15573_v4, %v3247_v26  ;;  %v18392_v53 = vld [vmem:[#allocation59_spill] sm:$0xff]  ;;  %v6043_v4 = vld [vmem:[#allocation3 + $0xe0] sm:$0x8] }
 0x239   : > { %v15771_v27 = vpop.f32.mrf.mxu1  ;;  %18389 = vst [vmem:[#allocation18_spill] sm:$0xff] %v15773_v30  ;;  %v4649_v39 = vadd.f32 %v15569_v60, %v3954_v37  ;;  %v12931_v16 = vpop.f32.mrf.mxu0  ;;  %v6248_v41 = vshrl.u32 %v6028_v57, 16  ;;  %v6270_v63 = vshrl.u32 %v6031_v58, 16  ;;  %v4647_v8 = vadd.f32 %v18391_v12, %v15705_v46  ;;  %v18395_v46 = vld [vmem:[#allocation39_spill] sm:$0xff] }
 0x23a   : > { %18390 = vst [vmem:[#allocation21_spill] sm:$0xff] %v15775_v23  ;;  %v15784_v40 = vadd.f32 %v12931_v16, %v18392_v53  ;;  %v15788_v3 = vrot.slane %v6226_v5, 11  ;;  %v6314_v9 = vshrl.u32 %v6037_v10, 16  ;;  %v7009_v26 = vrot.slane %v7007_v25, 4  ;;  %v6960_v10 = vld [vmem:[#allocation3 + $0xc] sm:$0x1] }
 0x23b   : > { %v15786_v29 = vpop.f32.mrf.mxu1  ;;  %v15790_v47 = vpop.f32.mrf.mxu0  ;;  %v7012_v60 = vrot.slane %v7010_v51, 5  ;;  %v15792_v37 = vrot.slane %v7016_v54, 5  ;;  %v7022_v7 = vrot.slane %v7020_v18, 4  ;;  %v4650_v14 = vadd.f32 %v18394_v61, %v15709_v15  ;;  %v18397_v16 = vld [vmem:[#allocation65_spill] sm:$0xff]  ;;  %v18398_v25 = vld [vmem:[#allocation51_spill] sm:$0xff] }
 0x23c   : > { %18393 = vst [vmem:[#allocation20_spill] sm:$0xff] %v15788_v3  ;;  %v4648_v57 = vadd.f32 %v18395_v46, %v15713_v28  ;;  %v15800_v17 = vrot.slane %v6204_v31, 11  ;;  %v6292_v5 = vshrl.u32 %v6034_v44, 16  ;;  %v15803_v12 = vadd.f32 %v18397_v16, %v3251_v11  ;;  %v6040_v15 = vld [vmem:[#allocation3 + $0xd0] sm:$0x8]  ;;  %v18401_v61 = vld [vmem:[#allocation13_spill] sm:$0xff] }
 0x23d   : > { %v15798_v58 = vpop.f32.mrf.mxu1  ;;  %v15806_v51 = vadd.f32 %v18398_v25, %v4645_v34  ;;  %v15808_v54 = vrot.slane %v6248_v41, 11  ;;  %v15810_v18 = vrot.slane %v6270_v63, 11  ;;  %v7684_v53 = vld [vmem:[#allocation3 + $0x10] sm:$0x8]  ;;  %v15813_v28 = vadd.f32 %v18401_v61, %v4643_v24  ;;  %v18402_v46 = vld [vmem:[#allocation70_spill] sm:$0xff]  ;;  %v12934_v44 = vpop.f32.mrf.mxu0  ;;  %v18404_v34 = vld [vmem:[#allocation60_spill] sm:$0xff] }
 0x23e   : > { %18396 = vst [vmem:[#allocation25_spill] sm:$0xff] %v15800_v17  ;;  %v15816_v31 = vadd.f32 %v18402_v46, %v4646_v55  ;;  %v15820_v11 = vrot.slane %v6314_v9, 11  ;;  %v6358_v16 = vshrl.u32 %v6043_v4, 16  ;;  %v15823_v25 = vadd.f32 %v12934_v44, %v18404_v34  ;;  %v6046_v41 = vld [vmem:[#allocation3 + $0xf0] sm:$0x8]  ;;  %v18405_v24 = vld [vmem:[#allocation72_spill] sm:$0xff] }
 0x23f   : > { %18399 = vst [vmem:[#allocation24_spill] sm:$0xff] %v15808_v54  ;;  %18400 = vst [vmem:[#allocation32_spill] sm:$0xff] %v15810_v18  ;;  %v15818_v17 = vpop.f32.mrf.mxu1  ;;  %v7013_v63 = vor.u32 %v7012_v60, %v7009_v26  ;;  %v7023_v18 = vor.u32 %v7022_v7, %v15792_v37  ;;  %v7026_v54 = vshll.u32 %v6960_v10, 16  ;;  %v6963_v3 = vld [vmem:[#allocation3 + $0x1c] sm:$0x1]  ;;  %v4652_v61 = vadd.f32 %v18405_v24, %v15723_v19  ;;  %v4628_v55 = vpop.f32.mrf.mxu0  ;;  %v18407_v4 = vld [vmem:[#allocation14_spill] sm:$0xff] }
 0x240   : > { %18403 = vst [vmem:[#allocation33_spill] sm:$0xff] %v15820_v11  ;;  %v15830_v23 = vrot.slane %v6292_v5, 11  ;;  %v6336_v9 = vshrl.u32 %v6040_v15, 16  ;;  %v7733_v11 = vshrl.u32 %v7684_v53, 16  ;;  %v15834_v44 = vadd.f32 %v18407_v4, %v15761_v32  ;;  %v18408_v34 = vld [vmem:[#allocation45_spill] sm:$0xff]  ;;  %v18409_v60 = vld [vmem:[#allocation23_spill] sm:$0xff] }
 0x241   : > { %v15828_v46 = vpop.f32.mrf.mxu1  ;;  %v15837_v26 = vadd.f32 %v18408_v34, %v4649_v39  ;;  %v15840_v7 = vadd.f32 %v18409_v60, %v4647_v8  ;;  %v18410_v10 = vld [vmem:[#allocation47_spill] sm:$0xff]  ;;  %v7687_v19 = vld [vmem:[#allocation3 + $0x20] sm:$0x8]  ;;  %v18411_v24 = vld [vmem:[#allocation52_spill] sm:$0xff]  ;;  %v12935_v5 = vpop.f32.mrf.mxu0  ;;  %v15850_v53 = vrot.slane %v6358_v16, 11  ;;  %v6380_v32 = vshrl.u32 %v6046_v41, 16 }
 0x242   : > { %18406 = vst [vmem:[#allocation40_spill] sm:$0xff] %v15830_v23  ;;  %v15843_v30 = vadd.f32 %v4628_v55, %v18410_v10  ;;  %v15846_v0 = vadd.f32 %v18411_v24, %v4650_v14  ;;  %v7050_v4 = vshll.u32 %v6963_v3, 16  ;;  %v6966_v23 = vld [vmem:[#allocation3 + $0x2c] sm:$0x1]  ;;  %v18413_v39 = vld [vmem:[#allocation63_spill] sm:$0xff]  ;;  %v7014_v8 = vrot.slane %v7013_v63, 4 }
 0x243   : > { %v15848_v15 = vpop.f32.mrf.mxu1  ;;  %18412 = vst [vmem:[#allocation48_spill] sm:$0xff] %v15850_v53  ;;  %v15853_v34 = vadd.f32 %v12935_v5, %v18413_v39  ;;  %v7024_v60 = vrot.slane %v7023_v18, 4  ;;  %v7028_v33 = vrot.slane %v7026_v54, 5  ;;  %v18414_v55 = vld [vmem:[#allocation26_spill] sm:$0xff]  ;;  %v15859_v14 = vrot.slane %v6336_v9, 11  ;;  %v18417_v53 = vld [vmem:[#allocation53_spill] sm:$0xff]  ;;  %v15874_v39 = vpop.f32.mrf.mxu0 }
 0x244   : > { %v4656_v10 = vadd.f32 %v18414_v55, %v15726_v35  ;;  %v15861_v24 = vrot.slane %v7733_v11, 11  ;;  %v7755_v16 = vshrl.u32 %v7687_v19, 16  ;;  %v15864_v41 = vadd.f32 %v18417_v53, %v4648_v57  ;;  %v18418_v3 = vld [vmem:[#allocation11_spill] sm:$0xff]  ;;  %v18421_v18 = vld [vmem:[#allocation50_spill] sm:$0xff]  ;;  %v7693_v55 = vld [vmem:[#allocation3 + $0x40] sm:$0x8] }
 0x245   : > { %v15857_v1 = vpop.f32.mrf.mxu1  ;;  %18415 = vst [vmem:[#allocation41_spill] sm:$0xff] %v15859_v14  ;;  %v15868_v5 = vadd.f32 %v18419_v52, %v18418_v3  ;;  %v18420_v63 = vld [vmem:[#allocation67_spill] sm:$0xff]  ;;  %v7074_v35 = vshll.u32 %v6966_v23, 16  ;;  %v18422_v9 = vld [vmem:[#allocation54_spill] sm:$0xff]  ;;  %v18423_v14 = vld [vmem:[#allocation37_spill] sm:$0xff]  ;;  %v15886_v52 = vrot.slane %v7050_v4, 5 }
 0x246   : > { %18416 = vst [vmem:[#allocation49_spill] sm:$0xff] %v15861_v24  ;;  %v15872_v54 = vadd.f32 %v18421_v18, %v18420_v63  ;;  %v15878_v11 = vadd.f32 %v18423_v14, %v18422_v9  ;;  %v18424_v19 = vld [vmem:[#allocation57_spill] sm:$0xff]  ;;  %v15884_v24 = vrot.slane %v6380_v32, 11  ;;  %v7690_v3 = vld [vmem:[#allocation3 + $0x30] sm:$0x8]  ;;  %v15889_v63 = vadd.f32 %v15677_v38, %v4652_v61  ;;  %v18428_v32 = vld [vmem:[#allocation56_spill] sm:$0xff] }
 0x247   : > { %v4660_v57 = vadd.f32 %v18424_v19, %v15746_v21  ;;  %v15882_v53 = vpop.f32.mrf.mxu1  ;;  %18426 = vst [vmem:[#allocation15_spill] sm:$0xff] %v15886_v52  ;;  %v15893_v23 = vsel %vm6533_vm9, %v15688_v59, 0  ;;  %v7019_v18 = vsel %vm13974_vm8, %v7014_v8, %v15792_v37  ;;  %v7029_v21 = vsel %vm13974_vm8, %v7024_v60, %v7028_v33  ;;  %v6969_v9 = vld [vmem:[#allocation3 + $0x3c] sm:$0x1]  ;;  %v18429_v19 = vld [vmem:[#allocation29_spill] sm:$0xff]  ;;  %v18431_v60 = vld [vmem:[#allocation31_spill] sm:$0xff] }
 0x248   : > { %18425 = vst [vmem:[#allocation55_spill] sm:$0xff] %v15884_v24  ;;  %v15902_v4 = vadd.f32 %v15697_v45, %v18428_v32  ;;  %v15906_v38 = vadd.f32 %v15718_v48, %v18429_v19  ;;  %v15913_v59 = vld [vmem:[%s18152_s3 + $0x10] sm:$0xf]  ;;  %v15915_v37 = vrot.slane %v7755_v16, 11  ;;  %v6972_v8 = vld [vmem:[#allocation3 + $0x4c] sm:$0x1]  ;;  %v15919_v24 = vadd.f32 %v15732_v42, %v18431_v60  ;;  %v12974_v48 = vpop.f32.mrf.mxu0 }
 0x249   : > { %v15908_v61 = vpop.f32.mrf.mxu1  ;;  %v7799_v33 = vshrl.u32 %v7693_v55, 16  ;;  %v4664_v45 = vadd.f32 %v15735_v36, %v15749_v22  ;;  %v15926_v32 = vld [vmem:[%s18151_s2] ss:$0 sm:$0xff]  ;;  %v15928_v19 = vrot.slane %v7074_v35, 5  ;;  %v7777_v52 = vshrl.u32 %v7690_v3, 16  ;;  %v18433_v14 = vld [vmem:[#allocation34_spill] sm:$0xff] }
 0x24a   : > { %18430 = vst [vmem:[#allocation58_spill] sm:$0xff] %v15915_v37  ;;  %18432 = vst [vmem:[#allocation61_spill] sm:$0xff] %v15919_v24  ;;  %v15931_v16 = vadd.f32 %v15751_v20, %v4656_v10  ;;  %v5697_v55 = vadd.f32 %v12974_v48, %v15806_v51  ;;  %v15934_v42 = vcombine.low %v7019_v18, %v7029_v21  ;;  %v7098_v60 = vshll.u32 %v6969_v9, 16  ;;  %v18434_v22 = vld [vmem:[#allocation28_spill] sm:$0xff]  ;;  %v5568_v35 = vpop.f32.mrf.mxu0  ;;  %v18436_v10 = vld [vmem:[#allocation66_spill] sm:$0xff] }
 0x24b   : > { %v12965_v37 = vpop.f32.mrf.mxu1  ;;  %v15938_v36 = vadd.f32 %v15766_v43, %v18433_v14  ;;  %v15942_v24 = vadd.f32 %v15771_v27, %v18434_v22  ;;  %v15946_v3 = vsel %vm6533_vm9, %v15913_v59, 0  ;;  %v7122_v20 = vshll.u32 %v6972_v8, 16  ;;  %v6975_v9 = vld [vmem:[#allocation3 + $0x5c] sm:$0x1]  ;;  %v7696_v27 = vld [vmem:[#allocation3 + $0x50] sm:$0x8] }
 0x24c   : > { %18435 = vst [vmem:[#allocation69_spill] sm:$0xff] %v15946_v3  ;;  %v15950_v51 = vadd.f32 %v15786_v29, %v18436_v10  ;;  %v5736_v18 = vadd.f32 %v15926_v32, %v5697_v55  ;;  %v5695_v21 = vadd.f32 %v5568_v35, %v15813_v28  ;;  %v15954_v14 = vrot.slane %v7799_v33, 11  ;;  %v12975_v29 = vpop.f32.mrf.mxu0  ;;  %v7699_v3 = vld [vmem:[#allocation3 + $0x60] sm:$0x8] }
 0x24d   : > { %v4941_v43 = vpop.f32.mrf.mxu1  ;;  %v4668_v48 = vadd.f32 %v15790_v47, %v15778_v50  ;;  %v15959_v22 = vadd.f32 %v15798_v58, %v4660_v57  ;;  %v15963_v8 = vadd.f32 %v15818_v17, %v15695_v56  ;;  %v15965_v10 = vrot.slane %v7777_v52, 11  ;;  %v6978_v57 = vld [vmem:[#allocation3 + $0x6c] sm:$0x1] }
 0x24e   : > { %18437 = vst [vmem:[#allocation64_spill] sm:$0xff] %v15954_v14  ;;  %v5811_v55 = vmax.f32 %v5736_v18, 0.0  ;;  %v5734_v28 = vadd.f32 %v15926_v32, %v5695_v21  ;;  %v5698_v33 = vadd.f32 %v12975_v29, %v15816_v31  ;;  %v15969_v14 = vrot.slane %v7098_v60, 5  ;;  %v5571_v47 = vpop.f32.mrf.mxu0 }
 0x24f   : > { %v12968_v35 = vpop.f32.mrf.mxu1  ;;  %v15973_v50 = vadd.f32 %v15828_v46, %v15716_v2  ;;  %v15975_v58 = vrot.slane %v7122_v20, 5  ;;  %v7146_v56 = vshll.u32 %v6975_v9, 16  ;;  %v7821_v17 = vshrl.u32 %v7696_v27, 16 }
 0x250   : > { %v12356_v52 = vpack.c.bf16 %v5811_v55, %v5811_v55  ;;  %v5809_v18 = vmax.f32 %v5734_v28, 0.0  ;;  %v5737_v21 = vadd.f32 %v15926_v32, %v5698_v33  ;;  %v5696_v31 = vadd.f32 %v5571_v47, %v15834_v44  ;;  %v6981_v33 = vld [vmem:[#allocation3 + $0x7c] sm:$0x1]  ;;  %v7705_v47 = vld [vmem:[#allocation3 + $0x80] sm:$0x8] }
 0x251   : > { %v4954_v29 = vpop.f32.mrf.mxu1  ;;  %v15981_v60 = vadd.f32 %v15848_v15, %v15730_v62  ;;  %v4672_v2 = vadd.f32 %v15874_v39, %v15803_v12  ;;  %v15986_v46 = vadd.f32 %v15857_v1, %v4664_v45  ;;  %v7843_v20 = vshrl.u32 %v7699_v3, 16  ;;  %v7702_v1 = vld [vmem:[#allocation3 + $0x70] sm:$0x8] }
 0x252   : > { %5971 = vst.msk [vmem:[#allocation3 + $0x24] sm:$0xf] %vm5766_vm10, %v12356_v52  ;;  %v12354_v9 = vpack.c.bf16 %v5809_v18, %v5809_v18  ;;  %v5812_v27 = vmax.f32 %v5737_v21, 0.0  ;;  %v5735_v55 = vadd.f32 %v15926_v32, %v5696_v31  ;;  %v7170_v44 = vshll.u32 %v6978_v57, 16  ;;  %v12978_v52 = vpop.f32.mrf.mxu0 }
 0x253   : > { %v12969_v28 = vpop.f32.mrf.mxu1  ;;  %v15992_v62 = vadd.f32 %v15882_v53, %v15764_v49  ;;  %v15994_v15 = vrot.slane %v7146_v56, 5  ;;  %v15996_v12 = vrot.slane %v7821_v17, 11  ;;  %v7887_v39 = vshrl.u32 %v7705_v47, 16 }
 0x254   : > { %5969 = vst.msk [vmem:[#allocation3 + $0x14] sm:$0xf] %vm5766_vm10, %v12354_v9  ;;  %v12357_v45 = vpack.c.bf16 %v5812_v27, %v5812_v27  ;;  %v5810_v3 = vmax.f32 %v5735_v55, 0.0  ;;  %v7194_v18 = vshll.u32 %v6981_v33, 16  ;;  %v7865_v21 = vshrl.u32 %v7702_v1, 16  ;;  %v5584_v55 = vpop.f32.mrf.mxu0 }
 0x255   : > { %v16001_v57 = vadd.f32 %v15908_v61, %v15769_v13  ;;  %v16004_v49 = vadd.f32 %v12965_v37, %v15784_v40  ;;  %v5701_v53 = vadd.f32 %v12978_v52, %v15837_v26  ;;  %v4957_v56 = vpop.f32.mrf.mxu1  ;;  %v16007_v17 = vrot.slane %v7843_v20, 11  ;;  %v16025_v37 = vld [vmem:[#allocation3 + $0x8c] sm:$0x1] }
 0x256   : > { %5972 = vst.msk [vmem:[#allocation3 + $0x28] sm:$0xf] %vm5766_vm10, %v12357_v45  ;;  %v12355_v31 = vpack.c.bf16 %v5810_v3, %v5810_v3  ;;  %v16010_v9 = vadd.f32 %v4941_v43, %v4668_v48  ;;  %v16013_v27 = vadd.f32 %v12968_v35, %v15823_v25  ;;  %v16015_v33 = vrot.slane %v7170_v44, 5  ;;  %18440 = vst [vmem:[#allocation22_spill] sm:$0xff] %v16025_v37  ;;  %v12979_v43 = vpop.f32.mrf.mxu0 }
 0x257   : > { %18438 = vst [vmem:[#allocation73_spill] sm:$0xff] %v16007_v17  ;;  %v5740_v13 = vadd.f32 %v15926_v32, %v5701_v53  ;;  %v5699_v40 = vadd.f32 %v5584_v55, %v15840_v7  ;;  %v16020_v26 = vadd.f32 %v4954_v29, %v15843_v30  ;;  %v16023_v61 = vadd.f32 %v12969_v28, %v15853_v34 }
 0x258   : > { %18439 = vst [vmem:[#allocation75_spill] sm:$0xff] %v16015_v33  ;;  %5970 = vst.msk [vmem:[#allocation3 + $0x18] sm:$0xf] %vm5766_vm10, %v12355_v31  ;;  %v16028_v25 = vadd.f32 %v4957_v56, %v4672_v2  ;;  %v16030_v48 = vrot.slane %v7194_v18, 5  ;;  %v16032_v35 = vrot.slane %v7865_v21, 11  ;;  %v16034_v20 = vrot.slane %v7887_v39, 11  ;;  %v5587_v47 = vpop.f32.mrf.mxu0 }
 0x259   : > { %v5815_v7 = vmax.f32 %v5740_v13, 0.0  ;;  %v5738_v30 = vadd.f32 %v15926_v32, %v5699_v40  ;;  %v5702_v29 = vadd.f32 %v12979_v43, %v15846_v0  ;;  %v6008_v34 = vld [vmem:[#allocation3 + $0x24] sm:$0xf]  ;;  %v5700_v21 = vadd.f32 %v5587_v47, %v15864_v41 }
 0x25a   : > { %18441 = vst [vmem:[#allocation71_spill] sm:$0xff] %v16030_v48  ;;  %18442 = vst [vmem:[#allocation74_spill] sm:$0xff] %v16032_v35  ;;  %v16038_v28 = vld [vmem:[#allocation3 + $0x24] sm:$0xf]  ;;  %v6099_v1 = vshrl.u32 %v6008_v34, 16  ;;  %v6102_v2 = vshll.u32 %v6008_v34, 16 }
 0x25b   : > { %18443 = vst [vmem:[#allocation27_spill] sm:$0xff] %v16034_v20  ;;  %v12360_v52 = vpack.c.bf16 %v5815_v7, %v5815_v7  ;;  %v5813_v39 = vmax.f32 %v5738_v30, 0.0  ;;  %v5741_v18 = vadd.f32 %v15926_v32, %v5702_v29  ;;  %v6005_v53 = vld [vmem:[#allocation3 + $0x14] sm:$0xf]  ;;  %v5739_v44 = vadd.f32 %v15926_v32, %v5700_v21  ;;  %v12982_v37 = vpop.f32.mrf.mxu0 }
 0x25c   : > { %v6961_v0 = vld [vmem:[#allocation3 + $0x14] sm:$0xf]  ;;  %v6077_v56 = vshrl.u32 %v6005_v53, 16  ;;  %v6080_v31 = vshll.u32 %v6005_v53, 16  ;;  %v6101_v55 = vrot.slane %v6099_v1, 7 }
 0x25d   : > { %v7031_v13 = vshrl.u32 %v6961_v0, 16  ;;  %5975 = vst.msk [vmem:[#allocation3 + $0x44] sm:$0xf] %vm5766_vm10, %v12360_v52  ;;  %v12358_v40 = vpack.c.bf16 %v5813_v39, %v5813_v39  ;;  %v5816_v43 = vmax.f32 %v5741_v18, 0.0  ;;  %v6009_v45 = vld [vmem:[#allocation3 + $0x28] sm:$0xf]  ;;  %v5705_v52 = vadd.f32 %v12982_v37, %v15868_v5 }
 0x25e   : > { %v7034_v3 = vshll.u32 %v6961_v0, 16  ;;  %v6079_v7 = vrot.slane %v6077_v56, 7  ;;  %v6108_v30 = vshrl.u32 %v6009_v45, 16  ;;  %v6111_v20 = vshll.u32 %v6009_v45, 16  ;;  %v5600_v0 = vpop.f32.mrf.mxu0 }
 0x25f   : > { %v11985_v29 = vcombine.low %v6008_v34, %v6009_v45  ;;  %5973 = vst.msk [vmem:[#allocation3 + $0x34] sm:$0xf] %vm5766_vm10, %v12358_v40  ;;  %v12361_v41 = vpack.c.bf16 %v5816_v43, %v5816_v43  ;;  %v5814_v47 = vmax.f32 %v5739_v44, 0.0  ;;  %v6006_v48 = vld [vmem:[#allocation3 + $0x18] sm:$0xf]  ;;  %v6104_v1 = vor.u32 %v6102_v2, %v6101_v55 }
 0x260   : > { %v6106_v35 = vrot.slane %v6101_v55, 4  ;;  %v6086_v39 = vshrl.u32 %v6006_v48, 16  ;;  %v6089_v18 = vshll.u32 %v6006_v48, 16  ;;  %v11984_v33 = vcombine.low %v6005_v53, %v6006_v48  ;;  %v12983_v37 = vpop.f32.mrf.mxu0  ;;  %v18445_v48 = vld [vmem:[#allocation12_spill] sm:$0xff]  ;;  %v18446_v53 = vld [vmem:[#allocation17_spill] sm:$0xff] }
 0x261   : > { %5976 = vst.msk [vmem:[#allocation3 + $0x48] sm:$0xf] %vm5766_vm10, %v12361_v41  ;;  %v12359_v21 = vpack.c.bf16 %v5814_v47, %v5814_v47  ;;  %v6110_v56 = vrot.slane %v6108_v30, 7  ;;  %v6082_v17 = vor.u32 %v6080_v31, %v6079_v7  ;;  %v6084_v34 = vrot.slane %v6079_v7, 4 }
 0x262   : > { %v5744_v45 = vadd.f32 %v15926_v32, %v5705_v52  ;;  %v5703_v44 = vadd.f32 %v5600_v0, %v15872_v54  ;;  %v6088_v40 = vrot.slane %v6086_v39, 7  ;;  %13007 = vmatmul.mubr.msk.bf16.vlgmr.msra.gmra.mxu1 %vm6484_vm11, %v11984_v33  ;;  %v6105_v5 = vsel %vm13776_vm5, %v15743_v6, %v6104_v1  ;;  %v5603_v47 = vpop.f32.mrf.mxu0 }
 0x263   : > { %5974 = vst.msk [vmem:[#allocation3 + $0x38] sm:$0xf] %vm5766_vm10, %v12359_v21  ;;  %13073 = vmatpush3.bf16.msra.mxu1 %v18445_v48  ;;  %13010 = vmatprep.mubr.msk.bf16.mxu1 %vm6484_vm11, %v11985_v29  ;;  %v6083_v31 = vsel %vm13776_vm5, %v18446_v53, %v6082_v17  ;;  %v6113_v55 = vor.u32 %v6111_v20, %v6110_v56  ;;  %v7033_v54 = vrot.slane %v7031_v13, 4  ;;  %v7036_v43 = vrot.slane %v7034_v3, 5 }
 0x264   : > { %v5819_v7 = vmax.f32 %v5744_v45, 0.0  ;;  %v5742_v33 = vadd.f32 %v15926_v32, %v5703_v44  ;;  %v5706_v30 = vadd.f32 %v12983_v37, %v15878_v11  ;;  %v6091_v6 = vor.u32 %v6089_v18, %v6088_v40  ;;  %v6014_v41 = vld [vmem:[#allocation3 + $0x44] sm:$0xf]  ;;  %13336 = vmatprep.subr.msk.bf16.mxu1 %vm6533_vm9, %v15913_v59 }
 0x265   : > { %v6114_v29 = vsel %vm13776_vm5, %v6106_v35, %v6113_v55  ;;  %v6143_v1 = vshrl.u32 %v6014_v41, 16  ;;  %v6146_v52 = vshll.u32 %v6014_v41, 16  ;;  %v7037_v17 = vor.u32 %v7036_v43, %v7033_v54 }
 0x266   : > { %v12364_v20 = vpack.c.bf16 %v5819_v7, %v5819_v7  ;;  %v5817_v13 = vmax.f32 %v5742_v33, 0.0  ;;  %v5745_v3 = vadd.f32 %v15926_v32, %v5706_v30  ;;  %v5704_v39 = vadd.f32 %v5603_v47, %v15889_v63  ;;  %v6011_v21 = vld [vmem:[#allocation3 + $0x34] sm:$0xf]  ;;  %v16081_v47 = vld [vmem:[#allocation3 + $0x18] sm:$0xf] }
 0x267   : > { %v6092_v11 = vsel %vm13776_vm5, %v6084_v34, %v6091_v6  ;;  %v6121_v18 = vshrl.u32 %v6011_v21, 16  ;;  %v6124_v0 = vshll.u32 %v6011_v21, 16  ;;  %v12017_v59 = vcombine.low %v6105_v5, %v6114_v29  ;;  %v12986_v34 = vpop.f32.mrf.mxu0 }
 0x268   : > { %5979 = vst.msk [vmem:[#allocation3 + $0x64] sm:$0xf] %vm5766_vm10, %v12364_v20  ;;  %v12362_v56 = vpack.c.bf16 %v5817_v13, %v5817_v13  ;;  %v5820_v35 = vmax.f32 %v5745_v3, 0.0  ;;  %v5743_v45 = vadd.f32 %v15926_v32, %v5704_v39  ;;  %v12016_v44 = vcombine.low %v6083_v31, %v6092_v11  ;;  %v6015_v40 = vld [vmem:[#allocation3 + $0x48] sm:$0xf] }
 0x269   : > { %v6123_v37 = vrot.slane %v6121_v18, 7  ;;  %v6145_v48 = vrot.slane %v6143_v1, 7  ;;  %v6152_v53 = vshrl.u32 %v6015_v40, 16  ;;  %v6155_v55 = vshll.u32 %v6015_v40, 16  ;;  %v5616_v1 = vpop.f32.mrf.mxu0 }
 0x26a   : > { %5977 = vst.msk [vmem:[#allocation3 + $0x54] sm:$0xf] %vm5766_vm10, %v12362_v56  ;;  %v12365_v63 = vpack.c.bf16 %v5820_v35, %v5820_v35  ;;  %v5818_v54 = vmax.f32 %v5743_v45, 0.0  ;;  %13041 = vmatmul.mubr.msk.bf16.vlgmr.msra.gmra.mxu0 %vm6484_vm11, %v12016_v44  ;;  %v6012_v5 = vld [vmem:[#allocation3 + $0x38] sm:$0xf]  ;;  %v11987_v43 = vcombine.low %v6014_v41, %v6015_v40  ;;  %v16076_v7 = vrot.slane %v7037_v17, 4 }
 0x26b   : > { %v5709_v33 = vadd.f32 %v12986_v34, %v15902_v4  ;;  %v6130_v30 = vshrl.u32 %v6012_v5, 16  ;;  %v6133_v31 = vshll.u32 %v6012_v5, 16  ;;  %v11986_v6 = vcombine.low %v6011_v21, %v6012_v5  ;;  %13044 = vmatprep.mubr.msk.bf16.mxu0 %vm6484_vm11, %v12017_v59  ;;  %13107 = vmatpush3.bf16.msra.mxu0 %v15893_v23  ;;  %v12987_v23 = vpop.f32.mrf.mxu0  ;;  %v18447_v21 = vld [vmem:[#allocation16_spill] sm:$0xff]  ;;  %v18448_v35 = vld [vmem:[#allocation61_spill] sm:$0xff] }
 0x26c   : > { %5980 = vst.msk [vmem:[#allocation3 + $0x68] sm:$0xf] %vm5766_vm10, %v12365_v63  ;;  %v12363_v29 = vpack.c.bf16 %v5818_v54, %v5818_v54  ;;  %v6154_v20 = vrot.slane %v6152_v53, 7  ;;  %v6126_v13 = vor.u32 %v6124_v0, %v6123_v37  ;;  %v6128_v41 = vrot.slane %v6123_v37, 4  ;;  %v18449_v37 = vld [vmem:[#allocation19_spill] sm:$0xff] }
 0x26d   : > { %v5748_v17 = vadd.f32 %v15926_v32, %v5709_v33  ;;  %v5707_v4 = vadd.f32 %v5616_v1, %v15906_v38  ;;  %v6132_v3 = vrot.slane %v6130_v30, 7  ;;  %13011 = vmatmul.mubr.msk.bf16.gmra.mxu1 %vm6484_vm11, %v11986_v6  ;;  %v6148_v39 = vor.u32 %v6146_v52, %v6145_v48  ;;  %v5619_v40 = vpop.f32.mrf.mxu0 }
 0x26e   : > { %5978 = vst.msk [vmem:[#allocation3 + $0x58] sm:$0xf] %vm5766_vm10, %v12363_v29  ;;  %13014 = vmatprep.mubr.msk.bf16.mxu1 %vm6484_vm11, %v11987_v43  ;;  %v6127_v11 = vsel %vm13776_vm5, %v18447_v21, %v6126_v13  ;;  %v6150_v18 = vrot.slane %v6145_v48, 4  ;;  %v6157_v0 = vor.u32 %v6155_v55, %v6154_v20  ;;  %v7040_v59 = vshll.u32 %v16081_v47, 16 }
 0x26f   : > { %v5823_v56 = vmax.f32 %v5748_v17, 0.0  ;;  %v5746_v38 = vadd.f32 %v15926_v32, %v5707_v4  ;;  %v5710_v45 = vadd.f32 %v12987_v23, %v18448_v35  ;;  %v6135_v44 = vor.u32 %v6133_v31, %v6132_v3  ;;  %v6020_v52 = vld [vmem:[#allocation3 + $0x64] sm:$0xf] }
 0x270   : > { %v6149_v53 = vsel %vm13776_vm5, %v18449_v37, %v6148_v39  ;;  %v6158_v63 = vsel %vm13776_vm5, %v6150_v18, %v6157_v0  ;;  %v6187_v54 = vshrl.u32 %v6020_v52, 16  ;;  %v6190_v48 = vshll.u32 %v6020_v52, 16  ;;  %v12990_v3 = vpop.f32.mrf.mxu0 }
 0x271   : > { %v12368_v55 = vpack.c.bf16 %v5823_v56, %v5823_v56  ;;  %v5821_v34 = vmax.f32 %v5746_v38, 0.0  ;;  %v5749_v5 = vadd.f32 %v15926_v32, %v5710_v45  ;;  %v5708_v43 = vadd.f32 %v5619_v40, %v15931_v16  ;;  %v6017_v33 = vld [vmem:[#allocation3 + $0x54] sm:$0xf] }
 0x272   : > { %v6136_v30 = vsel %vm13776_vm5, %v6128_v41, %v6135_v44  ;;  %v6165_v31 = vshrl.u32 %v6017_v33, 16  ;;  %v6168_v6 = vshll.u32 %v6017_v33, 16  ;;  %v12019_v29 = vcombine.low %v6149_v53, %v6158_v63  ;;  %v5632_v35 = vpop.f32.mrf.mxu0 }
 0x273   : > { %5983 = vst.msk [vmem:[#allocation3 + $0x84] sm:$0xf] %vm5766_vm10, %v12368_v55  ;;  %v12366_v1 = vpack.c.bf16 %v5821_v34, %v5821_v34  ;;  %v5824_v20 = vmax.f32 %v5749_v5, 0.0  ;;  %v5747_v13 = vadd.f32 %v15926_v32, %v5708_v43  ;;  %v12018_v17 = vcombine.low %v6127_v11, %v6136_v30  ;;  %v6021_v4 = vld [vmem:[#allocation3 + $0x68] sm:$0xf] }
 0x274   : > { %v6167_v39 = vrot.slane %v6165_v31, 7  ;;  %v6189_v23 = vrot.slane %v6187_v54, 7  ;;  %v6196_v21 = vshrl.u32 %v6021_v4, 16  ;;  %v6199_v16 = vshll.u32 %v6021_v4, 16  ;;  %v18450_v31 = vld [vmem:[#allocation18_spill] sm:$0xff] }
 0x275   : > { %5981 = vst.msk [vmem:[#allocation3 + $0x74] sm:$0xf] %vm5766_vm10, %v12366_v1  ;;  %v12369_v18 = vpack.c.bf16 %v5824_v20, %v5824_v20  ;;  %v5822_v41 = vmax.f32 %v5747_v13, 0.0  ;;  %v5713_v0 = vadd.f32 %v12990_v3, %v15938_v36  ;;  %13045 = vmatmul.mubr.msk.bf16.gmra.mxu0 %vm6484_vm11, %v12018_v17  ;;  %v6018_v56 = vld [vmem:[#allocation3 + $0x58] sm:$0xf]  ;;  %v11989_v38 = vcombine.low %v6020_v52, %v6021_v4  ;;  %v12991_v36 = vpop.f32.mrf.mxu0  ;;  %v18451_v1 = vld [vmem:[#allocation21_spill] sm:$0xff] }
 0x276   : > { %v6174_v45 = vshrl.u32 %v6018_v56, 16  ;;  %v6177_v44 = vshll.u32 %v6018_v56, 16  ;;  %v11988_v11 = vcombine.low %v6017_v33, %v6018_v56  ;;  %13048 = vmatprep.mubr.msk.bf16.mxu0 %vm6484_vm11, %v12019_v29  ;;  %v6198_v40 = vrot.slane %v6196_v21, 7 }
 0x277   : > { %5984 = vst.msk [vmem:[#allocation3 + $0x88] sm:$0xf] %vm5766_vm10, %v12369_v18  ;;  %v12367_v37 = vpack.c.bf16 %v5822_v41, %v5822_v41  ;;  %v5752_v53 = vadd.f32 %v15926_v32, %v5713_v0  ;;  %v5711_v63 = vadd.f32 %v5632_v35, %v15942_v24  ;;  %v6170_v54 = vor.u32 %v6168_v6, %v6167_v39  ;;  %v5635_v6 = vpop.f32.mrf.mxu0 }
 0x278   : > { %v6176_v55 = vrot.slane %v6174_v45, 7  ;;  %13015 = vmatmul.mubr.msk.bf16.gmra.mxu1 %vm6484_vm11, %v11988_v11  ;;  %v6172_v52 = vrot.slane %v6167_v39, 4  ;;  %v6192_v34 = vor.u32 %v6190_v48, %v6189_v23  ;;  %v6194_v5 = vrot.slane %v6189_v23, 4 }
 0x279   : > { %5982 = vst.msk [vmem:[#allocation3 + $0x78] sm:$0xf] %vm5766_vm10, %v12367_v37  ;;  %v5827_v43 = vmax.f32 %v5752_v53, 0.0  ;;  %v5750_v33 = vadd.f32 %v15926_v32, %v5711_v63  ;;  %v5714_v30 = vadd.f32 %v12991_v36, %v15950_v51  ;;  %13018 = vmatprep.mubr.msk.bf16.mxu1 %vm6484_vm11, %v11989_v38  ;;  %v6171_v24 = vsel %vm13776_vm5, %v18450_v31, %v6170_v54 }
 0x27a   : > { %v6179_v29 = vor.u32 %v6177_v44, %v6176_v55  ;;  %v6193_v48 = vsel %vm13776_vm5, %v18451_v1, %v6192_v34  ;;  %v6201_v20 = vor.u32 %v6199_v16, %v6198_v40  ;;  %v6026_v13 = vld [vmem:[#allocation3 + $0x84] sm:$0xf]  ;;  %v16126_v17 = vrot.slane %v7040_v59, 5 }
 0x27b   : > { %v12372_v4 = vpack.c.bf16 %v5827_v43, %v5827_v43  ;;  %v5825_v51 = vmax.f32 %v5750_v33, 0.0  ;;  %v5753_v3 = vadd.f32 %v15926_v32, %v5714_v30  ;;  %v5712_v39 = vadd.f32 %v5635_v6, %v15959_v22  ;;  %v12994_v53 = vpop.f32.mrf.mxu0 }
 0x27c   : > { %v6180_v23 = vsel %vm13776_vm5, %v6172_v52, %v6179_v29  ;;  %v6023_v21 = vld [vmem:[#allocation3 + $0x74] sm:$0xf]  ;;  %v6202_v18 = vsel %vm13776_vm5, %v6194_v5, %v6201_v20  ;;  %v6231_v41 = vshrl.u32 %v6026_v13, 16  ;;  %v6234_v16 = vshll.u32 %v6026_v13, 16 }
 0x27d   : > { %5987 = vst.msk [vmem:[#allocation3 + $0xa4] sm:$0xf] %vm5766_vm10, %v12372_v4  ;;  %v12370_v0 = vpack.c.bf16 %v5825_v51, %v5825_v51  ;;  %v5828_v59 = vmax.f32 %v5753_v3, 0.0  ;;  %v5751_v56 = vadd.f32 %v15926_v32, %v5712_v39  ;;  %v12020_v38 = vcombine.low %v6171_v24, %v6180_v23  ;;  %v5648_v33 = vpop.f32.mrf.mxu0  ;;  %v18452_v4 = vld [vmem:[#allocation20_spill] sm:$0xff] }
 0x27e   : > { %v6209_v35 = vshrl.u32 %v6023_v21, 16  ;;  %v6212_v45 = vshll.u32 %v6023_v21, 16  ;;  %v12021_v44 = vcombine.low %v6193_v48, %v6202_v18  ;;  %v6027_v22 = vld [vmem:[#allocation3 + $0x88] sm:$0xf]  ;;  %v6233_v11 = vrot.slane %v6231_v41, 7 }
 0x27f   : > { %5985 = vst.msk [vmem:[#allocation3 + $0x94] sm:$0xf] %vm5766_vm10, %v12370_v0  ;;  %v12373_v40 = vpack.c.bf16 %v5828_v59, %v5828_v59  ;;  %v5826_v37 = vmax.f32 %v5751_v56, 0.0  ;;  %13049 = vmatmul.mubr.msk.bf16.gmra.mxu0 %vm6484_vm11, %v12020_v38  ;;  %v6240_v63 = vshrl.u32 %v6027_v22, 16  ;;  %v6243_v54 = vshll.u32 %v6027_v22, 16 }
 0x280   : > { %v5717_v36 = vadd.f32 %v12994_v53, %v15963_v8  ;;  %v6024_v55 = vld [vmem:[#allocation3 + $0x78] sm:$0xf]  ;;  %v6211_v52 = vrot.slane %v6209_v35, 7  ;;  %13052 = vmatprep.mubr.msk.bf16.mxu0 %vm6484_vm11, %v12021_v44  ;;  %v11991_v34 = vcombine.low %v6026_v13, %v6027_v22  ;;  %v6236_v5 = vor.u32 %v6234_v16, %v6233_v11  ;;  %v12995_v8 = vpop.f32.mrf.mxu0 }
 0x281   : > { %5988 = vst.msk [vmem:[#allocation3 + $0xa8] sm:$0xf] %vm5766_vm10, %v12373_v40  ;;  %v12371_v43 = vpack.c.bf16 %v5826_v37, %v5826_v37  ;;  %v6218_v30 = vshrl.u32 %v6024_v55, 16  ;;  %v6221_v31 = vshll.u32 %v6024_v55, 16  ;;  %v11990_v24 = vcombine.low %v6023_v21, %v6024_v55 }
 0x282   : > { %v5756_v6 = vadd.f32 %v15926_v32, %v5717_v36  ;;  %v5715_v29 = vadd.f32 %v5648_v33, %v15973_v50  ;;  %v6242_v1 = vrot.slane %v6240_v63, 7  ;;  %v6214_v48 = vor.u32 %v6212_v45, %v6211_v52  ;;  %v18453_v50 = vld [vmem:[#allocation25_spill] sm:$0xff]  ;;  %v5651_v16 = vpop.f32.mrf.mxu0 }
 0x283   : > { %5986 = vst.msk [vmem:[#allocation3 + $0x98] sm:$0xf] %vm5766_vm10, %v12371_v43  ;;  %v6220_v20 = vrot.slane %v6218_v30, 7  ;;  %13019 = vmatmul.mubr.msk.bf16.gmra.mxu1 %vm6484_vm11, %v11990_v24  ;;  %v6216_v13 = vrot.slane %v6211_v52, 4  ;;  %v6237_v51 = vsel %vm13776_vm5, %v18452_v4, %v6236_v5  ;;  %v6238_v3 = vrot.slane %v6233_v11, 4 }
 0x284   : > { %v5831_v39 = vmax.f32 %v5756_v6, 0.0  ;;  %v5754_v23 = vadd.f32 %v15926_v32, %v5715_v29  ;;  %v5718_v21 = vadd.f32 %v12995_v8, %v15981_v60  ;;  %13022 = vmatprep.mubr.msk.bf16.mxu1 %vm6484_vm11, %v11991_v34  ;;  %v6215_v18 = vsel %vm13776_vm5, %v18453_v50, %v6214_v48  ;;  %v6032_v41 = vld [vmem:[#allocation3 + $0xa4] sm:$0xf] }
 0x285   : > { %v6223_v0 = vor.u32 %v6221_v31, %v6220_v20  ;;  %v6245_v59 = vor.u32 %v6243_v54, %v6242_v1  ;;  %v6275_v56 = vshrl.u32 %v6032_v41, 16  ;;  %v6278_v38 = vshll.u32 %v6032_v41, 16 }
 0x286   : > { %v12376_v35 = vpack.c.bf16 %v5831_v39, %v5831_v39  ;;  %v5829_v45 = vmax.f32 %v5754_v23, 0.0  ;;  %v5757_v44 = vadd.f32 %v15926_v32, %v5718_v21  ;;  %v5716_v22 = vadd.f32 %v5651_v16, %v15986_v46  ;;  %v6029_v11 = vld [vmem:[#allocation3 + $0x94] sm:$0xf]  ;;  %v12998_v34 = vpop.f32.mrf.mxu0 }
 0x287   : > { %v6224_v60 = vsel %vm13776_vm5, %v6216_v13, %v6223_v0  ;;  %v6253_v40 = vshrl.u32 %v6029_v11, 16  ;;  %v6256_v37 = vshll.u32 %v6029_v11, 16  ;;  %v6246_v53 = vsel %vm13776_vm5, %v6238_v3, %v6245_v59 }
 0x288   : > { %5991 = vst.msk [vmem:[#allocation3 + $0xc4] sm:$0xf] %vm5766_vm10, %v12376_v35  ;;  %v12374_v63 = vpack.c.bf16 %v5829_v45, %v5829_v45  ;;  %v5832_v54 = vmax.f32 %v5757_v44, 0.0  ;;  %v5755_v36 = vadd.f32 %v15926_v32, %v5716_v22  ;;  %v12022_v55 = vcombine.low %v6215_v18, %v6224_v60  ;;  %v6033_v52 = vld [vmem:[#allocation3 + $0xa8] sm:$0xf]  ;;  %v5664_v1 = vpop.f32.mrf.mxu0  ;;  %v18455_v44 = vld [vmem:[#allocation32_spill] sm:$0xff] }
 0x289   : > { %v6255_v5 = vrot.slane %v6253_v40, 7  ;;  %v12023_v46 = vcombine.low %v6237_v51, %v6246_v53  ;;  %v6277_v43 = vrot.slane %v6275_v56, 7  ;;  %v6284_v33 = vshrl.u32 %v6033_v52, 16 }
 0x28a   : > { %5989 = vst.msk [vmem:[#allocation3 + $0xb4] sm:$0xf] %vm5766_vm10, %v12374_v63  ;;  %v12377_v30 = vpack.c.bf16 %v5832_v54, %v5832_v54  ;;  %v5830_v31 = vmax.f32 %v5755_v36, 0.0  ;;  %v5721_v24 = vadd.f32 %v12998_v34, %v15992_v62  ;;  %13053 = vmatmul.mubr.msk.bf16.gmra.mxu0 %vm6484_vm11, %v12022_v55  ;;  %v6030_v6 = vld [vmem:[#allocation3 + $0x98] sm:$0xf]  ;;  %v6287_v29 = vshll.u32 %v6033_v52, 16  ;;  %v12999_v62 = vpop.f32.mrf.mxu0 }
 0x28b   : > { %v6262_v48 = vshrl.u32 %v6030_v6, 16  ;;  %v6265_v8 = vshll.u32 %v6030_v6, 16  ;;  %v11992_v20 = vcombine.low %v6029_v11, %v6030_v6  ;;  %13056 = vmatprep.mubr.msk.bf16.mxu0 %vm6484_vm11, %v12023_v46  ;;  %v6286_v13 = vrot.slane %v6284_v33, 7 }
 0x28c   : > { %5992 = vst.msk [vmem:[#allocation3 + $0xc8] sm:$0xf] %vm5766_vm10, %v12377_v30  ;;  %v12375_v4 = vpack.c.bf16 %v5830_v31, %v5830_v31  ;;  %v5760_v51 = vadd.f32 %v15926_v32, %v5721_v24  ;;  %v5719_v3 = vadd.f32 %v5664_v1, %v16001_v57  ;;  %v11993_v39 = vcombine.low %v6032_v41, %v6033_v52  ;;  %v5667_v35 = vpop.f32.mrf.mxu0  ;;  %v18454_v57 = vld [vmem:[#allocation24_spill] sm:$0xff] }
 0x28d   : > { %v6264_v23 = vrot.slane %v6262_v48, 7  ;;  %13023 = vmatmul.mubr.msk.bf16.gmra.mxu1 %vm6484_vm11, %v11992_v20  ;;  %v6258_v21 = vor.u32 %v6256_v37, %v6255_v5  ;;  %v6260_v50 = vrot.slane %v6255_v5, 4  ;;  %v6280_v18 = vor.u32 %v6278_v38, %v6277_v43 }
 0x28e   : > { %5990 = vst.msk [vmem:[#allocation3 + $0xb8] sm:$0xf] %vm5766_vm10, %v12375_v4  ;;  %v5835_v16 = vmax.f32 %v5760_v51, 0.0  ;;  %v5758_v0 = vadd.f32 %v15926_v32, %v5719_v3  ;;  %v5722_v59 = vadd.f32 %v12999_v62, %v16004_v49  ;;  %13026 = vmatprep.mubr.msk.bf16.mxu1 %vm6484_vm11, %v11993_v39  ;;  %v6282_v56 = vrot.slane %v6277_v43, 4 }
 0x28f   : > { %v6259_v41 = vsel %vm13776_vm5, %v18454_v57, %v6258_v21  ;;  %v6267_v45 = vor.u32 %v6265_v8, %v6264_v23  ;;  %v6281_v38 = vsel %vm13776_vm5, %v18455_v44, %v6280_v18  ;;  %v6289_v22 = vor.u32 %v6287_v29, %v6286_v13  ;;  %v6038_v11 = vld [vmem:[#allocation3 + $0xc4] sm:$0xf] }
 0x290   : > { %v12380_v60 = vpack.c.bf16 %v5835_v16, %v5835_v16  ;;  %v5833_v40 = vmax.f32 %v5758_v0, 0.0  ;;  %v5761_v37 = vadd.f32 %v15926_v32, %v5722_v59  ;;  %v5720_v49 = vadd.f32 %v5667_v35, %v16010_v9  ;;  %v18456_v57 = vld [vmem:[#allocation33_spill] sm:$0xff] }
 0x291   : > { %v6268_v53 = vsel %vm13776_vm5, %v6260_v50, %v6267_v45  ;;  %v6035_v63 = vld [vmem:[#allocation3 + $0xb4] sm:$0xf]  ;;  %v6290_v54 = vsel %vm13776_vm5, %v6282_v56, %v6289_v22  ;;  %v6319_v36 = vshrl.u32 %v6038_v11, 16  ;;  %v6322_v55 = vshll.u32 %v6038_v11, 16  ;;  %v13002_v29 = vpop.f32.mrf.mxu0  ;;  %v18457_v22 = vld [vmem:[#allocation40_spill] sm:$0xff] }
 0x292   : > { %5995 = vst.msk [vmem:[#allocation3 + $0xe4] sm:$0xf] %vm5766_vm10, %v12380_v60  ;;  %v12378_v52 = vpack.c.bf16 %v5833_v40, %v5833_v40  ;;  %v5836_v34 = vmax.f32 %v5761_v37, 0.0  ;;  %v5759_v5 = vadd.f32 %v15926_v32, %v5720_v49  ;;  %v12024_v46 = vcombine.low %v6259_v41, %v6268_v53 }
 0x293   : > { %v6297_v43 = vshrl.u32 %v6035_v63, 16  ;;  %v6300_v33 = vshll.u32 %v6035_v63, 16  ;;  %v12025_v30 = vcombine.low %v6281_v38, %v6290_v54  ;;  %v6039_v9 = vld [vmem:[#allocation3 + $0xc8] sm:$0xf]  ;;  %v6321_v31 = vrot.slane %v6319_v36, 7  ;;  %v5680_v39 = vpop.f32.mrf.mxu0 }
 0x294   : > { %5993 = vst.msk [vmem:[#allocation3 + $0xd4] sm:$0xf] %vm5766_vm10, %v12378_v52  ;;  %v12381_v24 = vpack.c.bf16 %v5836_v34, %v5836_v34  ;;  %v5834_v6 = vmax.f32 %v5759_v5, 0.0  ;;  %13057 = vmatmul.mubr.msk.bf16.gmra.mxu0 %vm6484_vm11, %v12024_v46  ;;  %v6328_v1 = vshrl.u32 %v6039_v9, 16  ;;  %v6331_v48 = vshll.u32 %v6039_v9, 16 }
 0x295   : > { %v5725_v8 = vadd.f32 %v13002_v29, %v16013_v27  ;;  %v6036_v20 = vld [vmem:[#allocation3 + $0xb8] sm:$0xf]  ;;  %v6299_v13 = vrot.slane %v6297_v43, 7  ;;  %13060 = vmatprep.mubr.msk.bf16.mxu0 %vm6484_vm11, %v12025_v30  ;;  %v11995_v4 = vcombine.low %v6038_v11, %v6039_v9  ;;  %v6324_v51 = vor.u32 %v6322_v55, %v6321_v31  ;;  %v12162_v27 = vld [vmem:[%s18152_s3 + $0x14] sm:$0xf]  ;;  %v13003_v59 = vpop.f32.mrf.mxu0 }
 0x296   : > { %5996 = vst.msk [vmem:[#allocation3 + $0xe8] sm:$0xf] %vm5766_vm10, %v12381_v24  ;;  %v12379_v3 = vpack.c.bf16 %v5834_v6, %v5834_v6  ;;  %v6306_v62 = vshrl.u32 %v6036_v20, 16  ;;  %v6309_v23 = vshll.u32 %v6036_v20, 16  ;;  %v11994_v21 = vcombine.low %v6035_v63, %v6036_v20  ;;  %13337 = vmatprep.subr.msk.bf16.mxu0 %vm6533_vm9, %v12162_v27 }
 0x297   : > { %v5764_v50 = vadd.f32 %v15926_v32, %v5725_v8  ;;  %v5723_v18 = vadd.f32 %v5680_v39, %v16020_v26  ;;  %v6330_v16 = vrot.slane %v6328_v1, 7  ;;  %v6302_v0 = vor.u32 %v6300_v33, %v6299_v13  ;;  %v5683_v40 = vpop.f32.mrf.mxu0 }
 0x298   : > { %5994 = vst.msk [vmem:[#allocation3 + $0xd8] sm:$0xf] %vm5766_vm10, %v12379_v3  ;;  %v6308_v56 = vrot.slane %v6306_v62, 7  ;;  %13027 = vmatmul.mubr.msk.bf16.gmra.mxu1 %vm6484_vm11, %v11994_v21  ;;  %v6304_v35 = vrot.slane %v6299_v13, 4  ;;  %v6325_v41 = vsel %vm13776_vm5, %v18456_v57, %v6324_v51  ;;  %v6326_v45 = vrot.slane %v6321_v31, 4  ;;  %v18459_v57 = vld [vmem:[#allocation41_spill] sm:$0xff] }
 0x299   : > { %v5839_v26 = vmax.f32 %v5764_v50, 0.0  ;;  %v5762_v44 = vadd.f32 %v15926_v32, %v5723_v18  ;;  %v5726_v38 = vadd.f32 %v13003_v59, %v16023_v61  ;;  %13030 = vmatprep.mubr.msk.bf16.mxu1 %vm6484_vm11, %v11995_v4  ;;  %v6303_v11 = vsel %vm13776_vm5, %v18457_v22, %v6302_v0  ;;  %v6044_v60 = vld [vmem:[#allocation3 + $0xe4] sm:$0xf]  ;;  %v7685_v62 = vld [vmem:[#allocation3 + $0x14] sm:$0xf] }
 0x29a   : > { %v6311_v37 = vor.u32 %v6309_v23, %v6308_v56  ;;  %v6333_v49 = vor.u32 %v6331_v48, %v6330_v16  ;;  %v6363_v53 = vshrl.u32 %v6044_v60, 16  ;;  %v6366_v63 = vshll.u32 %v6044_v60, 16  ;;  %v7686_v16 = vld [vmem:[#allocation3 + $0x18] sm:$0xf] }
 0x29b   : > { %v12384_v54 = vpack.c.bf16 %v5839_v26, %v5839_v26  ;;  %v5837_v36 = vmax.f32 %v5762_v44, 0.0  ;;  %v5765_v55 = vadd.f32 %v15926_v32, %v5726_v38  ;;  %v5724_v52 = vadd.f32 %v5683_v40, %v16028_v25  ;;  %v6041_v34 = vld [vmem:[#allocation3 + $0xd4] sm:$0xf] }
 0x29c   : > { %v6312_v61 = vsel %vm13776_vm5, %v6304_v35, %v6311_v37  ;;  %v6341_v5 = vshrl.u32 %v6041_v34, 16  ;;  %v6344_v46 = vshll.u32 %v6041_v34, 16  ;;  %v6334_v43 = vsel %vm13776_vm5, %v6326_v45, %v6333_v49  ;;  %v18460_v45 = vld [vmem:[#allocation48_spill] sm:$0xff] }
 0x29d   : > { %5999 = vst.msk [vmem:[#allocation3 + $0x104] sm:$0xf] %vm5766_vm10, %v12384_v54  ;;  %v12382_v33 = vpack.c.bf16 %v5837_v36, %v5837_v36  ;;  %v5840_v30 = vmax.f32 %v5765_v55, 0.0  ;;  %v5763_v9 = vadd.f32 %v15926_v32, %v5724_v52  ;;  %v12026_v31 = vcombine.low %v6303_v11, %v6312_v61  ;;  %v6045_v24 = vld [vmem:[#allocation3 + $0xe8] sm:$0xf] }
 0x29e   : > { %v6343_v6 = vrot.slane %v6341_v5, 7  ;;  %v12027_v29 = vcombine.low %v6325_v41, %v6334_v43  ;;  %v6365_v25 = vrot.slane %v6363_v53, 7  ;;  %v6372_v1 = vshrl.u32 %v6045_v24, 16 }
 0x29f   : > { %5997 = vst.msk [vmem:[#allocation3 + $0xf4] sm:$0xf] %vm5766_vm10, %v12382_v33  ;;  %v12385_v48 = vpack.c.bf16 %v5840_v30, %v5840_v30  ;;  %v5838_v8 = vmax.f32 %v5763_v9, 0.0  ;;  %13061 = vmatmul.mubr.msk.bf16.gmra.mxu0 %vm6484_vm11, %v12026_v31  ;;  %v6042_v20 = vld [vmem:[#allocation3 + $0xd8] sm:$0xf]  ;;  %v6375_v13 = vshll.u32 %v6045_v24, 16  ;;  %v11997_v4 = vcombine.low %v6044_v60, %v6045_v24 }
 0x2a0   : > { %v6350_v51 = vshrl.u32 %v6042_v20, 16  ;;  %v6353_v3 = vshll.u32 %v6042_v20, 16  ;;  %v11996_v39 = vcombine.low %v6041_v34, %v6042_v20  ;;  %13064 = vmatprep.mubr.msk.bf16.mxu0 %vm6484_vm11, %v12027_v29  ;;  %v6374_v32 = vrot.slane %v6372_v1, 7  ;;  %v7688_v30 = vld [vmem:[#allocation3 + $0x24] sm:$0xf] }
 0x2a1   : > { %6000 = vst.msk [vmem:[#allocation3 + $0x108] sm:$0xf] %vm5766_vm10, %v12385_v48  ;;  %v12383_v23 = vpack.c.bf16 %v5838_v8, %v5838_v8  ;;  %v6346_v21 = vor.u32 %v6344_v46, %v6343_v6  ;;  %v6348_v50 = vrot.slane %v6343_v6, 4  ;;  %v6368_v18 = vor.u32 %v6366_v63, %v6365_v25  ;;  %v6965_v63 = vld [vmem:[#allocation3 + $0x28] sm:$0xf] }
 0x2a2   : > { %v6352_v0 = vrot.slane %v6350_v51, 7  ;;  %13031 = vmatmul.mubr.msk.bf16.gmra.mxu1 %vm6484_vm11, %v11996_v39  ;;  %v6370_v27 = vrot.slane %v6365_v25, 4  ;;  %v6377_v59 = vor.u32 %v6375_v13, %v6374_v32  ;;  %v7043_v35 = vsel %vm13974_vm8, %v16076_v7, %v16126_v17 }
 0x2a3   : > { %5998 = vst.msk [vmem:[#allocation3 + $0xf8] sm:$0xf] %vm5766_vm10, %v12383_v23  ;;  %13034 = vmatprep.mubr.msk.bf16.mxu1 %vm6484_vm11, %v11997_v4  ;;  %v6347_v41 = vsel %vm13776_vm5, %v18459_v57, %v6346_v21  ;;  %v6369_v26 = vsel %vm13776_vm5, %v18460_v45, %v6368_v18  ;;  %v7044_v44 = vshrl.u32 %v16081_v47, 16  ;;  %v7738_v38 = vshrl.u32 %v7685_v62, 16  ;;  %v18464_v21 = vld [vmem:[#allocation15_spill] sm:$0xff] }
 0x2a4   : > { %v6355_v22 = vor.u32 %v6353_v3, %v6352_v0  ;;  %v6378_v11 = vsel %vm13776_vm5, %v6370_v27, %v6377_v59  ;;  %v7741_v7 = vshll.u32 %v7685_v62, 16  ;;  %v7747_v60 = vshrl.u32 %v7686_v16, 16  ;;  %v7689_v62 = vld [vmem:[#allocation3 + $0x28] sm:$0xf]  ;;  %v6967_v0 = vld [vmem:[#allocation3 + $0x34] sm:$0xf] }
 0x2a5   : > { %v12029_v40 = vcombine.low %v6369_v26, %v6378_v11  ;;  %v7046_v37 = vrot.slane %v7044_v44, 4  ;;  %v7740_v49 = vrot.slane %v7738_v38, 7  ;;  %v7750_v53 = vshll.u32 %v7686_v16, 16  ;;  %v18465_v59 = vld [vmem:[#allocation55_spill] sm:$0xff]  ;;  %v6968_v11 = vld [vmem:[#allocation3 + $0x38] sm:$0xf] }
 0x2a6   : > { %v6356_v54 = vsel %vm13776_vm5, %v6348_v50, %v6355_v22  ;;  %v6047_v36 = vld [vmem:[#allocation3 + $0xf4] sm:$0xf]  ;;  %v7749_v55 = vrot.slane %v7747_v60, 7  ;;  %v18461_v52 = vshrl.u32 %v16038_v28, 16  ;;  %v18462_v34 = vshll.u32 %v16038_v28, 16  ;;  %v18463_v28 = vld [vmem:[#allocation49_spill] sm:$0xff] }
 0x2a7   : > { %v12028_v5 = vcombine.low %v6347_v41, %v6356_v54  ;;  %v6385_v46 = vshrl.u32 %v6047_v36, 16  ;;  %v6388_v43 = vshll.u32 %v6047_v36, 16  ;;  %v7047_v33 = vor.u32 %v7046_v37, %v16126_v17 }
 0x2a8   : > { %v7057_v47 = vrot.slane %v18461_v52, 4  ;;  %v7060_v61 = vrot.slane %v18462_v34, 5  ;;  %v7743_v9 = vor.u32 %v7741_v7, %v7740_v49  ;;  %v7745_v31 = vrot.slane %v7740_v49, 4  ;;  %v18466_v34 = vld [vmem:[#allocation58_spill] sm:$0xff] }
 0x2a9   : > { %v7752_v24 = vor.u32 %v7750_v53, %v7749_v55  ;;  %13065 = vmatmul.mubr.msk.bf16.gmra.mxu0 %vm6484_vm11, %v12028_v5  ;;  %v6387_v29 = vrot.slane %v6385_v46, 7  ;;  %v7048_v25 = vrot.slane %v7047_v33, 4  ;;  %v7064_v1 = vshll.u32 %v6965_v63, 16 }
 0x2aa   : > { %v7061_v6 = vor.u32 %v7060_v61, %v7057_v47  ;;  %v7068_v48 = vshrl.u32 %v6965_v63, 16  ;;  %v6048_v8 = vld [vmem:[#allocation3 + $0xf8] sm:$0xf]  ;;  %13068 = vmatprep.mubr.msk.bf16.mxu0 %vm6484_vm11, %v12029_v40  ;;  %v7744_v20 = vsel %vm13776_vm5, %v18463_v28, %v7743_v9  ;;  %v7760_v4 = vshrl.u32 %v7688_v30, 16 }
 0x2ab   : > { %v7753_v17 = vsel %vm13776_vm5, %v7745_v31, %v7752_v24  ;;  %v6394_v51 = vshrl.u32 %v6048_v8, 16  ;;  %v6397_v3 = vshll.u32 %v6048_v8, 16  ;;  %v11998_v39 = vcombine.low %v6047_v36, %v6048_v8  ;;  %v6970_v24 = vld [vmem:[#allocation3 + $0x44] sm:$0xf] }
 0x2ac   : > { %v7062_v13 = vrot.slane %v7061_v6, 4  ;;  %v6390_v32 = vor.u32 %v6388_v43, %v6387_v29  ;;  %v6392_v23 = vrot.slane %v6387_v29, 4  ;;  %v7053_v50 = vsel %vm13974_vm8, %v7048_v25, %v18464_v21  ;;  %v7692_v43 = vld [vmem:[#allocation3 + $0x38] sm:$0xf] }
 0x2ad   : > { %v12097_v18 = vcombine.low %v7744_v20, %v7753_v17  ;;  %v7066_v16 = vrot.slane %v7064_v1, 5  ;;  %v6396_v27 = vrot.slane %v6394_v51, 7  ;;  %13035 = vmatmul.mubr.msk.bf16.gmra.mxu1 %vm6484_vm11, %v11998_v39  ;;  %v12049_v41 = vcombine.low %v7043_v35, %v7053_v50  ;;  %v7691_v35 = vld [vmem:[#allocation3 + $0x34] sm:$0xf]  ;;  %v6971_v17 = vld [vmem:[#allocation3 + $0x48] sm:$0xf] }
 0x2ae   : > { %v6391_v57 = vsel %vm13776_vm5, %v18465_v59, %v6390_v32  ;;  %v7070_v45 = vrot.slane %v7068_v48, 4  ;;  %13074 = vmatprep.mubr.msk.bf16.mxu1 %vm6484_vm11, %v15934_v42  ;;  %v7762_v44 = vrot.slane %v7760_v4, 7  ;;  %v7763_v38 = vshll.u32 %v7688_v30, 16  ;;  %v16277_v48 = vld [vmem:[%s18152_s3 + $0x18] sm:$0xf] }
 0x2af   : > { %v7067_v26 = vsel %vm13974_vm8, %v7062_v13, %v7066_v16  ;;  %v7769_v22 = vshrl.u32 %v7689_v62, 16  ;;  %v6399_v7 = vor.u32 %v6397_v3, %v6396_v27  ;;  %v7772_v40 = vshll.u32 %v7689_v62, 16  ;;  %v18467_v13 = vld [vmem:[#allocation69_spill] sm:$0xff]  ;;  %v16289_v59 = vld [vmem:[#allocation3 + $0x48] sm:$0xf] }
 0x2b0   : > { %v7071_v60 = vor.u32 %v7070_v45, %v7066_v16  ;;  %v7079_v37 = vshrl.u32 %v6967_v0, 16  ;;  %v7765_v49 = vor.u32 %v7763_v38, %v7762_v44  ;;  %v7767_v53 = vrot.slane %v7762_v44, 4  ;;  %v16283_v50 = vld [vmem:[#allocation3 + $0x44] sm:$0xf] }
 0x2b1   : > { %v7771_v63 = vrot.slane %v7769_v22, 7  ;;  %v7082_v54 = vshll.u32 %v6967_v0, 16  ;;  %v6400_v36 = vsel %vm13776_vm5, %v6392_v23, %v6399_v7  ;;  %v7088_v52 = vshll.u32 %v6968_v11, 16  ;;  %v6973_v7 = vld [vmem:[#allocation3 + $0x54] sm:$0xf] }
 0x2b2   : > { %v7072_v42 = vrot.slane %v7071_v60, 4  ;;  %v7081_v55 = vrot.slane %v7079_v37, 4  ;;  %v12030_v47 = vcombine.low %v6391_v57, %v6400_v36  ;;  %v7766_v61 = vsel %vm13776_vm5, %v18466_v34, %v7765_v49 }
 0x2b3   : > { %v7774_v5 = vor.u32 %v7772_v40, %v7771_v63  ;;  %v7084_v46 = vrot.slane %v7082_v54, 5  ;;  %v7090_v30 = vrot.slane %v7088_v52, 5  ;;  %v7092_v9 = vshrl.u32 %v6968_v11, 16 }
 0x2b4   : > { %v7077_v33 = vsel %vm13974_vm8, %v7072_v42, %v15928_v19  ;;  %v7782_v31 = vshrl.u32 %v7691_v35, 16  ;;  %13069 = vmatmul.mubr.msk.bf16.gmra.mxu0 %vm6484_vm11, %v12030_v47  ;;  %v7785_v1 = vshll.u32 %v7691_v35, 16  ;;  %v7791_v20 = vshrl.u32 %v7692_v43, 16  ;;  %v6974_v35 = vld [vmem:[#allocation3 + $0x58] sm:$0xf] }
 0x2b5   : > { %v12050_v6 = vcombine.low %v7067_v26, %v7077_v33  ;;  %v7775_v29 = vsel %vm13776_vm5, %v7767_v53, %v7774_v5  ;;  %v7085_v25 = vor.u32 %v7084_v46, %v7081_v55  ;;  %13075 = vmatmul.mubr.msk.bf16.vlgmr.msra.gmra.mxu1 %vm6484_vm11, %v12049_v41  ;;  %13108 = vmatprep.mubr.msk.bf16.mxu0 %vm6484_vm11, %v12097_v18  ;;  %v7094_v8 = vrot.slane %v7092_v9, 4  ;;  %v16304_v47 = vld [vmem:[#allocation3 + $0x54] sm:$0xf]  ;;  %v6976_v9 = vld [vmem:[#allocation3 + $0x64] sm:$0xf] }
 0x2b6   : > { %v12098_v19 = vcombine.low %v7766_v61, %v7775_v29  ;;  %v7784_v28 = vrot.slane %v7782_v31, 7  ;;  %13141 = vmatpush3.bf16.msra.mxu1 %v18467_v13  ;;  %v7794_v51 = vshll.u32 %v7692_v43, 16  ;;  %v7103_v3 = vshrl.u32 %v6970_v24, 16  ;;  %v18468_v31 = vld [vmem:[#allocation64_spill] sm:$0xff] }
 0x2b7   : > { %13078 = vmatprep.mubr.msk.bf16.mxu1 %vm6484_vm11, %v12050_v6  ;;  %v7086_v4 = vrot.slane %v7085_v25, 4  ;;  %v7106_v39 = vshll.u32 %v6970_v24, 16  ;;  %v7095_v32 = vor.u32 %v7094_v8, %v7090_v30  ;;  %v7793_v21 = vrot.slane %v7791_v20, 7  ;;  %13338 = vmatprep.subr.msk.bf16.mxu1 %vm6533_vm9, %v16277_v48  ;;  %v16313_v25 = vld [vmem:[#allocation3 + $0x58] sm:$0xf] }
 0x2b8   : > { %v7787_v62 = vor.u32 %v7785_v1, %v7784_v28  ;;  %v7789_v23 = vrot.slane %v7784_v28, 4  ;;  %v7105_v16 = vrot.slane %v7103_v3, 4  ;;  %v7112_v27 = vshll.u32 %v6971_v17, 16 }
 0x2b9   : > { %v7091_v18 = vsel %vm13974_vm8, %v7086_v4, %v7090_v30  ;;  %v7108_v0 = vrot.slane %v7106_v39, 5  ;;  %v7096_v57 = vrot.slane %v7095_v32, 4  ;;  %v7796_v45 = vor.u32 %v7794_v51, %v7793_v21 }
 0x2ba   : > { %v7788_v41 = vsel %vm13776_vm5, %v15965_v10, %v7787_v62  ;;  %v7116_v26 = vshrl.u32 %v6971_v17, 16  ;;  %v7114_v38 = vrot.slane %v7112_v27, 5  ;;  %v7804_v22 = vshrl.u32 %v16283_v50, 16  ;;  %v6977_v17 = vld [vmem:[#allocation3 + $0x68] sm:$0xf] }
 0x2bb   : > { %v7109_v44 = vor.u32 %v7108_v0, %v7105_v16  ;;  %v7807_v11 = vshll.u32 %v16283_v50, 16  ;;  %v7101_v60 = vsel %vm13974_vm8, %v7096_v57, %v15969_v14  ;;  %v7797_v40 = vsel %vm13776_vm5, %v7789_v23, %v7796_v45  ;;  %v16326_v0 = vld [vmem:[#allocation3 + $0x64] sm:$0xf] }
 0x2bc   : > { %v7118_v37 = vrot.slane %v7116_v26, 4  ;;  %v7813_v49 = vshrl.u32 %v16289_v59, 16  ;;  %13109 = vmatmul.mubr.msk.bf16.vlgmr.msra.gmra.mxu0 %vm6484_vm11, %v12098_v19  ;;  %v12051_v10 = vcombine.low %v7091_v18, %v7101_v60  ;;  %v12099_v53 = vcombine.low %v7788_v41, %v7797_v40  ;;  %v16328_v26 = vld [vmem:[#allocation3 + $0x68] sm:$0xf] }
 0x2bd   : > { %v7110_v63 = vrot.slane %v7109_v44, 4  ;;  %v7806_v54 = vrot.slane %v7804_v22, 7  ;;  %v7816_v55 = vshll.u32 %v16289_v59, 16  ;;  %v7127_v52 = vshrl.u32 %v6973_v7, 16 }
 0x2be   : > { %v7119_v36 = vor.u32 %v7118_v37, %v7114_v38  ;;  %v7815_v42 = vrot.slane %v7813_v49, 7  ;;  %13079 = vmatmul.mubr.msk.bf16.gmra.mxu1 %vm6484_vm11, %v12051_v10  ;;  %13112 = vmatprep.mubr.msk.bf16.mxu0 %vm6484_vm11, %v12099_v53  ;;  %v7130_v5 = vshll.u32 %v6973_v7, 16  ;;  %v7136_v30 = vshll.u32 %v6974_v35, 16 }
 0x2bf   : > { %v7115_v14 = vsel %vm13974_vm8, %v7110_v63, %v7114_v38  ;;  %v7809_v34 = vor.u32 %v7807_v11, %v7806_v54  ;;  %v7811_v61 = vrot.slane %v7806_v54, 4  ;;  %v7129_v33 = vrot.slane %v7127_v52, 4  ;;  %v6979_v54 = vld [vmem:[#allocation3 + $0x74] sm:$0xf] }
 0x2c0   : > { %v7120_v46 = vrot.slane %v7119_v36, 4  ;;  %v7818_v43 = vor.u32 %v7816_v55, %v7815_v42  ;;  %v7132_v6 = vrot.slane %v7130_v5, 5  ;;  %v7140_v29 = vshrl.u32 %v6974_v35, 16  ;;  %v6980_v55 = vld [vmem:[#allocation3 + $0x78] sm:$0xf] }
 0x2c1   : > { %v7810_v24 = vsel %vm13776_vm5, %v18468_v31, %v7809_v34  ;;  %v7826_v1 = vshrl.u32 %v16304_v47, 16  ;;  %v7138_v28 = vrot.slane %v7136_v30, 5  ;;  %v7829_v20 = vshll.u32 %v16304_v47, 16 }
 0x2c2   : > { %v7125_v19 = vsel %vm13974_vm8, %v7120_v46, %v15975_v58  ;;  %v7819_v8 = vsel %vm13776_vm5, %v7811_v61, %v7818_v43  ;;  %v7133_v51 = vor.u32 %v7132_v6, %v7129_v33  ;;  %v7142_v3 = vrot.slane %v7140_v29, 4  ;;  %v16345_v33 = vld [vmem:[#allocation3 + $0x74] sm:$0xf]  ;;  %v18469_v29 = vld [vmem:[#allocation73_spill] sm:$0xff] }
 0x2c3   : > { %v12052_v13 = vcombine.low %v7115_v14, %v7125_v19  ;;  %v12100_v4 = vcombine.low %v7810_v24, %v7819_v8  ;;  %v7828_v39 = vrot.slane %v7826_v1, 7  ;;  %v7835_v32 = vshrl.u32 %v16313_v25, 16 }
 0x2c4   : > { %v7838_v62 = vshll.u32 %v16313_v25, 16  ;;  %v7151_v23 = vshrl.u32 %v6976_v9, 16  ;;  %v7134_v58 = vrot.slane %v7133_v51, 4  ;;  %v7143_v21 = vor.u32 %v7142_v3, %v7138_v28  ;;  %v6982_v51 = vld [vmem:[#allocation3 + $0x84] sm:$0xf]  ;;  %v18470_v3 = vld [vmem:[#allocation75_spill] sm:$0xff] }
 0x2c5   : > { %13082 = vmatprep.mubr.msk.bf16.mxu1 %vm6484_vm11, %v12052_v13  ;;  %13113 = vmatmul.mubr.msk.bf16.gmra.mxu0 %vm6484_vm11, %v12100_v4  ;;  %v7154_v18 = vshll.u32 %v6976_v9, 16  ;;  %v7160_v16 = vshll.u32 %v6977_v17, 16  ;;  %v7831_v27 = vor.u32 %v7829_v20, %v7828_v39  ;;  %v7833_v57 = vrot.slane %v7828_v39, 4 }
 0x2c6   : > { %v7837_v41 = vrot.slane %v7835_v32, 7  ;;  %v7153_v45 = vrot.slane %v7151_v23, 4  ;;  %v7139_v44 = vsel %vm13974_vm8, %v7134_v58, %v7138_v28  ;;  %v7144_v38 = vrot.slane %v7143_v21, 4  ;;  %v16353_v28 = vld [vmem:[#allocation3 + $0x78] sm:$0xf] }
 0x2c7   : > { %v7156_v22 = vrot.slane %v7154_v18, 5  ;;  %v7162_v11 = vrot.slane %v7160_v16, 5  ;;  %v7832_v7 = vsel %vm13776_vm5, %v15996_v12, %v7831_v27  ;;  %v7164_v40 = vshrl.u32 %v6977_v17, 16  ;;  %v6983_v27 = vld [vmem:[#allocation3 + $0x88] sm:$0xf] }
 0x2c8   : > { %v7840_v60 = vor.u32 %v7838_v62, %v7837_v41  ;;  %v7848_v37 = vshrl.u32 %v16326_v0, 16  ;;  %v7149_v49 = vsel %vm13974_vm8, %v7144_v38, %v15994_v15  ;;  %v7851_v53 = vshll.u32 %v16326_v0, 16 }
 0x2c9   : > { %v7157_v10 = vor.u32 %v7156_v22, %v7153_v45  ;;  %v7857_v63 = vshrl.u32 %v16328_v26, 16  ;;  %v12053_v35 = vcombine.low %v7139_v44, %v7149_v49  ;;  %v7166_v42 = vrot.slane %v7164_v40, 4 }
 0x2ca   : > { %v7841_v36 = vsel %vm13776_vm5, %v7833_v57, %v7840_v60  ;;  %v7850_v12 = vrot.slane %v7848_v37, 7  ;;  %v7860_v61 = vshll.u32 %v16328_v26, 16  ;;  %v7175_v43 = vshrl.u32 %v6979_v54, 16 }
 0x2cb   : > { %v12101_v52 = vcombine.low %v7832_v7, %v7841_v36  ;;  %v7158_v14 = vrot.slane %v7157_v10, 4  ;;  %v7859_v34 = vrot.slane %v7857_v63, 7  ;;  %13083 = vmatmul.mubr.msk.bf16.gmra.mxu1 %vm6484_vm11, %v12053_v35  ;;  %v7167_v15 = vor.u32 %v7166_v42, %v7162_v11  ;;  %v16366_v10 = vld [vmem:[#allocation3 + $0x84] sm:$0xf]  ;;  %v18471_v63 = vld [vmem:[#allocation74_spill] sm:$0xff] }
 0x2cc   : > { %v7853_v5 = vor.u32 %v7851_v53, %v7850_v12  ;;  %v7855_v46 = vrot.slane %v7850_v12, 4  ;;  %v7178_v31 = vshll.u32 %v6979_v54, 16  ;;  %v7184_v24 = vshll.u32 %v6980_v55, 16  ;;  %v16373_v42 = vld [vmem:[#allocation3 + $0x88] sm:$0xf]  ;;  %v18472_v12 = vld [vmem:[#allocation71_spill] sm:$0xff] }
 0x2cd   : > { %13116 = vmatprep.mubr.msk.bf16.mxu0 %vm6484_vm11, %v12101_v52  ;;  %v7163_v30 = vsel %vm13974_vm8, %v7158_v14, %v7162_v11  ;;  %v7862_v9 = vor.u32 %v7860_v61, %v7859_v34  ;;  %v7168_v6 = vrot.slane %v7167_v15, 4  ;;  %v7177_v19 = vrot.slane %v7175_v43, 4  ;;  %v18473_v34 = vld [vmem:[#allocation22_spill] sm:$0xff] }
 0x2ce   : > { %v7854_v1 = vsel %vm13776_vm5, %v18469_v29, %v7853_v5  ;;  %v7188_v8 = vshrl.u32 %v6980_v55, 16  ;;  %v7180_v17 = vrot.slane %v7178_v31, 5  ;;  %v7186_v13 = vrot.slane %v7184_v24, 5  ;;  %v6985_v5 = vld [vmem:[#allocation3 + $0x94] sm:$0xf] }
 0x2cf   : > { %v7863_v20 = vsel %vm13776_vm5, %v7855_v46, %v7862_v9  ;;  %v7870_v4 = vshrl.u32 %v16345_v33, 16  ;;  %v7173_v39 = vsel %vm13974_vm8, %v7168_v6, %v18470_v3  ;;  %v7873_v23 = vshll.u32 %v16345_v33, 16  ;;  %v6986_v31 = vld [vmem:[#allocation3 + $0x98] sm:$0xf] }
 0x2d0   : > { %v12102_v32 = vcombine.low %v7854_v1, %v7863_v20  ;;  %v7190_v62 = vrot.slane %v7188_v8, 4  ;;  %v12054_v58 = vcombine.low %v7163_v30, %v7173_v39  ;;  %v7181_v21 = vor.u32 %v7180_v17, %v7177_v19  ;;  %v6987_v17 = vld [vmem:[#allocation3 + $0x9c] sm:$0x1] }
 0x2d1   : > { %v7872_v18 = vrot.slane %v7870_v4, 7  ;;  %v7879_v16 = vshrl.u32 %v16353_v28, 16  ;;  %v7882_v41 = vshll.u32 %v16353_v28, 16  ;;  %v7199_v45 = vshrl.u32 %v6982_v51, 16 }
 0x2d2   : > { %13117 = vmatmul.mubr.msk.bf16.gmra.mxu0 %vm6484_vm11, %v12102_v32  ;;  %v7191_v57 = vor.u32 %v7190_v62, %v7186_v13  ;;  %v7202_v44 = vshll.u32 %v6982_v51, 16  ;;  %13086 = vmatprep.mubr.msk.bf16.mxu1 %vm6484_vm11, %v12054_v58  ;;  %v7182_v38 = vrot.slane %v7181_v21, 4  ;;  %v7208_v49 = vshll.u32 %v6983_v27, 16  ;;  %v7708_v32 = vld [vmem:[#allocation3 + $0x90] sm:$0x8] }
 0x2d3   : > { %v7875_v22 = vor.u32 %v7873_v23, %v7872_v18  ;;  %v7877_v11 = vrot.slane %v7872_v18, 4  ;;  %v7881_v7 = vrot.slane %v7879_v16, 7  ;;  %v7201_v40 = vrot.slane %v7199_v45, 4 }
 0x2d4   : > { %v7192_v60 = vrot.slane %v7191_v57, 4  ;;  %v7204_v37 = vrot.slane %v7202_v44, 5  ;;  %v7187_v53 = vsel %vm13974_vm8, %v7182_v38, %v7186_v13  ;;  %v7212_v36 = vshrl.u32 %v6983_v27, 16  ;;  %v18475_v44 = vld [vmem:[#allocation27_spill] sm:$0xff] }
 0x2d5   : > { %v7876_v54 = vsel %vm13776_vm5, %v18471_v63, %v7875_v22  ;;  %v7884_v35 = vor.u32 %v7882_v41, %v7881_v7  ;;  %v7210_v14 = vrot.slane %v7208_v49, 5  ;;  %v18474_v61 = vshll.u32 %v18473_v34, 16  ;;  %v16390_v41 = vld [vmem:[#allocation3 + $0x94] sm:$0xf] }
 0x2d6   : > { %v7197_v55 = vsel %vm13974_vm8, %v7192_v60, %v18472_v12  ;;  %v7205_v52 = vor.u32 %v7204_v37, %v7201_v40  ;;  %v7214_v30 = vrot.slane %v7212_v36, 4  ;;  %v7892_v9 = vshrl.u32 %v16366_v10, 16  ;;  %v6989_v12 = vld [vmem:[#allocation3 + $0xa8] sm:$0xf] }
 0x2d7   : > { %v7220_v15 = vrot.slane %v18474_v61, 5  ;;  %v12055_v46 = vcombine.low %v7187_v53, %v7197_v55  ;;  %v7885_v43 = vsel %vm13776_vm5, %v7877_v11, %v7884_v35  ;;  %v7895_v29 = vshll.u32 %v16366_v10, 16  ;;  %v16397_v11 = vld [vmem:[#allocation3 + $0x98] sm:$0xf]  ;;  %v6988_v53 = vld [vmem:[#allocation3 + $0xa4] sm:$0xf] }
 0x2d8   : > { %v12103_v24 = vcombine.low %v7876_v54, %v7885_v43  ;;  %v7206_v6 = vrot.slane %v7205_v52, 4  ;;  %v7901_v1 = vshrl.u32 %v16373_v42, 16  ;;  %v7215_v19 = vor.u32 %v7214_v30, %v7210_v14  ;;  %v7711_v43 = vld [vmem:[#allocation3 + $0xa0] sm:$0x8] }
 0x2d9   : > { %13087 = vmatmul.mubr.msk.bf16.gmra.mxu1 %vm6484_vm11, %v12055_v46  ;;  %v7894_v8 = vrot.slane %v7892_v9, 7  ;;  %v7904_v20 = vshll.u32 %v16373_v42, 16  ;;  %v7223_v13 = vshrl.u32 %v6985_v5, 16  ;;  %v7226_v3 = vshll.u32 %v6985_v5, 16 }
 0x2da   : > { %13120 = vmatprep.mubr.msk.bf16.mxu0 %vm6484_vm11, %v12103_v24  ;;  %v7211_v4 = vsel %vm13974_vm8, %v7206_v6, %v7210_v14  ;;  %v7903_v51 = vrot.slane %v7901_v1, 7  ;;  %v7232_v39 = vshll.u32 %v6986_v31, 16  ;;  %v7216_v62 = vrot.slane %v7215_v19, 4  ;;  %v6990_v24 = vld [vmem:[#allocation3 + $0xac] sm:$0x1] }
 0x2db   : > { %v7897_v23 = vor.u32 %v7895_v29, %v7894_v8  ;;  %v7899_v58 = vrot.slane %v7894_v8, 4  ;;  %v7225_v21 = vrot.slane %v7223_v13, 4  ;;  %v7228_v16 = vrot.slane %v7226_v3, 5 }
 0x2dc   : > { %v7906_v18 = vor.u32 %v7904_v20, %v7903_v51  ;;  %v7234_v27 = vrot.slane %v7232_v39, 5  ;;  %v7236_v57 = vshrl.u32 %v6986_v31, 16  ;;  %v7221_v45 = vsel %vm13974_vm8, %v7216_v62, %v7220_v15  ;;  %v16409_v20 = vld [vmem:[#allocation3 + $0xa4] sm:$0xf] }
 0x2dd   : > { %v7898_v38 = vsel %vm13776_vm5, %v18475_v44, %v7897_v23  ;;  %v7242_v22 = vshll.u32 %v6987_v17, 16  ;;  %v7909_v7 = vshrl.u32 %v7708_v32, 16  ;;  %v12056_v60 = vcombine.low %v7211_v4, %v7221_v45  ;;  %v16415_v23 = vld [vmem:[#allocation3 + $0xa8] sm:$0xf] }
 0x2de   : > { %v7907_v40 = vsel %vm13776_vm5, %v7899_v58, %v7906_v18  ;;  %v7229_v37 = vor.u32 %v7228_v16, %v7225_v21  ;;  %v7238_v49 = vrot.slane %v7236_v57, 4  ;;  %v7914_v36 = vshrl.u32 %v16390_v41, 16 }
 0x2df   : > { %v12104_v63 = vcombine.low %v7898_v38, %v7907_v40  ;;  %v7244_v54 = vrot.slane %v7242_v22, 5  ;;  %v12088_v35 = vrot.slane %v7909_v7, 11  ;;  %13090 = vmatprep.mubr.msk.bf16.mxu1 %vm6484_vm11, %v12056_v60  ;;  %v7917_v14 = vshll.u32 %v16390_v41, 16 }
 0x2e0   : > { %v7230_v55 = vrot.slane %v7229_v37, 4  ;;  %v7239_v52 = vor.u32 %v7238_v49, %v7234_v27  ;;  %v7923_v34 = vshrl.u32 %v16397_v11, 16  ;;  %v7916_v61 = vrot.slane %v7914_v36, 7  ;;  %v6992_v37 = vld [vmem:[#allocation3 + $0xb8] sm:$0xf] }
 0x2e1   : > { %13121 = vmatmul.mubr.msk.bf16.gmra.mxu0 %vm6484_vm11, %v12104_v63  ;;  %v7926_v15 = vshll.u32 %v16397_v11, 16  ;;  %v7247_v5 = vshrl.u32 %v6988_v53, 16  ;;  %v7250_v46 = vshll.u32 %v6988_v53, 16  ;;  %v7256_v6 = vshll.u32 %v6989_v12, 16  ;;  %v6993_v63 = vld [vmem:[#allocation3 + $0xbc] sm:$0x1] }
 0x2e2   : > { %v7235_v30 = vsel %vm13974_vm8, %v7230_v55, %v7234_v27  ;;  %v7240_v9 = vrot.slane %v7239_v52, 4  ;;  %v7925_v31 = vrot.slane %v7923_v34, 7  ;;  %v7919_v29 = vor.u32 %v7917_v14, %v7916_v61  ;;  %v6991_v27 = vld [vmem:[#allocation3 + $0xb4] sm:$0xf]  ;;  %v7714_v14 = vld [vmem:[#allocation3 + $0xb0] sm:$0x8] }
 0x2e3   : > { %v7921_v1 = vrot.slane %v7916_v61, 4  ;;  %v7249_v19 = vrot.slane %v7247_v5, 4  ;;  %v7252_v8 = vrot.slane %v7250_v46, 5  ;;  %v7258_v4 = vrot.slane %v7256_v6, 5  ;;  %v16427_v46 = vld [vmem:[#allocation3 + $0xb4] sm:$0xf] }
 0x2e4   : > { %v7245_v17 = vsel %vm13974_vm8, %v7240_v9, %v7244_v54  ;;  %v7928_v13 = vor.u32 %v7926_v15, %v7925_v31  ;;  %v7260_v51 = vshrl.u32 %v6989_v12, 16  ;;  %v7920_v39 = vsel %vm13776_vm5, %v12088_v35, %v7919_v29 }
 0x2e5   : > { %v12057_v3 = vcombine.low %v7235_v30, %v7245_v17  ;;  %v7253_v32 = vor.u32 %v7252_v8, %v7249_v19  ;;  %v7266_v62 = vshll.u32 %v6990_v24, 16  ;;  %v7931_v18 = vshrl.u32 %v7711_v43, 16  ;;  %v16433_v19 = vld [vmem:[#allocation3 + $0xb8] sm:$0xf] }
 0x2e6   : > { %v7929_v58 = vsel %vm13776_vm5, %v7921_v1, %v7928_v13  ;;  %v7262_v21 = vrot.slane %v7260_v51, 4  ;;  %v7936_v16 = vshrl.u32 %v16409_v20, 16  ;;  %v7939_v38 = vshll.u32 %v16409_v20, 16  ;;  %v6994_v51 = vld [vmem:[#allocation3 + $0xc4] sm:$0xf] }
 0x2e7   : > { %13091 = vmatmul.mubr.msk.bf16.gmra.mxu1 %vm6484_vm11, %v12057_v3  ;;  %v12105_v57 = vcombine.low %v7920_v39, %v7929_v58  ;;  %v7254_v45 = vrot.slane %v7253_v32, 4  ;;  %v7268_v44 = vrot.slane %v7266_v62, 5  ;;  %v12089_v7 = vrot.slane %v7931_v18, 11  ;;  %v6995_v58 = vld [vmem:[#allocation3 + $0xc8] sm:$0xf] }
 0x2e8   : > { %v7263_v22 = vor.u32 %v7262_v21, %v7258_v4  ;;  %v7938_v60 = vrot.slane %v7936_v16, 7  ;;  %v7945_v40 = vshrl.u32 %v16415_v23, 16  ;;  %v7948_v53 = vshll.u32 %v16415_v23, 16 }
 0x2e9   : > { %13124 = vmatprep.mubr.msk.bf16.mxu0 %vm6484_vm11, %v12105_v57  ;;  %v7259_v49 = vsel %vm13974_vm8, %v7254_v45, %v7258_v4  ;;  %v7271_v54 = vshrl.u32 %v6991_v27, 16  ;;  %v7274_v35 = vshll.u32 %v6991_v27, 16  ;;  %v7280_v15 = vshll.u32 %v6992_v37, 16  ;;  %v6996_v57 = vld [vmem:[#allocation3 + $0xcc] sm:$0x1] }
 0x2ea   : > { %v7264_v36 = vrot.slane %v7263_v22, 4  ;;  %v7941_v12 = vor.u32 %v7939_v38, %v7938_v60  ;;  %v7943_v55 = vrot.slane %v7938_v60, 4  ;;  %v7947_v52 = vrot.slane %v7945_v40, 7 }
 0x2eb   : > { %v7273_v34 = vrot.slane %v7271_v54, 4  ;;  %v7276_v61 = vrot.slane %v7274_v35, 5  ;;  %v7284_v5 = vshrl.u32 %v6992_v37, 16  ;;  %v7290_v31 = vshll.u32 %v6993_v63, 16 }
 0x2ec   : > { %v7269_v43 = vsel %vm13974_vm8, %v7264_v36, %v7268_v44  ;;  %v7942_v30 = vsel %vm13776_vm5, %v12089_v7, %v7941_v12  ;;  %v7950_v9 = vor.u32 %v7948_v53, %v7947_v52  ;;  %v7282_v29 = vrot.slane %v7280_v15, 5  ;;  %v7717_v7 = vld [vmem:[#allocation3 + $0xc0] sm:$0x8]  ;;  %v16445_v53 = vld [vmem:[#allocation3 + $0xc4] sm:$0xf] }
 0x2ed   : > { %v12058_v24 = vcombine.low %v7259_v49, %v7269_v43  ;;  %v7277_v6 = vor.u32 %v7276_v61, %v7273_v34  ;;  %v7286_v1 = vrot.slane %v7284_v5, 4  ;;  %v7292_v17 = vrot.slane %v7290_v31, 5  ;;  %v16449_v12 = vld [vmem:[#allocation3 + $0xc8] sm:$0xf] }
 0x2ee   : > { %v7951_v8 = vsel %vm13776_vm5, %v7943_v55, %v7950_v9  ;;  %v7953_v13 = vshrl.u32 %v7714_v14, 16  ;;  %v7958_v4 = vshrl.u32 %v16427_v46, 16  ;;  %v7961_v62 = vshll.u32 %v16427_v46, 16 }
 0x2ef   : > { %13094 = vmatprep.mubr.msk.bf16.mxu1 %vm6484_vm11, %v12058_v24  ;;  %v12106_v3 = vcombine.low %v7942_v30, %v7951_v8  ;;  %v7278_v39 = vrot.slane %v7277_v6, 4  ;;  %v7287_v32 = vor.u32 %v7286_v1, %v7282_v29  ;;  %v7967_v16 = vshrl.u32 %v16433_v19, 16  ;;  %v6997_v6 = vld [vmem:[#allocation3 + $0xd4] sm:$0xf] }
 0x2f0   : > { %v12090_v21 = vrot.slane %v7953_v13, 11  ;;  %v7960_v18 = vrot.slane %v7958_v4, 7  ;;  %v7970_v27 = vshll.u32 %v16433_v19, 16  ;;  %v7295_v38 = vshrl.u32 %v6994_v51, 16  ;;  %v6998_v13 = vld [vmem:[#allocation3 + $0xd8] sm:$0xf] }
 0x2f1   : > { %13125 = vmatmul.mubr.msk.bf16.gmra.mxu0 %vm6484_vm11, %v12106_v3  ;;  %v7283_v45 = vsel %vm13974_vm8, %v7278_v39, %v7282_v29  ;;  %v7288_v44 = vrot.slane %v7287_v32, 4  ;;  %v7298_v22 = vshll.u32 %v6994_v51, 16  ;;  %v7969_v37 = vrot.slane %v7967_v16, 7 }
 0x2f2   : > { %v7963_v60 = vor.u32 %v7961_v62, %v7960_v18  ;;  %v7965_v40 = vrot.slane %v7960_v18, 4  ;;  %v7304_v49 = vshll.u32 %v6995_v58, 16  ;;  %v7297_v54 = vrot.slane %v7295_v38, 4  ;;  %v16463_v38 = vld [vmem:[#allocation3 + $0xd4] sm:$0xf] }
 0x2f3   : > { %v7293_v63 = vsel %vm13974_vm8, %v7288_v44, %v7292_v17  ;;  %v7300_v35 = vrot.slane %v7298_v22, 5  ;;  %v7308_v36 = vshrl.u32 %v6995_v58, 16  ;;  %v7972_v14 = vor.u32 %v7970_v27, %v7969_v37  ;;  %v6999_v58 = vld [vmem:[#allocation3 + $0xdc] sm:$0x1]  ;;  %v7720_v44 = vld [vmem:[#allocation3 + $0xd0] sm:$0x8] }
 0x2f4   : > { %v12059_v55 = vcombine.low %v7283_v45, %v7293_v63  ;;  %v7964_v52 = vsel %vm13776_vm5, %v12090_v21, %v7963_v60  ;;  %v7306_v34 = vrot.slane %v7304_v49, 5  ;;  %v7314_v5 = vshll.u32 %v6996_v57, 16  ;;  %v16467_v37 = vld [vmem:[#allocation3 + $0xd8] sm:$0xf] }
 0x2f5   : > { %v7301_v61 = vor.u32 %v7300_v35, %v7297_v54  ;;  %v7310_v15 = vrot.slane %v7308_v36, 4  ;;  %v7975_v43 = vshrl.u32 %v7717_v7, 16  ;;  %v7973_v30 = vsel %vm13776_vm5, %v7965_v40, %v7972_v14 }
 0x2f6   : > { %13095 = vmatmul.mubr.msk.bf16.gmra.mxu1 %vm6484_vm11, %v12059_v55  ;;  %v7980_v9 = vshrl.u32 %v16445_v53, 16  ;;  %v7983_v31 = vshll.u32 %v16445_v53, 16  ;;  %v7989_v24 = vshrl.u32 %v16449_v12, 16  ;;  %v12107_v29 = vcombine.low %v7964_v52, %v7973_v30  ;;  %v7001_v30 = vld [vmem:[#allocation3 + $0xe8] sm:$0xf] }
 0x2f7   : > { %v7302_v1 = vrot.slane %v7301_v61, 4  ;;  %v7311_v8 = vor.u32 %v7310_v15, %v7306_v34  ;;  %v7316_v17 = vrot.slane %v7314_v5, 5  ;;  %v12091_v4 = vrot.slane %v7975_v43, 11 }
 0x2f8   : > { %v7982_v51 = vrot.slane %v7980_v9, 7  ;;  %v7991_v3 = vrot.slane %v7989_v24, 7  ;;  %v7992_v39 = vshll.u32 %v16449_v12, 16  ;;  %13128 = vmatprep.mubr.msk.bf16.mxu0 %vm6484_vm11, %v12107_v29  ;;  %v7319_v21 = vshrl.u32 %v6997_v6, 16 }
 0x2f9   : > { %v7307_v32 = vsel %vm13974_vm8, %v7302_v1, %v7306_v34  ;;  %v7312_v62 = vrot.slane %v7311_v8, 4  ;;  %v7322_v18 = vshll.u32 %v6997_v6, 16  ;;  %v7328_v45 = vshll.u32 %v6998_v13, 16  ;;  %v7000_v34 = vld [vmem:[#allocation3 + $0xe4] sm:$0xf] }
 0x2fa   : > { %v7985_v16 = vor.u32 %v7983_v31, %v7982_v51  ;;  %v7987_v27 = vrot.slane %v7982_v51, 4  ;;  %v7994_v57 = vor.u32 %v7992_v39, %v7991_v3  ;;  %v7321_v7 = vrot.slane %v7319_v21, 4  ;;  %v7002_v51 = vld [vmem:[#allocation3 + $0xec] sm:$0x1] }
 0x2fb   : > { %v7317_v22 = vsel %vm13974_vm8, %v7312_v62, %v7316_v17  ;;  %v7324_v60 = vrot.slane %v7322_v18, 5  ;;  %v7332_v40 = vshrl.u32 %v6998_v13, 16  ;;  %v7330_v35 = vrot.slane %v7328_v45, 5  ;;  %v7723_v18 = vld [vmem:[#allocation3 + $0xe0] sm:$0x8] }
 0x2fc   : > { %v12060_v49 = vcombine.low %v7307_v32, %v7317_v22  ;;  %v7986_v63 = vsel %vm13776_vm5, %v12091_v4, %v7985_v16  ;;  %v7995_v54 = vsel %vm13776_vm5, %v7987_v27, %v7994_v57  ;;  %v7338_v14 = vshll.u32 %v6999_v58, 16  ;;  %v16481_v16 = vld [vmem:[#allocation3 + $0xe4] sm:$0xf]  ;;  %v16485_v22 = vld [vmem:[#allocation3 + $0xe8] sm:$0xf] }
 0x2fd   : > { %v12108_v36 = vcombine.low %v7986_v63, %v7995_v54  ;;  %v7325_v55 = vor.u32 %v7324_v60, %v7321_v7  ;;  %v7334_v52 = vrot.slane %v7332_v40, 4  ;;  %v7997_v61 = vshrl.u32 %v7720_v44, 16 }
 0x2fe   : > { %13098 = vmatprep.mubr.msk.bf16.mxu1 %vm6484_vm11, %v12060_v49  ;;  %v8002_v15 = vshrl.u32 %v16463_v38, 16  ;;  %v8005_v5 = vshll.u32 %v16463_v38, 16  ;;  %v8011_v43 = vshrl.u32 %v16467_v37, 16  ;;  %v7340_v24 = vrot.slane %v7338_v14, 5 }
 0x2ff   : > { %13129 = vmatmul.mubr.msk.bf16.gmra.mxu0 %vm6484_vm11, %v12108_v36  ;;  %v7326_v9 = vrot.slane %v7325_v55, 4  ;;  %v7335_v31 = vor.u32 %v7334_v52, %v7330_v35  ;;  %v8014_v6 = vshll.u32 %v16467_v37, 16  ;;  %v12092_v29 = vrot.slane %v7997_v61, 11  ;;  %v7003_v55 = vld [vmem:[#allocation3 + $0xf4] sm:$0xf] }
 0x300   : > { %v8004_v1 = vrot.slane %v8002_v15, 7  ;;  %v8013_v8 = vrot.slane %v8011_v43, 7  ;;  %v7343_v17 = vshrl.u32 %v7000_v34, 16  ;;  %v7346_v3 = vshll.u32 %v7000_v34, 16  ;;  %v7004_v15 = vld [vmem:[#allocation3 + $0xf8] sm:$0xf] }
 0x301   : > { %v7331_v13 = vsel %vm13974_vm8, %v7326_v9, %v7330_v35  ;;  %v7336_v4 = vrot.slane %v7335_v31, 4  ;;  %v7352_v39 = vshll.u32 %v7001_v30, 16  ;;  %v7356_v44 = vshrl.u32 %v7001_v30, 16 }
 0x302   : > { %v8007_v32 = vor.u32 %v8005_v5, %v8004_v1  ;;  %v8009_v62 = vrot.slane %v8004_v1, 4  ;;  %v8016_v58 = vor.u32 %v8014_v6, %v8013_v8  ;;  %v7345_v21 = vrot.slane %v7343_v17, 4  ;;  %v7005_v17 = vld [vmem:[#allocation3 + $0xfc] sm:$0x1] }
 0x303   : > { %v7341_v27 = vsel %vm13974_vm8, %v7336_v4, %v7340_v24  ;;  %v7348_v57 = vrot.slane %v7346_v3, 5  ;;  %v7354_v45 = vrot.slane %v7352_v39, 5  ;;  %v7362_v49 = vshll.u32 %v7002_v51, 16 }
 0x304   : > { %v12061_v7 = vcombine.low %v7331_v13, %v7341_v27  ;;  %v8008_v60 = vsel %vm13776_vm5, %v12092_v29, %v8007_v32  ;;  %v8017_v40 = vsel %vm13776_vm5, %v8009_v62, %v8016_v58  ;;  %v7358_v35 = vrot.slane %v7356_v44, 4  ;;  %v7726_v62 = vld [vmem:[#allocation3 + $0xf0] sm:$0x8]  ;;  %v16499_v58 = vld [vmem:[#allocation3 + $0xf4] sm:$0xf] }
 0x305   : > { %v12109_v63 = vcombine.low %v8008_v60, %v8017_v40  ;;  %v7349_v54 = vor.u32 %v7348_v57, %v7345_v21  ;;  %v8019_v36 = vshrl.u32 %v7723_v18, 16  ;;  %v7364_v52 = vrot.slane %v7362_v49, 5  ;;  %v16503_v44 = vld [vmem:[#allocation3 + $0xf8] sm:$0xf] }
 0x306   : > { %13099 = vmatmul.mubr.msk.bf16.gmra.mxu1 %vm6484_vm11, %v12061_v7  ;;  %v8024_v14 = vshrl.u32 %v16481_v16, 16  ;;  %v8027_v34 = vshll.u32 %v16481_v16, 16  ;;  %v8033_v61 = vshrl.u32 %v16485_v22, 16  ;;  %v7359_v43 = vor.u32 %v7358_v35, %v7354_v45 }
 0x307   : > { %13132 = vmatprep.mubr.msk.bf16.mxu0 %vm6484_vm11, %v12109_v63  ;;  %v7350_v5 = vrot.slane %v7349_v54, 4  ;;  %v12093_v30 = vrot.slane %v8019_v36, 11  ;;  %v8036_v9 = vshll.u32 %v16485_v22, 16  ;;  %v7367_v6 = vshrl.u32 %v7003_v55, 16  ;;  %v7729_v36 = vld [vmem:[#allocation3 + $0x100] sm:$0x8] }
 0x308   : > { %v8026_v31 = vrot.slane %v8024_v14, 7  ;;  %v8035_v24 = vrot.slane %v8033_v61, 7  ;;  %v7370_v29 = vshll.u32 %v7003_v55, 16  ;;  %v7360_v8 = vrot.slane %v7359_v43, 4  ;;  %v16513_v61 = vld [vmem:[#allocation3 + $0x104] sm:$0xf] }
 0x309   : > { %v7355_v1 = vsel %vm13974_vm8, %v7350_v5, %v7354_v45  ;;  %v7376_v13 = vshll.u32 %v7004_v15, 16  ;;  %v7380_v4 = vshrl.u32 %v7004_v15, 16  ;;  %v7369_v32 = vrot.slane %v7367_v6, 4  ;;  %v13469_v6 = vld [vmem:[#allocation3 + $0x14] sm:$0xf] }
 0x30a   : > { %v8029_v51 = vor.u32 %v8027_v34, %v8026_v31  ;;  %v8031_v3 = vrot.slane %v8026_v31, 4  ;;  %v8038_v39 = vor.u32 %v8036_v9, %v8035_v24  ;;  %v7365_v21 = vsel %vm13974_vm8, %v7360_v8, %v7364_v52  ;;  %v16520_v9 = vld [vmem:[%s18152_s3 + $0x1c] sm:$0xf]  ;;  %v13471_v8 = vld [vmem:[%s18152_s3 + $0x14] sm:$0xf] }
 0x30b   : > { %v7372_v18 = vrot.slane %v7370_v29, 5  ;;  %v7378_v27 = vrot.slane %v7376_v13, 5  ;;  %v7382_v57 = vrot.slane %v7380_v4, 4  ;;  %v12062_v45 = vcombine.low %v7355_v1, %v7365_v21  ;;  %v13470_v29 = vld [vmem:[#allocation3 + $0x18] sm:$0xf] }
 0x30c   : > { %v8030_v7 = vsel %vm13776_vm5, %v12093_v30, %v8029_v51  ;;  %v8039_v60 = vsel %vm13776_vm5, %v8031_v3, %v8038_v39  ;;  %v7386_v40 = vshll.u32 %v7005_v17, 16  ;;  %v8041_v35 = vshrl.u32 %v7726_v62, 16  ;;  %v16526_v13 = vld [vmem:[#allocation3 + $0x108] sm:$0xf] }
 0x30d   : > { %v12110_v49 = vcombine.low %v8030_v7, %v8039_v60  ;;  %v7373_v63 = vor.u32 %v7372_v18, %v7369_v32  ;;  %v7383_v54 = vor.u32 %v7382_v57, %v7378_v27  ;;  %13102 = vmatprep.mubr.msk.bf16.mxu1 %vm6484_vm11, %v12062_v45  ;;  %v8046_v52 = vshrl.u32 %v16499_v58, 16  ;;  %v8704_v57 = vld [vmem:[#allocation3 + $0x14] sm:$0xf] }
 0x30e   : > { %v7388_v55 = vrot.slane %v7386_v40, 5  ;;  %v8049_v14 = vshll.u32 %v16499_v58, 16  ;;  %v8055_v34 = vshrl.u32 %v16503_v44, 16  ;;  %v12094_v43 = vrot.slane %v8041_v35, 11  ;;  %v8705_v40 = vld [vmem:[#allocation3 + $0x18] sm:$0xf] }
 0x30f   : > { %13133 = vmatmul.mubr.msk.bf16.gmra.mxu0 %vm6484_vm11, %v12110_v49  ;;  %v7374_v15 = vrot.slane %v7373_v63, 4  ;;  %v7384_v5 = vrot.slane %v7383_v54, 4  ;;  %v8058_v30 = vshll.u32 %v16503_v44, 16  ;;  %v8048_v31 = vrot.slane %v8046_v52, 7  ;;  %v13472_v35 = vld [vmem:[#allocation3 + $0x24] sm:$0xf] }
 0x310   : > { %v8057_v24 = vrot.slane %v8055_v34, 7  ;;  %v12130_v1 = vcombine.low %v13469_v6, %v13470_v29  ;;  %v9235_v17 = vsel %vm6533_vm9, %v13471_v8, 0  ;;  %v8063_v3 = vshrl.u32 %v7729_v36, 16  ;;  %v13473_v36 = vld [vmem:[#allocation3 + $0x28] sm:$0xf] }
 0x311   : > { %v7379_v4 = vsel %vm13974_vm8, %v7374_v15, %v7378_v27  ;;  %v7389_v51 = vsel %vm13974_vm8, %v7384_v5, %v7388_v55  ;;  %13175 = vmatpush3.bf16.msra.mxu0 %v9235_v17  ;;  %v8068_v39 = vshrl.u32 %v16513_v61, 16  ;;  %v8051_v62 = vor.u32 %v8049_v14, %v8048_v31  ;;  %v8706_v52 = vld [vmem:[#allocation3 + $0x1c] sm:$0x1] }
 0x312   : > { %v12063_v32 = vcombine.low %v7379_v4, %v7389_v51  ;;  %v8053_v21 = vrot.slane %v8048_v31, 4  ;;  %v8060_v18 = vor.u32 %v8058_v30, %v8057_v24  ;;  %13339 = vmatprep.subr.msk.bf16.mxu0 %vm6533_vm9, %v16520_v9  ;;  %v12095_v45 = vrot.slane %v8063_v3, 11  ;;  %v8708_v51 = vld [vmem:[#allocation3 + $0x28] sm:$0xf] }
 0x313   : > { %v8070_v7 = vrot.slane %v8068_v39, 7  ;;  %v8071_v60 = vshll.u32 %v16513_v61, 16  ;;  %v8077_v27 = vshrl.u32 %v16526_v13, 16  ;;  %v8052_v49 = vsel %vm13776_vm5, %v12094_v43, %v8051_v62  ;;  %v8707_v43 = vld [vmem:[#allocation3 + $0x24] sm:$0xf] }
 0x314   : > { %13103 = vmatmul.mubr.msk.bf16.gmra.mxu1 %vm6484_vm11, %v12063_v32  ;;  %v8061_v63 = vsel %vm13776_vm5, %v8053_v21, %v8060_v18  ;;  %v8080_v54 = vshll.u32 %v16526_v13, 16  ;;  %v12131_v55 = vcombine.low %v13472_v35, %v13473_v36  ;;  %v8753_v30 = vshrl.u32 %v8704_v57, 16  ;;  %v8709_v62 = vld [vmem:[#allocation3 + $0x2c] sm:$0x1] }
 0x315   : > { %v12111_v14 = vcombine.low %v8052_v49, %v8061_v63  ;;  %13142 = vmatprep.mubr.msk.bf16.mxu1 %vm6484_vm11, %v12130_v1  ;;  %v8073_v34 = vor.u32 %v8071_v60, %v8070_v7  ;;  %v8075_v15 = vrot.slane %v8070_v7, 4  ;;  %v8079_v5 = vrot.slane %v8077_v27, 7  ;;  %v13475_v7 = vld [vmem:[#allocation3 + $0x38] sm:$0xf] }
 0x316   : > { %v8756_v31 = vshll.u32 %v8704_v57, 16  ;;  %v8762_v24 = vshll.u32 %v8705_v40, 16  ;;  %v8766_v6 = vshrl.u32 %v8705_v40, 16  ;;  %v8772_v17 = vshll.u32 %v8706_v52, 16  ;;  %v13474_v57 = vld [vmem:[#allocation3 + $0x34] sm:$0xf] }
 0x317   : > { %13136 = vmatprep.mubr.msk.bf16.mxu0 %vm6484_vm11, %v12111_v14  ;;  %v8074_v29 = vsel %vm13776_vm5, %v12095_v45, %v8073_v34  ;;  %v8082_v8 = vor.u32 %v8080_v54, %v8079_v5  ;;  %v9930_v4 = vsel %vm6533_vm9, %v16277_v48, 0  ;;  %v8755_v1 = vrot.slane %v8753_v30, 4  ;;  %v8710_v54 = vld [vmem:[#allocation3 + $0x34] sm:$0xf]  ;;  %v16554_v14 = vld [vmem:[%s18152_s3 + $0x20] sm:$0xf] }
 0x318   : > { %v8758_v3 = vrot.slane %v8756_v31, 5  ;;  %v8764_v39 = vrot.slane %v8762_v24, 5  ;;  %v8768_v32 = vrot.slane %v8766_v6, 4  ;;  %v8774_v18 = vrot.slane %v8772_v17, 5  ;;  %v8711_v31 = vld [vmem:[#allocation3 + $0x38] sm:$0xf] }
 0x319   : > { %v8083_v21 = vsel %vm13776_vm5, %v8075_v15, %v8082_v8  ;;  %v12132_v60 = vcombine.low %v13474_v57, %v13475_v7  ;;  %v8777_v27 = vshrl.u32 %v8707_v43, 16  ;;  %v8780_v63 = vshll.u32 %v8707_v43, 16 }
 0x31a   : > { %v12112_v45 = vcombine.low %v8074_v29, %v8083_v21  ;;  %v8759_v40 = vor.u32 %v8758_v3, %v8755_v1  ;;  %v8769_v49 = vor.u32 %v8768_v32, %v8764_v39  ;;  %v8786_v35 = vshll.u32 %v8708_v51, 16  ;;  %v8712_v29 = vld [vmem:[#allocation3 + $0x3c] sm:$0x1]  ;;  %v8713_v3 = vld [vmem:[#allocation3 + $0x44] sm:$0xf] }
 0x31b   : > { %v8779_v48 = vrot.slane %v8777_v27, 4  ;;  %v8790_v36 = vshrl.u32 %v8708_v51, 16  ;;  %v8796_v52 = vshll.u32 %v8709_v62, 16  ;;  %v8782_v5 = vrot.slane %v8780_v63, 5 }
 0x31c   : > { %13137 = vmatmul.mubr.msk.bf16.gmra.mxu0 %vm6484_vm11, %v12112_v45  ;;  %13143 = vmatmul.mubr.msk.bf16.vlgmr.msra.gmra.mxu1 %vm6484_vm11, %v12131_v55  ;;  %v8760_v34 = vrot.slane %v8759_v40, 4  ;;  %v8770_v15 = vrot.slane %v8769_v49, 4  ;;  %v12133_v30 = vcombine.low %v16283_v50, %v16289_v59  ;;  %v8788_v24 = vrot.slane %v8786_v35, 5 }
 0x31d   : > { %13209 = vmatpush3.bf16.msra.mxu1 %v9930_v4  ;;  %13146 = vmatprep.mubr.msk.bf16.mxu1 %vm6484_vm11, %v12132_v60  ;;  %v8792_v6 = vrot.slane %v8790_v36, 4  ;;  %v8798_v43 = vrot.slane %v8796_v52, 5  ;;  %v8801_v8 = vshrl.u32 %v8710_v54, 16  ;;  %v8783_v51 = vor.u32 %v8782_v5, %v8779_v48  ;;  %v8714_v60 = vld [vmem:[#allocation3 + $0x48] sm:$0xf] }
 0x31e   : > { %v8765_v17 = vsel %vm13974_vm8, %v8760_v34, %v8764_v39  ;;  %v8775_v55 = vsel %vm13974_vm8, %v8770_v15, %v8774_v18  ;;  %v8804_v1 = vshll.u32 %v8710_v54, 16  ;;  %13340 = vmatprep.subr.msk.bf16.mxu1 %vm6533_vm9, %v16554_v14  ;;  %v8810_v32 = vshll.u32 %v8711_v31, 16  ;;  %v8715_v48 = vld [vmem:[#allocation3 + $0x4c] sm:$0x1]  ;;  %v8716_v15 = vld [vmem:[#allocation3 + $0x54] sm:$0xf] }
 0x31f   : > { %v12163_v50 = vcombine.low %v8765_v17, %v8775_v55  ;;  %v8793_v59 = vor.u32 %v8792_v6, %v8788_v24  ;;  %v8803_v4 = vrot.slane %v8801_v8, 4  ;;  %v8784_v62 = vrot.slane %v8783_v51, 4 }
 0x320   : > { %v8806_v21 = vrot.slane %v8804_v1, 5  ;;  %v8814_v57 = vshrl.u32 %v8711_v31, 16  ;;  %v8820_v7 = vshll.u32 %v8712_v29, 16  ;;  %v8812_v27 = vrot.slane %v8810_v32, 5 }
 0x321   : > { %13176 = vmatprep.mubr.msk.bf16.mxu0 %vm6484_vm11, %v12163_v50  ;;  %v8794_v39 = vrot.slane %v8793_v59, 4  ;;  %v12134_v18 = vcombine.low %v16304_v47, %v16313_v25  ;;  %v8825_v45 = vshrl.u32 %v8713_v3, 16  ;;  %v8789_v40 = vsel %vm13974_vm8, %v8784_v62, %v8788_v24  ;;  %v8717_v24 = vld [vmem:[#allocation3 + $0x58] sm:$0xf] }
 0x322   : > { %v8807_v49 = vor.u32 %v8806_v21, %v8803_v4  ;;  %v8816_v63 = vrot.slane %v8814_v57, 4  ;;  %v8822_v54 = vrot.slane %v8820_v7, 5  ;;  %v8828_v52 = vshll.u32 %v8713_v3, 16  ;;  %v16574_v5 = vpop.f32.mrf.mxu1  ;;  %v8718_v4 = vld [vmem:[#allocation3 + $0x5c] sm:$0x1] }
 0x323   : > { %v8799_v35 = vsel %vm13974_vm8, %v8794_v39, %v8798_v43  ;;  %v8827_v36 = vrot.slane %v8825_v45, 4  ;;  %v8834_v34 = vshll.u32 %v8714_v60, 16  ;;  %v8838_v6 = vshrl.u32 %v8714_v60, 16  ;;  %v8719_v60 = vld [vmem:[#allocation3 + $0x64] sm:$0xf] }
 0x324   : > { %v12164_v31 = vcombine.low %v8789_v40, %v8799_v35  ;;  %13147 = vmatmul.mubr.msk.bf16.gmra.mxu1 %vm6484_vm11, %v12133_v30  ;;  %v8808_v47 = vrot.slane %v8807_v49, 4  ;;  %v8817_v25 = vor.u32 %v8816_v63, %v8812_v27  ;;  %v8830_v29 = vrot.slane %v8828_v52, 5  ;;  %v16580_v55 = vpop.f32.mrf.mxu1  ;;  %v8720_v40 = vld [vmem:[#allocation3 + $0x68] sm:$0xf] }
 0x325   : > { %13150 = vmatprep.mubr.msk.bf16.mxu1 %vm6484_vm11, %v12134_v18  ;;  %v8836_v8 = vrot.slane %v8834_v34, 5  ;;  %v8844_v17 = vshll.u32 %v8715_v48, 16  ;;  %v12135_v43 = vcombine.low %v16326_v0, %v16328_v26  ;;  %v8840_v1 = vrot.slane %v8838_v6, 4  ;;  %v8721_v34 = vld [vmem:[#allocation3 + $0x6c] sm:$0x1] }
 0x326   : > { %13177 = vmatmul.mubr.msk.bf16.vlgmr.msra.gmra.mxu0 %vm6484_vm11, %v12164_v31  ;;  %v8813_v51 = vsel %vm13974_vm8, %v8808_v47, %v8812_v27  ;;  %v8818_v30 = vrot.slane %v8817_v25, 4  ;;  %v8849_v3 = vshrl.u32 %v8716_v15, 16  ;;  %v8831_v50 = vor.u32 %v8830_v29, %v8827_v36  ;;  %v16585_v21 = vpop.f32.mrf.mxu1 }
 0x327   : > { %v8846_v59 = vrot.slane %v8844_v17, 5  ;;  %v8852_v32 = vshll.u32 %v8716_v15, 16  ;;  %v8858_v62 = vshll.u32 %v8717_v24, 16  ;;  %v8841_v26 = vor.u32 %v8840_v1, %v8836_v8 }
 0x328   : > { %v8823_v0 = vsel %vm13974_vm8, %v8818_v30, %v8822_v54  ;;  %v8851_v57 = vrot.slane %v8849_v3, 4  ;;  %v8862_v7 = vshrl.u32 %v8717_v24, 16  ;;  %v8832_v18 = vrot.slane %v8831_v50, 4  ;;  %v16591_v36 = vpop.f32.mrf.mxu1  ;;  %v8722_v24 = vld [vmem:[#allocation3 + $0x74] sm:$0xf] }
 0x329   : > { %v12165_v39 = vcombine.low %v8813_v51, %v8823_v0  ;;  %v8854_v27 = vrot.slane %v8852_v32, 5  ;;  %v8860_v45 = vrot.slane %v8858_v62, 5  ;;  %v8842_v49 = vrot.slane %v8841_v26, 4  ;;  %v8723_v32 = vld [vmem:[#allocation3 + $0x78] sm:$0xf] }
 0x32a   : > { %v8864_v63 = vrot.slane %v8862_v7, 4  ;;  %v8868_v48 = vshll.u32 %v8718_v4, 16  ;;  %v12136_v35 = vcombine.low %v16345_v33, %v16353_v28  ;;  %v8837_v54 = vsel %vm13974_vm8, %v8832_v18, %v8836_v8  ;;  %v16596_v47 = vpop.f32.mrf.mxu0  ;;  %v8724_v26 = vld [vmem:[#allocation3 + $0x7c] sm:$0x1] }
 0x32b   : > { %13180 = vmatprep.mubr.msk.bf16.mxu0 %vm6484_vm11, %v12165_v39  ;;  %v8855_v52 = vor.u32 %v8854_v27, %v8851_v57  ;;  %v8873_v15 = vshrl.u32 %v8719_v60, 16  ;;  %v8876_v31 = vshll.u32 %v8719_v60, 16  ;;  %v8847_v25 = vsel %vm13974_vm8, %v8842_v49, %v8846_v59 }
 0x32c   : > { %13151 = vmatmul.mubr.msk.bf16.gmra.mxu1 %vm6484_vm11, %v12135_v43  ;;  %v8865_v6 = vor.u32 %v8864_v63, %v8860_v45  ;;  %v8870_v33 = vrot.slane %v8868_v48, 5  ;;  %v8882_v28 = vshll.u32 %v8720_v40, 16  ;;  %v12166_v29 = vcombine.low %v8837_v54, %v8847_v25  ;;  %v16602_v30 = vpop.f32.mrf.mxu0 }
 0x32d   : > { %v8856_v17 = vrot.slane %v8855_v52, 4  ;;  %13154 = vmatprep.mubr.msk.bf16.mxu1 %vm6484_vm11, %v12136_v35  ;;  %v8875_v8 = vrot.slane %v8873_v15, 4  ;;  %v8878_v51 = vrot.slane %v8876_v31, 5  ;;  %v8886_v50 = vshrl.u32 %v8720_v40, 16  ;;  %v16604_v59 = vpop.f32.mrf.mxu1  ;;  %v8725_v40 = vld [vmem:[#allocation3 + $0x84] sm:$0xf] }
 0x32e   : > { %v8866_v1 = vrot.slane %v8865_v6, 4  ;;  %v8884_v3 = vrot.slane %v8882_v28, 5  ;;  %v8892_v4 = vshll.u32 %v8721_v34, 16  ;;  %13181 = vmatmul.mubr.msk.bf16.gmra.mxu0 %vm6484_vm11, %v12166_v29  ;;  %v12137_v0 = vcombine.low %v16366_v10, %v16373_v42  ;;  %v16611_v7 = vpop.f32.mrf.mxu0  ;;  %v8726_v34 = vld [vmem:[#allocation3 + $0x88] sm:$0xf] }
 0x32f   : > { %v8861_v43 = vsel %vm13974_vm8, %v8856_v17, %v8860_v45  ;;  %v8879_v62 = vor.u32 %v8878_v51, %v8875_v8  ;;  %v8897_v57 = vshrl.u32 %v8722_v24, 16  ;;  %v8888_v39 = vrot.slane %v8886_v50, 4  ;;  %v16615_v49 = vpop.f32.mrf.mxu1  ;;  %v8727_v28 = vld [vmem:[#allocation3 + $0x8c] sm:$0x1] }
 0x330   : > { %v8871_v60 = vsel %vm13974_vm8, %v8866_v1, %v8870_v33  ;;  %v8894_v18 = vrot.slane %v8892_v4, 5  ;;  %v8900_v27 = vshll.u32 %v8722_v24, 16  ;;  %v8906_v35 = vshll.u32 %v8723_v32, 16  ;;  %v16619_v31 = vpop.f32.mrf.mxu0 }
 0x331   : > { %v12167_v63 = vcombine.low %v8861_v43, %v8871_v60  ;;  %v8880_v48 = vrot.slane %v8879_v62, 4  ;;  %v8899_v45 = vrot.slane %v8897_v57, 4  ;;  %v8889_v54 = vor.u32 %v8888_v39, %v8884_v3  ;;  %v16617_v15 = vpop.f32.mrf.mxu1  ;;  %v8729_v57 = vld [vmem:[#allocation3 + $0x98] sm:$0xf] }
 0x332   : > { %v8902_v52 = vrot.slane %v8900_v27, 5  ;;  %v8910_v10 = vshrl.u32 %v8723_v32, 16  ;;  %v8916_v42 = vshll.u32 %v8724_v26, 16  ;;  %v8908_v6 = vrot.slane %v8906_v35, 5  ;;  %v8728_v26 = vld [vmem:[#allocation3 + $0x94] sm:$0xf] }
 0x333   : > { %13184 = vmatprep.mubr.msk.bf16.mxu0 %vm6484_vm11, %v12167_v63  ;;  %v8885_v25 = vsel %vm13974_vm8, %v8880_v48, %v8884_v3  ;;  %v12138_v33 = vcombine.low %v16390_v41, %v16397_v11  ;;  %v8921_v24 = vshrl.u32 %v8725_v40, 16  ;;  %v8890_v29 = vrot.slane %v8889_v54, 4  ;;  %v16628_v43 = vpop.f32.mrf.mxu1  ;;  %v8730_v48 = vld [vmem:[#allocation3 + $0x9c] sm:$0x1] }
 0x334   : > { %13155 = vmatmul.mubr.msk.bf16.gmra.mxu1 %vm6484_vm11, %v12137_v0  ;;  %v8903_v17 = vor.u32 %v8902_v52, %v8899_v45  ;;  %v8912_v8 = vrot.slane %v8910_v10, 4  ;;  %v8918_v51 = vrot.slane %v8916_v42, 5  ;;  %v8924_v50 = vshll.u32 %v8725_v40, 16 }
 0x335   : > { %13158 = vmatprep.mubr.msk.bf16.mxu1 %vm6484_vm11, %v12138_v33  ;;  %v8923_v1 = vrot.slane %v8921_v24, 4  ;;  %v8930_v4 = vshll.u32 %v8726_v34, 16  ;;  %v8934_v32 = vshrl.u32 %v8726_v34, 16  ;;  %v8895_v3 = vsel %vm13974_vm8, %v8890_v29, %v8894_v18  ;;  %v16632_v0 = vpop.f32.mrf.mxu0  ;;  %v8731_v29 = vld [vmem:[#allocation3 + $0xa4] sm:$0xf] }
 0x336   : > { %v8904_v41 = vrot.slane %v8903_v17, 4  ;;  %v8913_v11 = vor.u32 %v8912_v8, %v8908_v6  ;;  %v8940_v62 = vshll.u32 %v8727_v28, 16  ;;  %v12168_v60 = vcombine.low %v8885_v25, %v8895_v3 }
 0x337   : > { %v8926_v39 = vrot.slane %v8924_v50, 5  ;;  %v8932_v27 = vrot.slane %v8930_v4, 5  ;;  %v8936_v63 = vrot.slane %v8934_v32, 4  ;;  %v12139_v18 = vcombine.low %v16409_v20, %v16415_v23  ;;  %v16638_v54 = vpop.f32.mrf.mxu0  ;;  %v8732_v4 = vld [vmem:[#allocation3 + $0xa8] sm:$0xf] }
 0x338   : > { %v8909_v40 = vsel %vm13974_vm8, %v8904_v41, %v8908_v6  ;;  %v8914_v45 = vrot.slane %v8913_v11, 4  ;;  %v8942_v35 = vrot.slane %v8940_v62, 5  ;;  %13185 = vmatmul.mubr.msk.bf16.gmra.mxu0 %vm6484_vm11, %v12168_v60  ;;  %v8945_v42 = vshrl.u32 %v8728_v26, 16  ;;  %v16641_v25 = vpop.f32.mrf.mxu1 }
 0x339   : > { %v8927_v52 = vor.u32 %v8926_v39, %v8923_v1  ;;  %v8937_v10 = vor.u32 %v8936_v63, %v8932_v27  ;;  %v8948_v34 = vshll.u32 %v8728_v26, 16  ;;  %v8954_v28 = vshll.u32 %v8729_v57, 16  ;;  %v16645_v17 = vpop.f32.mrf.mxu0 }
 0x33a   : > { %v8919_v33 = vsel %vm13974_vm8, %v8914_v45, %v8918_v51  ;;  %v8958_v6 = vshrl.u32 %v8729_v57, 16  ;;  %v8964_v24 = vshll.u32 %v8730_v48, 16  ;;  %v8947_v50 = vrot.slane %v8945_v42, 4  ;;  %v16647_v1 = vpop.f32.mrf.mxu1  ;;  %v8733_v51 = vld [vmem:[#allocation3 + $0xac] sm:$0x1] }
 0x33b   : > { %v12169_v20 = vcombine.low %v8909_v40, %v8919_v33  ;;  %v8928_v23 = vrot.slane %v8927_v52, 4  ;;  %v8938_v8 = vrot.slane %v8937_v10, 4  ;;  %v8950_v32 = vrot.slane %v8948_v34, 5  ;;  %v16650_v62 = vpop.f32.mrf.mxu0  ;;  %v8734_v52 = vld [vmem:[#allocation3 + $0xb4] sm:$0xf] }
 0x33c   : > { %13159 = vmatmul.mubr.msk.bf16.gmra.mxu1 %vm6484_vm11, %v12139_v18  ;;  %v8956_v3 = vrot.slane %v8954_v28, 5  ;;  %v8960_v41 = vrot.slane %v8958_v6, 4  ;;  %v8966_v11 = vrot.slane %v8964_v24, 5  ;;  %v12140_v60 = vcombine.low %v16427_v46, %v16433_v19  ;;  %v16659_v63 = vpop.f32.mrf.mxu1  ;;  %v8735_v19 = vld [vmem:[#allocation3 + $0xb8] sm:$0xf] }
 0x33d   : > { %13188 = vmatprep.mubr.msk.bf16.mxu0 %vm6484_vm11, %v12169_v20  ;;  %v8933_v26 = vsel %vm13974_vm8, %v8928_v23, %v8932_v27  ;;  %v8943_v57 = vsel %vm13974_vm8, %v8938_v8, %v8942_v35  ;;  %v8969_v39 = vshrl.u32 %v8731_v29, 16  ;;  %v8951_v40 = vor.u32 %v8950_v32, %v8947_v50  ;;  %v8736_v8 = vld [vmem:[#allocation3 + $0xbc] sm:$0x1] }
 0x33e   : > { %v12170_v48 = vcombine.low %v8933_v26, %v8943_v57  ;;  %v8961_v45 = vor.u32 %v8960_v41, %v8956_v3  ;;  %v8972_v18 = vshll.u32 %v8731_v29, 16  ;;  %13162 = vmatprep.mubr.msk.bf16.mxu1 %vm6484_vm11, %v12140_v60  ;;  %v8978_v42 = vshll.u32 %v8732_v4, 16  ;;  %v16664_v6 = vpop.f32.mrf.mxu1 }
 0x33f   : > { %v8971_v10 = vrot.slane %v8969_v39, 4  ;;  %v8982_v34 = vshrl.u32 %v8732_v4, 16  ;;  %v8988_v27 = vshll.u32 %v8733_v51, 16  ;;  %v8952_v33 = vrot.slane %v8951_v40, 4  ;;  %v16666_v24 = vpop.f32.mrf.mxu0 }
 0x340   : > { %v8962_v28 = vrot.slane %v8961_v45, 4  ;;  %v8974_v35 = vrot.slane %v8972_v18, 5  ;;  %v12141_v46 = vcombine.low %v16445_v53, %v16449_v12  ;;  %13189 = vmatmul.mubr.msk.bf16.gmra.mxu0 %vm6484_vm11, %v12170_v48  ;;  %v8980_v29 = vrot.slane %v8978_v42, 5  ;;  %v8737_v12 = vld [vmem:[#allocation3 + $0xc4] sm:$0xf] }
 0x341   : > { %v8984_v20 = vrot.slane %v8982_v34, 4  ;;  %v8990_v23 = vrot.slane %v8988_v27, 5  ;;  %v8993_v50 = vshrl.u32 %v8734_v52, 16  ;;  %v8957_v4 = vsel %vm13974_vm8, %v8952_v33, %v8956_v3  ;;  %v16673_v51 = vpop.f32.mrf.mxu0  ;;  %v8738_v42 = vld [vmem:[#allocation3 + $0xc8] sm:$0xf] }
 0x342   : > { %v8967_v32 = vsel %vm13974_vm8, %v8962_v28, %v8966_v11  ;;  %v8975_v41 = vor.u32 %v8974_v35, %v8971_v10  ;;  %v8996_v53 = vshll.u32 %v8734_v52, 16  ;;  %v9002_v39 = vshll.u32 %v8735_v19, 16 }
 0x343   : > { %v12171_v26 = vcombine.low %v8957_v4, %v8967_v32  ;;  %v8985_v57 = vor.u32 %v8984_v20, %v8980_v29  ;;  %v8995_v60 = vrot.slane %v8993_v50, 4  ;;  %v9006_v45 = vshrl.u32 %v8735_v19, 16  ;;  %v16676_v3 = vpop.f32.mrf.mxu1  ;;  %v16678_v34 = vpop.f32.mrf.mxu0  ;;  %v8739_v19 = vld [vmem:[#allocation3 + $0xcc] sm:$0x1] }
 0x344   : > { %v8976_v48 = vrot.slane %v8975_v41, 4  ;;  %13163 = vmatmul.mubr.msk.bf16.gmra.mxu1 %vm6484_vm11, %v12141_v46  ;;  %v8998_v40 = vrot.slane %v8996_v53, 5  ;;  %v9012_v18 = vshll.u32 %v8736_v8, 16  ;;  %v9004_v52 = vrot.slane %v9002_v39, 5  ;;  %v8740_v41 = vld [vmem:[#allocation3 + $0xd4] sm:$0xf] }
 0x345   : > { %13192 = vmatprep.mubr.msk.bf16.mxu0 %vm6484_vm11, %v12171_v26  ;;  %v8986_v11 = vrot.slane %v8985_v57, 4  ;;  %v12142_v10 = vcombine.low %v16463_v38, %v16467_v37  ;;  %v9017_v27 = vshrl.u32 %v8737_v12, 16  ;;  %v9008_v35 = vrot.slane %v9006_v45, 4  ;;  %v16685_v20 = vpop.f32.mrf.mxu1  ;;  %v16690_v38 = vpop.f32.mrf.mxu0  ;;  %v8741_v57 = vld [vmem:[#allocation3 + $0xd8] sm:$0xf] }
 0x346   : > { %v8981_v33 = vsel %vm13974_vm8, %v8976_v48, %v8980_v29  ;;  %v8999_v28 = vor.u32 %v8998_v40, %v8995_v60  ;;  %v9014_v46 = vrot.slane %v9012_v18, 5  ;;  %v9020_v4 = vshll.u32 %v8737_v12, 16 }
 0x347   : > { %v8991_v8 = vsel %vm13974_vm8, %v8986_v11, %v8990_v23  ;;  %13166 = vmatprep.mubr.msk.bf16.mxu1 %vm6484_vm11, %v12142_v10  ;;  %v9019_v50 = vrot.slane %v9017_v27, 4  ;;  %v9026_v32 = vshll.u32 %v8738_v42, 16  ;;  %v9009_v29 = vor.u32 %v9008_v35, %v9004_v52  ;;  %v16692_v60 = vpop.f32.mrf.mxu1 }
 0x348   : > { %v12172_v37 = vcombine.low %v8981_v33, %v8991_v8  ;;  %v9000_v53 = vrot.slane %v8999_v28, 4  ;;  %v9030_v26 = vshrl.u32 %v8738_v42, 16  ;;  %v9022_v39 = vrot.slane %v9020_v4, 5  ;;  %v8742_v33 = vld [vmem:[#allocation3 + $0xdc] sm:$0x1] }
 0x349   : > { %v9028_v48 = vrot.slane %v9026_v32, 5  ;;  %v9036_v40 = vshll.u32 %v8739_v19, 16  ;;  %v12143_v23 = vcombine.low %v16481_v16, %v16485_v22  ;;  %v9010_v45 = vrot.slane %v9009_v29, 4  ;;  %v16699_v10 = vpop.f32.mrf.mxu1  ;;  %v8743_v4 = vld [vmem:[#allocation3 + $0xe4] sm:$0xf] }
 0x34a   : > { %13193 = vmatmul.mubr.msk.bf16.gmra.mxu0 %vm6484_vm11, %v12172_v37  ;;  %v9005_v12 = vsel %vm13974_vm8, %v9000_v53, %v9004_v52  ;;  %v9032_v18 = vrot.slane %v9030_v26, 4  ;;  %v9041_v11 = vshrl.u32 %v8740_v41, 16  ;;  %18476 = vst [vmem:[#allocation46_spill] sm:$0xff] %v16699_v10  ;;  %v9023_v42 = vor.u32 %v9022_v39, %v9019_v50  ;;  %v16701_v8 = vpop.f32.mrf.mxu0  ;;  %v8744_v50 = vld [vmem:[#allocation3 + $0xe8] sm:$0xf] }
 0x34b   : > { %v9038_v27 = vrot.slane %v9036_v40, 5  ;;  %v9044_v28 = vshll.u32 %v8740_v41, 16  ;;  %v9050_v35 = vshll.u32 %v8741_v57, 16  ;;  %v9015_v16 = vsel %vm13974_vm8, %v9010_v45, %v9014_v46 }
 0x34c   : > { %v9033_v22 = vor.u32 %v9032_v18, %v9028_v48  ;;  %13167 = vmatmul.mubr.msk.bf16.gmra.mxu1 %vm6484_vm11, %v12143_v23  ;;  %v9043_v19 = vrot.slane %v9041_v11, 4  ;;  %v9054_v52 = vshrl.u32 %v8741_v57, 16  ;;  %v12173_v32 = vcombine.low %v9005_v12, %v9015_v16  ;;  %v16706_v26 = vpop.f32.mrf.mxu0  ;;  %v8745_v12 = vld [vmem:[#allocation3 + $0xec] sm:$0x1] }
 0x34d   : > { %v9024_v37 = vrot.slane %v9023_v42, 4  ;;  %v9046_v53 = vrot.slane %v9044_v28, 5  ;;  %v9052_v29 = vrot.slane %v9050_v35, 5  ;;  %v9060_v40 = vshll.u32 %v8742_v33, 16  ;;  %v16710_v46 = vpop.f32.mrf.mxu1 }
 0x34e   : > { %v9034_v41 = vrot.slane %v9033_v22, 4  ;;  %v9056_v39 = vrot.slane %v9054_v52, 4  ;;  %v12144_v10 = vcombine.low %v16499_v58, %v16503_v44  ;;  %18477 = vst [vmem:[#allocation43_spill] sm:$0xff] %v16710_v46  ;;  %13196 = vmatprep.mubr.msk.bf16.mxu0 %vm6484_vm11, %v12173_v32  ;;  %v9065_v45 = vshrl.u32 %v8743_v4, 16  ;;  %v16715_v11 = vpop.f32.mrf.mxu0  ;;  %v8746_v44 = vld [vmem:[#allocation3 + $0xf4] sm:$0xf] }
 0x34f   : > { %v9029_v57 = vsel %vm13974_vm8, %v9024_v37, %v9028_v48  ;;  %v9047_v23 = vor.u32 %v9046_v53, %v9043_v19  ;;  %v9068_v18 = vshll.u32 %v8743_v4, 16  ;;  %v9062_v28 = vrot.slane %v9060_v40, 5  ;;  %v16720_v35 = vpop.f32.mrf.mxu1  ;;  %v8747_v46 = vld [vmem:[#allocation3 + $0xf8] sm:$0xf]  ;;  %v8748_v40 = vld [vmem:[#allocation3 + $0xfc] sm:$0x1] }
 0x350   : > { %v9039_v42 = vsel %vm13974_vm8, %v9034_v41, %v9038_v27  ;;  %v9057_v33 = vor.u32 %v9056_v39, %v9052_v29  ;;  %13170 = vmatprep.mubr.msk.bf16.mxu1 %vm6484_vm11, %v12144_v10  ;;  %v9074_v58 = vshll.u32 %v8744_v50, 16  ;;  %18478 = vst [vmem:[#allocation62_spill] sm:$0xff] %v16720_v35  ;;  %v9067_v48 = vrot.slane %v9065_v45, 4  ;;  %v16722_v52 = vpop.f32.mrf.mxu0 }
 0x351   : > { %v12174_v16 = vcombine.low %v9029_v57, %v9039_v42  ;;  %v9048_v22 = vrot.slane %v9047_v23, 4  ;;  %v9070_v19 = vrot.slane %v9068_v18, 5  ;;  %v9078_v37 = vshrl.u32 %v8744_v50, 16  ;;  %v16724_v27 = vpop.f32.mrf.mxu1  ;;  %v9431_v23 = vld [vmem:[#allocation3 + $0x20] sm:$0x8] }
 0x352   : > { %v9058_v4 = vrot.slane %v9057_v33, 4  ;;  %v9076_v32 = vrot.slane %v9074_v58, 5  ;;  %v9084_v53 = vshll.u32 %v8745_v12, 16  ;;  %18479 = vst [vmem:[#allocation35_spill] sm:$0xff] %v16724_v27  ;;  %v12145_v39 = vcombine.low %v16513_v61, %v16526_v13  ;;  %v16733_v42 = vld [vmem:[#allocation3 + $0x24] sm:$0xf] }
 0x353   : > { %13197 = vmatmul.mubr.msk.bf16.gmra.mxu0 %vm6484_vm11, %v12174_v16  ;;  %v9053_v10 = vsel %vm13974_vm8, %v9048_v22, %v9052_v29  ;;  %v9071_v41 = vor.u32 %v9070_v19, %v9067_v48  ;;  %v9089_v57 = vshrl.u32 %v8746_v44, 16  ;;  %v9080_v50 = vrot.slane %v9078_v37, 4  ;;  %v16736_v22 = vpop.f32.mrf.mxu1 }
 0x354   : > { %v9063_v45 = vsel %vm13974_vm8, %v9058_v4, %v9062_v28  ;;  %v9086_v12 = vrot.slane %v9084_v53, 5  ;;  %v9092_v18 = vshll.u32 %v8746_v44, 16  ;;  %13171 = vmatmul.mubr.msk.bf16.gmra.mxu1 %vm6484_vm11, %v12145_v39  ;;  %v9098_v16 = vshll.u32 %v8747_v46, 16  ;;  %18480 = vst [vmem:[#allocation42_spill] sm:$0xff] %v16736_v22  ;;  %v16738_v61 = vpop.f32.mrf.mxu0  ;;  %v16740_v28 = vld [vmem:[#allocation3 + $0x28] sm:$0xf] }
 0x355   : > { %v12175_v33 = vcombine.low %v9053_v10, %v9063_v45  ;;  %v9072_v58 = vrot.slane %v9071_v41, 4  ;;  %v9091_v29 = vrot.slane %v9089_v57, 4  ;;  %18481 = vst [vmem:[#allocation30_spill] sm:$0xff] %v16738_v61  ;;  %v9081_v13 = vor.u32 %v9080_v50, %v9076_v32 }
 0x356   : > { %v9094_v48 = vrot.slane %v9092_v18, 5  ;;  %v9102_v19 = vshrl.u32 %v8747_v46, 16  ;;  %v9108_v27 = vshll.u32 %v8748_v40, 16  ;;  %v9100_v4 = vrot.slane %v9098_v16, 5  ;;  %v16746_v10 = vpop.f32.mrf.mxu0 }
 0x357   : > { %13200 = vmatprep.mubr.msk.bf16.mxu0 %vm6484_vm11, %v12175_v33  ;;  %v9077_v44 = vsel %vm13974_vm8, %v9072_v58, %v9076_v32  ;;  %v9480_v37 = vshrl.u32 %v9431_v23, 16  ;;  %v9485_v53 = vshrl.u32 %v16733_v42, 16  ;;  %18482 = vst [vmem:[#allocation68_spill] sm:$0xff] %v16746_v10  ;;  %v9082_v41 = vrot.slane %v9081_v13, 4  ;;  %v8749_v33 = vld [vmem:[#allocation3 + $0x104] sm:$0xf] }
 0x358   : > { %v9095_v39 = vor.u32 %v9094_v48, %v9091_v29  ;;  %v9104_v57 = vrot.slane %v9102_v19, 4  ;;  %v9110_v45 = vrot.slane %v9108_v27, 5  ;;  %v9488_v40 = vshll.u32 %v16733_v42, 16  ;;  %v16750_v22 = vpop.f32.mrf.mxu1  ;;  %v16752_v32 = vpop.f32.mrf.mxu0  ;;  %v8750_v13 = vld [vmem:[#allocation3 + $0x108] sm:$0xf] }
 0x359   : > { %v12195_v50 = vrot.slane %v9480_v37, 11  ;;  %v9487_v46 = vrot.slane %v9485_v53, 7  ;;  %v9494_v18 = vshrl.u32 %v16740_v28, 16  ;;  %18483 = vst [vmem:[#allocation38_spill] sm:$0xff] %v16750_v22  ;;  %18484 = vst [vmem:[#allocation59_spill] sm:$0xff] %v16752_v32  ;;  %v9087_v23 = vsel %vm13974_vm8, %v9082_v41, %v9086_v12 }
 0x35a   : > { %v9096_v58 = vrot.slane %v9095_v39, 4  ;;  %v9105_v16 = vor.u32 %v9104_v57, %v9100_v4  ;;  %v9497_v29 = vshll.u32 %v16740_v28, 16  ;;  %v12176_v27 = vcombine.low %v9077_v44, %v9087_v23  ;;  %v8751_v53 = vld [vmem:[#allocation3 + $0x10c] sm:$0x1]  ;;  %v16757_v10 = vpop.f32.mrf.mxu1  ;;  %v16763_v41 = vpop.f32.mrf.mxu0  ;;  %v16768_v44 = vld [vmem:[%s18154_s5] sm:$0x3] }
 0x35b   : > { %v9490_v48 = vor.u32 %v9488_v40, %v9487_v46  ;;  %v9492_v19 = vrot.slane %v9487_v46, 4  ;;  %v9496_v37 = vrot.slane %v9494_v18, 7  ;;  %18485 = vst [vmem:[#allocation44_spill] sm:$0xff] %v16757_v10  ;;  %v10256_v32 = vsel %vm6533_vm9, %v16520_v9, 0  ;;  %18486 = vst [vmem:[#allocation39_spill] sm:$0xff] %v16763_v41 }
 0x35c   : > { %v9101_v22 = vsel %vm13974_vm8, %v9096_v58, %v9100_v4  ;;  %v9106_v35 = vrot.slane %v9105_v16, 4  ;;  %v9113_v12 = vshrl.u32 %v8749_v33, 16  ;;  %18487 = vst [vmem:[#allocation65_spill] sm:$0xff] %v16768_v44  ;;  %13201 = vmatmul.mubr.msk.bf16.gmra.mxu0 %vm6484_vm11, %v12176_v27  ;;  %v9116_v46 = vshll.u32 %v8749_v33, 16  ;;  %v9434_v40 = vld [vmem:[#allocation3 + $0x30] sm:$0x8]  ;;  %v16775_v9 = vpop.f32.mrf.mxu1 }
 0x35d   : > { %v9491_v39 = vsel %vm13776_vm5, %v12195_v50, %v9490_v48  ;;  %v9499_v57 = vor.u32 %v9497_v29, %v9496_v37  ;;  %v9122_v4 = vshll.u32 %v8750_v13, 16  ;;  %v16773_v18 = vld [vmem:[#allocation3 + $0x34] sm:$0xf]  ;;  %18488 = vst [vmem:[#allocation51_spill] sm:$0xff] %v16775_v9  ;;  %13243 = vmatpush3.bf16.msra.mxu0 %v10256_v32  ;;  %v9126_v16 = vshrl.u32 %v8750_v13, 16 }
 0x35e   : > { %v9111_v23 = vsel %vm13974_vm8, %v9106_v35, %v9110_v45  ;;  %v9115_v58 = vrot.slane %v9113_v12, 4  ;;  %v9132_v10 = vshll.u32 %v8751_v53, 16  ;;  %v16779_v41 = vld [vmem:[#allocation3 + $0x38] sm:$0xf]  ;;  %v9118_v33 = vrot.slane %v9116_v46, 5  ;;  %v16783_v48 = vpop.f32.mrf.mxu1  ;;  %13341 = vmatprep.subr.msk.bf16.mxu0 %vm1080_vm0, %v16768_v44 }
 0x35f   : > { %v12177_v27 = vcombine.low %v9101_v22, %v9111_v23  ;;  %v9500_v50 = vsel %vm13776_vm5, %v9492_v19, %v9499_v57  ;;  %v9124_v29 = vrot.slane %v9122_v4, 5  ;;  %18489 = vst [vmem:[#allocation13_spill] sm:$0xff] %v16783_v48  ;;  %v9128_v9 = vrot.slane %v9126_v16, 4  ;;  %v9437_v32 = vld [vmem:[#allocation3 + $0x40] sm:$0x8]  ;;  %v16787_v13 = vpop.f32.mrf.mxu0 }
 0x360   : > { %v12212_v37 = vcombine.low %v9491_v39, %v9500_v50  ;;  %v9134_v35 = vrot.slane %v9132_v10, 5  ;;  %v9502_v45 = vshrl.u32 %v9434_v40, 16  ;;  %18490 = vst [vmem:[#allocation70_spill] sm:$0xff] %v16787_v13  ;;  %v9119_v22 = vor.u32 %v9118_v33, %v9115_v58  ;;  %v16793_v57 = vld [vmem:[#allocation3 + $0x44] sm:$0xf] }
 0x361   : > { %13204 = vmatprep.mubr.msk.bf16.mxu0 %vm6484_vm11, %v12177_v27  ;;  %v9507_v53 = vshrl.u32 %v16773_v18, 16  ;;  %v9510_v19 = vshll.u32 %v16773_v18, 16  ;;  %v9516_v12 = vshrl.u32 %v16779_v41, 16  ;;  %v9129_v39 = vor.u32 %v9128_v9, %v9124_v29  ;;  %v16799_v40 = vpop.f32.mrf.mxu0  ;;  %v16803_v50 = vld [vmem:[#allocation3 + $0x48] sm:$0xf] }
 0x362   : > { %13210 = vmatprep.mubr.msk.bf16.mxu1 %vm6484_vm11, %v12212_v37  ;;  %v12196_v46 = vrot.slane %v9502_v45, 11  ;;  %v9519_v10 = vshll.u32 %v16779_v41, 16  ;;  %v12245_v4 = vcombine.low %v16733_v42, %v16740_v28  ;;  %18491 = vst [vmem:[#allocation60_spill] sm:$0xff] %v16799_v40  ;;  %v9120_v23 = vrot.slane %v9119_v22, 4  ;;  %v16805_v33 = vpop.f32.mrf.mxu1  ;;  %v9440_v13 = vld [vmem:[#allocation3 + $0x50] sm:$0x8] }
 0x363   : > { %v9509_v58 = vrot.slane %v9507_v53, 7  ;;  %v9518_v16 = vrot.slane %v9516_v12, 7  ;;  %v10982_v27 = vsel %vm6533_vm9, %v16554_v14, 0  ;;  %18492 = vst [vmem:[#allocation72_spill] sm:$0xff] %v16805_v33  ;;  %v9130_v37 = vrot.slane %v9129_v39, 4  ;;  %v16809_v48 = vpop.f32.mrf.mxu0 }
 0x364   : > { %v9524_v9 = vshrl.u32 %v9437_v32, 16  ;;  %v9529_v45 = vshrl.u32 %v16793_v57, 16  ;;  %v9532_v44 = vshll.u32 %v16793_v57, 16  ;;  %18493 = vst [vmem:[#allocation14_spill] sm:$0xff] %v16809_v48  ;;  %v9125_v42 = vsel %vm13974_vm8, %v9120_v23, %v9124_v29  ;;  %v16813_v12 = vld [vmem:[#allocation3 + $0x54] sm:$0xf]  ;;  %v16815_v14 = vpop.f32.mrf.mxu1 }
 0x365   : > { %v9512_v28 = vor.u32 %v9510_v19, %v9509_v58  ;;  %v9514_v22 = vrot.slane %v9509_v58, 4  ;;  %v9521_v53 = vor.u32 %v9519_v10, %v9518_v16  ;;  %v9135_v39 = vsel %vm13974_vm8, %v9130_v37, %v9134_v35  ;;  %v16820_v61 = vpop.f32.mrf.mxu0  ;;  %v16827_v23 = vld [vmem:[#allocation3 + $0x58] sm:$0xf] }
 0x366   : > { %v12197_v32 = vrot.slane %v9524_v9, 11  ;;  %v9531_v33 = vrot.slane %v9529_v45, 7  ;;  %v9538_v40 = vshrl.u32 %v16803_v50, 16  ;;  %v12178_v48 = vcombine.low %v9125_v42, %v9135_v39  ;;  %v16829_v58 = vpop.f32.mrf.mxu1  ;;  %v16854_v39 = vld [vmem:[#allocation3 + $0x68] sm:$0xf] }
 0x367   : > { %v9513_v29 = vsel %vm13776_vm5, %v12196_v46, %v9512_v28  ;;  %v9522_v19 = vsel %vm13776_vm5, %v9514_v22, %v9521_v53  ;;  %v9541_v10 = vshll.u32 %v16803_v50, 16  ;;  %v16834_v45 = vadd.f32 %v16596_v47, %v16574_v5  ;;  %v9443_v22 = vld [vmem:[#allocation3 + $0x60] sm:$0x8]  ;;  %v16845_v47 = vld [vmem:[#allocation3 + $0x64] sm:$0xf] }
 0x368   : > { %v12213_v35 = vcombine.low %v9513_v29, %v9522_v19  ;;  %v9534_v16 = vor.u32 %v9532_v44, %v9531_v33  ;;  %v9536_v37 = vrot.slane %v9531_v33, 4  ;;  %v9540_v9 = vrot.slane %v9538_v40, 7  ;;  %13205 = vmatmul.mubr.msk.bf16.gmra.mxu0 %vm6484_vm11, %v12178_v48  ;;  %v16847_v33 = vpop.f32.mrf.mxu1 }
 0x369   : > { %v12246_v46 = vcombine.low %v16773_v18, %v16779_v41  ;;  %v9546_v42 = vshrl.u32 %v9440_v13, 16  ;;  %v9551_v28 = vshrl.u32 %v16813_v12, 16  ;;  %13244 = vmatprep.mubr.msk.bf16.mxu0 %vm6484_vm11, %v12245_v4  ;;  %v9554_v48 = vshll.u32 %v16813_v12, 16  ;;  %v16849_v41 = vpop.f32.mrf.mxu0 }
 0x36a   : > { %13211 = vmatmul.mubr.msk.bf16.vlgmr.msra.gmra.mxu1 %vm6484_vm11, %v12213_v35  ;;  %v9535_v44 = vsel %vm13776_vm5, %v12197_v32, %v9534_v16  ;;  %v9543_v40 = vor.u32 %v9541_v10, %v9540_v9  ;;  %v9560_v5 = vshrl.u32 %v16827_v23, 16  ;;  %v9563_v53 = vshll.u32 %v16827_v23, 16 }
 0x36b   : > { %13277 = vmatpush3.bf16.msra.mxu1 %v10982_v27  ;;  %v12198_v18 = vrot.slane %v9546_v42, 11  ;;  %v9553_v13 = vrot.slane %v9551_v28, 7  ;;  %v12247_v4 = vcombine.low %v16793_v57, %v16803_v50  ;;  %v16860_v19 = vadd.f32 %v16602_v30, %v16580_v55  ;;  %v16862_v35 = vpop.f32.mrf.mxu0 }
 0x36c   : > { %v9544_v32 = vsel %vm13776_vm5, %v9536_v37, %v9543_v40  ;;  %v9562_v29 = vrot.slane %v9560_v5, 7  ;;  %v9568_v10 = vshrl.u32 %v9443_v22, 16  ;;  %v9573_v42 = vshrl.u32 %v16845_v47, 16  ;;  %v16879_v5 = vld [vmem:[#allocation3 + $0x74] sm:$0xf] }
 0x36d   : > { %v12214_v27 = vcombine.low %v9535_v44, %v9544_v32  ;;  %v9556_v16 = vor.u32 %v9554_v48, %v9553_v13  ;;  %v9558_v9 = vrot.slane %v9553_v13, 4  ;;  %v9576_v50 = vshll.u32 %v16845_v47, 16  ;;  %v16867_v37 = vpop.f32.mrf.mxu1  ;;  %v16869_v40 = vpop.f32.mrf.mxu0  ;;  %v9446_v48 = vld [vmem:[#allocation3 + $0x70] sm:$0x8] }
 0x36e   : > { %v9565_v28 = vor.u32 %v9563_v53, %v9562_v29  ;;  %v12199_v57 = vrot.slane %v9568_v10, 11  ;;  %v9582_v56 = vshrl.u32 %v16854_v39, 16  ;;  %v9575_v30 = vrot.slane %v9573_v42, 7  ;;  %v16891_v29 = vld [vmem:[#allocation3 + $0x78] sm:$0xf] }
 0x36f   : > { %13214 = vmatprep.mubr.msk.bf16.mxu1 %vm6484_vm11, %v12214_v27  ;;  %v9557_v55 = vsel %vm13776_vm5, %v12198_v18, %v9556_v16  ;;  %v9585_v22 = vshll.u32 %v16854_v39, 16  ;;  %v16877_v44 = vadd.f32 %v16611_v7, %v16585_v21  ;;  %v16885_v32 = vadd.f32 %v16619_v31, %v16591_v36  ;;  %v16893_v10 = vpop.f32.mrf.mxu1  ;;  %v16898_v16 = vld [vmem:[#allocation3 + $0x84] sm:$0xf]  ;;  %v16900_v36 = vpop.f32.mrf.mxu0  ;;  %v9449_v42 = vld [vmem:[#allocation3 + $0x80] sm:$0x8] }
 0x370   : > { %v9566_v13 = vsel %vm13776_vm5, %v9558_v9, %v9565_v28  ;;  %v9584_v53 = vrot.slane %v9582_v56, 7  ;;  %v16889_v18 = vadd.f32 %v16632_v0, %v16604_v59  ;;  %13245 = vmatmul.mubr.msk.bf16.vlgmr.msra.gmra.mxu0 %vm6484_vm11, %v12246_v46  ;;  %v9578_v7 = vor.u32 %v9576_v50, %v9575_v30  ;;  %v16914_v50 = vld [vmem:[#allocation3 + $0x88] sm:$0xf] }
 0x371   : > { %18494 = vst [vmem:[#allocation45_spill] sm:$0xff] %v16885_v32  ;;  %v12215_v21 = vcombine.low %v9557_v55, %v9566_v13  ;;  %v9580_v27 = vrot.slane %v9575_v30, 4  ;;  %v12248_v56 = vcombine.low %v16813_v12, %v16827_v23  ;;  %13248 = vmatprep.mubr.msk.bf16.mxu0 %vm6484_vm11, %v12247_v4  ;;  %v9590_v31 = vshrl.u32 %v9446_v48, 16  ;;  %v16905_v46 = vpop.f32.mrf.mxu1 }
 0x372   : > { %18495 = vst [vmem:[#allocation23_spill] sm:$0xff] %v16889_v18  ;;  %v9587_v59 = vor.u32 %v9585_v22, %v9584_v53  ;;  %v9595_v0 = vshrl.u32 %v16879_v5, 16  ;;  %v9598_v9 = vshll.u32 %v16879_v5, 16  ;;  %v9579_v12 = vsel %vm13776_vm5, %v12199_v57, %v9578_v7 }
 0x373   : > { %13215 = vmatmul.mubr.msk.bf16.gmra.mxu1 %vm6484_vm11, %v12215_v21  ;;  %v9604_v23 = vshrl.u32 %v16891_v29, 16  ;;  %v9607_v28 = vshll.u32 %v16891_v29, 16  ;;  %v12249_v4 = vcombine.low %v16845_v47, %v16854_v39  ;;  %v12200_v30 = vrot.slane %v9590_v31, 11  ;;  %v16922_v13 = vpop.f32.mrf.mxu1 }
 0x374   : > { %v9588_v55 = vsel %vm13776_vm5, %v9580_v27, %v9587_v59  ;;  %v9597_v22 = vrot.slane %v9595_v0, 7  ;;  %v16920_v48 = vadd.f32 %v16638_v54, %v16615_v49  ;;  %v9612_v21 = vshrl.u32 %v9449_v42, 16  ;;  %v16925_v18 = vpop.f32.mrf.mxu0  ;;  %v9452_v42 = vld [vmem:[#allocation3 + $0x90] sm:$0x8] }
 0x375   : > { %v12216_v57 = vcombine.low %v9579_v12, %v9588_v55  ;;  %v9606_v53 = vrot.slane %v9604_v23, 7  ;;  %v9617_v7 = vshrl.u32 %v16898_v16, 16  ;;  %v9620_v32 = vshll.u32 %v16898_v16, 16  ;;  %v16929_v59 = vpop.f32.mrf.mxu1 }
 0x376   : > { %18496 = vst [vmem:[#allocation47_spill] sm:$0xff] %v16920_v48  ;;  %v9600_v47 = vor.u32 %v9598_v9, %v9597_v22  ;;  %v9602_v39 = vrot.slane %v9597_v22, 4  ;;  %v9626_v27 = vshrl.u32 %v16914_v50, 16  ;;  %v12201_v54 = vrot.slane %v9612_v21, 11  ;;  %v16933_v12 = vpop.f32.mrf.mxu0  ;;  %v17003_v48 = vld [vmem:[#allocation3 + $0xb4] sm:$0xf] }
 0x377   : > { %13218 = vmatprep.mubr.msk.bf16.mxu1 %vm6484_vm11, %v12216_v57  ;;  %v9609_v49 = vor.u32 %v9607_v28, %v9606_v53  ;;  %v9619_v31 = vrot.slane %v9617_v7, 7  ;;  %v9629_v0 = vshll.u32 %v16914_v50, 16  ;;  %v16939_v55 = vadd.f32 %v16645_v17, %v16617_v15  ;;  %v16945_v28 = vld [vmem:[#allocation3 + $0x94] sm:$0xf]  ;;  %v16947_v57 = vld [vmem:[#allocation3 + $0x98] sm:$0xf]  ;;  %v16949_v53 = vpop.f32.mrf.mxu1 }
 0x378   : > { %v9601_v9 = vsel %vm13776_vm5, %v12200_v30, %v9600_v47  ;;  %v9628_v23 = vrot.slane %v9626_v27, 7  ;;  %v16943_v22 = vadd.f32 %v16650_v62, %v16628_v43  ;;  %13249 = vmatmul.mubr.msk.bf16.gmra.mxu0 %vm6484_vm11, %v12248_v56  ;;  %v16956_v15 = vadd.f32 %v16666_v24, %v16641_v25  ;;  %v16958_v17 = vpop.f32.mrf.mxu0  ;;  %v9455_v56 = vld [vmem:[#allocation3 + $0xa0] sm:$0x8] }
 0x379   : > { %18497 = vst [vmem:[#allocation52_spill] sm:$0xff] %v16939_v55  ;;  %v9610_v30 = vsel %vm13776_vm5, %v9602_v39, %v9609_v49  ;;  %v9622_v21 = vor.u32 %v9620_v32, %v9619_v31  ;;  %v9624_v7 = vrot.slane %v9619_v31, 4  ;;  %13252 = vmatprep.mubr.msk.bf16.mxu0 %vm6484_vm11, %v12249_v4  ;;  %v12250_v47 = vcombine.low %v16879_v5, %v16891_v29  ;;  %v16965_v39 = vpop.f32.mrf.mxu1  ;;  %v16972_v4 = vld [vmem:[#allocation3 + $0xa8] sm:$0xf] }
 0x37a   : > { %18498 = vst [vmem:[#allocation63_spill] sm:$0xff] %v16943_v22  ;;  %18499 = vst [vmem:[#allocation26_spill] sm:$0xff] %v16956_v15  ;;  %v12217_v43 = vcombine.low %v9601_v9, %v9610_v30  ;;  %v9631_v62 = vor.u32 %v9629_v0, %v9628_v23  ;;  %v9634_v27 = vshrl.u32 %v9452_v42, 16  ;;  %v16963_v22 = vld [vmem:[#allocation3 + $0xa4] sm:$0xf]  ;;  %v9639_v25 = vshrl.u32 %v16945_v28, 16  ;;  %v16974_v31 = vpop.f32.mrf.mxu0 }
 0x37b   : > { %v9623_v32 = vsel %vm13776_vm5, %v12201_v54, %v9622_v21  ;;  %v9642_v24 = vshll.u32 %v16945_v28, 16  ;;  %v9648_v49 = vshrl.u32 %v16947_v57, 16  ;;  %v9651_v0 = vshll.u32 %v16947_v57, 16  ;;  %v16982_v42 = vpop.f32.mrf.mxu1 }
 0x37c   : > { %13219 = vmatmul.mubr.msk.bf16.gmra.mxu1 %vm6484_vm11, %v12217_v43  ;;  %v9632_v5 = vsel %vm13776_vm5, %v9624_v7, %v9631_v62  ;;  %v12202_v29 = vrot.slane %v9634_v27, 11  ;;  %v12251_v54 = vcombine.low %v16898_v16, %v16914_v50  ;;  %v9641_v23 = vrot.slane %v9639_v25, 7  ;;  %v16988_v15 = vpop.f32.mrf.mxu0 }
 0x37d   : > { %v12218_v9 = vcombine.low %v9623_v32, %v9632_v5  ;;  %v9650_v30 = vrot.slane %v9648_v49, 7  ;;  %v16986_v21 = vadd.f32 %v16673_v51, %v16647_v1  ;;  %v9656_v43 = vshrl.u32 %v9455_v56, 16  ;;  %v9458_v49 = vld [vmem:[#allocation3 + $0xb0] sm:$0x8] }
 0x37e   : > { %v9661_v7 = vshrl.u32 %v16963_v22, 16  ;;  %v9664_v62 = vshll.u32 %v16963_v22, 16  ;;  %v9670_v27 = vshrl.u32 %v16972_v4, 16  ;;  %v9644_v16 = vor.u32 %v9642_v24, %v9641_v23  ;;  %v16995_v5 = vpop.f32.mrf.mxu1  ;;  %v16997_v1 = vpop.f32.mrf.mxu0 }
 0x37f   : > { %18500 = vst [vmem:[#allocation53_spill] sm:$0xff] %v16986_v21  ;;  %13222 = vmatprep.mubr.msk.bf16.mxu1 %vm6484_vm11, %v12218_v9  ;;  %v9646_v50 = vrot.slane %v9641_v23, 4  ;;  %v9653_v32 = vor.u32 %v9651_v0, %v9650_v30  ;;  %v9673_v25 = vshll.u32 %v16972_v4, 16  ;;  %v12203_v51 = vrot.slane %v9656_v43, 11 }
 0x380   : > { %v9663_v56 = vrot.slane %v9661_v7, 7  ;;  %v9672_v21 = vrot.slane %v9670_v27, 7  ;;  %v17001_v55 = vadd.f32 %v16678_v34, %v16659_v63  ;;  %13253 = vmatmul.mubr.msk.bf16.gmra.mxu0 %vm6484_vm11, %v12250_v47  ;;  %v9645_v24 = vsel %vm13776_vm5, %v12202_v29, %v9644_v16  ;;  %v17018_v63 = vld [vmem:[#allocation3 + $0xb8] sm:$0xf]  ;;  %v17020_v34 = vpop.f32.mrf.mxu1  ;;  %v17022_v30 = vpop.f32.mrf.mxu0  ;;  %v17025_v27 = vld [vmem:[#allocation3 + $0xc4] sm:$0xf] }
 0x381   : > { %v9654_v0 = vsel %vm13776_vm5, %v9646_v50, %v9653_v32  ;;  %v17012_v9 = vadd.f32 %v16690_v38, %v16664_v6  ;;  %v17016_v23 = vadd.f32 %v16701_v8, %v16676_v3  ;;  %13256 = vmatprep.mubr.msk.bf16.mxu0 %vm6484_vm11, %v12251_v54  ;;  %v12252_v6 = vcombine.low %v16945_v28, %v16947_v57  ;;  %v9461_v16 = vld [vmem:[#allocation3 + $0xc0] sm:$0x8]  ;;  %v17040_v57 = vld [vmem:[#allocation3 + $0xc8] sm:$0xf] }
 0x382   : > { %18501 = vst [vmem:[#allocation11_spill] sm:$0xff] %v17001_v55  ;;  %v12219_v47 = vcombine.low %v9645_v24, %v9654_v0  ;;  %v9666_v29 = vor.u32 %v9664_v62, %v9663_v56  ;;  %v9668_v43 = vrot.slane %v9663_v56, 4  ;;  %v9675_v7 = vor.u32 %v9673_v25, %v9672_v21  ;;  %v17031_v50 = vpop.f32.mrf.mxu0  ;;  %v17042_v32 = vpop.f32.mrf.mxu1 }
 0x383   : > { %18502 = vst [vmem:[#allocation36_spill] sm:$0xff] %v17012_v9  ;;  %18503 = vst [vmem:[#allocation67_spill] sm:$0xff] %v17016_v23  ;;  %v9678_v38 = vshrl.u32 %v9458_v49, 16  ;;  %v9683_v3 = vshrl.u32 %v17003_v48, 16  ;;  %v9686_v8 = vshll.u32 %v17003_v48, 16  ;;  %v9692_v62 = vshrl.u32 %v17018_v63, 16 }
 0x384   : > { %13223 = vmatmul.mubr.msk.bf16.gmra.mxu1 %vm6484_vm11, %v12219_v47  ;;  %v9667_v54 = vsel %vm13776_vm5, %v12203_v51, %v9666_v29  ;;  %v9676_v21 = vsel %vm13776_vm5, %v9668_v43, %v9675_v7  ;;  %v9695_v28 = vshll.u32 %v17018_v63, 16  ;;  %v12253_v24 = vcombine.low %v16963_v22, %v16972_v4  ;;  %v17087_v9 = vld [vmem:[#allocation3 + $0xe4] sm:$0xf] }
 0x385   : > { %v12220_v25 = vcombine.low %v9667_v54, %v9676_v21  ;;  %v12204_v49 = vrot.slane %v9678_v38, 11  ;;  %v9685_v56 = vrot.slane %v9683_v3, 7  ;;  %v17046_v0 = vpop.f32.mrf.mxu0  ;;  %v9694_v51 = vrot.slane %v9692_v62, 7 }
 0x386   : > { %v17050_v47 = vadd.f32 %v16706_v26, %v16685_v20  ;;  %v9700_v29 = vshrl.u32 %v9461_v16, 16  ;;  %v9705_v43 = vshrl.u32 %v17025_v27, 16  ;;  %v9708_v38 = vshll.u32 %v17025_v27, 16  ;;  %v9464_v20 = vld [vmem:[#allocation3 + $0xd0] sm:$0x8]  ;;  %v17059_v26 = vpop.f32.mrf.mxu1 }
 0x387   : > { %13226 = vmatprep.mubr.msk.bf16.mxu1 %vm6484_vm11, %v12220_v25  ;;  %v9688_v7 = vor.u32 %v9686_v8, %v9685_v56  ;;  %v9690_v23 = vrot.slane %v9685_v56, 4  ;;  %v9714_v3 = vshrl.u32 %v17040_v57, 16  ;;  %v17056_v54 = vpop.f32.mrf.mxu0  ;;  %v9697_v22 = vor.u32 %v9695_v28, %v9694_v51  ;;  %v18506_v56 = vld [vmem:[#allocation46_spill] sm:$0xff]  ;;  %v17072_v51 = vld [vmem:[#allocation3 + $0xd4] sm:$0xf] }
 0x388   : > { %18504 = vst [vmem:[#allocation50_spill] sm:$0xff] %v17050_v47  ;;  %v12205_v4 = vrot.slane %v9700_v29, 11  ;;  %v9707_v21 = vrot.slane %v9705_v43, 7  ;;  %v9717_v62 = vshll.u32 %v17040_v57, 16  ;;  %13257 = vmatmul.mubr.msk.bf16.gmra.mxu0 %vm6484_vm11, %v12252_v6  ;;  %v17066_v25 = vadd.f32 %v16715_v11, %v16692_v60  ;;  %v17074_v29 = vld [vmem:[#allocation3 + $0xd8] sm:$0xf] }
 0x389   : > { %v9689_v8 = vsel %vm13776_vm5, %v12204_v49, %v9688_v7  ;;  %v9716_v16 = vrot.slane %v9714_v3, 7  ;;  %v17070_v28 = vadd.f32 %v16722_v52, %v18506_v56  ;;  %v9698_v43 = vsel %vm13776_vm5, %v9690_v23, %v9697_v22  ;;  %13260 = vmatprep.mubr.msk.bf16.mxu0 %vm6484_vm11, %v12253_v24  ;;  %v18508_v7 = vld [vmem:[#allocation43_spill] sm:$0xff]  ;;  %v18509_v3 = vld [vmem:[#allocation30_spill] sm:$0xff]  ;;  %v17083_v60 = vpop.f32.mrf.mxu0 }
 0x38a   : > { %18505 = vst [vmem:[#allocation54_spill] sm:$0xff] %v17066_v25  ;;  %v9710_v6 = vor.u32 %v9708_v38, %v9707_v21  ;;  %v9712_v49 = vrot.slane %v9707_v21, 4  ;;  %v17081_v47 = vadd.f32 %v18509_v3, %v18508_v7  ;;  %18511 = vst [vmem:[#allocation56_spill] sm:$0xff] %v17083_v60  ;;  %v12221_v11 = vcombine.low %v9689_v8, %v9698_v43  ;;  %v9467_v25 = vld [vmem:[#allocation3 + $0xe0] sm:$0x8]  ;;  %v18513_v7 = vld [vmem:[#allocation68_spill] sm:$0xff] }
 0x38b   : > { %18507 = vst [vmem:[#allocation37_spill] sm:$0xff] %v17070_v28  ;;  %v9719_v52 = vor.u32 %v9717_v62, %v9716_v16  ;;  %v12254_v56 = vcombine.low %v17003_v48, %v17018_v63  ;;  %v9722_v28 = vshrl.u32 %v9464_v20, 16  ;;  %v9727_v24 = vshrl.u32 %v17072_v51, 16  ;;  %v17094_v21 = vld [vmem:[#allocation3 + $0xe8] sm:$0xf]  ;;  %v17096_v8 = vpop.f32.mrf.mxu1  ;;  %v17110_v55 = vpop.f32.mrf.mxu0 }
 0x38c   : > { %18510 = vst [vmem:[#allocation57_spill] sm:$0xff] %v17081_v47  ;;  %v9711_v23 = vsel %vm13776_vm5, %v12205_v4, %v9710_v6  ;;  %v9730_v38 = vshll.u32 %v17072_v51, 16  ;;  %v9736_v22 = vshrl.u32 %v17074_v29, 16  ;;  %13227 = vmatmul.mubr.msk.bf16.gmra.mxu1 %vm6484_vm11, %v12221_v11  ;;  %v9739_v62 = vshll.u32 %v17074_v29, 16  ;;  %v18512_v6 = vld [vmem:[#allocation62_spill] sm:$0xff]  ;;  %18516 = vst [vmem:[#allocation34_spill] sm:$0xff] %v17110_v55 }
 0x38d   : > { %v9720_v48 = vsel %vm13776_vm5, %v9712_v49, %v9719_v52  ;;  %v12206_v63 = vrot.slane %v9722_v28, 11  ;;  %v12255_v4 = vcombine.low %v17025_v27, %v17040_v57  ;;  %v9729_v16 = vrot.slane %v9727_v24, 7  ;;  %v17108_v47 = vpop.f32.mrf.mxu1  ;;  %v17122_v60 = vld [vmem:[#allocation3 + $0xf4] sm:$0xf] }
 0x38e   : > { %v12222_v20 = vcombine.low %v9711_v23, %v9720_v48  ;;  %v9738_v43 = vrot.slane %v9736_v22, 7  ;;  %v17106_v3 = vadd.f32 %v18513_v7, %v18512_v6  ;;  %18515 = vst [vmem:[#allocation31_spill] sm:$0xff] %v17108_v47  ;;  %v9744_v11 = vshrl.u32 %v9467_v25, 16  ;;  %v9470_v22 = vld [vmem:[#allocation3 + $0xf0] sm:$0x8] }
 0x38f   : > { %v9749_v49 = vshrl.u32 %v17087_v9, 16  ;;  %v9752_v28 = vshll.u32 %v17087_v9, 16  ;;  %v9758_v52 = vshrl.u32 %v17094_v21, 16  ;;  %v9732_v27 = vor.u32 %v9730_v38, %v9729_v16  ;;  %v18517_v25 = vld [vmem:[#allocation35_spill] sm:$0xff]  ;;  %v17124_v47 = vpop.f32.mrf.mxu1 }
 0x390   : > { %18514 = vst [vmem:[#allocation29_spill] sm:$0xff] %v17106_v3  ;;  %13230 = vmatprep.mubr.msk.bf16.mxu1 %vm6484_vm11, %v12222_v20  ;;  %v9734_v57 = vrot.slane %v9729_v16, 4  ;;  %v9741_v23 = vor.u32 %v9739_v62, %v9738_v43  ;;  %v9761_v24 = vshll.u32 %v17094_v21, 16  ;;  %13261 = vmatmul.mubr.msk.bf16.gmra.mxu0 %vm6484_vm11, %v12254_v56  ;;  %v12207_v48 = vrot.slane %v9744_v11, 11  ;;  %v18518_v3 = vld [vmem:[#allocation59_spill] sm:$0xff]  ;;  %18520 = vst [vmem:[#allocation66_spill] sm:$0xff] %v17124_v47 }
 0x391   : > { %v9751_v6 = vrot.slane %v9749_v49, 7  ;;  %v9760_v7 = vrot.slane %v9758_v52, 7  ;;  %v17120_v55 = vadd.f32 %v18518_v3, %v18517_v25  ;;  %v9733_v38 = vsel %vm13776_vm5, %v12206_v63, %v9732_v27  ;;  %13264 = vmatprep.mubr.msk.bf16.mxu0 %vm6484_vm11, %v12255_v4  ;;  %v18521_v56 = vld [vmem:[#allocation42_spill] sm:$0xff]  ;;  %v18522_v20 = vld [vmem:[#allocation39_spill] sm:$0xff]  ;;  %v17139_v49 = vld [vmem:[#allocation3 + $0xf8] sm:$0xf] }
 0x392   : > { %v9742_v62 = vsel %vm13776_vm5, %v9734_v57, %v9741_v23  ;;  %v17133_v16 = vadd.f32 %v18522_v20, %v18521_v56  ;;  %v18524_v43 = vld [vmem:[#allocation38_spill] sm:$0xff]  ;;  %v17141_v52 = vpop.f32.mrf.mxu0  ;;  %v17143_v47 = vld [vmem:[#allocation3 + $0x104] sm:$0xf]  ;;  %v12256_v4 = vcombine.low %v17072_v51, %v17074_v29  ;;  %v9766_v57 = vshrl.u32 %v9470_v22, 16  ;;  %v9473_v20 = vld [vmem:[#allocation3 + $0x100] sm:$0x8]  ;;  %v17158_v51 = vpop.f32.mrf.mxu1 }
 0x393   : > { %18519 = vst [vmem:[#allocation28_spill] sm:$0xff] %v17120_v55  ;;  %v18525_v11 = vld [vmem:[#allocation70_spill] sm:$0xff]  ;;  %18527 = vst [vmem:[#allocation17_spill] sm:$0xff] %v17141_v52  ;;  %v12223_v25 = vcombine.low %v9733_v38, %v9742_v62  ;;  %v9754_v55 = vor.u32 %v9752_v28, %v9751_v6  ;;  %v9756_v63 = vrot.slane %v9751_v6, 4  ;;  %v9763_v27 = vor.u32 %v9761_v24, %v9760_v7 }
 0x394   : > { %18523 = vst [vmem:[#allocation9_spill] sm:$0xff] %v17133_v16  ;;  %v17137_v3 = vadd.f32 %v18525_v11, %v18524_v43  ;;  %v9771_v23 = vshrl.u32 %v17122_v60, 16  ;;  %v9774_v56 = vshll.u32 %v17122_v60, 16  ;;  %v9780_v24 = vshrl.u32 %v17139_v49, 16  ;;  %v17156_v7 = vld [vmem:[#allocation3 + $0x108] sm:$0xf]  ;;  %v17160_v29 = vpop.f32.mrf.mxu0 }
 0x395   : > { %13231 = vmatmul.mubr.msk.bf16.gmra.mxu1 %vm6484_vm11, %v12223_v25  ;;  %v9755_v43 = vsel %vm13776_vm5, %v12207_v48, %v9754_v55  ;;  %v9764_v28 = vsel %vm13776_vm5, %v9756_v63, %v9763_v27  ;;  %v9783_v6 = vshll.u32 %v17139_v49, 16  ;;  %18528 = vst [vmem:[#allocation16_spill] sm:$0xff] %v17160_v29  ;;  %v12208_v38 = vrot.slane %v9766_v57, 11  ;;  %v18529_v48 = vld [vmem:[#allocation44_spill] sm:$0xff] }
 0x396   : > { %18526 = vst [vmem:[#allocation12_spill] sm:$0xff] %v17137_v3  ;;  %v12224_v22 = vcombine.low %v9755_v43, %v9764_v28  ;;  %v9773_v62 = vrot.slane %v9771_v23, 7  ;;  %v12257_v11 = vcombine.low %v17087_v9, %v17094_v21  ;;  %v9782_v55 = vrot.slane %v9780_v24, 7  ;;  %v18530_v25 = vld [vmem:[#allocation60_spill] sm:$0xff]  ;;  %v9476_v28 = vld [vmem:[#allocation3 + $0x110] sm:$0x8] }
 0x397   : > { %v17166_v63 = vadd.f32 %v18530_v25, %v18529_v48  ;;  %v9788_v27 = vshrl.u32 %v9473_v20, 16  ;;  %v9793_v3 = vshrl.u32 %v17143_v47, 16  ;;  %v9796_v29 = vshll.u32 %v17143_v47, 16  ;;  %v17176_v20 = vpop.f32.mrf.mxu0  ;;  %v18533_v48 = vld [vmem:[#allocation14_spill] sm:$0xff] }
 0x398   : > { %13234 = vmatprep.mubr.msk.bf16.mxu1 %vm6484_vm11, %v12224_v22  ;;  %v9776_v16 = vor.u32 %v9774_v56, %v9773_v62  ;;  %v9778_v52 = vrot.slane %v9773_v62, 4  ;;  %v9802_v57 = vshrl.u32 %v17156_v7, 16  ;;  %13265 = vmatmul.mubr.msk.bf16.gmra.mxu0 %vm6484_vm11, %v12256_v4  ;;  %v9785_v23 = vor.u32 %v9783_v6, %v9782_v55  ;;  %v18532_v62 = vld [vmem:[#allocation51_spill] sm:$0xff]  ;;  %v18535_v4 = vld [vmem:[#allocation13_spill] sm:$0xff]  ;;  %v17191_v55 = vld [vmem:[#allocation3 + $0x118] sm:$0xf] }
 0x399   : > { %18531 = vst [vmem:[#allocation61_spill] sm:$0xff] %v17166_v63  ;;  %v12209_v9 = vrot.slane %v9788_v27, 11  ;;  %v9795_v21 = vrot.slane %v9793_v3, 7  ;;  %v9805_v43 = vshll.u32 %v17156_v7, 16  ;;  %v17174_v24 = vpop.f32.mrf.mxu1  ;;  %13268 = vmatprep.mubr.msk.bf16.mxu0 %vm6484_vm11, %v12257_v11  ;;  %v17183_v25 = vadd.f32 %v18533_v48, %v18532_v62  ;;  %v17189_v6 = vld [vmem:[#allocation3 + $0x114] sm:$0xf] }
 0x39a   : > { %v9777_v56 = vsel %vm13776_vm5, %v12208_v38, %v9776_v16  ;;  %v9804_v22 = vrot.slane %v9802_v57, 7  ;;  %v17187_v3 = vadd.f32 %v16820_v61, %v18535_v4  ;;  %v9786_v27 = vsel %vm13776_vm5, %v9778_v52, %v9785_v23  ;;  %v18537_v38 = vld [vmem:[#allocation72_spill] sm:$0xff] }
 0x39b   : > { %18534 = vst [vmem:[#allocation19_spill] sm:$0xff] %v17183_v25  ;;  %v9798_v63 = vor.u32 %v9796_v29, %v9795_v21  ;;  %v9800_v16 = vrot.slane %v9795_v21, 4  ;;  %v17197_v11 = vadd.f32 %v16849_v41, %v18537_v38  ;;  %v17199_v57 = vpop.f32.mrf.mxu1  ;;  %v12225_v62 = vcombine.low %v9777_v56, %v9786_v27  ;;  %v10452_v41 = vld [vmem:[#allocation3 + $0x28] sm:$0xf]  ;;  %v17208_v21 = vpop.f32.mrf.mxu0 }
 0x39c   : > { %18536 = vst [vmem:[#allocation18_spill] sm:$0xff] %v17187_v3  ;;  %v9807_v48 = vor.u32 %v9805_v43, %v9804_v22  ;;  %v12258_v61 = vcombine.low %v17122_v60, %v17139_v49  ;;  %v9810_v4 = vshrl.u32 %v9476_v28, 16  ;;  %v10451_v3 = vld [vmem:[#allocation3 + $0x24] sm:$0xf]  ;;  %v9815_v52 = vshrl.u32 %v17189_v6, 16  ;;  %18539 = vst [vmem:[#allocation20_spill] sm:$0xff] %v17208_v21 }
 0x39d   : > { %18538 = vst [vmem:[#allocation21_spill] sm:$0xff] %v17197_v11  ;;  %v9799_v25 = vsel %vm13776_vm5, %v12209_v9, %v9798_v63  ;;  %v9818_v29 = vshll.u32 %v17189_v6, 16  ;;  %v9824_v23 = vshrl.u32 %v17191_v55, 16  ;;  %13235 = vmatmul.mubr.msk.bf16.gmra.mxu1 %vm6484_vm11, %v12225_v62  ;;  %v9827_v49 = vshll.u32 %v17191_v55, 16  ;;  %v10453_v9 = vld [vmem:[#allocation3 + $0x2c] sm:$0x1]  ;;  %v17220_v38 = vpop.f32.mrf.mxu1 }
 0x39e   : > { %v9808_v43 = vsel %vm13776_vm5, %v9800_v16, %v9807_v48  ;;  %v12210_v60 = vrot.slane %v9810_v4, 11  ;;  %v12259_v63 = vcombine.low %v17143_v47, %v17156_v7  ;;  %v9817_v56 = vrot.slane %v9815_v52, 7 }
 0x39f   : > { %v12226_v28 = vcombine.low %v9799_v25, %v9808_v43  ;;  %v9826_v22 = vrot.slane %v9824_v23, 7  ;;  %v17218_v27 = vadd.f32 %v16862_v35, %v16815_v14  ;;  %v10500_v62 = vshrl.u32 %v10451_v3, 16 }
 0x3a0   : > { %v10503_v11 = vshll.u32 %v10451_v3, 16  ;;  %v10509_v21 = vshll.u32 %v10452_v41, 16  ;;  %v10513_v16 = vshrl.u32 %v10452_v41, 16  ;;  %13269 = vmatmul.mubr.msk.bf16.gmra.mxu0 %vm6484_vm11, %v12258_v61  ;;  %v9820_v48 = vor.u32 %v9818_v29, %v9817_v56  ;;  %v10454_v29 = vld [vmem:[#allocation3 + $0x34] sm:$0xf] }
 0x3a1   : > { %13238 = vmatprep.mubr.msk.bf16.mxu1 %vm6484_vm11, %v12226_v28  ;;  %v9822_v47 = vrot.slane %v9817_v56, 4  ;;  %v9829_v7 = vor.u32 %v9827_v49, %v9826_v22  ;;  %v10519_v25 = vshll.u32 %v10453_v9, 16  ;;  %v17224_v4 = vpop.f32.mrf.mxu0  ;;  %13272 = vmatprep.mubr.msk.bf16.mxu0 %vm6484_vm11, %v12259_v63  ;;  %v10502_v14 = vrot.slane %v10500_v62, 4  ;;  %v17235_v49 = vpop.f32.mrf.mxu1  ;;  %v18541_v56 = vld [vmem:[#allocation65_spill] sm:$0xff] }
 0x3a2   : > { %v10505_v35 = vrot.slane %v10503_v11, 5  ;;  %v10511_v52 = vrot.slane %v10509_v21, 5  ;;  %v10515_v23 = vrot.slane %v10513_v16, 4  ;;  %v9821_v3 = vsel %vm13776_vm5, %v12210_v60, %v9820_v48  ;;  %v10455_v21 = vld [vmem:[#allocation3 + $0x38] sm:$0xf] }
 0x3a3   : > { %v9830_v41 = vsel %vm13776_vm5, %v9822_v47, %v9829_v7  ;;  %v10521_v43 = vrot.slane %v10519_v25, 5  ;;  %v17233_v61 = vadd.f32 %v16869_v40, %v16829_v58  ;;  %v17239_v11 = vadd.f32 %v16900_v36, %v16847_v33  ;;  %v10456_v60 = vld [vmem:[#allocation3 + $0x3c] sm:$0x1]  ;;  %v17251_v62 = vpop.f32.mrf.mxu0  ;;  %v10457_v47 = vld [vmem:[#allocation3 + $0x44] sm:$0xf] }
 0x3a4   : > { %v12227_v9 = vcombine.low %v9821_v3, %v9830_v41  ;;  %v10506_v63 = vor.u32 %v10505_v35, %v10502_v14  ;;  %v10516_v28 = vor.u32 %v10515_v23, %v10511_v52  ;;  %v11376_v2 = vsel %vm1080_vm0, %v18541_v56, 0  ;;  %v10459_v3 = vld [vmem:[#allocation3 + $0x4c] sm:$0x1] }
 0x3a5   : > { %18540 = vst [vmem:[#allocation25_spill] sm:$0xff] %v17239_v11  ;;  %v17245_v22 = vadd.f32 %v16925_v18, %v16867_v37  ;;  %v12260_v58 = vcombine.low %v17189_v6, %v17191_v55  ;;  %v7654_v40 = vadd.f32 %v16929_v59, %v16834_v45  ;;  %13311 = vmatpush3.bf16.msra.mxu0 %v11376_v2  ;;  %v10524_v16 = vshrl.u32 %v10454_v29, 16  ;;  %v10458_v6 = vld [vmem:[#allocation3 + $0x48] sm:$0xf] }
 0x3a6   : > { %13239 = vmatmul.mubr.msk.bf16.gmra.mxu1 %vm6484_vm11, %v12227_v9  ;;  %v10507_v33 = vrot.slane %v10506_v63, 4  ;;  %v10517_v36 = vrot.slane %v10516_v28, 4  ;;  %v10527_v48 = vshll.u32 %v10454_v29, 16  ;;  %v10533_v7 = vshll.u32 %v10455_v21, 16 }
 0x3a7   : > { %18542 = vst [vmem:[#allocation24_spill] sm:$0xff] %v17245_v22  ;;  %v10537_v25 = vshrl.u32 %v10455_v21, 16  ;;  %v10543_v37 = vshll.u32 %v10456_v60, 16  ;;  %v17256_v18 = vadd.f32 %v16933_v12, %v16893_v10  ;;  %v17258_v55 = vpop.f32.mrf.mxu1  ;;  %v10526_v35 = vrot.slane %v10524_v16, 4  ;;  %v17265_v10 = vpop.f32.mrf.mxu0 }
 0x3a8   : > { %v10512_v59 = vsel %vm13974_vm8, %v10507_v33, %v10511_v52  ;;  %v10522_v14 = vsel %vm13974_vm8, %v10517_v36, %v10521_v43  ;;  %v10529_v23 = vrot.slane %v10527_v48, 5  ;;  %13273 = vmatmul.mubr.msk.bf16.gmra.mxu0 %vm6484_vm11, %v12260_v58  ;;  %v10535_v29 = vrot.slane %v10533_v7, 5 }
 0x3a9   : > { %18543 = vst [vmem:[#allocation32_spill] sm:$0xff] %v17256_v18  ;;  %v12278_v41 = vcombine.low %v10512_v59, %v10522_v14  ;;  %v10539_v9 = vrot.slane %v10537_v25, 4  ;;  %v10545_v63 = vrot.slane %v10543_v37, 5  ;;  %v10548_v28 = vshrl.u32 %v10457_v47, 16  ;;  %v17267_v56 = vpop.f32.mrf.mxu1  ;;  %v10460_v59 = vld [vmem:[#allocation3 + $0x54] sm:$0xf]  ;;  %v17276_v14 = vpop.f32.mrf.mxu0 }
 0x3aa   : > { %v10530_v12 = vor.u32 %v10529_v23, %v10526_v35  ;;  %v10551_v21 = vshll.u32 %v10457_v47, 16  ;;  %v10557_v60 = vshll.u32 %v10458_v6, 16  ;;  %v10561_v43 = vshrl.u32 %v10458_v6, 16  ;;  %v10461_v23 = vld [vmem:[#allocation3 + $0x58] sm:$0xf] }
 0x3ab   : > { %13278 = vmatprep.mubr.msk.bf16.mxu1 %vm6484_vm11, %v12278_v41  ;;  %v10540_v52 = vor.u32 %v10539_v9, %v10535_v29  ;;  %v10567_v2 = vshll.u32 %v10459_v3, 16  ;;  %v7652_v33 = vadd.f32 %v16949_v53, %v16860_v19  ;;  %v10550_v36 = vrot.slane %v10548_v28, 4  ;;  %v17286_v3 = vpop.f32.mrf.mxu1  ;;  %v18547_v41 = vld [vmem:[#allocation45_spill] sm:$0xff] }
 0x3ac   : > { %v10531_v58 = vrot.slane %v10530_v12, 4  ;;  %v10553_v16 = vrot.slane %v10551_v21, 5  ;;  %v10559_v48 = vrot.slane %v10557_v60, 5  ;;  %v10563_v25 = vrot.slane %v10561_v43, 4  ;;  %v10462_v12 = vld [vmem:[#allocation3 + $0x5c] sm:$0x1] }
 0x3ad   : > { %v10541_v7 = vrot.slane %v10540_v52, 4  ;;  %v10569_v37 = vrot.slane %v10567_v2, 5  ;;  %v17274_v47 = vadd.f32 %v16958_v17, %v16905_v46  ;;  %v7655_v19 = vadd.f32 %v16965_v39, %v16877_v44  ;;  %v18549_v39 = vld [vmem:[#allocation23_spill] sm:$0xff]  ;;  %v10463_v2 = vld [vmem:[#allocation3 + $0x64] sm:$0xf] }
 0x3ae   : > { %v10536_v6 = vsel %vm13974_vm8, %v10531_v58, %v10535_v29  ;;  %v10554_v35 = vor.u32 %v10553_v16, %v10550_v36  ;;  %v17284_v53 = vadd.f32 %v16974_v31, %v16922_v13  ;;  %v10564_v17 = vor.u32 %v10563_v25, %v10559_v48  ;;  %v10464_v36 = vld [vmem:[#allocation3 + $0x68] sm:$0xf] }
 0x3af   : > { %18545 = vst [vmem:[#allocation33_spill] sm:$0xff] %v17274_v47  ;;  %v10546_v46 = vsel %vm13974_vm8, %v10541_v7, %v10545_v63  ;;  %v7653_v9 = vadd.f32 %v16982_v42, %v18547_v41  ;;  %v17293_v29 = vadd.f32 %v16988_v15, %v7654_v40  ;;  %v7658_v13 = vadd.f32 %v16995_v5, %v18549_v39  ;;  %v17305_v5 = vpop.f32.mrf.mxu1 }
 0x3b0   : > { %18546 = vst [vmem:[#allocation40_spill] sm:$0xff] %v17284_v53  ;;  %v12279_v28 = vcombine.low %v10536_v6, %v10546_v46  ;;  %v10555_v44 = vrot.slane %v10554_v35, 4  ;;  %v10572_v31 = vshrl.u32 %v10460_v59, 16  ;;  %v10565_v21 = vrot.slane %v10564_v17, 4  ;;  %v10465_v6 = vld [vmem:[#allocation3 + $0x6c] sm:$0x1] }
 0x3b1   : > { %18548 = vst [vmem:[#allocation41_spill] sm:$0xff] %v17293_v29  ;;  %v10575_v60 = vshll.u32 %v10460_v59, 16  ;;  %v10581_v52 = vshll.u32 %v10461_v23, 16  ;;  %v10585_v43 = vshrl.u32 %v10461_v23, 16  ;;  %v17297_v63 = vpop.f32.mrf.mxu0  ;;  %v10591_v40 = vshll.u32 %v10462_v12, 16  ;;  %v11260_v29 = vld [vmem:[%s13734_s8 + $0x60] sm:$0xff] }
 0x3b2   : > { %13279 = vmatmul.mubr.msk.bf16.vlgmr.msra.gmra.mxu1 %vm6484_vm11, %v12279_v28  ;;  %v10560_v15 = vsel %vm13974_vm8, %v10555_v44, %v10559_v48  ;;  %v10574_v42 = vrot.slane %v10572_v31, 4  ;;  %v17303_v58 = vadd.f32 %v16997_v1, %v7652_v33  ;;  %v10570_v16 = vsel %vm13974_vm8, %v10565_v21, %v10569_v37  ;;  %v18551_v37 = vld [vmem:[#allocation47_spill] sm:$0xff] }
 0x3b3   : > { %v10577_v7 = vrot.slane %v10575_v60, 5  ;;  %v10583_v25 = vrot.slane %v10581_v52, 5  ;;  %v10587_v59 = vrot.slane %v10585_v43, 4  ;;  %v17309_v35 = vpop.f32.mrf.mxu0  ;;  %v12280_v23 = vcombine.low %v10560_v15, %v10570_v16  ;;  %v18553_v16 = vld [vmem:[#allocation52_spill] sm:$0xff]  ;;  %v11262_v53 = vld [vmem:[%s13734_s8 + $0x70] sm:$0xff] }
 0x3b4   : > { %18550 = vst [vmem:[#allocation48_spill] sm:$0xff] %v17303_v58  ;;  %v10593_v46 = vrot.slane %v10591_v40, 5  ;;  %v10596_v48 = vshrl.u32 %v10463_v2, 16  ;;  %v10599_v17 = vshll.u32 %v10463_v2, 16  ;;  %v10605_v1 = vshll.u32 %v10464_v36, 16 }
 0x3b5   : > { %v10578_v41 = vor.u32 %v10577_v7, %v10574_v42  ;;  %v10588_v12 = vor.u32 %v10587_v59, %v10583_v25  ;;  %v10609_v33 = vshrl.u32 %v10464_v36, 16  ;;  %13282 = vmatprep.mubr.msk.bf16.mxu1 %vm6484_vm11, %v12280_v23  ;;  %v10615_v39 = vshll.u32 %v10465_v6, 16  ;;  %v17316_v40 = vpop.f32.mrf.mxu0  ;;  %v10466_v59 = vld [vmem:[#allocation3 + $0x74] sm:$0xf] }
 0x3b6   : > { %v10598_v28 = vrot.slane %v10596_v48, 4  ;;  %v10601_v44 = vrot.slane %v10599_v17, 5  ;;  %v7656_v31 = vadd.f32 %v17020_v34, %v18551_v37  ;;  %v17314_v21 = vpop.f32.mrf.mxu1  ;;  %v10607_v43 = vrot.slane %v10605_v1, 5  ;;  %v10467_v17 = vld [vmem:[#allocation3 + $0x78] sm:$0xf] }
 0x3b7   : > { %v10579_v60 = vrot.slane %v10578_v41, 4  ;;  %v10589_v52 = vrot.slane %v10588_v12, 4  ;;  %v10611_v15 = vrot.slane %v10609_v33, 4  ;;  %v10617_v42 = vrot.slane %v10615_v39, 5  ;;  %v10468_v41 = vld [vmem:[#allocation3 + $0x7c] sm:$0x1]  ;;  %v17345_v39 = vpop.f32.mrf.mxu0 }
 0x3b8   : > { %v10602_v2 = vor.u32 %v10601_v44, %v10598_v28  ;;  %v17319_v36 = vadd.f32 %v17022_v30, %v7655_v19  ;;  %v17323_v7 = vadd.f32 %v17042_v32, %v18553_v16  ;;  %v17330_v48 = vadd.f32 %v17031_v50, %v7653_v9  ;;  %v18555_v19 = vld [vmem:[#allocation63_spill] sm:$0xff]  ;;  %v17339_v33 = vpop.f32.mrf.mxu1  ;;  %v18557_v28 = vld [vmem:[#allocation26_spill] sm:$0xff]  ;;  %v10469_v44 = vld [vmem:[#allocation3 + $0x84] sm:$0xf] }
 0x3b9   : > { %v10584_v34 = vsel %vm13974_vm8, %v10579_v60, %v10583_v25  ;;  %v10594_v6 = vsel %vm13974_vm8, %v10589_v52, %v10593_v46  ;;  %v10612_v23 = vor.u32 %v10611_v15, %v10607_v43  ;;  %v17334_v1 = vadd.f32 %v17059_v26, %v18555_v19  ;;  %v10470_v60 = vld [vmem:[#allocation3 + $0x88] sm:$0xf]  ;;  %v10471_v16 = vld [vmem:[#allocation3 + $0x8c] sm:$0x1] }
 0x3ba   : > { %18552 = vst [vmem:[#allocation49_spill] sm:$0xff] %v17319_v36  ;;  %18554 = vst [vmem:[#allocation15_spill] sm:$0xff] %v17330_v48  ;;  %v12281_v12 = vcombine.low %v10584_v34, %v10594_v6  ;;  %v10603_v30 = vrot.slane %v10602_v2, 4  ;;  %v17337_v32 = vadd.f32 %v17046_v0, %v7658_v13  ;;  %v17343_v46 = vadd.f32 %v17096_v8, %v18557_v28  ;;  %v11250_v34 = vld [vmem:[%s13734_s8 + $0x10] sm:$0xff]  ;;  %v11253_v28 = vld [vmem:[%s13734_s8 + $0x28] sm:$0xff] }
 0x3bb   : > { %v10613_v25 = vrot.slane %v10612_v23, 4  ;;  %v10620_v50 = vshrl.u32 %v10466_v59, 16  ;;  %v10623_v9 = vshll.u32 %v10466_v59, 16  ;;  %v10629_v26 = vshll.u32 %v10467_v17, 16  ;;  %v11248_v59 = vld [vmem:[%s13734_s8] sm:$0xff]  ;;  %v11257_v48 = vld [vmem:[%s13734_s8 + $0x48] sm:$0xff] }
 0x3bc   : > { %18556 = vst [vmem:[#allocation55_spill] sm:$0xff] %v17337_v32  ;;  %13283 = vmatmul.mubr.msk.bf16.gmra.mxu1 %vm6484_vm11, %v12281_v12  ;;  %v10608_v0 = vsel %vm13974_vm8, %v10603_v30, %v10607_v43  ;;  %v10633_v13 = vshrl.u32 %v10467_v17, 16  ;;  %v10639_v37 = vshll.u32 %v10468_v41, 16  ;;  %v17353_v2 = vadd.f32 %v17056_v54, %v7656_v31  ;;  %v11249_v41 = vld [vmem:[%s13734_s8 + $0x8] sm:$0xff]  ;;  %v17358_v12 = vpop.f32.mrf.mxu1  ;;  %v11251_v54 = vld [vmem:[%s13734_s8 + $0x18] sm:$0xff]  ;;  %v11252_v31 = vld [vmem:[%s13734_s8 + $0x20] sm:$0xff] }
 0x3bd   : > { %v10618_v8 = vsel %vm13974_vm8, %v10613_v25, %v10617_v42  ;;  %v10622_v52 = vrot.slane %v10620_v50, 4  ;;  %v10625_v15 = vrot.slane %v10623_v9, 5  ;;  %v10631_v6 = vrot.slane %v10629_v26, 5  ;;  %v11258_v36 = vld [vmem:[%s13734_s8 + $0x50] sm:$0xff] }
 0x3be   : > { %18558 = vst [vmem:[#allocation58_spill] sm:$0xff] %v17353_v2  ;;  %v12282_v43 = vcombine.low %v10608_v0, %v10618_v8  ;;  %v10635_v23 = vrot.slane %v10633_v13, 4  ;;  %v10641_v17 = vrot.slane %v10639_v37, 5  ;;  %v10644_v30 = vshrl.u32 %v10469_v44, 16  ;;  %v11254_v13 = vld [vmem:[%s13734_s8 + $0x30] sm:$0xff]  ;;  %v11255_v37 = vld [vmem:[%s13734_s8 + $0x38] sm:$0xff]  ;;  %v17375_v47 = vpop.f32.mrf.mxu1 }
 0x3bf   : > { %v10626_v42 = vor.u32 %v10625_v15, %v10622_v52  ;;  %v10647_v19 = vshll.u32 %v10469_v44, 16  ;;  %v10653_v25 = vshll.u32 %v10470_v60, 16  ;;  %v17363_v50 = vpop.f32.mrf.mxu0  ;;  %v10657_v0 = vshrl.u32 %v10470_v60, 16  ;;  %v11256_v44 = vld [vmem:[%s13734_s8 + $0x40] sm:$0xff] }
 0x3c0   : > { %13286 = vmatprep.mubr.msk.bf16.mxu1 %vm6484_vm11, %v12282_v43  ;;  %v10636_v9 = vor.u32 %v10635_v23, %v10631_v6  ;;  %v10663_v26 = vshll.u32 %v10471_v16, 16  ;;  %v11280_v8 = vadd.f32 %v11250_v34, %v11248_v59  ;;  %v10646_v15 = vrot.slane %v10644_v30, 4  ;;  %v11259_v16 = vld [vmem:[%s13734_s8 + $0x58] sm:$0xff] }
 0x3c1   : > { %v10627_v52 = vrot.slane %v10626_v42, 4  ;;  %v10649_v2 = vrot.slane %v10647_v19, 5  ;;  %v10655_v32 = vrot.slane %v10653_v25, 5  ;;  %v10659_v43 = vrot.slane %v10657_v0, 4  ;;  %v11261_v19 = vld [vmem:[%s13734_s8 + $0x68] sm:$0xff]  ;;  %v11263_v25 = vld [vmem:[%s13734_s8 + $0x78] sm:$0xff]  ;;  %v17381_v18 = vpop.f32.mrf.mxu0 }
 0x3c2   : > { %v10637_v58 = vrot.slane %v10636_v9, 4  ;;  %v10665_v23 = vrot.slane %v10663_v26, 5  ;;  %v11281_v60 = vadd.f32 %v11251_v54, %v11249_v41  ;;  %11296 = vst.msk [vmem:[#allocation5] sm:$0xff] %vm1031_vm2, %v11280_v8  ;;  %v11282_v42 = vadd.f32 %v11254_v13, %v11252_v31  ;;  %v18559_v9 = vld [vmem:[#allocation53_spill] sm:$0xff]  ;;  %v18560_v0 = vld [vmem:[#allocation31_spill] sm:$0xff] }
 0x3c3   : > { %v10632_v59 = vsel %vm13974_vm8, %v10627_v52, %v10631_v6  ;;  %v10650_v34 = vor.u32 %v10649_v2, %v10646_v15  ;;  %v11283_v30 = vadd.f32 %v11255_v37, %v11253_v28  ;;  %v10660_v54 = vor.u32 %v10659_v43, %v10655_v32  ;;  %v10472_v31 = vld [vmem:[#allocation3 + $0x94] sm:$0xf]  ;;  %v18564_v52 = vld [vmem:[#allocation66_spill] sm:$0xff]  ;;  %v10474_v15 = vld [vmem:[#allocation3 + $0x9c] sm:$0x1] }
 0x3c4   : > { %v10642_v41 = vsel %vm13974_vm8, %v10637_v58, %v10641_v17  ;;  %11297 = vst.msk [vmem:[#allocation5 + $0x8] sm:$0xff] %vm1031_vm2, %v11281_v60  ;;  %v7660_v26 = vadd.f32 %v18560_v0, %v18559_v9  ;;  %v11284_v8 = vadd.f32 %v11258_v36, %v11256_v44  ;;  %11298 = vst.msk [vmem:[#allocation5 + $0x10] sm:$0xff] %vm1031_vm2, %v11282_v42  ;;  %v18561_v58 = vld [vmem:[#allocation56_spill] sm:$0xff]  ;;  %v18563_v37 = vld [vmem:[#allocation11_spill] sm:$0xff] }
 0x3c5   : > { %v12283_v22 = vcombine.low %v10632_v59, %v10642_v41  ;;  %v10651_v11 = vrot.slane %v10650_v34, 4  ;;  %11299 = vst.msk [vmem:[#allocation5 + $0x18] sm:$0xff] %vm1031_vm2, %v11283_v30  ;;  %v11285_v2 = vadd.f32 %v11259_v16, %v11257_v48  ;;  %v11286_v6 = vadd.f32 %v11262_v53, %v11260_v29  ;;  %v10473_v44 = vld [vmem:[#allocation3 + $0x98] sm:$0xf]  ;;  %v18565_v29 = vld [vmem:[#allocation34_spill] sm:$0xff]  ;;  %v18568_v16 = vld [vmem:[#allocation17_spill] sm:$0xff] }
 0x3c6   : > { %v10661_v28 = vrot.slane %v10660_v54, 4  ;;  %v11287_v13 = vadd.f32 %v11263_v25, %v11261_v19  ;;  %11300 = vst.msk [vmem:[#allocation5 + $0x20] sm:$0xff] %vm1031_vm2, %v11284_v8  ;;  %v17393_v17 = vadd.f32 %v18561_v58, %v17323_v7  ;;  %v7663_v36 = vadd.f32 %v18564_v52, %v18563_v37  ;;  %v17397_v43 = vpop.f32.mrf.mxu1  ;;  %v18567_v48 = vld [vmem:[#allocation36_spill] sm:$0xff]  ;;  %v10475_v34 = vld [vmem:[#allocation3 + $0xa4] sm:$0xf] }
 0x3c7   : > { %13287 = vmatmul.mubr.msk.bf16.gmra.mxu1 %vm6484_vm11, %v12283_v22  ;;  %v10656_v53 = vsel %vm13974_vm8, %v10651_v11, %v10655_v32  ;;  %11301 = vst.msk [vmem:[#allocation5 + $0x28] sm:$0xff] %vm1031_vm2, %v11285_v2  ;;  %11302 = vst.msk [vmem:[#allocation5 + $0x30] sm:$0xff] %vm1031_vm2, %v11286_v6  ;;  %v17406_v7 = vadd.f32 %v18565_v29, %v17334_v1  ;;  %v7661_v60 = vadd.f32 %v17158_v51, %v18567_v48  ;;  %v17414_v22 = vpop.f32.mrf.mxu0  ;;  %v18570_v32 = vld [vmem:[#allocation67_spill] sm:$0xff]  ;;  %v18571_v0 = vld [vmem:[#allocation16_spill] sm:$0xff] }
 0x3c8   : > { %18562 = vst [vmem:[#allocation69_spill] sm:$0xff] %v17393_v17  ;;  %v17412_v59 = vadd.f32 %v18568_v16, %v17343_v46  ;;  %v10666_v11 = vsel %vm13974_vm8, %v10661_v28, %v10665_v23  ;;  %11303 = vst.msk [vmem:[#allocation5 + $0x38] sm:$0xff] %vm1031_vm2, %v11287_v13  ;;  %v7666_v42 = vadd.f32 %v17174_v24, %v18570_v32  ;;  %v10668_v1 = vshrl.u32 %v10472_v31, 16  ;;  %v17421_v19 = vpop.f32.mrf.mxu1  ;;  %v10476_v2 = vld [vmem:[#allocation3 + $0xa8] sm:$0xf]  ;;  %v11276_v17 = vld [vmem:[%s13734_s8 + $0xe0] sm:$0xff] }
 0x3c9   : > { %18566 = vst [vmem:[#allocation64_spill] sm:$0xff] %v17406_v7  ;;  %v10671_v30 = vshll.u32 %v10472_v31, 16  ;;  %v12284_v51 = vcombine.low %v10656_v53, %v10666_v11  ;;  %v10677_v25 = vshll.u32 %v10473_v44, 16  ;;  %v10681_v41 = vshrl.u32 %v10473_v44, 16  ;;  %v18573_v31 = vld [vmem:[#allocation50_spill] sm:$0xff]  ;;  %v17432_v52 = vpop.f32.mrf.mxu0 }
 0x3ca   : > { %18569 = vst [vmem:[#allocation73_spill] sm:$0xff] %v17412_v59  ;;  %v10687_v46 = vshll.u32 %v10474_v15, 16  ;;  %v10670_v54 = vrot.slane %v10668_v1, 4  ;;  %v17424_v8 = vadd.f32 %v18571_v0, %v7660_v26  ;;  %v10692_v23 = vshrl.u32 %v10475_v34, 16  ;;  %v17434_v16 = vpop.f32.mrf.mxu1  ;;  %v10477_v1 = vld [vmem:[#allocation3 + $0xac] sm:$0x1] }
 0x3cb   : > { %v10673_v9 = vrot.slane %v10671_v30, 5  ;;  %13290 = vmatprep.mubr.msk.bf16.mxu1 %vm6484_vm11, %v12284_v51  ;;  %v11312_v6 = vld [vmem:[#allocation5] ss:$2 sm:$0xff]  ;;  %v11328_v28 = vld [vmem:[#allocation5 + $0x1] ss:$2 sm:$0xff]  ;;  %v10679_v24 = vrot.slane %v10677_v25, 5  ;;  %v7664_v58 = vadd.f32 %v17199_v57, %v18573_v31  ;;  %v17430_v37 = vadd.f32 %v17176_v20, %v7663_v36 }
 0x3cc   : > { %18572 = vst [vmem:[#allocation75_spill] sm:$0xff] %v17424_v8  ;;  %v10683_v13 = vrot.slane %v10681_v41, 4  ;;  %v11314_v44 = vld [vmem:[#allocation5 + $0x10] ss:$2 sm:$0xff]  ;;  %v11330_v15 = vld [vmem:[#allocation5 + $0x11] ss:$2 sm:$0xff]  ;;  %v11343_v26 = vadd.f32 %v11328_v28, %v11312_v6 }
 0x3cd   : > { %18574 = vst [vmem:[#allocation74_spill] sm:$0xff] %v17430_v37  ;;  %v10674_v53 = vor.u32 %v10673_v9, %v10670_v54  ;;  %v10689_v29 = vrot.slane %v10687_v46, 5  ;;  %v10694_v48 = vrot.slane %v10692_v23, 4  ;;  %v11344_v11 = vadd.f32 %v11330_v15, %v11314_v44  ;;  %v18575_v36 = vld [vmem:[#allocation54_spill] sm:$0xff]  ;;  %v18576_v31 = vld [vmem:[#allocation20_spill] sm:$0xff] }
 0x3ce   : > { %v10684_v32 = vor.u32 %v10683_v13, %v10679_v24  ;;  %v10695_v30 = vshll.u32 %v10475_v34, 16  ;;  %v10701_v51 = vshll.u32 %v10476_v2, 16  ;;  %v11316_v25 = vld [vmem:[#allocation5 + $0x20] ss:$2 sm:$0xff]  ;;  %v11332_v57 = vld [vmem:[#allocation5 + $0x21] ss:$2 sm:$0xff]  ;;  %v17438_v0 = vadd.f32 %v17220_v38, %v18575_v36  ;;  %v17447_v38 = vpop.f32.mrf.mxu1 }
 0x3cf   : > { %v10675_v41 = vrot.slane %v10674_v53, 4  ;;  %v10705_v20 = vshrl.u32 %v10476_v2, 16  ;;  %v17441_v6 = vadd.f32 %v18576_v31, %v7661_v60  ;;  %v11351_v46 = vpack.c.bf16 %v11344_v11, %v11343_v26  ;;  %v11318_v54 = vld [vmem:[#allocation5 + $0x30] ss:$2 sm:$0xff]  ;;  %v11334_v9 = vld [vmem:[#allocation5 + $0x31] ss:$2 sm:$0xff]  ;;  %v17443_v44 = vpop.f32.mrf.mxu0 }
 0x3d0   : > { %v11345_v23 = vadd.f32 %v11332_v57, %v11316_v25  ;;  %v10685_v28 = vrot.slane %v10684_v32, 4  ;;  %v10697_v13 = vrot.slane %v10695_v30, 5  ;;  %v11346_v34 = vadd.f32 %v11334_v9, %v11318_v54  ;;  %v10478_v37 = vld [vmem:[#allocation3 + $0xb4] sm:$0xf]  ;;  %v18578_v32 = vld [vmem:[#allocation37_spill] sm:$0xff]  ;;  %v11273_v7 = vld [vmem:[%s13734_s8 + $0xc8] sm:$0xff] }
 0x3d1   : > { %18577 = vst [vmem:[#allocation71_spill] sm:$0xff] %v17441_v6  ;;  %v10680_v15 = vsel %vm13974_vm8, %v10675_v41, %v10679_v24  ;;  %v10703_v2 = vrot.slane %v10701_v51, 5  ;;  %v10707_v53 = vrot.slane %v10705_v20, 4  ;;  %13312 = vmatprep.mubr.msk.bf16.mxu0 %vm1031_vm2, %v11351_v46  ;;  %v10711_v11 = vshll.u32 %v10477_v1, 16  ;;  %v10479_v25 = vld [vmem:[#allocation3 + $0xb8] sm:$0xf]  ;;  %v17454_v57 = vpop.f32.mrf.mxu0 }
 0x3d2   : > { %v10690_v60 = vsel %vm13974_vm8, %v10685_v28, %v10689_v29  ;;  %v10698_v26 = vor.u32 %v10697_v13, %v10694_v48  ;;  %v7665_v30 = vadd.f32 %v17235_v49, %v18578_v32  ;;  %v11352_v36 = vpack.c.bf16 %v11346_v34, %v11345_v23  ;;  %v10480_v20 = vld [vmem:[#allocation3 + $0xbc] sm:$0x1]  ;;  %v18580_v54 = vld [vmem:[#allocation57_spill] sm:$0xff]  ;;  %v10483_v32 = vld [vmem:[#allocation3 + $0xcc] sm:$0x1] }
 0x3d3   : > { %v12285_v24 = vcombine.low %v10680_v15, %v10690_v60  ;;  %v10708_v51 = vor.u32 %v10707_v53, %v10703_v2  ;;  %v17457_v41 = vadd.f32 %v17224_v4, %v7666_v42  ;;  %v10713_v46 = vrot.slane %v10711_v11, 5  ;;  %v10481_v28 = vld [vmem:[#allocation3 + $0xc4] sm:$0xf]  ;;  %v17465_v4 = vpop.f32.mrf.mxu0  ;;  %v10482_v53 = vld [vmem:[#allocation3 + $0xc8] sm:$0xf]  ;;  %v18623_v45 = vld [vmem:[#allocation64_spill] sm:$0xff] }
 0x3d4   : > { %v10699_v31 = vrot.slane %v10698_v26, 4  ;;  %v7670_v29 = vadd.f32 %v17258_v55, %v18580_v54  ;;  %v10716_v48 = vshrl.u32 %v10478_v37, 16  ;;  %13313 = vmatmul.mubr.msk.bf16.vlgmr.msra.gmra.mxu0 %vm1031_vm2, %v11352_v36  ;;  %v10719_v1 = vshll.u32 %v10478_v37, 16  ;;  %v17463_v13 = vpop.f32.mrf.mxu1  ;;  %v10490_v6 = vld [vmem:[#allocation3 + $0xf4] sm:$0xf] }
 0x3d5   : > { %18579 = vst [vmem:[#allocation22_spill] sm:$0xff] %v17457_v41  ;;  %13291 = vmatmul.mubr.msk.bf16.gmra.mxu1 %vm6484_vm11, %v12285_v24  ;;  %v10709_v49 = vrot.slane %v10708_v51, 4  ;;  %v10725_v9 = vshll.u32 %v10479_v25, 16  ;;  %v10729_v23 = vshrl.u32 %v10479_v25, 16  ;;  %v10735_v15 = vshll.u32 %v10480_v20, 16 }
 0x3d6   : > { %v10704_v42 = vsel %vm13974_vm8, %v10699_v31, %v10703_v2  ;;  %v10718_v34 = vrot.slane %v10716_v48, 4  ;;  %v17470_v55 = vadd.f32 %v17251_v62, %v7664_v58  ;;  %v10721_v37 = vrot.slane %v10719_v1, 5  ;;  %v17474_v25 = vpop.f32.mrf.mxu1  ;;  %v17478_v58 = vpop.f32.mrf.mxu0 }
 0x3d7   : > { %v10714_v60 = vsel %vm13974_vm8, %v10709_v49, %v10713_v46  ;;  %v10727_v26 = vrot.slane %v10725_v9, 5  ;;  %v10731_v11 = vrot.slane %v10729_v23, 4  ;;  %v10737_v24 = vrot.slane %v10735_v15, 5  ;;  %v18582_v9 = vld [vmem:[#allocation29_spill] sm:$0xff] }
 0x3d8   : > { %18581 = vst [vmem:[#allocation27_spill] sm:$0xff] %v17470_v55  ;;  %v12286_v36 = vcombine.low %v10704_v42, %v10714_v60  ;;  %v10740_v51 = vshrl.u32 %v10481_v28, 16  ;;  %v10743_v54 = vshll.u32 %v10481_v28, 16  ;;  %v10722_v2 = vor.u32 %v10721_v37, %v10718_v34  ;;  %v17476_v62 = vpop.f32.mrf.mxu1  ;;  %v18584_v55 = vld [vmem:[#allocation28_spill] sm:$0xff] }
 0x3d9   : > { %v10732_v31 = vor.u32 %v10731_v11, %v10727_v26  ;;  %v10749_v20 = vshll.u32 %v10482_v53, 16  ;;  %v10753_v48 = vshrl.u32 %v10482_v53, 16  ;;  %v10759_v1 = vshll.u32 %v10483_v32, 16 }
 0x3da   : > { %13294 = vmatprep.mubr.msk.bf16.mxu1 %vm6484_vm11, %v12286_v36  ;;  %v10742_v46 = vrot.slane %v10740_v51, 4  ;;  %v10745_v49 = vrot.slane %v10743_v54, 5  ;;  %v7668_v23 = vadd.f32 %v17267_v56, %v18582_v9  ;;  %v10723_v42 = vrot.slane %v10722_v2, 4  ;;  %v17483_v34 = vpop.f32.mrf.mxu1  ;;  %v10484_v51 = vld [vmem:[#allocation3 + $0xd4] sm:$0xf] }
 0x3db   : > { %v10733_v15 = vrot.slane %v10732_v31, 4  ;;  %v10751_v60 = vrot.slane %v10749_v20, 5  ;;  %v10755_v28 = vrot.slane %v10753_v48, 4  ;;  %v10761_v53 = vrot.slane %v10759_v1, 5  ;;  %v10485_v31 = vld [vmem:[#allocation3 + $0xd8] sm:$0xf] }
 0x3dc   : > { %v10746_v37 = vor.u32 %v10745_v49, %v10742_v46  ;;  %v17487_v11 = vadd.f32 %v17265_v10, %v17438_v0  ;;  %v7671_v36 = vadd.f32 %v17286_v3, %v18584_v55  ;;  %v10728_v32 = vsel %vm13974_vm8, %v10723_v42, %v10727_v26  ;;  %v10486_v20 = vld [vmem:[#allocation3 + $0xdc] sm:$0x1]  ;;  %v17498_v48 = vpop.f32.mrf.mxu0  ;;  %v17500_v10 = vpop.f32.mrf.mxu1  ;;  %v18586_v3 = vld [vmem:[#allocation9_spill] sm:$0xff] }
 0x3dd   : > { %v10738_v56 = vsel %vm13974_vm8, %v10733_v15, %v10737_v24  ;;  %v10756_v54 = vor.u32 %v10755_v28, %v10751_v60  ;;  %v17496_v2 = vadd.f32 %v17276_v14, %v7665_v30  ;;  %v7669_v55 = vadd.f32 %v17305_v5, %v18586_v3  ;;  %v18588_v24 = vld [vmem:[#allocation12_spill] sm:$0xff]  ;;  %v10487_v9 = vld [vmem:[#allocation3 + $0xe4] sm:$0xf] }
 0x3de   : > { %18583 = vst [vmem:[#allocation46_spill] sm:$0xff] %v17487_v11  ;;  %v12287_v0 = vcombine.low %v10728_v32, %v10738_v56  ;;  %v10747_v46 = vrot.slane %v10746_v37, 4  ;;  %v17505_v26 = vadd.f32 %v17297_v63, %v7670_v29  ;;  %v7674_v1 = vadd.f32 %v17314_v21, %v18588_v24  ;;  %v17509_v42 = vpop.f32.mrf.mxu0  ;;  %v17511_v15 = vpop.f32.mrf.mxu1  ;;  %v10488_v29 = vld [vmem:[#allocation3 + $0xe8] sm:$0xf] }
 0x3df   : > { %18585 = vst [vmem:[#allocation43_spill] sm:$0xff] %v17496_v2  ;;  %v10757_v49 = vrot.slane %v10756_v54, 4  ;;  %v10764_v14 = vshrl.u32 %v10484_v51, 16  ;;  %v10767_v30 = vshll.u32 %v10484_v51, 16  ;;  %v10773_v5 = vshll.u32 %v10485_v31, 16 }
 0x3e0   : > { %18587 = vst [vmem:[#allocation30_spill] sm:$0xff] %v17505_v26  ;;  %13295 = vmatmul.mubr.msk.bf16.gmra.mxu1 %vm6484_vm11, %v12287_v0  ;;  %v10752_v28 = vsel %vm13974_vm8, %v10747_v46, %v10751_v60  ;;  %v10777_v37 = vshrl.u32 %v10485_v31, 16  ;;  %v10783_v63 = vshll.u32 %v10486_v20, 16  ;;  %v17519_v51 = vadd.f32 %v17309_v35, %v7668_v23  ;;  %v10489_v54 = vld [vmem:[#allocation3 + $0xec] sm:$0x1]  ;;  %v17521_v3 = vpop.f32.mrf.mxu0  ;;  %v17523_v24 = vpop.f32.mrf.mxu1 }
 0x3e1   : > { %v10762_v32 = vsel %vm13974_vm8, %v10757_v49, %v10761_v53  ;;  %v10766_v21 = vrot.slane %v10764_v14, 4  ;;  %v10769_v56 = vrot.slane %v10767_v30, 5  ;;  %v10775_v26 = vrot.slane %v10773_v5, 5  ;;  %v18590_v14 = vld [vmem:[#allocation61_spill] sm:$0xff] }
 0x3e2   : > { %18589 = vst [vmem:[#allocation62_spill] sm:$0xff] %v17519_v51  ;;  %v12288_v0 = vcombine.low %v10752_v28, %v10762_v32  ;;  %v10779_v60 = vrot.slane %v10777_v37, 4  ;;  %v10785_v46 = vrot.slane %v10783_v63, 5  ;;  %v10788_v20 = vshrl.u32 %v10487_v9, 16  ;;  %v17525_v41 = vpop.f32.mrf.mxu0  ;;  %v17527_v53 = vpop.f32.mrf.mxu1 }
 0x3e3   : > { %v10770_v31 = vor.u32 %v10769_v56, %v10766_v21  ;;  %v10791_v2 = vshll.u32 %v10487_v9, 16  ;;  %v10797_v11 = vshll.u32 %v10488_v29, 16  ;;  %v10801_v23 = vshrl.u32 %v10488_v29, 16 }
 0x3e4   : > { %13298 = vmatprep.mubr.msk.bf16.mxu1 %vm6484_vm11, %v12288_v0  ;;  %v10780_v35 = vor.u32 %v10779_v60, %v10775_v26  ;;  %v10807_v49 = vshll.u32 %v10489_v54, 16  ;;  %v7672_v30 = vadd.f32 %v17339_v33, %v18590_v14  ;;  %v10790_v5 = vrot.slane %v10788_v20, 4  ;;  %v17532_v32 = vpop.f32.mrf.mxu1  ;;  %v18592_v0 = vld [vmem:[#allocation19_spill] sm:$0xff]  ;;  %v18595_v20 = vld [vmem:[#allocation18_spill] sm:$0xff] }
 0x3e5   : > { %v10771_v28 = vrot.slane %v10770_v31, 4  ;;  %v10793_v37 = vrot.slane %v10791_v2, 5  ;;  %v10799_v63 = vrot.slane %v10797_v11, 5  ;;  %v10803_v21 = vrot.slane %v10801_v23, 4  ;;  %v10491_v11 = vld [vmem:[#allocation3 + $0xf8] sm:$0xf] }
 0x3e6   : > { %v10781_v9 = vrot.slane %v10780_v35, 4  ;;  %v10809_v56 = vrot.slane %v10807_v49, 5  ;;  %v17535_v51 = vadd.f32 %v17316_v40, %v7671_v36  ;;  %v17541_v33 = vadd.f32 %v17358_v12, %v18592_v0  ;;  %v17546_v60 = vpop.f32.mrf.mxu0  ;;  %v17548_v31 = vpop.f32.mrf.mxu1  ;;  %v10492_v12 = vld [vmem:[#allocation3 + $0xfc] sm:$0x1] }
 0x3e7   : > { %v10776_v29 = vsel %vm13974_vm8, %v10771_v28, %v10775_v26  ;;  %v10794_v54 = vor.u32 %v10793_v37, %v10790_v5  ;;  %v17544_v2 = vadd.f32 %v17345_v39, %v7669_v55  ;;  %18594 = vst [vmem:[#allocation59_spill] sm:$0xff] %v17548_v31  ;;  %v10804_v36 = vor.u32 %v10803_v21, %v10799_v63  ;;  %v18597_v55 = vld [vmem:[#allocation21_spill] sm:$0xff]  ;;  %v11279_v31 = vld [vmem:[%s13734_s8 + $0xf8] sm:$0xff] }
 0x3e8   : > { %18591 = vst [vmem:[#allocation68_spill] sm:$0xff] %v17535_v51  ;;  %v10786_v40 = vsel %vm13974_vm8, %v10781_v9, %v10785_v46  ;;  %v17554_v26 = vadd.f32 %v17375_v47, %v18595_v20  ;;  %v17557_v35 = vadd.f32 %v17363_v50, %v7674_v1  ;;  %v17561_v49 = vadd.f32 %v17397_v43, %v18597_v55  ;;  %v17563_v28 = vpop.f32.mrf.mxu0  ;;  %v17565_v5 = vpop.f32.mrf.mxu1  ;;  %v10493_v50 = vld [vmem:[#allocation3 + $0x104] sm:$0xf]  ;;  %v11269_v51 = vld [vmem:[%s13734_s8 + $0xa8] sm:$0xff] }
 0x3e9   : > { %18593 = vst [vmem:[#allocation35_spill] sm:$0xff] %v17544_v2  ;;  %v12289_v23 = vcombine.low %v10776_v29, %v10786_v40  ;;  %v10795_v39 = vrot.slane %v10794_v54, 4  ;;  %v10812_v14 = vshrl.u32 %v10490_v6, 16  ;;  %18598 = vst [vmem:[#allocation39_spill] sm:$0xff] %v17563_v28  ;;  %v10805_v46 = vrot.slane %v10804_v36, 4 }
 0x3ea   : > { %18596 = vst [vmem:[#allocation42_spill] sm:$0xff] %v17557_v35  ;;  %18599 = vst [vmem:[#allocation38_spill] sm:$0xff] %v17565_v5  ;;  %v10815_v37 = vshll.u32 %v10490_v6, 16  ;;  %v10821_v9 = vshll.u32 %v10491_v11, 16  ;;  %v10825_v47 = vshrl.u32 %v10491_v11, 16  ;;  %v10831_v43 = vshll.u32 %v10492_v12, 16  ;;  %v17573_v0 = vpop.f32.mrf.mxu0  ;;  %v17575_v11 = vpop.f32.mrf.mxu1 }
 0x3eb   : > { %13299 = vmatmul.mubr.msk.bf16.gmra.mxu1 %vm6484_vm11, %v12289_v23  ;;  %v10800_v1 = vsel %vm13974_vm8, %v10795_v39, %v10799_v63  ;;  %v10814_v21 = vrot.slane %v10812_v14, 4  ;;  %v17571_v29 = vadd.f32 %v17381_v18, %v7672_v30  ;;  %v10494_v54 = vld [vmem:[#allocation3 + $0x108] sm:$0xf]  ;;  %v10495_v6 = vld [vmem:[#allocation3 + $0x10c] sm:$0x1]  ;;  %18601 = vst [vmem:[#allocation44_spill] sm:$0xff] %v17573_v0  ;;  %v10810_v40 = vsel %vm13974_vm8, %v10805_v46, %v10809_v56 }
 0x3ec   : > { %18602 = vst [vmem:[#allocation60_spill] sm:$0xff] %v17575_v11  ;;  %v10817_v36 = vrot.slane %v10815_v37, 5  ;;  %v10823_v20 = vrot.slane %v10821_v9, 5  ;;  %v10827_v63 = vrot.slane %v10825_v47, 4  ;;  %v11264_v12 = vld [vmem:[%s13734_s8 + $0x80] sm:$0xff]  ;;  %v11266_v23 = vld [vmem:[%s13734_s8 + $0x90] sm:$0xff]  ;;  %v12290_v18 = vcombine.low %v10800_v1, %v10810_v40  ;;  %v17584_v2 = vpop.f32.mrf.mxu0  ;;  %v17586_v56 = vpop.f32.mrf.mxu1 }
 0x3ed   : > { %18600 = vst [vmem:[#allocation70_spill] sm:$0xff] %v17571_v29  ;;  %v10833_v30 = vrot.slane %v10831_v43, 5  ;;  %v10836_v39 = vshrl.u32 %v10493_v50, 16  ;;  %v10839_v55 = vshll.u32 %v10493_v50, 16  ;;  %v11265_v14 = vld [vmem:[%s13734_s8 + $0x88] sm:$0xff]  ;;  %v11267_v29 = vld [vmem:[%s13734_s8 + $0x98] sm:$0xff]  ;;  %v11288_v59 = vadd.f32 %v11266_v23, %v11264_v12 }
 0x3ee   : > { %v11268_v35 = vld [vmem:[%s13734_s8 + $0xa0] sm:$0xff]  ;;  %18603 = vst [vmem:[#allocation51_spill] sm:$0xff] %v17584_v2  ;;  %18604 = vst [vmem:[#allocation14_spill] sm:$0xff] %v17586_v56  ;;  %v10818_v46 = vor.u32 %v10817_v36, %v10814_v21  ;;  %v10828_v37 = vor.u32 %v10827_v63, %v10823_v20  ;;  %v10845_v9 = vshll.u32 %v10494_v54, 16  ;;  %v10849_v47 = vshrl.u32 %v10494_v54, 16  ;;  %v11270_v1 = vld [vmem:[%s13734_s8 + $0xb0] sm:$0xff]  ;;  %13302 = vmatprep.mubr.msk.bf16.mxu1 %vm6484_vm11, %v12290_v18  ;;  %v17595_v21 = vpop.f32.mrf.mxu1  ;;  %v17599_v0 = vpop.f32.mrf.mxu0 }
 0x3ef   : > { %v11271_v43 = vld [vmem:[%s13734_s8 + $0xb8] sm:$0xff]  ;;  %v10838_v50 = vrot.slane %v10836_v39, 4  ;;  %v10841_v40 = vrot.slane %v10839_v55, 5  ;;  %v10855_v8 = vshll.u32 %v10495_v6, 16  ;;  %v11272_v11 = vld [vmem:[%s13734_s8 + $0xc0] sm:$0xff]  ;;  %v11274_v56 = vld [vmem:[%s13734_s8 + $0xd0] sm:$0xff]  ;;  %v11289_v6 = vadd.f32 %v11267_v29, %v11265_v14 }
 0x3f0   : > { %18605 = vst [vmem:[#allocation13_spill] sm:$0xff] %v17595_v21  ;;  %v10819_v54 = vrot.slane %v10818_v46, 4  ;;  %v10829_v36 = vrot.slane %v10828_v37, 4  ;;  %v10847_v63 = vrot.slane %v10845_v9, 5  ;;  %v10851_v2 = vrot.slane %v10849_v47, 4  ;;  %v11275_v5 = vld [vmem:[%s13734_s8 + $0xd8] sm:$0xff]  ;;  %v17605_v28 = vpop.f32.mrf.mxu1  ;;  %v17611_v21 = vpop.f32.mrf.mxu0 }
 0x3f1   : > { %v10842_v18 = vor.u32 %v10841_v40, %v10838_v50  ;;  %v10857_v39 = vrot.slane %v10855_v8, 5  ;;  %v11290_v12 = vadd.f32 %v11270_v1, %v11268_v35  ;;  %11304 = vst.msk [vmem:[#allocation5 + $0x40] sm:$0xff] %vm1031_vm2, %v11288_v59  ;;  %v11277_v23 = vld [vmem:[%s13734_s8 + $0xe8] sm:$0xff]  ;;  %v11278_v55 = vld [vmem:[%s13734_s8 + $0xf0] sm:$0xff]  ;;  %v11291_v47 = vadd.f32 %v11271_v43, %v11269_v51  ;;  %11305 = vst.msk [vmem:[#allocation5 + $0x48] sm:$0xff] %vm1031_vm2, %v11289_v6  ;;  %s269_s8 = sand.u32 1, %s13528_s25  }
 0x3f2   : > { %v10824_v46 = vsel %vm13974_vm8, %v10819_v54, %v10823_v20  ;;  %v10834_v37 = vsel %vm13974_vm8, %v10829_v36, %v10833_v30  ;;  %v10852_v9 = vor.u32 %v10851_v2, %v10847_v63  ;;  %v7676_v59 = vadd.f32 %v17421_v19, %v17218_v27  ;;  %v17617_v14 = vpop.f32.mrf.mxu1  ;;  %v10496_v1 = vld [vmem:[#allocation3 + $0x114] sm:$0xf]  ;;  %v10497_v43 = vld [vmem:[#allocation3 + $0x118] sm:$0xf]  ;;  %v17620_v50 = vpop.f32.mrf.mxu0  ;;  %v10498_v19 = vld [vmem:[#allocation3 + $0x11c] sm:$0x1] }
 0x3f3   : > { %v12291_v8 = vcombine.low %v10824_v46, %v10834_v37  ;;  %v10843_v29 = vrot.slane %v10842_v18, 4  ;;  %11306 = vst.msk [vmem:[#allocation5 + $0x50] sm:$0xff] %vm1031_vm2, %v11290_v12  ;;  %v11292_v35 = vadd.f32 %v11274_v56, %v11272_v11  ;;  %11307 = vst.msk [vmem:[#allocation5 + $0x58] sm:$0xff] %vm1031_vm2, %v11291_v47  ;;  %v11293_v30 = vadd.f32 %v11275_v5, %v11273_v7  ;;  %s11554_s29 = sshll.u32 %s269_s8, 6  ;;  %s18109_s28 = scalar_lea.sflag [#allocation7], %s269_s8 }
 0x3f4   : > { %v10853_v20 = vrot.slane %v10852_v9, 4  ;;  %v11294_v2 = vadd.f32 %v11278_v55, %v11276_v17  ;;  %v11295_v51 = vadd.f32 %v11279_v31, %v11277_v23  ;;  %v17628_v27 = vadd.f32 %v17414_v22, %v17541_v33  ;;  %v17636_v31 = vpop.f32.mrf.mxu1  ;;  %v18606_v22 = vld [vmem:[#allocation25_spill] sm:$0xff]  ;;  %s18026_s9 = scalar_lea.vmem [#allocation6], %s11554_s29 }
 0x3f5   : > { %13303 = vmatmul.mubr.msk.bf16.gmra.mxu1 %vm6484_vm11, %v12291_v8  ;;  %v10848_v40 = vsel %vm13974_vm8, %v10843_v29, %v10847_v63  ;;  %11308 = vst.msk [vmem:[#allocation5 + $0x60] sm:$0xff] %vm1031_vm2, %v11292_v35  ;;  %v7679_v7 = vadd.f32 %v17434_v16, %v17233_v61  ;;  %v17634_v17 = vadd.f32 %v17432_v52, %v17554_v26  ;;  %11309 = vst.msk [vmem:[#allocation5 + $0x68] sm:$0xff] %vm1031_vm2, %v11293_v30  ;;  %v18607_v52 = vld [vmem:[#allocation24_spill] sm:$0xff]  ;;  %v17651_v26 = vpop.f32.mrf.mxu0  ;;  %v18609_v8 = vld [vmem:[#allocation33_spill] sm:$0xff]  ;;  %s11488_s14 = sshll.u32 %s18026_s9, 4  ;;  %s18103_s14 = int_to_ptr.vmem [resolvable:$true] %s11488_s14 }
 0x3f6   : > { %v10858_v5 = vsel %vm13974_vm8, %v10853_v20, %v10857_v39  ;;  %11310 = vst.msk [vmem:[#allocation5 + $0x70] sm:$0xff] %vm1031_vm2, %v11294_v2  ;;  %11311 = vst.msk [vmem:[#allocation5 + $0x78] sm:$0xff] %vm1031_vm2, %v11295_v51  ;;  %v7677_v33 = vadd.f32 %v17447_v38, %v18606_v22  ;;  %v17647_v61 = vadd.f32 %v17443_v44, %v17561_v49  ;;  %v10860_v56 = vshrl.u32 %v10496_v1, 16  ;;  %v17653_v63 = vpop.f32.mrf.mxu1  ;;  %v18608_v38 = vld [vmem:[#allocation32_spill] sm:$0xff]  ;;  %s13476_s18 = scalar_lea.vmem %s18103_s14, 1024  ;;  %p13483_p0 = scmp.lt.s32.totalorder %s18103_s14, %s13481_s20 }
 0x3f7   : > { %v7682_v16 = vadd.f32 %v17463_v13, %v18607_v52  ;;  %v12292_v11 = vcombine.low %v10848_v40, %v10858_v5  ;;  %v10863_v54 = vshll.u32 %v10496_v1, 16  ;;  %v10869_v36 = vshll.u32 %v10497_v43, 16  ;;  %v18610_v2 = vld [vmem:[#allocation40_spill] sm:$0xff]  ;;  %p13477_p11 = scmp.ne.s32.totalorder %s18103_s14, %s13476_s18  ;;  %p13484_p1 = scmp.lt.s32.totalorder %s13482_s21, %s13476_s18 }
 0x3f8   : > { %v10873_v18 = vshrl.u32 %v10497_v43, 16  ;;  %v10879_v39 = vshll.u32 %v10498_v19, 16  ;;  %v17656_v6 = vadd.f32 %v17454_v57, %v7676_v59  ;;  %v7680_v44 = vadd.f32 %v17474_v25, %v18608_v38  ;;  %v17664_v55 = vpop.f32.mrf.mxu1  ;;  %v11320_v46 = vld [vmem:[#allocation5 + $0x40] ss:$2 sm:$0xff]  ;;  %v11336_v37 = vld [vmem:[#allocation5 + $0x41] ss:$2 sm:$0xff]  ;;  %v13186_v25 = vpop.f32.mrf.mxu0 }
 0x3f9   : > { %13306 = vmatprep.mubr.msk.bf16.mxu1 %vm6484_vm11, %v12292_v11  ;;  %v10862_v49 = vrot.slane %v10860_v56, 4  ;;  %v10865_v13 = vrot.slane %v10863_v54, 5  ;;  %v10871_v12 = vrot.slane %v10869_v36, 5  ;;  %v17662_v23 = vadd.f32 %v17465_v4, %v7679_v7  ;;  %v18611_v7 = vld [vmem:[#allocation41_spill] sm:$0xff]  ;;  %v18612_v52 = vld [vmem:[#allocation48_spill] sm:$0xff]  ;;  %p13478_p12 = pnand %p13477_p11, %p13620_p5  ;;  %p13485_p2 = por %p13484_p1, %p13483_p0 }
 0x3fa   : > { %v10875_v9 = vrot.slane %v10873_v18, 4  ;;  %v10881_v47 = vrot.slane %v10879_v39, 5  ;;  %v7683_v57 = vadd.f32 %v17476_v62, %v18609_v8  ;;  %v17669_v29 = vadd.f32 %v17478_v58, %v7677_v33  ;;  %v11322_v59 = vld [vmem:[#allocation5 + $0x50] ss:$2 sm:$0xff]  ;;  %v11338_v35 = vld [vmem:[#allocation5 + $0x51] ss:$2 sm:$0xff]  ;;  %v8596_v1 = vpop.f32.mrf.mxu1  ;;  %v9303_v19 = vpop.f32.mrf.mxu0 }
 0x3fb   : > { %v11347_v20 = vadd.f32 %v11336_v37, %v11320_v46  ;;  %v10866_v30 = vor.u32 %v10865_v13, %v10862_v49  ;;  %v7681_v4 = vadd.f32 %v17483_v34, %v18610_v2  ;;  %v17674_v51 = vadd.f32 %v17498_v48, %v7682_v16  ;;  %v18613_v48 = vld [vmem:[#allocation49_spill] sm:$0xff]  ;;  %v18614_v49 = vld [vmem:[#allocation15_spill] sm:$0xff]  ;;  %p13479_p13 = pneg %p13478_p12 }
 0x3fc   : > { %v11348_v43 = vadd.f32 %v11338_v35, %v11322_v59  ;;  %v10876_v40 = vor.u32 %v10875_v9, %v10871_v12  ;;  %v8674_v62 = vadd.f32 %v17500_v10, %v18611_v7  ;;  %v17679_v58 = vadd.f32 %v17509_v42, %v7680_v44  ;;  %v11324_v5 = vld [vmem:[#allocation5 + $0x60] ss:$2 sm:$0xff]  ;;  %v11340_v33 = vld [vmem:[#allocation5 + $0x61] ss:$2 sm:$0xff]  ;;  %v13160_v10 = vpop.f32.mrf.mxu1  ;;  %v13187_v38 = vpop.f32.mrf.mxu0  ;;  %v18615_v13 = vld [vmem:[#allocation55_spill] sm:$0xff] }
 0x3fd   : > { %v11326_v22 = vld [vmem:[#allocation5 + $0x70] ss:$2 sm:$0xff]  ;;  %v8672_v11 = vadd.f32 %v17511_v15, %v18612_v52  ;;  %v17684_v34 = vadd.f32 %v17521_v3, %v7683_v57  ;;  %v8675_v16 = vadd.f32 %v17523_v24, %v18613_v48  ;;  %v17689_v56 = vadd.f32 %v17525_v41, %v7681_v4  ;;  %v11342_v42 = vld [vmem:[#allocation5 + $0x71] ss:$2 sm:$0xff]  ;;  %v18617_v57 = vld [vmem:[#allocation58_spill] sm:$0xff]  ;;  %p13486_p3 = pnand %p13485_p2, %p13479_p13 }
 0x3fe   : > { %v11353_v54 = vpack.c.bf16 %v11348_v43, %v11347_v20  ;;  %v11349_v36 = vadd.f32 %v11340_v33, %v11324_v5  ;;  %v10867_v18 = vrot.slane %v10866_v30, 4  ;;  %v10877_v39 = vrot.slane %v10876_v40, 4  ;;  %v8609_v46 = vpop.f32.mrf.mxu1  ;;  %v18616_v9 = vld [vmem:[#allocation39_spill] sm:$0xff]  ;;  %v18619_v30 = vld [vmem:[#allocation44_spill] sm:$0xff]  ;;  %v18620_v2 = vld [vmem:[#allocation69_spill] sm:$0xff] }
 0x3ff   : > { %v11350_v44 = vadd.f32 %v11342_v42, %v11326_v22  ;;  %v8673_v15 = vadd.f32 %v17527_v53, %v18614_v49  ;;  %v17694_v3 = vadd.f32 %v17546_v60, %v8674_v62  ;;  %v8678_v24 = vadd.f32 %v17532_v32, %v18615_v13  ;;  %v18618_v53 = vld [vmem:[#allocation59_spill] sm:$0xff]  ;;  %v9306_v60 = vpop.f32.mrf.mxu0  ;;  %v18621_v4 = vld [vmem:[#allocation38_spill] sm:$0xff]  ;;  %v18625_v22 = vld [vmem:[#allocation73_spill] sm:$0xff] }
 0x400   : > { %13316 = vmatprep.mubr.msk.bf16.mxu0 %vm1031_vm2, %v11353_v54  ;;  %v10872_v41 = vsel %vm13974_vm8, %v10867_v18, %v10871_v12  ;;  %v10882_v37 = vsel %vm13974_vm8, %v10877_v39, %v10881_v47  ;;  %v17704_v8 = vadd.f32 %v18616_v9, %v8672_v11  ;;  %v8676_v59 = vadd.f32 %v18618_v53, %v18617_v57  ;;  %v13161_v40 = vpop.f32.mrf.mxu1  ;;  %v18622_v12 = vld [vmem:[#allocation51_spill] sm:$0xff]  ;;  %v18624_v47 = vld [vmem:[#allocation60_spill] sm:$0xff]  ;;  %v18626_v33 = vld [vmem:[#allocation14_spill] sm:$0xff] }
 0x401   : > { %v11354_v35 = vpack.c.bf16 %v11350_v44, %v11349_v36  ;;  %v12293_v20 = vcombine.low %v10872_v41, %v10882_v37  ;;  %v17709_v32 = vadd.f32 %v18619_v30, %v8675_v16  ;;  %v8679_v43 = vadd.f32 %v18621_v4, %v18620_v2  ;;  %v13190_v11 = vpop.f32.mrf.mxu0  ;;  %v18627_v16 = vld [vmem:[#allocation75_spill] sm:$0xff]  ;;  %v18628_v54 = vld [vmem:[#allocation13_spill] sm:$0xff]  ;;  %v18633_v57 = vld [vmem:[#allocation46_spill] sm:$0xff] }
 0x402   : > { %v17714_v7 = vadd.f32 %v18622_v12, %v8673_v15  ;;  %v8677_v62 = vadd.f32 %v18624_v47, %v18623_v45  ;;  %v17719_v5 = vadd.f32 %v17599_v0, %v8678_v24  ;;  %v8682_v52 = vadd.f32 %v18626_v33, %v18625_v22  ;;  %v8612_v18 = vpop.f32.mrf.mxu1  ;;  %v18629_v0 = vld [vmem:[#allocation74_spill] sm:$0xff]  ;;  %v18630_v49 = vld [vmem:[#allocation71_spill] sm:$0xff] }
 0x403   : > { %13317 = vmatmul.mubr.msk.bf16.gmra.mxu0 %vm1031_vm2, %v11354_v35  ;;  %13307 = vmatmul.mubr.msk.bf16.gmra.mxu1 %vm6484_vm11, %v12293_v20  ;;  %v17726_v48 = vadd.f32 %v17611_v21, %v8676_v59  ;;  %v8680_v42 = vadd.f32 %v18628_v54, %v18627_v16  ;;  %v17731_v36 = vadd.f32 %v17620_v50, %v8679_v43  ;;  %v9319_v21 = vpop.f32.mrf.mxu0  ;;  %v18631_v24 = vld [vmem:[#allocation22_spill] sm:$0xff]  ;;  %v18632_v50 = vld [vmem:[#allocation27_spill] sm:$0xff] }
 0x404   : > { %v8683_v39 = vadd.f32 %v17605_v28, %v18629_v0  ;;  %v17736_v44 = vadd.f32 %v17651_v26, %v8677_v62  ;;  %v8681_v15 = vadd.f32 %v17617_v14, %v18630_v49  ;;  %v17740_v13 = vadd.f32 %v13186_v25, %v8682_v52  ;;  %v13164_v53 = vpop.f32.mrf.mxu1  ;;  %v18634_v14 = vld [vmem:[#allocation43_spill] sm:$0xff]  ;;  %v18635_v35 = vld [vmem:[#allocation30_spill] sm:$0xff] }
 0x405   : > { %v8686_v41 = vadd.f32 %v17636_v31, %v18631_v24  ;;  %v17744_v37 = vadd.f32 %v9303_v19, %v8680_v42  ;;  %v8684_v9 = vadd.f32 %v17653_v63, %v18632_v50  ;;  %v8687_v28 = vadd.f32 %v17664_v55, %v18633_v57  ;;  %v13191_v30 = vpop.f32.mrf.mxu0  ;;  %v18636_v19 = vld [vmem:[#allocation62_spill] sm:$0xff]  ;;  %v18637_v55 = vld [vmem:[#allocation68_spill] sm:$0xff]  ;;  %v18638_v45 = vld [vmem:[#allocation35_spill] sm:$0xff] }
 0x406   : > { %v17750_v26 = vadd.f32 %v13187_v38, %v8683_v39  ;;  %v17752_v59 = vadd.f32 %v9306_v60, %v8681_v15  ;;  %v8685_v25 = vadd.f32 %v8596_v1, %v18634_v14  ;;  %v8690_v20 = vadd.f32 %v13160_v10, %v18635_v35  ;;  %v8625_v43 = vpop.f32.mrf.mxu1  ;;  %v18639_v47 = vld [vmem:[#allocation42_spill] sm:$0xff] }
 0x407   : > { %v17756_v2 = vadd.f32 %v13190_v11, %v8686_v41  ;;  %v17758_v31 = vadd.f32 %v9319_v21, %v8684_v9  ;;  %v8688_v4 = vadd.f32 %v8609_v46, %v18636_v19  ;;  %v17761_v63 = vadd.f32 %v13191_v30, %v8687_v28  ;;  %v9322_v38 = vpop.f32.mrf.mxu0  ;;  %v18640_v1 = vld [vmem:[#allocation70_spill] sm:$0xff] }
 0x408   : > { %v8691_v12 = vadd.f32 %v13161_v40, %v18637_v55  ;;  %v8689_v60 = vadd.f32 %v8612_v18, %v18638_v45  ;;  %v8694_v62 = vadd.f32 %v13164_v53, %v18639_v47  ;;  %v8692_v22 = vadd.f32 %v8625_v43, %v18640_v1  ;;  %v13165_v33 = vpop.f32.mrf.mxu1 }
 0x409   : > { %v17767_v10 = vadd.f32 %v9322_v38, %v8685_v25  ;;  %v8695_v52 = vadd.f32 %v13165_v33, %v17628_v27 }
 0x40a   : > { %v13194_v11 = vpop.f32.mrf.mxu0  ;;  %v8628_v16 = vpop.f32.mrf.mxu1 }
 0x40b   : > { %v17770_v46 = vadd.f32 %v13194_v11, %v8690_v20  ;;  %v8693_v54 = vadd.f32 %v8628_v16, %v17634_v17 }
 0x40c   : > { %v9335_v42 = vpop.f32.mrf.mxu0  ;;  %v13168_v40 = vpop.f32.mrf.mxu1 }
 0x40d   : > { %v17773_v0 = vadd.f32 %v9335_v42, %v8688_v4  ;;  %v8698_v18 = vadd.f32 %v13168_v40, %v17647_v61 }
 0x40e   : > { %v13195_v39 = vpop.f32.mrf.mxu0  ;;  %v8641_v49 = vpop.f32.mrf.mxu1 }
 0x40f   : > { %v17776_v15 = vadd.f32 %v13195_v39, %v8691_v12  ;;  %v8696_v21 = vadd.f32 %v8641_v49, %v17656_v6 }
 0x410   : > { %v9338_v24 = vpop.f32.mrf.mxu0  ;;  %v13169_v27 = vpop.f32.mrf.mxu1 }
 0x411   : > { %v17779_v41 = vadd.f32 %v9338_v24, %v8689_v60  ;;  %v8699_v50 = vadd.f32 %v13169_v27, %v17662_v23 }
 0x412   : > { %v8644_v9 = vpop.f32.mrf.mxu1 }
 0x413   : > { %v13198_v17 = vpop.f32.mrf.mxu0  ;;  %v8697_v57 = vadd.f32 %v8644_v9, %v17669_v29 }
 0x414   : > { %v17783_v28 = vadd.f32 %v13198_v17, %v8694_v62  ;;  %v13172_v61 = vpop.f32.mrf.mxu1 }
 0x415   : > { %v9351_v53 = vpop.f32.mrf.mxu0  ;;  %v8702_v25 = vadd.f32 %v13172_v61, %v17674_v51 }
 0x416   : > { %v17785_v14 = vadd.f32 %v9351_v53, %v8692_v22  ;;  %v8657_v6 = vpop.f32.mrf.mxu1 }
 0x417   : > { %v13199_v35 = vpop.f32.mrf.mxu0  ;;  %v8700_v30 = vadd.f32 %v8657_v6, %v17679_v58 }
 0x418   : > { %v17788_v20 = vadd.f32 %v13199_v35, %v8695_v52  ;;  %v13173_v23 = vpop.f32.mrf.mxu1 }
 0x419   : > { %v9354_v19 = vpop.f32.mrf.mxu0  ;;  %v8703_v29 = vadd.f32 %v13173_v23, %v17684_v34 }
 0x41a   : > { %v17791_v4 = vadd.f32 %v9354_v19, %v8693_v54  ;;  %v8660_v43 = vpop.f32.mrf.mxu1 }
 0x41b   : > { %v8701_v55 = vadd.f32 %v8660_v43, %v17689_v56 }
 0x41c   : > { %v13202_v12 = vpop.f32.mrf.mxu0 }
 0x41d   : > { %v17795_v38 = vadd.f32 %v13202_v12, %v8698_v18 }
 0x41e   : > { %v9367_v45 = vpop.f32.mrf.mxu0 }
 0x41f   : > { %v17797_v51 = vadd.f32 %v9367_v45, %v8696_v21 }
 0x420   : > { %v13203_v60 = vpop.f32.mrf.mxu0 }
 0x421   : > { %v17799_v47 = vadd.f32 %v13203_v60, %v8699_v50 }
 0x422   : > { %v9370_v62 = vpop.f32.mrf.mxu0 }
 0x423   : > { %v17801_v58 = vadd.f32 %v9370_v62, %v8697_v57 }
 0x428   : > { %v13206_v1 = vpop.f32.mrf.mxu0 }
 0x429   : > { %v17803_v22 = vadd.f32 %v13206_v1, %v8702_v25 }
 0x42a   : > { %v17805_v33 = vpop.f32.mrf.mxu1  ;;  %v9383_v34 = vpop.f32.mrf.mxu0 }
 0x42b   : > { %v17807_v52 = vadd.f32 %v9383_v34, %v8700_v30 }
 0x42c   : > { %v17809_v56 = vpop.f32.mrf.mxu1  ;;  %v13207_v11 = vpop.f32.mrf.mxu0 }
 0x42d   : > { %v17811_v16 = vadd.f32 %v13207_v11, %v8703_v29 }
 0x42e   : > { %v17813_v54 = vpop.f32.mrf.mxu1  ;;  %v9386_v42 = vpop.f32.mrf.mxu0 }
 0x42f   : > { %v17815_v40 = vadd.f32 %v9386_v42, %v8701_v55 }
 0x430   : > { %v17817_v18 = vpop.f32.mrf.mxu1  ;;  %v17819_v39 = vpop.f32.mrf.mxu0 }
 0x432   : > { %v17821_v21 = vpop.f32.mrf.mxu0 }
 0x433   : > { %v13216_v49 = vpop.f32.mrf.mxu1 }
 0x434   : > { %v17824_v24 = vadd.f32 %v13216_v49, %v17719_v5  ;;  %v17828_v50 = vpop.f32.mrf.mxu0 }
 0x435   : > { %v17826_v27 = vpop.f32.mrf.mxu1 }
 0x436   : > { %v17830_v17 = vpop.f32.mrf.mxu0 }
 0x437   : > { %v13217_v9 = vpop.f32.mrf.mxu1 }
 0x438   : > { %v17833_v57 = vadd.f32 %v13217_v9, %v17731_v36  ;;  %v17837_v61 = vpop.f32.mrf.mxu0 }
 0x439   : > { %v17835_v53 = vpop.f32.mrf.mxu1 }
 0x43a   : > { %v17839_v25 = vpop.f32.mrf.mxu0 }
 0x43c   : > { %v13220_v35 = vpop.f32.mrf.mxu1  ;;  %v17844_v6 = vpop.f32.mrf.mxu0 }
 0x43d   : > { %v17842_v5 = vadd.f32 %v13220_v35, %v17740_v13 }
 0x43e   : > { %v9998_v30 = vpop.f32.mrf.mxu1  ;;  %v17849_v23 = vpop.f32.mrf.mxu0 }
 0x43f   : > { %v17847_v19 = vadd.f32 %v9998_v30, %v17744_v37 }
 0x440   : > { %v13221_v36 = vpop.f32.mrf.mxu1  ;;  %v17854_v43 = vpop.f32.mrf.mxu0 }
 0x441   : > { %v17852_v29 = vadd.f32 %v13221_v36, %v17750_v26 }
 0x442   : > { %v10001_v55 = vpop.f32.mrf.mxu1  ;;  %v17859_v13 = vpop.f32.mrf.mxu0 }
 0x443   : > { %v17857_v12 = vadd.f32 %v10001_v55, %v17752_v59 }
 0x444   : > { %v13224_v45 = vpop.f32.mrf.mxu1  ;;  %v17864_v37 = vpop.f32.mrf.mxu0 }
 0x445   : > { %v17862_v60 = vadd.f32 %v13224_v45, %v17756_v2 }
 0x446   : > { %v10014_v62 = vpop.f32.mrf.mxu1  ;;  %v17869_v26 = vpop.f32.mrf.mxu0 }
 0x447   : > { %v17867_v1 = vadd.f32 %v10014_v62, %v17758_v31 }
 0x448   : > { %v13225_v34 = vpop.f32.mrf.mxu1  ;;  %v17874_v59 = vpop.f32.mrf.mxu0 }
 0x449   : > { %v17872_v11 = vadd.f32 %v13225_v34, %v17761_v63 }
 0x44a   : > { %v10017_v42 = vpop.f32.mrf.mxu1  ;;  %v17879_v2 = vpop.f32.mrf.mxu0 }
 0x44b   : > { %v17877_v49 = vadd.f32 %v10017_v42, %v17767_v10 }
 0x44c   : > { %v13228_v9 = vpop.f32.mrf.mxu1  ;;  %v17884_v31 = vpop.f32.mrf.mxu0 }
 0x44d   : > { %v17882_v35 = vadd.f32 %v13228_v9, %v17770_v46 }
 0x44e   : > { %v10030_v30 = vpop.f32.mrf.mxu1  ;;  %v17892_v45 = vpop.f32.mrf.mxu0 }
 0x44f   : > { %v17887_v36 = vadd.f32 %v10030_v30, %v17773_v0 }
 0x450   : > { %v13229_v63 = vpop.f32.mrf.mxu1  ;;  %v17897_v42 = vpop.f32.mrf.mxu0 }
 0x451   : > { %18641 = vst [vmem:[#allocation72_spill] sm:$0xff] %v17887_v36  ;;  %v17890_v55 = vadd.f32 %v13229_v63, %v17776_v15 }
 0x452   : > { %v10033_v10 = vpop.f32.mrf.mxu1  ;;  %v17905_v36 = vpop.f32.mrf.mxu0 }
 0x453   : > { %v17895_v62 = vadd.f32 %v10033_v10, %v17779_v41 }
 0x454   : > { %v17913_v10 = vpop.f32.mrf.mxu0 }
 0x455   : > { %18642 = vst [vmem:[#allocation65_spill] sm:$0xff] %v17895_v62  ;;  %v13232_v34 = vpop.f32.mrf.mxu1 }
 0x456   : > { %v17900_v46 = vadd.f32 %v13232_v34, %v17783_v28 }
 0x457   : > { %v10046_v9 = vpop.f32.mrf.mxu1 }
 0x458   : > { %v17903_v0 = vadd.f32 %v10046_v9, %v17785_v14  ;;  %v17921_v9 = vpop.f32.mrf.mxu0 }
 0x459   : > { %v13233_v30 = vpop.f32.mrf.mxu1 }
 0x45a   : > { %18643 = vst [vmem:[#allocation10_spill] sm:$0xff] %v17903_v0  ;;  %v17908_v15 = vadd.f32 %v13233_v30, %v17788_v20 }
 0x45b   : > { %v10049_v63 = vpop.f32.mrf.mxu1 }
 0x45c   : > { %v17911_v41 = vadd.f32 %v10049_v63, %v17791_v4  ;;  %v17929_v63 = vpop.f32.mrf.mxu0 }
 0x45d   : > { %v13236_v62 = vpop.f32.mrf.mxu1 }
 0x45e   : > { %18644 = vst [vmem:[#allocation45_spill] sm:$0xff] %v17911_v41  ;;  %v17916_v28 = vadd.f32 %v13236_v62, %v17795_v38 }
 0x45f   : > { %v10062_v34 = vpop.f32.mrf.mxu1 }
 0x460   : > { %v17919_v14 = vadd.f32 %v10062_v34, %v17797_v51  ;;  %v17937_v34 = vpop.f32.mrf.mxu0 }
 0x461   : > { %v13237_v0 = vpop.f32.mrf.mxu1 }
 0x462   : > { %18645 = vst [vmem:[#allocation23_spill] sm:$0xff] %v17919_v14  ;;  %v17924_v20 = vadd.f32 %v13237_v0, %v17799_v47 }
 0x463   : > { %v10065_v30 = vpop.f32.mrf.mxu1 }
 0x464   : > { %v17927_v4 = vadd.f32 %v10065_v30, %v17801_v58  ;;  %v17945_v30 = vpop.f32.mrf.mxu0 }
 0x466   : > { %v13240_v41 = vpop.f32.mrf.mxu1 }
 0x467   : > { %v17932_v38 = vadd.f32 %v13240_v41, %v17803_v22  ;;  %v10095_v22 = vadd.f32 %v17805_v33, %v17694_v3  ;;  %v10093_v41 = vadd.f32 %v17809_v56, %v17704_v8 }
 0x468   : > { %v10078_v62 = vpop.f32.mrf.mxu1 }
 0x469   : > { %18646 = vst [vmem:[#allocation47_spill] sm:$0xff] %v17932_v38  ;;  %v17935_v51 = vadd.f32 %v10078_v62, %v17807_v52  ;;  %v17951_v52 = vpop.f32.mrf.mxu0 }
 0x46a   : > { %v13241_v14 = vpop.f32.mrf.mxu1 }
 0x46b   : > { %18647 = vst [vmem:[#allocation52_spill] sm:$0xff] %v17935_v51  ;;  %v17940_v47 = vadd.f32 %v13241_v14, %v17811_v16  ;;  %v10421_v51 = vadd.f32 %v17819_v39, %v10095_v22  ;;  %v10419_v16 = vadd.f32 %v17821_v21, %v10093_v41  ;;  %v17959_v3 = vpop.f32.mrf.mxu0 }
 0x46c   : > { %v10081_v0 = vpop.f32.mrf.mxu1 }
 0x46d   : > { %18648 = vst [vmem:[#allocation63_spill] sm:$0xff] %v17940_v47  ;;  %v17943_v58 = vadd.f32 %v10081_v0, %v17815_v40  ;;  %v10096_v40 = vadd.f32 %v17813_v54, %v17709_v32  ;;  %v10094_v0 = vadd.f32 %v17817_v18, %v17714_v7  ;;  %v17964_v41 = vpop.f32.mrf.mxu0  ;;  %v10097_v32 = vadd.f32 %v17826_v27, %v17726_v48 }
 0x46e   : > { %v10425_v18 = vadd.f32 %v17837_v61, %v17824_v24  ;;  %v10426_v48 = vadd.f32 %v17844_v6, %v17833_v57  ;;  %v10427_v57 = vadd.f32 %v17859_v13, %v17847_v19 }
 0x46f   : > { %18649 = vst [vmem:[#allocation26_spill] sm:$0xff] %v17943_v58  ;;  %v10422_v8 = vadd.f32 %v17828_v50, %v10096_v40  ;;  %v10420_v56 = vadd.f32 %v17830_v17, %v10094_v0  ;;  %v10423_v50 = vadd.f32 %v17839_v25, %v10097_v32  ;;  %v17972_v17 = vpop.f32.mrf.mxu0 }
 0x471   : > { %v17979_v24 = vpop.f32.mrf.mxu0 }
 0x472   : > { %v13280_v62 = vpop.f32.mrf.mxu1 }
 0x473   : > { %v11147_v58 = vadd.f32 %v13280_v62, %v10421_v51  ;;  %v17982_v0 = vpop.f32.mrf.mxu0 }
 0x474   : > { %v11018_v14 = vpop.f32.mrf.mxu1 }
 0x475   : > { %v11145_v47 = vadd.f32 %v11018_v14, %v10419_v16 }
 0x476   : > { %v13281_v33 = vpop.f32.mrf.mxu1 }
 0x477   : > { %v11177_v38 = vadd.f32 %v11147_v58, %v11145_v47  ;;  %v11148_v21 = vadd.f32 %v13281_v33, %v10422_v8 }
 0x478   : > { %v11021_v39 = vpop.f32.mrf.mxu1 }
 0x479   : > { %11193 = vst.msk [vmem:[#allocation4] sm:$0xff] %vm6484_vm11, %v11177_v38  ;;  %v11146_v22 = vadd.f32 %v11021_v39, %v10420_v56  ;;  %v10098_v38 = vadd.f32 %v17835_v53, %v17736_v44  ;;  %v10429_v53 = vadd.f32 %v17854_v43, %v17842_v5  ;;  %v10430_v39 = vadd.f32 %v17864_v37, %v17852_v29  ;;  %v18004_v29 = vld [vmem:[%s18153_s4] ss:$0 sm:$0xff] }
 0x47b   : > { %v11178_v7 = vadd.f32 %v11148_v21, %v11146_v22  ;;  %v10424_v27 = vadd.f32 %v17849_v23, %v10098_v38  ;;  %v17989_v23 = vpop.f32.mrf.mxu0  ;;  %v10428_v21 = vadd.f32 %v17869_v26, %v17857_v12 }
 0x47c   : > { %v13284_v54 = vpop.f32.mrf.mxu1 }
 0x47d   : > { %11194 = vst.msk [vmem:[#allocation4 + $0x8] sm:$0xff] %vm6484_vm11, %v11178_v7  ;;  %v11151_v47 = vadd.f32 %v13284_v54, %v10425_v18  ;;  %v17995_v7 = vpop.f32.mrf.mxu0 }
 0x47e   : > { %v11034_v51 = vpop.f32.mrf.mxu1 }
 0x47f   : > { %v11149_v58 = vadd.f32 %v11034_v51, %v10423_v50  ;;  %v17999_v50 = vpop.f32.mrf.mxu0  ;;  %v18010_v51 = vld [vmem:[%s18155_s6] ss:$0 sm:$0xff] }
 0x480   : > { %v13285_v62 = vpop.f32.mrf.mxu1 }
 0x481   : > { %v11179_v16 = vadd.f32 %v11151_v47, %v11149_v58  ;;  %v11152_v25 = vadd.f32 %v13285_v62, %v10426_v48  ;;  %v10433_v47 = vadd.f32 %v17874_v59, %v17862_v60  ;;  %v10431_v58 = vadd.f32 %v17879_v2, %v17867_v1 }
 0x482   : > { %v11037_v61 = vpop.f32.mrf.mxu1  ;;  %v10432_v60 = vadd.f32 %v17892_v45, %v17877_v49 }
 0x483   : > { %11195 = vst.msk [vmem:[#allocation4 + $0x10] sm:$0xff] %vm6484_vm11, %v11179_v16  ;;  %v11150_v14 = vadd.f32 %v11037_v61, %v10424_v27 }
 0x484   : > { %v11209_v19 = vld [vmem:[#allocation4] ss:$2 sm:$0xff]  ;;  %v11225_v43 = vld [vmem:[#allocation4 + $0x1] ss:$2 sm:$0xff] }
 0x485   : > { %v11180_v40 = vadd.f32 %v11152_v25, %v11150_v14  ;;  %v11240_v18 = vadd.f32 %v11225_v43, %v11209_v19  ;;  %v10437_v19 = vadd.f32 %v17897_v42, %v17882_v35  ;;  %v18650_v43 = vld [vmem:[#allocation72_spill] sm:$0xff] }
 0x487   : > { %11196 = vst.msk [vmem:[#allocation4 + $0x18] sm:$0xff] %vm6484_vm11, %v11180_v40  ;;  %v13288_v44 = vpop.f32.mrf.mxu1  ;;  %v11450_v62 = vadd.f32 %v18004_v29, %v11240_v18  ;;  %v10434_v40 = vadd.f32 %v17884_v31, %v17872_v11 }
 0x488   : > { %v11155_v33 = vadd.f32 %v13288_v44, %v10429_v53 }
 0x489   : > { %v11050_v6 = vpop.f32.mrf.mxu1 }
 0x48a   : > { %v11153_v8 = vadd.f32 %v11050_v6, %v10427_v57 }
 0x48b   : > { %v13289_v56 = vpop.f32.mrf.mxu1 }
 0x48c   : > { %v11181_v22 = vadd.f32 %v11155_v33, %v11153_v8  ;;  %v11156_v5 = vadd.f32 %v13289_v56, %v10430_v39 }
 0x48d   : > { %v11053_v32 = vpop.f32.mrf.mxu1 }
 0x48e   : > { %11197 = vst.msk [vmem:[#allocation4 + $0x20] sm:$0xff] %vm6484_vm11, %v11181_v22  ;;  %v11154_v13 = vadd.f32 %v11053_v32, %v10428_v21  ;;  %v11211_v12 = vld [vmem:[#allocation4 + $0x10] ss:$2 sm:$0xff]  ;;  %v11227_v37 = vld [vmem:[#allocation4 + $0x11] ss:$2 sm:$0xff] }
 0x48f   : > { %v11241_v48 = vadd.f32 %v11227_v37, %v11211_v12 }
 0x490   : > { %v11182_v54 = vadd.f32 %v11156_v5, %v11154_v13  ;;  %v10435_v13 = vadd.f32 %v17905_v36, %v18650_v43 }
 0x491   : > { %v11451_v6 = vadd.f32 %v18004_v29, %v11241_v48 }
 0x492   : > { %11198 = vst.msk [vmem:[#allocation4 + $0x28] sm:$0xff] %vm6484_vm11, %v11182_v54 }
 0x494   : > { %v13314_v26 = vpop.f32.mrf.mxu0 }
 0x495   : > { %v13292_v38 = vpop.f32.mrf.mxu1  ;;  %v11421_v33 = vadd.f32 %v13314_v26, %v18010_v51  ;;  %v10438_v26 = vadd.f32 %v17913_v10, %v17890_v55  ;;  %v10441_v10 = vadd.f32 %v17929_v63, %v17900_v46 }
 0x496   : > { %v11412_v27 = vpop.f32.mrf.mxu0  ;;  %v11159_v25 = vadd.f32 %v13292_v38, %v10433_v47  ;;  %v18651_v38 = vld [vmem:[#allocation65_spill] sm:$0xff] }
 0x497   : > { %v11066_v16 = vpop.f32.mrf.mxu1  ;;  %v11413_v61 = vadd.f32 %v18010_v51, %v11412_v27  ;;  %v10436_v47 = vadd.f32 %v17921_v9, %v18651_v38  ;;  %v18652_v9 = vld [vmem:[#allocation10_spill] sm:$0xff] }
 0x498   : > { %v11157_v14 = vadd.f32 %v11066_v16, %v10431_v58  ;;  %v13315_v44 = vpop.f32.mrf.mxu0 }
 0x499   : > { %v13293_v53 = vpop.f32.mrf.mxu1  ;;  %v11458_v1 = vadd.f32 %v11450_v62, %v11413_v61  ;;  %v11213_v59 = vld [vmem:[#allocation4 + $0x20] ss:$2 sm:$0xff]  ;;  %v11229_v2 = vld [vmem:[#allocation4 + $0x21] ss:$2 sm:$0xff]  ;;  %v11424_v27 = vadd.f32 %v13315_v44, %v18010_v51 }
 0x49a   : > { %v11183_v57 = vadd.f32 %v11159_v25, %v11157_v14  ;;  %v11242_v8 = vadd.f32 %v11229_v2, %v11213_v59  ;;  %v11415_v56 = vpop.f32.mrf.mxu0  ;;  %v11160_v11 = vadd.f32 %v13293_v53, %v10434_v40  ;;  %v10439_v14 = vadd.f32 %v17937_v34, %v18652_v9  ;;  %v18653_v2 = vld [vmem:[#allocation45_spill] sm:$0xff] }
 0x49b   : > { %v11069_v39 = vpop.f32.mrf.mxu1  ;;  %11466 = vst.msk [vmem:[%s18026_s9] sm:$0xff] %vm6484_vm11, %v11458_v1  ;;  %v11416_v49 = vadd.f32 %v18010_v51, %v11415_v56  ;;  %v10442_v59 = vadd.f32 %v17945_v30, %v17908_v15  ;;  %v10445_v56 = vadd.f32 %v17959_v3, %v17916_v28 }
 0x49c   : > { %11199 = vst.msk [vmem:[#allocation4 + $0x30] sm:$0xff] %vm6484_vm11, %v11183_v57  ;;  %v11158_v31 = vadd.f32 %v11069_v39, %v10432_v60  ;;  %v11452_v45 = vadd.f32 %v18004_v29, %v11242_v8  ;;  %v10440_v57 = vadd.f32 %v17951_v52, %v18653_v2  ;;  %v18654_v39 = vld [vmem:[#allocation23_spill] sm:$0xff] }
 0x49d   : > { %v11459_v21 = vadd.f32 %v11451_v6, %v11416_v49 }
 0x49e   : > { %v11184_v22 = vadd.f32 %v11160_v11, %v11158_v31  ;;  %v11460_v32 = vadd.f32 %v11452_v45, %v11421_v33  ;;  %v10443_v11 = vadd.f32 %v17964_v41, %v18654_v39  ;;  %v10446_v31 = vadd.f32 %v17972_v17, %v17924_v20  ;;  %v18655_v17 = vld [vmem:[#allocation47_spill] sm:$0xff] }
 0x49f   : > { %11467 = vst.msk [vmem:[%s18026_s9 + $0x8] sm:$0xff] %vm6484_vm11, %v11459_v21  ;;  %v10444_v45 = vadd.f32 %v17979_v24, %v17927_v4  ;;  %v10449_v4 = vadd.f32 %v17982_v0, %v18655_v17  ;;  %v18656_v24 = vld [vmem:[#allocation52_spill] sm:$0xff] }
 0x4a0   : > { %11200 = vst.msk [vmem:[#allocation4 + $0x38] sm:$0xff] %vm6484_vm11, %v11184_v22  ;;  %v13296_v5 = vpop.f32.mrf.mxu1  ;;  %11468 = vst.msk [vmem:[%s18026_s9 + $0x10] sm:$0xff] %vm6484_vm11, %v11460_v32 }
 0x4a1   : > { %v11163_v18 = vadd.f32 %v13296_v5, %v10437_v19 }
 0x4a2   : > { %v11082_v54 = vpop.f32.mrf.mxu1 }
 0x4a3   : > { %v11161_v12 = vadd.f32 %v11082_v54, %v10435_v13 }
 0x4a4   : > { %v13297_v37 = vpop.f32.mrf.mxu1 }
 0x4a5   : > { %v11185_v58 = vadd.f32 %v11163_v18, %v11161_v12  ;;  %v11164_v36 = vadd.f32 %v13297_v37, %v10438_v26  ;;  %v10447_v12 = vadd.f32 %v17989_v23, %v18656_v24 }
 0x4a6   : > { %v11085_v62 = vpop.f32.mrf.mxu1 }
 0x4a7   : > { %v11215_v48 = vld [vmem:[#allocation4 + $0x30] ss:$2 sm:$0xff]  ;;  %v11231_v35 = vld [vmem:[#allocation4 + $0x31] ss:$2 sm:$0xff]  ;;  %11201 = vst.msk [vmem:[#allocation4 + $0x40] sm:$0xff] %vm6484_vm11, %v11185_v58  ;;  %v11162_v42 = vadd.f32 %v11085_v62, %v10436_v47 }
 0x4a8   : > { %v11243_v16 = vadd.f32 %v11231_v35, %v11215_v48  ;;  %v18657_v48 = vld [vmem:[#allocation63_spill] sm:$0xff] }
 0x4a9   : > { %v11186_v61 = vadd.f32 %v11164_v36, %v11162_v42  ;;  %v10450_v35 = vadd.f32 %v17995_v7, %v18657_v48  ;;  %v18658_v36 = vld [vmem:[#allocation26_spill] sm:$0xff] }
 0x4aa   : > { %v11453_v25 = vadd.f32 %v18004_v29, %v11243_v16  ;;  %v10448_v42 = vadd.f32 %v17999_v50, %v18658_v36 }
 0x4ab   : > { %11202 = vst.msk [vmem:[#allocation4 + $0x48] sm:$0xff] %vm6484_vm11, %v11186_v61  ;;  %v13300_v55 = vpop.f32.mrf.mxu1 }
 0x4ac   : > { %v11461_v40 = vadd.f32 %v11453_v25, %v11424_v27  ;;  %v11167_v60 = vadd.f32 %v13300_v55, %v10441_v10 }
 0x4ad   : > { %v11098_v53 = vpop.f32.mrf.mxu1 }
 0x4ae   : > { %11469 = vst.msk [vmem:[%s18026_s9 + $0x18] sm:$0xff] %vm6484_vm11, %v11461_v40  ;;  %v11165_v1 = vadd.f32 %v11098_v53, %v10439_v14 }
 0x4af   : > { %v13301_v44 = vpop.f32.mrf.mxu1 }
 0x4b0   : > { %v11187_v6 = vadd.f32 %v11167_v60, %v11165_v1  ;;  %v11168_v46 = vadd.f32 %v13301_v44, %v10442_v59 }
 0x4b1   : > { %v11101_v33 = vpop.f32.mrf.mxu1 }
 0x4b2   : > { %11203 = vst.msk [vmem:[#allocation4 + $0x50] sm:$0xff] %vm6484_vm11, %v11187_v6  ;;  %v11166_v63 = vadd.f32 %v11101_v33, %v10440_v57  ;;  %v11217_v32 = vld [vmem:[#allocation4 + $0x40] ss:$2 sm:$0xff]  ;;  %v11233_v41 = vld [vmem:[#allocation4 + $0x41] ss:$2 sm:$0xff] }
 0x4b3   : > { %v11244_v19 = vadd.f32 %v11233_v41, %v11217_v32 }
 0x4b4   : > { %v11188_v34 = vadd.f32 %v11168_v46, %v11166_v63 }
 0x4b5   : > { %v13304_v8 = vpop.f32.mrf.mxu1  ;;  %v11454_v37 = vadd.f32 %v18004_v29, %v11244_v19 }
 0x4b6   : > { %11204 = vst.msk [vmem:[#allocation4 + $0x58] sm:$0xff] %vm6484_vm11, %v11188_v34  ;;  %v11171_v30 = vadd.f32 %v13304_v8, %v10445_v56 }
 0x4b7   : > { %v11114_v15 = vpop.f32.mrf.mxu1 }
 0x4b8   : > { %v11169_v49 = vadd.f32 %v11114_v15, %v10443_v11 }
 0x4b9   : > { %v13305_v52 = vpop.f32.mrf.mxu1 }
 0x4ba   : > { %v11189_v21 = vadd.f32 %v11171_v30, %v11169_v49  ;;  %v11172_v28 = vadd.f32 %v13305_v52, %v10446_v31 }
 0x4bb   : > { %v11117_v22 = vpop.f32.mrf.mxu1 }
 0x4bc   : > { %11205 = vst.msk [vmem:[#allocation4 + $0x60] sm:$0xff] %vm6484_vm11, %v11189_v21  ;;  %v11170_v3 = vadd.f32 %v11117_v22, %v10444_v45 }
 0x4bd   : > { %v11219_v43 = vld [vmem:[#allocation4 + $0x50] ss:$2 sm:$0xff]  ;;  %v11235_v13 = vld [vmem:[#allocation4 + $0x51] ss:$2 sm:$0xff] }
 0x4be   : > { %v11190_v5 = vadd.f32 %v11172_v28, %v11170_v3  ;;  %v11245_v20 = vadd.f32 %v11235_v13, %v11219_v43 }
 0x4c0   : > { %11206 = vst.msk [vmem:[#allocation4 + $0x68] sm:$0xff] %vm6484_vm11, %v11190_v5  ;;  %v11455_v23 = vadd.f32 %v18004_v29, %v11245_v20 }
 0x4c3   : > { %v13318_v54 = vpop.f32.mrf.mxu0  ;;  %v13308_v18 = vpop.f32.mrf.mxu1 }
 0x4c4   : > { %v11175_v58 = vadd.f32 %v13308_v18, %v10449_v4  ;;  %v11437_v25 = vadd.f32 %v13318_v54, %v18010_v51 }
 0x4c5   : > { %v11428_v26 = vpop.f32.mrf.mxu0  ;;  %v11130_v38 = vpop.f32.mrf.mxu1 }
 0x4c6   : > { %v11429_v47 = vadd.f32 %v18010_v51, %v11428_v26  ;;  %v11173_v62 = vadd.f32 %v11130_v38, %v10447_v12 }
 0x4c7   : > { %v11221_v27 = vld [vmem:[#allocation4 + $0x60] ss:$2 sm:$0xff]  ;;  %v11237_v0 = vld [vmem:[#allocation4 + $0x61] ss:$2 sm:$0xff]  ;;  %v13319_v16 = vpop.f32.mrf.mxu0  ;;  %v13309_v61 = vpop.f32.mrf.mxu1 }
 0x4c8   : > { %v11462_v55 = vadd.f32 %v11454_v37, %v11429_v47  ;;  %v11246_v10 = vadd.f32 %v11237_v0, %v11221_v27  ;;  %v11191_v9 = vadd.f32 %v11175_v58, %v11173_v62  ;;  %v11176_v50 = vadd.f32 %v13309_v61, %v10450_v35 }
 0x4c9   : > { %v11431_v14 = vpop.f32.mrf.mxu0  ;;  %v11133_v40 = vpop.f32.mrf.mxu1  ;;  %v11440_v33 = vadd.f32 %v13319_v16, %v18010_v51 }
 0x4ca   : > { %11470 = vst.msk [vmem:[%s18026_s9 + $0x20] sm:$0xff] %vm6484_vm11, %v11462_v55  ;;  %v11456_v7 = vadd.f32 %v18004_v29, %v11246_v10  ;;  %11207 = vst.msk [vmem:[#allocation4 + $0x70] sm:$0xff] %vm6484_vm11, %v11191_v9  ;;  %v11432_v53 = vadd.f32 %v18010_v51, %v11431_v14  ;;  %v11174_v60 = vadd.f32 %v11133_v40, %v10448_v42 }
 0x4cc   : > { %v11464_v1 = vadd.f32 %v11456_v7, %v11437_v25  ;;  %v11463_v44 = vadd.f32 %v11455_v23, %v11432_v53  ;;  %v11192_v59 = vadd.f32 %v11176_v50, %v11174_v60 }
 0x4ce   : > { %11472 = vst.msk [vmem:[%s18026_s9 + $0x30] sm:$0xff] %vm6484_vm11, %v11464_v1  ;;  %11471 = vst.msk [vmem:[%s18026_s9 + $0x28] sm:$0xff] %vm6484_vm11, %v11463_v44 }
 0x4cf   : > { %11208 = vst.msk [vmem:[#allocation4 + $0x78] sm:$0xff] %vm6484_vm11, %v11192_v59 }
 0x4d6   : > { %v11223_v2 = vld [vmem:[#allocation4 + $0x70] ss:$2 sm:$0xff]  ;;  %v11239_v57 = vld [vmem:[#allocation4 + $0x71] ss:$2 sm:$0xff] }
 0x4d7   : > { %v11247_v6 = vadd.f32 %v11239_v57, %v11223_v2 }
 0x4d9   : > { %v11457_v46 = vadd.f32 %v18004_v29, %v11247_v6 }
 0x4db   : > { %v11465_v63 = vadd.f32 %v11457_v46, %v11440_v33 }
 0x4dd   : > { %11473 = vst.msk [vmem:[%s18026_s9 + $0x38] sm:$0xff] %vm6484_vm11, %v11465_v63 }
 0x4de   : > { %13489 = shalt.err (!%p13486_p3)
}
 0x4df   : > { %s13490_s8 = scalar_lea.hbm %s18101_s17, 1024  ;;  %s13494_s29 = scalar_lea.hbm %s18156_s7, 2048 }
 0x4e0   : > { %p13491_p4 = scmp.ne.s32.totalorder %s18101_s17, %s13490_s8  ;;  %p13495_p9 = scmp.lt.s32.totalorder %s18101_s17, %s18156_s7 }
 0x4e1   : > { %p13496_p10 = scmp.lt.s32.totalorder %s13494_s29, %s13490_s8 }
 0x4e2   : > { %p13492_p7 = pnand %p13491_p4, %p13620_p5 }
 0x4e3   : > { %p13497_p11 = por %p13496_p10, %p13495_p9 }
 0x4e4   : > { %p13493_p8 = pneg %p13492_p7 }
 0x4e6   : > { %p13498_p12 = pnand %p13497_p11, %p13493_p8 }
 0x4e8   : > { %13501 = shalt.err (!%p13498_p12)
}
 0x4e9   : > { %s13540_s15 = smov 128   ;;  %s13541_s16 = smov 8  }
 0x4ea   : > { %13342 = dma.vmem_to_hbm [thread:$0]  (%p13620_p5), %s18103_s14, 1024, %s18101_s17, %s18109_s28, %s13540_s15, %s13540_s15, %s13541_s16  }
 0x4eb PF: > { %p13348_p13 = scmp.ge.s32.totalorder %s13536_s27, 2  ;;  %s11503_s18 = sand.u32 1, %s13524_s24  }
 0x4ec   : > { %s11504_s19 = scalar_lea.sflag [#allocation7], %s11503_s18 }
 0x4ed   : > { %p13345_p0 = pnand %p13348_p13, %p13624_p6 }
 0x4ef   : > { %p13346_p1 = pneg %p13345_p0 }
 0x4f1   : > { %13519 = dma.done.wait (%p13346_p1), %s11504_s19, 1024  }
 0x4f2   : > { %13521 = vsyncadd (%p13346_p1), %s11504_s19, 4294966272  ;;  %p17_p2 = scmp.ge.s32.totalorder %s13607_s30, 4   ;;  %s18659_s24 = smov %s13528_s25 }
 0x4f3   : > { %s18660_s25 = smov %s13532_s26  ;;  %s18661_s26 = smov %s13618_s10 }
 0x4f4   : > { %s18662_s27 = smov %s13607_s30  ;;  %19 = sbr.rel (!%p17_p2) target bundleno = 3 (0x3), region = 135 }
 0x4f9   :  { %11509 = vsyncpa [#allocation7], 1 }
 0x4fa   :  { %11511 = vsyncpa [#allocation7 + $0x1], 1 }

</bundles_post_ra>
